<compile_context>
chip_gen: v7x
topology: tpu7x:2x2x1
jax: 0.10.0
libtpu: 0.0.40
codegen_flags: <defaults>
</compile_context>

<pallas_src>
import functools

import numpy as np
import jax
import jax.numpy as jnp
from jax import lax
from jax.experimental import pallas as pl
from jax.experimental.pallas import tpu as pltpu

BN_EPS = 1e-5
DISCRETE = False          # SeperatedImpalaNetwork(discrete=False)
STEERING_N = 1
THROTTLE_N = 1

_VMEM_LIMIT = 32 * 1024 * 1024


# ---------------------------------------------------------------------------
# Pallas kernels
# ---------------------------------------------------------------------------
def _conv_pool_kernel(x_ref, band_ref, colsel_ref, rowsel_ref, shift_ref, out_ref,
                      *, Hc):
    """Fused Conv2d(3x3, pad=0) + folded BatchNorm + MaxPool2d(3, stride=2).

    Lane-dense layout: x_ref (1, H, W*Cin) f32, out_ref (1, Ph, Pw*Cout) f32.
    band_ref   (3, W*Cin, Wc*Cout)  conv_dtype   dx taps + BN scale folded in
    colsel_ref (3, Wc*Cout, Pw*Cout) f32         exact 0/1 column selection
    rowsel_ref (3, Ph, Hc)           f32         exact 0/1 row selection
    shift_ref  (1, Pw*Cout)          f32         BN/bias shift (post-pool: commutes)
    """
    cd = band_ref.dtype
    x = x_ref[0]                                             # (H, W*Cin) f32
    # 3x3 conv as three row-shifted band matmuls (dy = whole-row sublane offsets,
    # dx + Cin contraction folded into the band weights -> no lane relayouts).
    y = jnp.dot(x[0:Hc].astype(cd), band_ref[0], preferred_element_type=jnp.float32)
    y = y + jnp.dot(x[1:Hc + 1].astype(cd), band_ref[1],
                    preferred_element_type=jnp.float32)
    y = y + jnp.dot(x[2:Hc + 2].astype(cd), band_ref[2],
                    preferred_element_type=jnp.float32)       # (Hc, Wc*Cout) f32

    # MaxPool 3x3/s2: dx-max + stride-2 column subsample via selection matmuls,
    # then dy-max + stride-2 row subsample via row-selection matmuls.  The MXU has
    # slack here; this removes every strided / unaligned relayout and the per-row
    # unrolled loops of the previous version.
    m = jnp.dot(y, colsel_ref[0], preferred_element_type=jnp.float32)
    m = jnp.maximum(m, jnp.dot(y, colsel_ref[1], preferred_element_type=jnp.float32))
    m = jnp.maximum(m, jnp.dot(y, colsel_ref[2], preferred_element_type=jnp.float32))
    p = jnp.dot(rowsel_ref[0], m, preferred_element_type=jnp.float32)
    p = jnp.maximum(p, jnp.dot(rowsel_ref[1], m, preferred_element_type=jnp.float32))
    p = jnp.maximum(p, jnp.dot(rowsel_ref[2], m, preferred_element_type=jnp.float32))

    out_ref[0] = (p + shift_ref[...]).astype(out_ref.dtype)


def _resblock_kernel(x_ref, w1_ref, s1_ref, w2_ref, s2_ref, out_ref, pad_ref, *, Hs):
    """Fused ResBlock: relu -> conv3x3(pad=1)+bn -> relu -> conv3x3(pad=1)+bn -> +x.

    x_ref/out_ref (1, Hs, W*C) f32; w*_ref (3, W*C, W*C) band weights (BN folded);
    s*_ref (1, W*C) f32 shifts; pad_ref VMEM scratch (Hs+2, W*C) f32.
    """
    cd = w1_ref.dtype
    lanes = pad_ref.shape[1]
    zrow = jnp.zeros((1, lanes), pad_ref.dtype)
    # Only the two 1-row padding borders need zeroing; they are never overwritten
    # (the dx=1 padding is handled inside the band weights).
    pad_ref[0:1, :] = zrow
    pad_ref[Hs + 1:Hs + 2, :] = zrow

    x = x_ref[0]                                             # (Hs, W*C) f32
    pad_ref[pl.ds(1, Hs), :] = jnp.maximum(x, 0.0)
    p = pad_ref[...]
    y = jnp.dot(p[0:Hs].astype(cd), w1_ref[0], preferred_element_type=jnp.float32)
    y = y + jnp.dot(p[1:Hs + 1].astype(cd), w1_ref[1],
                    preferred_element_type=jnp.float32)
    y = y + jnp.dot(p[2:Hs + 2].astype(cd), w1_ref[2],
                    preferred_element_type=jnp.float32)
    h = jnp.maximum(y + s1_ref[...], 0.0)

    pad_ref[pl.ds(1, Hs), :] = h
    p = pad_ref[...]
    y = jnp.dot(p[0:Hs].astype(cd), w2_ref[0], preferred_element_type=jnp.float32)
    y = y + jnp.dot(p[1:Hs + 1].astype(cd), w2_ref[1],
                    preferred_element_type=jnp.float32)
    y = y + jnp.dot(p[2:Hs + 2].astype(cd), w2_ref[2],
                    preferred_element_type=jnp.float32)

    out_ref[0] = (y + s2_ref[...] + x).astype(out_ref.dtype)


def _fc_head_kernel(x_ref, w1_ref, b1_ref, w2_ref, b2_ref, wh_ref, bh_ref, out_ref,
                    *, steering_n, discrete):
    """fc_layer (Linear->ReLU->Linear->ReLU) + merged steering/throttle head."""
    cd = w1_ref.dtype
    x = x_ref[...].astype(cd)
    h = jnp.maximum(
        jnp.dot(x, w1_ref[...], preferred_element_type=jnp.float32) + b1_ref[...], 0.0)
    # TODO(synk): nn.Dropout2d(0.5) treated as identity (eval mode).
    h = jnp.maximum(
        jnp.dot(h.astype(cd), w2_ref[...], preferred_element_type=jnp.float32)
        + b2_ref[...], 0.0)
    out = (jnp.dot(h.astype(cd), wh_ref[...], preferred_element_type=jnp.float32)
           + bh_ref[...])
    if discrete:
        # TODO(synk): discrete branch (softmax over steering logits) is not exercised
        # by the self-test below.
        s = out[:, :steering_n]
        s = s - jnp.max(s, axis=-1, keepdims=True)
        e = jnp.exp(s)
        out = jnp.concatenate([e / jnp.sum(e, axis=-1, keepdims=True),
                               out[:, steering_n:]], axis=1)
    out_ref[...] = out.astype(out_ref.dtype)


# ---------------------------------------------------------------------------
# pallas_call wrappers
# ---------------------------------------------------------------------------
def _conv_bn_pool(x, ih, iw, cout, cp):
    n, _, lanes_in = x.shape
    hc, wc = ih - 2, iw - 2
    ph, pw = (hc - 3) // 2 + 1, (wc - 3) // 2 + 1
    out = pl.pallas_call(
        functools.partial(_conv_pool_kernel, Hc=hc),
        out_shape=jax.ShapeDtypeStruct((n, ph, pw * cout), jnp.float32),
        grid=(n,),
        in_specs=[
            pl.BlockSpec((1, ih, lanes_in), lambda i: (i, 0, 0)),
            pl.BlockSpec(cp["band"].shape, lambda i: (0, 0, 0)),
            pl.BlockSpec(cp["colsel"].shape, lambda i: (0, 0, 0)),
            pl.BlockSpec(cp["rowsel"].shape, lambda i: (0, 0, 0)),
            pl.BlockSpec(cp["shift"].shape, lambda i: (0, 0)),
        ],
        out_specs=pl.BlockSpec((1, ph, pw * cout), lambda i: (i, 0, 0)),
        compiler_params=pltpu.CompilerParams(
            dimension_semantics=("parallel",), vmem_limit_bytes=_VMEM_LIMIT),
    )(x, cp["band"], cp["colsel"], cp["rowsel"], cp["shift"])
    return out, ph, pw


def _resblock(x, ih, lanes, rp):
    n = x.shape[0]
    return pl.pallas_call(
        functools.partial(_resblock_kernel, Hs=ih),
        out_shape=jax.ShapeDtypeStruct((n, ih, lanes), jnp.float32),
        grid=(n,),
        in_specs=[
            pl.BlockSpec((1, ih, lanes), lambda i: (i, 0, 0)),
            pl.BlockSpec(rp["band1"].shape, lambda i: (0, 0, 0)),
            pl.BlockSpec(rp["shift1"].shape, lambda i: (0, 0)),
            pl.BlockSpec(rp["band2"].shape, lambda i: (0, 0, 0)),
            pl.BlockSpec(rp["shift2"].shape, lambda i: (0, 0)),
        ],
        out_specs=pl.BlockSpec((1, ih, lanes), lambda i: (i, 0, 0)),
        scratch_shapes=[pltpu.VMEM((ih + 2, lanes), jnp.float32)],
        compiler_params=pltpu.CompilerParams(
            dimension_semantics=("parallel",), vmem_limit_bytes=_VMEM_LIMIT),
    )(x, rp["band1"], rp["shift1"], rp["band2"], rp["shift2"])


def _fc_head(total, fc, *, discrete, steering_n):
    n, k = total.shape
    out_dim = fc["bh"].shape[1]
    bt = n if (n <= 8 or n % 8) else 8          # batch tile (parallel -> both v7x TCs)
    nb = pl.cdiv(n, bt)
    return pl.pallas_call(
        functools.partial(_fc_head_kernel, steering_n=steering_n, discrete=discrete),
        out_shape=jax.ShapeDtypeStruct((n, out_dim), jnp.float32),
        grid=(nb,),
        in_specs=[
            pl.BlockSpec((bt, k), lambda i: (i, 0)),
            pl.BlockSpec(fc["w1"].shape, lambda i: (0, 0)),
            pl.BlockSpec(fc["b1"].shape, lambda i: (0, 0)),
            pl.BlockSpec(fc["w2"].shape, lambda i: (0, 0)),
            pl.BlockSpec(fc["b2"].shape, lambda i: (0, 0)),
            pl.BlockSpec(fc["wh"].shape, lambda i: (0, 0)),
            pl.BlockSpec(fc["bh"].shape, lambda i: (0, 0)),
        ],
        out_specs=pl.BlockSpec((bt, out_dim), lambda i: (i, 0)),
        compiler_params=pltpu.CompilerParams(
            dimension_semantics=("parallel",), vmem_limit_bytes=_VMEM_LIMIT),
    )(total, fc["w1"], fc["b1"], fc["w2"], fc["b2"], fc["wh"], fc["bh"])


# ---------------------------------------------------------------------------
# One-time parameter preparation (hoisted out of the jitted forward)
# ---------------------------------------------------------------------------
def _fold_bn_np(p):
    w = np.asarray(p["w"], np.float32)                              # (3,3,Cin,Cout)
    scale = (np.asarray(p["gamma"], np.float32)
             / np.sqrt(np.asarray(p["var"], np.float32) + BN_EPS))
    shift = (np.asarray(p["beta"], np.float32)
             + (np.asarray(p["b"], np.float32)
                - np.asarray(p["mean"], np.float32)) * scale)
    return w * scale, shift


def _valid_band(wf, in_w):
    """(3, in_w*Cin, (in_w-2)*Cout) band matrices for a 3x3 VALID conv over rows."""
    cin, cout = wf.shape[2], wf.shape[3]
    out_w = in_w - 2
    band = np.zeros((3, in_w * cin, out_w * cout), np.float32)
    for a in range(3):
        for b in range(3):
            for c in range(out_w):
                band[a, (c + b) * cin:(c + b + 1) * cin,
                     c * cout:(c + 1) * cout] = wf[a, b]
    return band


def _same_band(wf, in_w):
    """(3, in_w*C, in_w*C) band matrices for a 3x3 SAME (pad=1) conv over rows."""
    cin, cout = wf.shape[2], wf.shape[3]
    band = np.zeros((3, in_w * cin, in_w * cout), np.float32)
    for a in range(3):
        for b in range(3):
            for c in range(in_w):
                cc = c + b - 1
                if 0 <= cc < in_w:
                    band[a, cc * cin:(cc + 1) * cin,
                         c * cout:(c + 1) * cout] = wf[a, b]
    return band


def _pool_col_select(conv_w, c, pool_w):
    sel = np.zeros((3, conv_w * c, pool_w * c), np.float32)
    eye = np.eye(c, dtype=np.float32)
    for dx in range(3):
        for j in range(pool_w):
            src = 2 * j + dx
            sel[dx, src * c:(src + 1) * c, j * c:(j + 1) * c] = eye
    return sel


def _pool_row_select(conv_h, pool_h):
    sel = np.zeros((3, pool_h, conv_h), np.float32)
    for dy in range(3):
        for p in range(pool_h):
            sel[dy, p, 2 * p + dy] = 1.0
    return sel


def prepare_params(params, img_hw, conv_dtype=jnp.bfloat16):
    """Fold BN, build band/selection matrices, permute fc1 rows, cast - once."""
    cd = conv_dtype
    ih, iw = img_hw
    blocks = []
    for name, cout in (("block1", 16), ("block2", 32), ("block3", 64)):
        bp = params[name]
        hc, wc = ih - 2, iw - 2
        ph, pw = (hc - 3) // 2 + 1, (wc - 3) // 2 + 1
        wf, sh = _fold_bn_np(bp["conv"])
        blk = {"conv": {
            "band": jnp.asarray(_valid_band(wf, iw), cd),
            "colsel": jnp.asarray(_pool_col_select(wc, cout, pw), jnp.float32),
            "rowsel": jnp.asarray(_pool_row_select(hc, ph), jnp.float32),
            "shift": jnp.asarray(np.tile(sh, pw)[None, :], jnp.float32),
        }}
        for rname in ("res1", "res2"):
            rp = bp[rname]
            w1f, s1 = _fold_bn_np(rp["conv1"])
            w2f, s2 = _fold_bn_np(rp["conv2"])
            blk[rname] = {
                "band1": jnp.asarray(_same_band(w1f, pw), cd),
                "shift1": jnp.asarray(np.tile(s1, pw)[None, :], jnp.float32),
                "band2": jnp.asarray(_same_band(w2f, pw), cd),
                "shift2": jnp.asarray(np.tile(s2, pw)[None, :], jnp.float32),
            }
        blocks.append(blk)
        ih, iw = ph, pw

    # fc1 rows permuted so the lane-dense NHWC flatten matches nn.Flatten's NCHW order.
    c3, h3, w3 = 64, ih, iw
    n_conv = c3 * h3 * w3
    w1 = np.asarray(params["fc1"]["w"], np.float32)
    w1 = np.concatenate(
        [w1[:n_conv].reshape(c3, h3, w3, -1).transpose(1, 2, 0, 3).reshape(n_conv, -1),
         w1[n_conv:]], axis=0)
    fc = {
        "w1": jnp.asarray(w1, cd),
        "b1": jnp.asarray(np.asarray(params["fc1"]["b"], np.float32)[None, :]),
        "w2": jnp.asarray(np.asarray(params["fc2"]["w"], np.float32), cd),
        "b2": jnp.asarray(np.asarray(params["fc2"]["b"], np.float32)[None, :]),
        "wh": jnp.asarray(np.concatenate(
            [np.asarray(params["steer"]["w"], np.float32),
             np.asarray(params["throttle"]["w"], np.float32)], axis=1), cd),
        "bh": jnp.asarray(np.concatenate(
            [np.asarray(params["steer"]["b"], np.float32),
             np.asarray(params["throttle"]["b"], np.float32)])[None, :]),
    }
    return {"blocks": blocks, "fc": fc}


# ---------------------------------------------------------------------------
# Model composition
# ---------------------------------------------------------------------------
@functools.partial(jax.jit, static_argnames=("discrete", "steering_n"))
def seperated_impala_forward(prep, img_nchw, scalar, *, discrete=DISCRETE,
                             steering_n=STEERING_N):
    n, cin, ih, iw = img_nchw.shape
    # NCHW -> lane-dense (N, H, W*C) in one relayout (wide contiguous-row DMAs).
    x = jnp.transpose(img_nchw, (0, 2, 3, 1)).astype(jnp.float32).reshape(n, ih, iw * cin)
    for blk, cout in zip(prep["blocks"], (16, 32, 64)):
        x, ih, iw = _conv_bn_pool(x, ih, iw, cout, blk["conv"])
        x = _resblock(x, ih, iw * cout, blk["res1"])
        x = _resblock(x, ih, iw * cout, blk["res2"])
    feature = x.reshape(n, ih * iw * 64)          # NHWC-order flatten (no transpose;
    total = jnp.concatenate([feature, scalar.astype(jnp.float32)], axis=1)
    return _fc_head(total, prep["fc"], discrete=discrete, steering_n=steering_n)


# ---------------------------------------------------------------------------
# Deterministic parameter construction
# ---------------------------------------------------------------------------
def _conv_bn_params(key, cin, cout):
    ks = jax.random.split(key, 6)
    return {
        "w": jax.random.normal(ks[0], (3, 3, cin, cout), jnp.float32)
             * jnp.sqrt(1.0 / (9 * cin)),
        "b": 0.05 * jax.random.normal(ks[1], (cout,), jnp.float32),
        "gamma": 1.0 + 0.1 * jax.random.normal(ks[2], (cout,), jnp.float32),
        "beta": 0.05 * jax.random.normal(ks[3], (cout,), jnp.float32),
        "mean": 0.05 * jax.random.normal(ks[4], (cout,), jnp.float32),
        "var": jax.random.uniform(ks[5], (cout,), jnp.float32, 0.5, 1.5),
    }


def _linear_params(key, fin, fout):
    k1, k2 = jax.random.split(key)
    return {
        "w": jax.random.normal(k1, (fin, fout), jnp.float32) * jnp.sqrt(1.0 / fin),
        "b": 0.05 * jax.random.normal(k2, (fout,), jnp.float32),
    }


def _impala_params(key, cin, cout):
    k0, k1, k2, k3, k4 = jax.random.split(key, 5)
    return {
        "conv": _conv_bn_params(k0, cin, cout),
        "res1": {"conv1": _conv_bn_params(k1, cout, cout),
                 "conv2": _conv_bn_params(k2, cout, cout)},
        "res2": {"conv1": _conv_bn_params(k3, cout, cout),
                 "conv2": _conv_bn_params(k4, cout, cout)},
    }


def init_params(key, img_hw, scalar_dim, steering_n, throttle_n):
    def spatial(s):
        for _ in range(3):
            s = s - 2               # 3x3 conv, padding 0
            s = (s - 3) // 2 + 1    # MaxPool2d(kernel=3, stride=2)
        return s

    hf, wf = spatial(img_hw[0]), spatial(img_hw[1])
    feature_size = 64 * hf * wf + scalar_dim
    k1, k2, k3, kf1, kf2, ks, kt = jax.random.split(key, 7)
    return {
        "block1": _impala_params(k1, 3, 16),
        "block2": _impala_params(k2, 16, 32),
        "block3": _impala_params(k3, 32, 64),
        "fc1": _linear_params(kf1, feature_size, 256),
        "fc2": _linear_params(kf2, 256, 128),
        "steer": _linear_params(ks, 128, steering_n),
        "throttle": _linear_params(kt, 128, throttle_n),
    }


# ---------------------------------------------------------------------------
# Pure-JAX reference (for correctness checks)
# ---------------------------------------------------------------------------
def _ref_forward(params, img_nchw, scalar, discrete, conv_dtype):
    hi = lax.Precision.HIGHEST
    cd = conv_dtype
    x = jnp.transpose(img_nchw, (0, 2, 3, 1)).astype(jnp.float32)

    def conv_bn(x, p, pad):
        scale = p["gamma"] / jnp.sqrt(p["var"] + BN_EPS)
        shift = p["beta"] + (p["b"] - p["mean"]) * scale
        y = lax.conv_general_dilated(
            x.astype(cd), (p["w"] * scale).astype(cd),
            window_strides=(1, 1), padding=pad,
            dimension_numbers=("NHWC", "HWIO", "NHWC"),
            precision=hi, preferred_element_type=jnp.float32)
        return y + shift

    def pool(x):
        return lax.reduce_window(x, -jnp.inf, lax.max,
                                 (1, 3, 3, 1), (1, 2, 2, 1), "VALID")

    def res(x, p):
        h = conv_bn(jax.nn.relu(x), p["conv1"], [(1, 1), (1, 1)])
        h = conv_bn(jax.nn.relu(h), p["conv2"], [(1, 1), (1, 1)])
        return h + x

    for name in ("block1", "block2", "block3"):
        p = params[name]
        x = conv_bn(x, p["conv"], [(0, 0), (0, 0)])
        x = pool(x)
        x = res(x, p["res1"])
        x = res(x, p["res2"])

    n = x.shape[0]
    feature = jnp.transpose(x, (0, 3, 1, 2)).reshape(n, -1)   # PyTorch NCHW flatten
    total = jnp.concatenate([feature, scalar.astype(jnp.float32)], axis=1)

    def dense(v, p):
        return (jnp.dot(v.astype(cd), p["w"].astype(cd), precision=hi,
                        preferred_element_type=jnp.float32) + p["b"])

    h = jax.nn.relu(dense(total, params["fc1"]))
    h = jax.nn.relu(dense(h, params["fc2"]))
    steer = dense(h, params["steer"])
    if discrete:
        steer = jax.nn.softmax(steer, axis=-1)
    thr = dense(h, params["throttle"])
    return jnp.concatenate([steer, thr], axis=-1)


# ---------------------------------------------------------------------------
if __name__ == "__main__":
    key = jax.random.PRNGKey(0)
    k_img, k_sc, k_par = jax.random.split(key, 3)

    N, H, W = 2, 32, 32                       # small shapes; 32x32 -> 1x1x64 feature
    img = jax.random.normal(k_img, (N, 3, H, W), jnp.float32)    # NCHW like PyTorch
    scalar = jax.random.normal(k_sc, (N, 1), jnp.float32)
    params = init_params(k_par, (H, W), scalar_dim=1,
                         steering_n=STEERING_N, throttle_n=THROTTLE_N)

    # Main (bf16 MXU-operand) run; all parameter prep is done once, outside forward.
    prep_bf16 = prepare_params(params, (H, W), conv_dtype=jnp.bfloat16)
    action = seperated_impala_forward(prep_bf16, img, scalar,
                                      discrete=DISCRETE, steering_n=STEERING_N)
    action = jax.block_until_ready(action)
    assert action.shape == (N, STEERING_N + THROTTLE_N), action.shape

    # Check 1: f32-operand kernels vs the full-precision spec (structure is exact).
    prep_f32 = prepare_params(params, (H, W), conv_dtype=jnp.float32)
    action_f32 = jax.block_until_ready(
        seperated_impala_forward(prep_f32, img, scalar,
                                 discrete=DISCRETE, steering_n=STEERING_N))
    ref_f32 = _ref_forward(params, img, scalar, DISCRETE, jnp.float32)
    np.testing.assert_allclose(np.asarray(action_f32), np.asarray(ref_f32),
                               rtol=2e-3, atol=2e-3)

    # Check 2: bf16-operand kernels vs the same math with bf16 MXU operands
    # (differences are accumulation order only; both accumulate in f32).
    ref_bf16 = _ref_forward(params, img, scalar, DISCRETE, jnp.bfloat16)
    np.testing.assert_allclose(np.asarray(action), np.asarray(ref_bf16),
                               rtol=2e-3, atol=2e-3)

    print("KERNEL_OK")
</pallas_src>

<mosaic_0001>
module attributes {stable_mosaic.version = 11 : i64} {
  func.func @_resblock_kernel(%arg0: i32, %arg1: memref<1x14x224xf32, #tpu.memory_space<vmem>>, %arg2: memref<3x224x224xbf16, #tpu.memory_space<vmem>>, %arg3: memref<1x224xf32, #tpu.memory_space<vmem>>, %arg4: memref<3x224x224xbf16, #tpu.memory_space<vmem>>, %arg5: memref<1x224xf32, #tpu.memory_space<vmem>>, %arg6: memref<1x14x224xf32, #tpu.memory_space<vmem>>, %arg7: memref<16x224xf32, #tpu.memory_space<vmem>>) attributes {dimension_semantics = [#tpu.dimension_semantics<parallel>], iteration_bounds = array<i64: 2>, scalar_prefetch = 0 : i64, scratch_operands = 1 : i64, tpu.core_type = #tpu.core_type<tc>, window_params = [{transform_indices = @transform_0, window_bounds = array<i64: 1, 14, 224>}, {pipeline_mode = #tpu.pipeline_mode<synchronous>, transform_indices = @transform_1, window_bounds = array<i64: 3, 224, 224>}, {pipeline_mode = #tpu.pipeline_mode<synchronous>, transform_indices = @transform_2, window_bounds = array<i64: 1, 224>}, {pipeline_mode = #tpu.pipeline_mode<synchronous>, transform_indices = @transform_3, window_bounds = array<i64: 3, 224, 224>}, {pipeline_mode = #tpu.pipeline_mode<synchronous>, transform_indices = @transform_4, window_bounds = array<i64: 1, 224>}, {transform_indices = @transform_5, window_bounds = array<i64: 1, 14, 224>}]} {
    %cst = arith.constant 0.000000e+00 : f32
    %0 = vector.broadcast %cst : f32 to vector<1x224xf32>
    %c0 = arith.constant 0 : index
    %c0_0 = arith.constant 0 : index
    %1 = vector.load %arg7[%c0, %c0_0] : memref<16x224xf32, #tpu.memory_space<vmem>>, vector<1x224xf32>
    tpu.vector_store %arg7[%c0, %c0_0], %0 {strides = array<i32>} : memref<16x224xf32, #tpu.memory_space<vmem>>, vector<1x224xf32>,
    %c15 = arith.constant 15 : index
    %c0_1 = arith.constant 0 : index
    %2 = vector.load %arg7[%c15, %c0_1] : memref<16x224xf32, #tpu.memory_space<vmem>>, vector<1x224xf32>
    tpu.vector_store %arg7[%c15, %c0_1], %0 {strides = array<i32>} : memref<16x224xf32, #tpu.memory_space<vmem>>, vector<1x224xf32>,
    %c0_2 = arith.constant 0 : index
    %c0_3 = arith.constant 0 : index
    %c0_4 = arith.constant 0 : index
    %3 = vector.load %arg1[%c0_2, %c0_3, %c0_4] : memref<1x14x224xf32, #tpu.memory_space<vmem>>, vector<1x14x224xf32>
    %4 = vector.shape_cast %3 : vector<1x14x224xf32> to vector<14x224xf32>
    %cst_5 = arith.constant 0.000000e+00 : f32
    %5 = vector.broadcast %cst_5 : f32 to vector<14x224xf32>
    %6 = arith.maximumf %4, %5 : vector<14x224xf32>
    %c1 = arith.constant 1 : index
    %c0_6 = arith.constant 0 : index
    %7 = vector.load %arg7[%c1, %c0_6] : memref<16x224xf32, #tpu.memory_space<vmem>>, vector<14x224xf32>
    tpu.vector_store %arg7[%c1, %c0_6], %6 {strides = array<i32>} : memref<16x224xf32, #tpu.memory_space<vmem>>, vector<14x224xf32>,
    %c0_7 = arith.constant 0 : index
    %c0_8 = arith.constant 0 : index
    %8 = vector.load %arg7[%c0_7, %c0_8] : memref<16x224xf32, #tpu.memory_space<vmem>>, vector<16x224xf32>
    %9 = vector.extract_strided_slice %8 {offsets = [0, 0], sizes = [14, 224], strides = [1, 1]} : vector<16x224xf32> to vector<14x224xf32>
    %10 = arith.truncf %9 : vector<14x224xf32> to vector<14x224xbf16>
    %c0_9 = arith.constant 0 : index
    %c0_10 = arith.constant 0 : index
    %c0_11 = arith.constant 0 : index
    %11 = vector.load %arg2[%c0_9, %c0_10, %c0_11] : memref<3x224x224xbf16, #tpu.memory_space<vmem>>, vector<1x224x224xbf16>
    %12 = vector.shape_cast %11 : vector<1x224x224xbf16> to vector<224x224xbf16>
    %cst_12 = arith.constant dense<0.000000e+00> : vector<14x224xf32>
    %13 = tpu.matmul %10, %12, %cst_12 {dimension_numbers = #tpu.dot_dimension_numbers<[1], [0], [0], [1], [0, 0, 1, 1], [], []>} : vector<14x224xbf16>, vector<224x224xbf16>, vector<14x224xf32> -> vector<14x224xf32>
    %14 = vector.extract_strided_slice %8 {offsets = [1, 0], sizes = [14, 224], strides = [1, 1]} : vector<16x224xf32> to vector<14x224xf32>
    %15 = arith.truncf %14 : vector<14x224xf32> to vector<14x224xbf16>
    %c1_13 = arith.constant 1 : index
    %c0_14 = arith.constant 0 : index
    %c0_15 = arith.constant 0 : index
    %16 = vector.load %arg2[%c1_13, %c0_14, %c0_15] : memref<3x224x224xbf16, #tpu.memory_space<vmem>>, vector<1x224x224xbf16>
    %17 = vector.shape_cast %16 : vector<1x224x224xbf16> to vector<224x224xbf16>
    %cst_16 = arith.constant dense<0.000000e+00> : vector<14x224xf32>
    %18 = tpu.matmul %15, %17, %cst_16 {dimension_numbers = #tpu.dot_dimension_numbers<[1], [0], [0], [1], [0, 0, 1, 1], [], []>} : vector<14x224xbf16>, vector<224x224xbf16>, vector<14x224xf32> -> vector<14x224xf32>
    %19 = arith.addf %13, %18 : vector<14x224xf32>
    %20 = vector.extract_strided_slice %8 {offsets = [2, 0], sizes = [14, 224], strides = [1, 1]} : vector<16x224xf32> to vector<14x224xf32>
    %21 = arith.truncf %20 : vector<14x224xf32> to vector<14x224xbf16>
    %c2 = arith.constant 2 : index
    %c0_17 = arith.constant 0 : index
    %c0_18 = arith.constant 0 : index
    %22 = vector.load %arg2[%c2, %c0_17, %c0_18] : memref<3x224x224xbf16, #tpu.memory_space<vmem>>, vector<1x224x224xbf16>
    %23 = vector.shape_cast %22 : vector<1x224x224xbf16> to vector<224x224xbf16>
    %cst_19 = arith.constant dense<0.000000e+00> : vector<14x224xf32>
    %24 = tpu.matmul %21, %23, %cst_19 {dimension_numbers = #tpu.dot_dimension_numbers<[1], [0], [0], [1], [0, 0, 1, 1], [], []>} : vector<14x224xbf16>, vector<224x224xbf16>, vector<14x224xf32> -> vector<14x224xf32>
    %25 = arith.addf %19, %24 : vector<14x224xf32>
    %c0_20 = arith.constant 0 : index
    %c0_21 = arith.constant 0 : index
    %26 = vector.load %arg3[%c0_20, %c0_21] : memref<1x224xf32, #tpu.memory_space<vmem>>, vector<1x224xf32>
    %27 = vector.broadcast %26 : vector<1x224xf32> to vector<14x224xf32>
    %28 = arith.addf %25, %27 : vector<14x224xf32>
    %cst_22 = arith.constant 0.000000e+00 : f32
    %29 = vector.broadcast %cst_22 : f32 to vector<14x224xf32>
    %30 = arith.maximumf %28, %29 : vector<14x224xf32>
    %c1_23 = arith.constant 1 : index
    %c0_24 = arith.constant 0 : index
    %31 = vector.load %arg7[%c1_23, %c0_24] : memref<16x224xf32, #tpu.memory_space<vmem>>, vector<14x224xf32>
    tpu.vector_store %arg7[%c1_23, %c0_24], %30 {strides = array<i32>} : memref<16x224xf32, #tpu.memory_space<vmem>>, vector<14x224xf32>,
    %c0_25 = arith.constant 0 : index
    %c0_26 = arith.constant 0 : index
    %32 = vector.load %arg7[%c0_25, %c0_26] : memref<16x224xf32, #tpu.memory_space<vmem>>, vector<16x224xf32>
    %33 = vector.extract_strided_slice %32 {offsets = [0, 0], sizes = [14, 224], strides = [1, 1]} : vector<16x224xf32> to vector<14x224xf32>
    %34 = arith.truncf %33 : vector<14x224xf32> to vector<14x224xbf16>
    %c0_27 = arith.constant 0 : index
    %c0_28 = arith.constant 0 : index
    %c0_29 = arith.constant 0 : index
    %35 = vector.load %arg4[%c0_27, %c0_28, %c0_29] : memref<3x224x224xbf16, #tpu.memory_space<vmem>>, vector<1x224x224xbf16>
    %36 = vector.shape_cast %35 : vector<1x224x224xbf16> to vector<224x224xbf16>
    %cst_30 = arith.constant dense<0.000000e+00> : vector<14x224xf32>
    %37 = tpu.matmul %34, %36, %cst_30 {dimension_numbers = #tpu.dot_dimension_numbers<[1], [0], [0], [1], [0, 0, 1, 1], [], []>} : vector<14x224xbf16>, vector<224x224xbf16>, vector<14x224xf32> -> vector<14x224xf32>
    %38 = vector.extract_strided_slice %32 {offsets = [1, 0], sizes = [14, 224], strides = [1, 1]} : vector<16x224xf32> to vector<14x224xf32>
    %39 = arith.truncf %38 : vector<14x224xf32> to vector<14x224xbf16>
    %c1_31 = arith.constant 1 : index
    %c0_32 = arith.constant 0 : index
    %c0_33 = arith.constant 0 : index
    %40 = vector.load %arg4[%c1_31, %c0_32, %c0_33] : memref<3x224x224xbf16, #tpu.memory_space<vmem>>, vector<1x224x224xbf16>
    %41 = vector.shape_cast %40 : vector<1x224x224xbf16> to vector<224x224xbf16>
    %cst_34 = arith.constant dense<0.000000e+00> : vector<14x224xf32>
    %42 = tpu.matmul %39, %41, %cst_34 {dimension_numbers = #tpu.dot_dimension_numbers<[1], [0], [0], [1], [0, 0, 1, 1], [], []>} : vector<14x224xbf16>, vector<224x224xbf16>, vector<14x224xf32> -> vector<14x224xf32>
    %43 = arith.addf %37, %42 : vector<14x224xf32>
    %44 = vector.extract_strided_slice %32 {offsets = [2, 0], sizes = [14, 224], strides = [1, 1]} : vector<16x224xf32> to vector<14x224xf32>
    %45 = arith.truncf %44 : vector<14x224xf32> to vector<14x224xbf16>
    %c2_35 = arith.constant 2 : index
    %c0_36 = arith.constant 0 : index
    %c0_37 = arith.constant 0 : index
    %46 = vector.load %arg4[%c2_35, %c0_36, %c0_37] : memref<3x224x224xbf16, #tpu.memory_space<vmem>>, vector<1x224x224xbf16>
    %47 = vector.shape_cast %46 : vector<1x224x224xbf16> to vector<224x224xbf16>
    %cst_38 = arith.constant dense<0.000000e+00> : vector<14x224xf32>
    %48 = tpu.matmul %45, %47, %cst_38 {dimension_numbers = #tpu.dot_dimension_numbers<[1], [0], [0], [1], [0, 0, 1, 1], [], []>} : vector<14x224xbf16>, vector<224x224xbf16>, vector<14x224xf32> -> vector<14x224xf32>
    %49 = arith.addf %43, %48 : vector<14x224xf32>
    %c0_39 = arith.constant 0 : index
    %c0_40 = arith.constant 0 : index
    %50 = vector.load %arg5[%c0_39, %c0_40] : memref<1x224xf32, #tpu.memory_space<vmem>>, vector<1x224xf32>
    %51 = vector.broadcast %50 : vector<1x224xf32> to vector<14x224xf32>
    %52 = arith.addf %49, %51 : vector<14x224xf32>
    %53 = arith.addf %52, %4 : vector<14x224xf32>
    %c0_41 = arith.constant 0 : index
    %c0_42 = arith.constant 0 : index
    %c0_43 = arith.constant 0 : index
    %54 = vector.load %arg6[%c0_41, %c0_42, %c0_43] : memref<1x14x224xf32, #tpu.memory_space<vmem>>, vector<1x14x224xf32>
    %55 = vector.shape_cast %54 : vector<1x14x224xf32> to vector<14x224xf32>
    %56 = vector.shape_cast %53 : vector<14x224xf32> to vector<1x14x224xf32>
    tpu.vector_store %arg6[%c0_41, %c0_42, %c0_43], %56 {strides = array<i32>} : memref<1x14x224xf32, #tpu.memory_space<vmem>>, vector<1x14x224xf32>,
    return
  }
  func.func @transform_0(%arg0: i32) -> (i32, i32, i32) {
    %c0_i32 = arith.constant 0 : i32
    %c0_i32_0 = arith.constant 0 : i32
    %c0_i32_1 = arith.constant 0 : i32
    return %arg0, %c0_i32, %c0_i32_0 : i32, i32, i32
  }
  func.func @transform_1(%arg0: i32) -> (i32, i32, i32) {
    %c0_i32 = arith.constant 0 : i32
    %c0_i32_0 = arith.constant 0 : i32
    %c0_i32_1 = arith.constant 0 : i32
    %c0_i32_2 = arith.constant 0 : i32
    return %c0_i32, %c0_i32_0, %c0_i32_1 : i32, i32, i32
  }
  func.func @transform_2(%arg0: i32) -> (i32, i32) {
    %c0_i32 = arith.constant 0 : i32
    %c0_i32_0 = arith.constant 0 : i32
    %c0_i32_1 = arith.constant 0 : i32
    return %c0_i32, %c0_i32_0 : i32, i32
  }
  func.func @transform_3(%arg0: i32) -> (i32, i32, i32) {
    %c0_i32 = arith.constant 0 : i32
    %c0_i32_0 = arith.constant 0 : i32
    %c0_i32_1 = arith.constant 0 : i32
    %c0_i32_2 = arith.constant 0 : i32
    return %c0_i32, %c0_i32_0, %c0_i32_1 : i32, i32, i32
  }
  func.func @transform_4(%arg0: i32) -> (i32, i32) {
    %c0_i32 = arith.constant 0 : i32
    %c0_i32_0 = arith.constant 0 : i32
    %c0_i32_1 = arith.constant 0 : i32
    return %c0_i32, %c0_i32_0 : i32, i32
  }
  func.func @transform_5(%arg0: i32) -> (i32, i32, i32) {
    %c0_i32 = arith.constant 0 : i32
    %c0_i32_0 = arith.constant 0 : i32
    %c0_i32_1 = arith.constant 0 : i32
    return %arg0, %c0_i32, %c0_i32_0 : i32, i32, i32
  }
}

module attributes {stable_mosaic.version = 11 : i64} {
  func.func @_conv_pool_kernel(%arg0: i32, %arg1: memref<1x32x96xf32, #tpu.memory_space<vmem>>, %arg2: memref<3x96x480xbf16, #tpu.memory_space<vmem>>, %arg3: memref<3x480x224xf32, #tpu.memory_space<vmem>>, %arg4: memref<3x14x30xf32, #tpu.memory_space<vmem>>, %arg5: memref<1x224xf32, #tpu.memory_space<vmem>>, %arg6: memref<1x14x224xf32, #tpu.memory_space<vmem>>) attributes {dimension_semantics = [#tpu.dimension_semantics<parallel>], iteration_bounds = array<i64: 2>, scalar_prefetch = 0 : i64, scratch_operands = 0 : i64, tpu.core_type = #tpu.core_type<tc>, window_params = [{transform_indices = @transform_0, window_bounds = array<i64: 1, 32, 96>}, {pipeline_mode = #tpu.pipeline_mode<synchronous>, transform_indices = @transform_1, window_bounds = array<i64: 3, 96, 480>}, {pipeline_mode = #tpu.pipeline_mode<synchronous>, transform_indices = @transform_2, window_bounds = array<i64: 3, 480, 224>}, {pipeline_mode = #tpu.pipeline_mode<synchronous>, transform_indices = @transform_3, window_bounds = array<i64: 3, 14, 30>}, {pipeline_mode = #tpu.pipeline_mode<synchronous>, transform_indices = @transform_4, window_bounds = array<i64: 1, 224>}, {transform_indices = @transform_5, window_bounds = array<i64: 1, 14, 224>}]} {
    %c0 = arith.constant 0 : index
    %c0_0 = arith.constant 0 : index
    %c0_1 = arith.constant 0 : index
    %0 = vector.load %arg1[%c0, %c0_0, %c0_1] : memref<1x32x96xf32, #tpu.memory_space<vmem>>, vector<1x32x96xf32>
    %1 = vector.shape_cast %0 : vector<1x32x96xf32> to vector<32x96xf32>
    %2 = vector.extract_strided_slice %1 {offsets = [0, 0], sizes = [30, 96], strides = [1, 1]} : vector<32x96xf32> to vector<30x96xf32>
    %3 = arith.truncf %2 : vector<30x96xf32> to vector<30x96xbf16>
    %c0_2 = arith.constant 0 : index
    %c0_3 = arith.constant 0 : index
    %c0_4 = arith.constant 0 : index
    %4 = vector.load %arg2[%c0_2, %c0_3, %c0_4] : memref<3x96x480xbf16, #tpu.memory_space<vmem>>, vector<1x96x480xbf16>
    %5 = vector.shape_cast %4 : vector<1x96x480xbf16> to vector<96x480xbf16>
    %cst = arith.constant dense<0.000000e+00> : vector<30x480xf32>
    %6 = tpu.matmul %3, %5, %cst {dimension_numbers = #tpu.dot_dimension_numbers<[1], [0], [0], [1], [0, 0, 1, 1], [], []>} : vector<30x96xbf16>, vector<96x480xbf16>, vector<30x480xf32> -> vector<30x480xf32>
    %7 = vector.extract_strided_slice %1 {offsets = [1, 0], sizes = [30, 96], strides = [1, 1]} : vector<32x96xf32> to vector<30x96xf32>
    %8 = arith.truncf %7 : vector<30x96xf32> to vector<30x96xbf16>
    %c1 = arith.constant 1 : index
    %c0_5 = arith.constant 0 : index
    %c0_6 = arith.constant 0 : index
    %9 = vector.load %arg2[%c1, %c0_5, %c0_6] : memref<3x96x480xbf16, #tpu.memory_space<vmem>>, vector<1x96x480xbf16>
    %10 = vector.shape_cast %9 : vector<1x96x480xbf16> to vector<96x480xbf16>
    %cst_7 = arith.constant dense<0.000000e+00> : vector<30x480xf32>
    %11 = tpu.matmul %8, %10, %cst_7 {dimension_numbers = #tpu.dot_dimension_numbers<[1], [0], [0], [1], [0, 0, 1, 1], [], []>} : vector<30x96xbf16>, vector<96x480xbf16>, vector<30x480xf32> -> vector<30x480xf32>
    %12 = arith.addf %6, %11 : vector<30x480xf32>
    %13 = vector.extract_strided_slice %1 {offsets = [2, 0], sizes = [30, 96], strides = [1, 1]} : vector<32x96xf32> to vector<30x96xf32>
    %14 = arith.truncf %13 : vector<30x96xf32> to vector<30x96xbf16>
    %c2 = arith.constant 2 : index
    %c0_8 = arith.constant 0 : index
    %c0_9 = arith.constant 0 : index
    %15 = vector.load %arg2[%c2, %c0_8, %c0_9] : memref<3x96x480xbf16, #tpu.memory_space<vmem>>, vector<1x96x480xbf16>
    %16 = vector.shape_cast %15 : vector<1x96x480xbf16> to vector<96x480xbf16>
    %cst_10 = arith.constant dense<0.000000e+00> : vector<30x480xf32>
    %17 = tpu.matmul %14, %16, %cst_10 {dimension_numbers = #tpu.dot_dimension_numbers<[1], [0], [0], [1], [0, 0, 1, 1], [], []>} : vector<30x96xbf16>, vector<96x480xbf16>, vector<30x480xf32> -> vector<30x480xf32>
    %18 = arith.addf %12, %17 : vector<30x480xf32>
    %c0_11 = arith.constant 0 : index
    %c0_12 = arith.constant 0 : index
    %c0_13 = arith.constant 0 : index
    %19 = vector.load %arg3[%c0_11, %c0_12, %c0_13] : memref<3x480x224xf32, #tpu.memory_space<vmem>>, vector<1x480x224xf32>
    %20 = vector.shape_cast %19 : vector<1x480x224xf32> to vector<480x224xf32>
    %cst_14 = arith.constant dense<0.000000e+00> : vector<30x224xf32>
    %21 = tpu.matmul %18, %20, %cst_14 {dimension_numbers = #tpu.dot_dimension_numbers<[1], [0], [0], [1], [0, 0, 1, 1], [], []>} : vector<30x480xf32>, vector<480x224xf32>, vector<30x224xf32> -> vector<30x224xf32>
    %c1_15 = arith.constant 1 : index
    %c0_16 = arith.constant 0 : index
    %c0_17 = arith.constant 0 : index
    %22 = vector.load %arg3[%c1_15, %c0_16, %c0_17] : memref<3x480x224xf32, #tpu.memory_space<vmem>>, vector<1x480x224xf32>
    %23 = vector.shape_cast %22 : vector<1x480x224xf32> to vector<480x224xf32>
    %cst_18 = arith.constant dense<0.000000e+00> : vector<30x224xf32>
    %24 = tpu.matmul %18, %23, %cst_18 {dimension_numbers = #tpu.dot_dimension_numbers<[1], [0], [0], [1], [0, 0, 1, 1], [], []>} : vector<30x480xf32>, vector<480x224xf32>, vector<30x224xf32> -> vector<30x224xf32>
    %25 = arith.maximumf %21, %24 : vector<30x224xf32>
    %c2_19 = arith.constant 2 : index
    %c0_20 = arith.constant 0 : index
    %c0_21 = arith.constant 0 : index
    %26 = vector.load %arg3[%c2_19, %c0_20, %c0_21] : memref<3x480x224xf32, #tpu.memory_space<vmem>>, vector<1x480x224xf32>
    %27 = vector.shape_cast %26 : vector<1x480x224xf32> to vector<480x224xf32>
    %cst_22 = arith.constant dense<0.000000e+00> : vector<30x224xf32>
    %28 = tpu.matmul %18, %27, %cst_22 {dimension_numbers = #tpu.dot_dimension_numbers<[1], [0], [0], [1], [0, 0, 1, 1], [], []>} : vector<30x480xf32>, vector<480x224xf32>, vector<30x224xf32> -> vector<30x224xf32>
    %29 = arith.maximumf %25, %28 : vector<30x224xf32>
    %c0_23 = arith.constant 0 : index
    %c0_24 = arith.constant 0 : index
    %c0_25 = arith.constant 0 : index
    %30 = vector.load %arg4[%c0_23, %c0_24, %c0_25] : memref<3x14x30xf32, #tpu.memory_space<vmem>>, vector<1x14x30xf32>
    %31 = vector.shape_cast %30 : vector<1x14x30xf32> to vector<14x30xf32>
    %cst_26 = arith.constant dense<0.000000e+00> : vector<14x224xf32>
    %32 = tpu.matmul %31, %29, %cst_26 {dimension_numbers = #tpu.dot_dimension_numbers<[1], [0], [0], [1], [0, 0, 1, 1], [], []>} : vector<14x30xf32>, vector<30x224xf32>, vector<14x224xf32> -> vector<14x224xf32>
    %c1_27 = arith.constant 1 : index
    %c0_28 = arith.constant 0 : index
    %c0_29 = arith.constant 0 : index
    %33 = vector.load %arg4[%c1_27, %c0_28, %c0_29] : memref<3x14x30xf32, #tpu.memory_space<vmem>>, vector<1x14x30xf32>
    %34 = vector.shape_cast %33 : vector<1x14x30xf32> to vector<14x30xf32>
    %cst_30 = arith.constant dense<0.000000e+00> : vector<14x224xf32>
    %35 = tpu.matmul %34, %29, %cst_30 {dimension_numbers = #tpu.dot_dimension_numbers<[1], [0], [0], [1], [0, 0, 1, 1], [], []>} : vector<14x30xf32>, vector<30x224xf32>, vector<14x224xf32> -> vector<14x224xf32>
    %36 = arith.maximumf %32, %35 : vector<14x224xf32>
    %c2_31 = arith.constant 2 : index
    %c0_32 = arith.constant 0 : index
    %c0_33 = arith.constant 0 : index
    %37 = vector.load %arg4[%c2_31, %c0_32, %c0_33] : memref<3x14x30xf32, #tpu.memory_space<vmem>>, vector<1x14x30xf32>
    %38 = vector.shape_cast %37 : vector<1x14x30xf32> to vector<14x30xf32>
    %cst_34 = arith.constant dense<0.000000e+00> : vector<14x224xf32>
    %39 = tpu.matmul %38, %29, %cst_34 {dimension_numbers = #tpu.dot_dimension_numbers<[1], [0], [0], [1], [0, 0, 1, 1], [], []>} : vector<14x30xf32>, vector<30x224xf32>, vector<14x224xf32> -> vector<14x224xf32>
    %40 = arith.maximumf %36, %39 : vector<14x224xf32>
    %c0_35 = arith.constant 0 : index
    %c0_36 = arith.constant 0 : index
    %41 = vector.load %arg5[%c0_35, %c0_36] : memref<1x224xf32, #tpu.memory_space<vmem>>, vector<1x224xf32>
    %42 = vector.broadcast %41 : vector<1x224xf32> to vector<14x224xf32>
    %43 = arith.addf %40, %42 : vector<14x224xf32>
    %c0_37 = arith.constant 0 : index
    %c0_38 = arith.constant 0 : index
    %c0_39 = arith.constant 0 : index
    %44 = vector.load %arg6[%c0_37, %c0_38, %c0_39] : memref<1x14x224xf32, #tpu.memory_space<vmem>>, vector<1x14x224xf32>
    %45 = vector.shape_cast %44 : vector<1x14x224xf32> to vector<14x224xf32>
    %46 = vector.shape_cast %43 : vector<14x224xf32> to vector<1x14x224xf32>
    tpu.vector_store %arg6[%c0_37, %c0_38, %c0_39], %46 {strides = array<i32>} : memref<1x14x224xf32, #tpu.memory_space<vmem>>, vector<1x14x224xf32>,
    return
  }
  func.func @transform_0(%arg0: i32) -> (i32, i32, i32) {
    %c0_i32 = arith.constant 0 : i32
    %c0_i32_0 = arith.constant 0 : i32
    %c0_i32_1 = arith.constant 0 : i32
    return %arg0, %c0_i32, %c0_i32_0 : i32, i32, i32
  }
  func.func @transform_1(%arg0: i32) -> (i32, i32, i32) {
    %c0_i32 = arith.constant 0 : i32
    %c0_i32_0 = arith.constant 0 : i32
    %c0_i32_1 = arith.constant 0 : i32
    %c0_i32_2 = arith.constant 0 : i32
    return %c0_i32, %c0_i32_0, %c0_i32_1 : i32, i32, i32
  }
  func.func @transform_2(%arg0: i32) -> (i32, i32, i32) {
    %c0_i32 = arith.constant 0 : i32
    %c0_i32_0 = arith.constant 0 : i32
    %c0_i32_1 = arith.constant 0 : i32
    %c0_i32_2 = arith.constant 0 : i32
    return %c0_i32, %c0_i32_0, %c0_i32_1 : i32, i32, i32
  }
  func.func @transform_3(%arg0: i32) -> (i32, i32, i32) {
    %c0_i32 = arith.constant 0 : i32
    %c0_i32_0 = arith.constant 0 : i32
    %c0_i32_1 = arith.constant 0 : i32
    %c0_i32_2 = arith.constant 0 : i32
    return %c0_i32, %c0_i32_0, %c0_i32_1 : i32, i32, i32
  }
  func.func @transform_4(%arg0: i32) -> (i32, i32) {
    %c0_i32 = arith.constant 0 : i32
    %c0_i32_0 = arith.constant 0 : i32
    %c0_i32_1 = arith.constant 0 : i32
    return %c0_i32, %c0_i32_0 : i32, i32
  }
  func.func @transform_5(%arg0: i32) -> (i32, i32, i32) {
    %c0_i32 = arith.constant 0 : i32
    %c0_i32_0 = arith.constant 0 : i32
    %c0_i32_1 = arith.constant 0 : i32
    return %arg0, %c0_i32, %c0_i32_0 : i32, i32, i32
  }
}

module attributes {stable_mosaic.version = 11 : i64} {
  func.func @_conv_pool_kernel(%arg0: i32, %arg1: memref<1x14x224xf32, #tpu.memory_space<vmem>>, %arg2: memref<3x224x384xbf16, #tpu.memory_space<vmem>>, %arg3: memref<3x384x160xf32, #tpu.memory_space<vmem>>, %arg4: memref<3x5x12xf32, #tpu.memory_space<vmem>>, %arg5: memref<1x160xf32, #tpu.memory_space<vmem>>, %arg6: memref<1x5x160xf32, #tpu.memory_space<vmem>>) attributes {dimension_semantics = [#tpu.dimension_semantics<parallel>], iteration_bounds = array<i64: 2>, scalar_prefetch = 0 : i64, scratch_operands = 0 : i64, tpu.core_type = #tpu.core_type<tc>, window_params = [{transform_indices = @transform_0, window_bounds = array<i64: 1, 14, 224>}, {pipeline_mode = #tpu.pipeline_mode<synchronous>, transform_indices = @transform_1, window_bounds = array<i64: 3, 224, 384>}, {pipeline_mode = #tpu.pipeline_mode<synchronous>, transform_indices = @transform_2, window_bounds = array<i64: 3, 384, 160>}, {pipeline_mode = #tpu.pipeline_mode<synchronous>, transform_indices = @transform_3, window_bounds = array<i64: 3, 5, 12>}, {pipeline_mode = #tpu.pipeline_mode<synchronous>, transform_indices = @transform_4, window_bounds = array<i64: 1, 160>}, {transform_indices = @transform_5, window_bounds = array<i64: 1, 5, 160>}]} {
    %c0 = arith.constant 0 : index
    %c0_0 = arith.constant 0 : index
    %c0_1 = arith.constant 0 : index
    %0 = vector.load %arg1[%c0, %c0_0, %c0_1] : memref<1x14x224xf32, #tpu.memory_space<vmem>>, vector<1x14x224xf32>
    %1 = vector.shape_cast %0 : vector<1x14x224xf32> to vector<14x224xf32>
    %2 = vector.extract_strided_slice %1 {offsets = [0, 0], sizes = [12, 224], strides = [1, 1]} : vector<14x224xf32> to vector<12x224xf32>
    %3 = arith.truncf %2 : vector<12x224xf32> to vector<12x224xbf16>
    %c0_2 = arith.constant 0 : index
    %c0_3 = arith.constant 0 : index
    %c0_4 = arith.constant 0 : index
    %4 = vector.load %arg2[%c0_2, %c0_3, %c0_4] : memref<3x224x384xbf16, #tpu.memory_space<vmem>>, vector<1x224x384xbf16>
    %5 = vector.shape_cast %4 : vector<1x224x384xbf16> to vector<224x384xbf16>
    %cst = arith.constant dense<0.000000e+00> : vector<12x384xf32>
    %6 = tpu.matmul %3, %5, %cst {dimension_numbers = #tpu.dot_dimension_numbers<[1], [0], [0], [1], [0, 0, 1, 1], [], []>} : vector<12x224xbf16>, vector<224x384xbf16>, vector<12x384xf32> -> vector<12x384xf32>
    %7 = vector.extract_strided_slice %1 {offsets = [1, 0], sizes = [12, 224], strides = [1, 1]} : vector<14x224xf32> to vector<12x224xf32>
    %8 = arith.truncf %7 : vector<12x224xf32> to vector<12x224xbf16>
    %c1 = arith.constant 1 : index
    %c0_5 = arith.constant 0 : index
    %c0_6 = arith.constant 0 : index
    %9 = vector.load %arg2[%c1, %c0_5, %c0_6] : memref<3x224x384xbf16, #tpu.memory_space<vmem>>, vector<1x224x384xbf16>
    %10 = vector.shape_cast %9 : vector<1x224x384xbf16> to vector<224x384xbf16>
    %cst_7 = arith.constant dense<0.000000e+00> : vector<12x384xf32>
    %11 = tpu.matmul %8, %10, %cst_7 {dimension_numbers = #tpu.dot_dimension_numbers<[1], [0], [0], [1], [0, 0, 1, 1], [], []>} : vector<12x224xbf16>, vector<224x384xbf16>, vector<12x384xf32> -> vector<12x384xf32>
    %12 = arith.addf %6, %11 : vector<12x384xf32>
    %13 = vector.extract_strided_slice %1 {offsets = [2, 0], sizes = [12, 224], strides = [1, 1]} : vector<14x224xf32> to vector<12x224xf32>
    %14 = arith.truncf %13 : vector<12x224xf32> to vector<12x224xbf16>
    %c2 = arith.constant 2 : index
    %c0_8 = arith.constant 0 : index
    %c0_9 = arith.constant 0 : index
    %15 = vector.load %arg2[%c2, %c0_8, %c0_9] : memref<3x224x384xbf16, #tpu.memory_space<vmem>>, vector<1x224x384xbf16>
    %16 = vector.shape_cast %15 : vector<1x224x384xbf16> to vector<224x384xbf16>
    %cst_10 = arith.constant dense<0.000000e+00> : vector<12x384xf32>
    %17 = tpu.matmul %14, %16, %cst_10 {dimension_numbers = #tpu.dot_dimension_numbers<[1], [0], [0], [1], [0, 0, 1, 1], [], []>} : vector<12x224xbf16>, vector<224x384xbf16>, vector<12x384xf32> -> vector<12x384xf32>
    %18 = arith.addf %12, %17 : vector<12x384xf32>
    %c0_11 = arith.constant 0 : index
    %c0_12 = arith.constant 0 : index
    %c0_13 = arith.constant 0 : index
    %19 = vector.load %arg3[%c0_11, %c0_12, %c0_13] : memref<3x384x160xf32, #tpu.memory_space<vmem>>, vector<1x384x160xf32>
    %20 = vector.shape_cast %19 : vector<1x384x160xf32> to vector<384x160xf32>
    %cst_14 = arith.constant dense<0.000000e+00> : vector<12x160xf32>
    %21 = tpu.matmul %18, %20, %cst_14 {dimension_numbers = #tpu.dot_dimension_numbers<[1], [0], [0], [1], [0, 0, 1, 1], [], []>} : vector<12x384xf32>, vector<384x160xf32>, vector<12x160xf32> -> vector<12x160xf32>
    %c1_15 = arith.constant 1 : index
    %c0_16 = arith.constant 0 : index
    %c0_17 = arith.constant 0 : index
    %22 = vector.load %arg3[%c1_15, %c0_16, %c0_17] : memref<3x384x160xf32, #tpu.memory_space<vmem>>, vector<1x384x160xf32>
    %23 = vector.shape_cast %22 : vector<1x384x160xf32> to vector<384x160xf32>
    %cst_18 = arith.constant dense<0.000000e+00> : vector<12x160xf32>
    %24 = tpu.matmul %18, %23, %cst_18 {dimension_numbers = #tpu.dot_dimension_numbers<[1], [0], [0], [1], [0, 0, 1, 1], [], []>} : vector<12x384xf32>, vector<384x160xf32>, vector<12x160xf32> -> vector<12x160xf32>
    %25 = arith.maximumf %21, %24 : vector<12x160xf32>
    %c2_19 = arith.constant 2 : index
    %c0_20 = arith.constant 0 : index
    %c0_21 = arith.constant 0 : index
    %26 = vector.load %arg3[%c2_19, %c0_20, %c0_21] : memref<3x384x160xf32, #tpu.memory_space<vmem>>, vector<1x384x160xf32>
    %27 = vector.shape_cast %26 : vector<1x384x160xf32> to vector<384x160xf32>
    %cst_22 = arith.constant dense<0.000000e+00> : vector<12x160xf32>
    %28 = tpu.matmul %18, %27, %cst_22 {dimension_numbers = #tpu.dot_dimension_numbers<[1], [0], [0], [1], [0, 0, 1, 1], [], []>} : vector<12x384xf32>, vector<384x160xf32>, vector<12x160xf32> -> vector<12x160xf32>
    %29 = arith.maximumf %25, %28 : vector<12x160xf32>
    %c0_23 = arith.constant 0 : index
    %c0_24 = arith.constant 0 : index
    %c0_25 = arith.constant 0 : index
    %30 = vector.load %arg4[%c0_23, %c0_24, %c0_25] : memref<3x5x12xf32, #tpu.memory_space<vmem>>, vector<1x5x12xf32>
    %31 = vector.shape_cast %30 : vector<1x5x12xf32> to vector<5x12xf32>
    %cst_26 = arith.constant dense<0.000000e+00> : vector<5x160xf32>
    %32 = tpu.matmul %31, %29, %cst_26 {dimension_numbers = #tpu.dot_dimension_numbers<[1], [0], [0], [1], [0, 0, 1, 1], [], []>} : vector<5x12xf32>, vector<12x160xf32>, vector<5x160xf32> -> vector<5x160xf32>
    %c1_27 = arith.constant 1 : index
    %c0_28 = arith.constant 0 : index
    %c0_29 = arith.constant 0 : index
    %33 = vector.load %arg4[%c1_27, %c0_28, %c0_29] : memref<3x5x12xf32, #tpu.memory_space<vmem>>, vector<1x5x12xf32>
    %34 = vector.shape_cast %33 : vector<1x5x12xf32> to vector<5x12xf32>
    %cst_30 = arith.constant dense<0.000000e+00> : vector<5x160xf32>
    %35 = tpu.matmul %34, %29, %cst_30 {dimension_numbers = #tpu.dot_dimension_numbers<[1], [0], [0], [1], [0, 0, 1, 1], [], []>} : vector<5x12xf32>, vector<12x160xf32>, vector<5x160xf32> -> vector<5x160xf32>
    %36 = arith.maximumf %32, %35 : vector<5x160xf32>
    %c2_31 = arith.constant 2 : index
    %c0_32 = arith.constant 0 : index
    %c0_33 = arith.constant 0 : index
    %37 = vector.load %arg4[%c2_31, %c0_32, %c0_33] : memref<3x5x12xf32, #tpu.memory_space<vmem>>, vector<1x5x12xf32>
    %38 = vector.shape_cast %37 : vector<1x5x12xf32> to vector<5x12xf32>
    %cst_34 = arith.constant dense<0.000000e+00> : vector<5x160xf32>
    %39 = tpu.matmul %38, %29, %cst_34 {dimension_numbers = #tpu.dot_dimension_numbers<[1], [0], [0], [1], [0, 0, 1, 1], [], []>} : vector<5x12xf32>, vector<12x160xf32>, vector<5x160xf32> -> vector<5x160xf32>
    %40 = arith.maximumf %36, %39 : vector<5x160xf32>
    %c0_35 = arith.constant 0 : index
    %c0_36 = arith.constant 0 : index
    %41 = vector.load %arg5[%c0_35, %c0_36] : memref<1x160xf32, #tpu.memory_space<vmem>>, vector<1x160xf32>
    %42 = vector.broadcast %41 : vector<1x160xf32> to vector<5x160xf32>
    %43 = arith.addf %40, %42 : vector<5x160xf32>
    %c0_37 = arith.constant 0 : index
    %c0_38 = arith.constant 0 : index
    %c0_39 = arith.constant 0 : index
    %44 = vector.load %arg6[%c0_37, %c0_38, %c0_39] : memref<1x5x160xf32, #tpu.memory_space<vmem>>, vector<1x5x160xf32>
    %45 = vector.shape_cast %44 : vector<1x5x160xf32> to vector<5x160xf32>
    %46 = vector.shape_cast %43 : vector<5x160xf32> to vector<1x5x160xf32>
    tpu.vector_store %arg6[%c0_37, %c0_38, %c0_39], %46 {strides = array<i32>} : memref<1x5x160xf32, #tpu.memory_space<vmem>>, vector<1x5x160xf32>,
    return
  }
  func.func @transform_0(%arg0: i32) -> (i32, i32, i32) {
    %c0_i32 = arith.constant 0 : i32
    %c0_i32_0 = arith.constant 0 : i32
    %c0_i32_1 = arith.constant 0 : i32
    return %arg0, %c0_i32, %c0_i32_0 : i32, i32, i32
  }
  func.func @transform_1(%arg0: i32) -> (i32, i32, i32) {
    %c0_i32 = arith.constant 0 : i32
    %c0_i32_0 = arith.constant 0 : i32
    %c0_i32_1 = arith.constant 0 : i32
    %c0_i32_2 = arith.constant 0 : i32
    return %c0_i32, %c0_i32_0, %c0_i32_1 : i32, i32, i32
  }
  func.func @transform_2(%arg0: i32) -> (i32, i32, i32) {
    %c0_i32 = arith.constant 0 : i32
    %c0_i32_0 = arith.constant 0 : i32
    %c0_i32_1 = arith.constant 0 : i32
    %c0_i32_2 = arith.constant 0 : i32
    return %c0_i32, %c0_i32_0, %c0_i32_1 : i32, i32, i32
  }
  func.func @transform_3(%arg0: i32) -> (i32, i32, i32) {
    %c0_i32 = arith.constant 0 : i32
    %c0_i32_0 = arith.constant 0 : i32
    %c0_i32_1 = arith.constant 0 : i32
    %c0_i32_2 = arith.constant 0 : i32
    return %c0_i32, %c0_i32_0, %c0_i32_1 : i32, i32, i32
  }
  func.func @transform_4(%arg0: i32) -> (i32, i32) {
    %c0_i32 = arith.constant 0 : i32
    %c0_i32_0 = arith.constant 0 : i32
    %c0_i32_1 = arith.constant 0 : i32
    return %c0_i32, %c0_i32_0 : i32, i32
  }
  func.func @transform_5(%arg0: i32) -> (i32, i32, i32) {
    %c0_i32 = arith.constant 0 : i32
    %c0_i32_0 = arith.constant 0 : i32
    %c0_i32_1 = arith.constant 0 : i32
    return %arg0, %c0_i32, %c0_i32_0 : i32, i32, i32
  }
}

module attributes {stable_mosaic.version = 11 : i64} {
  func.func @_resblock_kernel(%arg0: i32, %arg1: memref<1x5x160xf32, #tpu.memory_space<vmem>>, %arg2: memref<3x160x160xbf16, #tpu.memory_space<vmem>>, %arg3: memref<1x160xf32, #tpu.memory_space<vmem>>, %arg4: memref<3x160x160xbf16, #tpu.memory_space<vmem>>, %arg5: memref<1x160xf32, #tpu.memory_space<vmem>>, %arg6: memref<1x5x160xf32, #tpu.memory_space<vmem>>, %arg7: memref<7x160xf32, #tpu.memory_space<vmem>>) attributes {dimension_semantics = [#tpu.dimension_semantics<parallel>], iteration_bounds = array<i64: 2>, scalar_prefetch = 0 : i64, scratch_operands = 1 : i64, tpu.core_type = #tpu.core_type<tc>, window_params = [{transform_indices = @transform_0, window_bounds = array<i64: 1, 5, 160>}, {pipeline_mode = #tpu.pipeline_mode<synchronous>, transform_indices = @transform_1, window_bounds = array<i64: 3, 160, 160>}, {pipeline_mode = #tpu.pipeline_mode<synchronous>, transform_indices = @transform_2, window_bounds = array<i64: 1, 160>}, {pipeline_mode = #tpu.pipeline_mode<synchronous>, transform_indices = @transform_3, window_bounds = array<i64: 3, 160, 160>}, {pipeline_mode = #tpu.pipeline_mode<synchronous>, transform_indices = @transform_4, window_bounds = array<i64: 1, 160>}, {transform_indices = @transform_5, window_bounds = array<i64: 1, 5, 160>}]} {
    %cst = arith.constant 0.000000e+00 : f32
    %0 = vector.broadcast %cst : f32 to vector<1x160xf32>
    %c0 = arith.constant 0 : index
    %c0_0 = arith.constant 0 : index
    %1 = vector.load %arg7[%c0, %c0_0] : memref<7x160xf32, #tpu.memory_space<vmem>>, vector<1x160xf32>
    tpu.vector_store %arg7[%c0, %c0_0], %0 {strides = array<i32>} : memref<7x160xf32, #tpu.memory_space<vmem>>, vector<1x160xf32>,
    %c6 = arith.constant 6 : index
    %c0_1 = arith.constant 0 : index
    %2 = vector.load %arg7[%c6, %c0_1] : memref<7x160xf32, #tpu.memory_space<vmem>>, vector<1x160xf32>
    tpu.vector_store %arg7[%c6, %c0_1], %0 {strides = array<i32>} : memref<7x160xf32, #tpu.memory_space<vmem>>, vector<1x160xf32>,
    %c0_2 = arith.constant 0 : index
    %c0_3 = arith.constant 0 : index
    %c0_4 = arith.constant 0 : index
    %3 = vector.load %arg1[%c0_2, %c0_3, %c0_4] : memref<1x5x160xf32, #tpu.memory_space<vmem>>, vector<1x5x160xf32>
    %4 = vector.shape_cast %3 : vector<1x5x160xf32> to vector<5x160xf32>
    %cst_5 = arith.constant 0.000000e+00 : f32
    %5 = vector.broadcast %cst_5 : f32 to vector<5x160xf32>
    %6 = arith.maximumf %4, %5 : vector<5x160xf32>
    %c1 = arith.constant 1 : index
    %c0_6 = arith.constant 0 : index
    %7 = vector.load %arg7[%c1, %c0_6] : memref<7x160xf32, #tpu.memory_space<vmem>>, vector<5x160xf32>
    tpu.vector_store %arg7[%c1, %c0_6], %6 {strides = array<i32>} : memref<7x160xf32, #tpu.memory_space<vmem>>, vector<5x160xf32>,
    %c0_7 = arith.constant 0 : index
    %c0_8 = arith.constant 0 : index
    %8 = vector.load %arg7[%c0_7, %c0_8] : memref<7x160xf32, #tpu.memory_space<vmem>>, vector<7x160xf32>
    %9 = vector.extract_strided_slice %8 {offsets = [0, 0], sizes = [5, 160], strides = [1, 1]} : vector<7x160xf32> to vector<5x160xf32>
    %10 = arith.truncf %9 : vector<5x160xf32> to vector<5x160xbf16>
    %c0_9 = arith.constant 0 : index
    %c0_10 = arith.constant 0 : index
    %c0_11 = arith.constant 0 : index
    %11 = vector.load %arg2[%c0_9, %c0_10, %c0_11] : memref<3x160x160xbf16, #tpu.memory_space<vmem>>, vector<1x160x160xbf16>
    %12 = vector.shape_cast %11 : vector<1x160x160xbf16> to vector<160x160xbf16>
    %cst_12 = arith.constant dense<0.000000e+00> : vector<5x160xf32>
    %13 = tpu.matmul %10, %12, %cst_12 {dimension_numbers = #tpu.dot_dimension_numbers<[1], [0], [0], [1], [0, 0, 1, 1], [], []>} : vector<5x160xbf16>, vector<160x160xbf16>, vector<5x160xf32> -> vector<5x160xf32>
    %14 = vector.extract_strided_slice %8 {offsets = [1, 0], sizes = [5, 160], strides = [1, 1]} : vector<7x160xf32> to vector<5x160xf32>
    %15 = arith.truncf %14 : vector<5x160xf32> to vector<5x160xbf16>
    %c1_13 = arith.constant 1 : index
    %c0_14 = arith.constant 0 : index
    %c0_15 = arith.constant 0 : index
    %16 = vector.load %arg2[%c1_13, %c0_14, %c0_15] : memref<3x160x160xbf16, #tpu.memory_space<vmem>>, vector<1x160x160xbf16>
    %17 = vector.shape_cast %16 : vector<1x160x160xbf16> to vector<160x160xbf16>
    %cst_16 = arith.constant dense<0.000000e+00> : vector<5x160xf32>
    %18 = tpu.matmul %15, %17, %cst_16 {dimension_numbers = #tpu.dot_dimension_numbers<[1], [0], [0], [1], [0, 0, 1, 1], [], []>} : vector<5x160xbf16>, vector<160x160xbf16>, vector<5x160xf32> -> vector<5x160xf32>
    %19 = arith.addf %13, %18 : vector<5x160xf32>
    %20 = vector.extract_strided_slice %8 {offsets = [2, 0], sizes = [5, 160], strides = [1, 1]} : vector<7x160xf32> to vector<5x160xf32>
    %21 = arith.truncf %20 : vector<5x160xf32> to vector<5x160xbf16>
    %c2 = arith.constant 2 : index
    %c0_17 = arith.constant 0 : index
    %c0_18 = arith.constant 0 : index
    %22 = vector.load %arg2[%c2, %c0_17, %c0_18] : memref<3x160x160xbf16, #tpu.memory_space<vmem>>, vector<1x160x160xbf16>
    %23 = vector.shape_cast %22 : vector<1x160x160xbf16> to vector<160x160xbf16>
    %cst_19 = arith.constant dense<0.000000e+00> : vector<5x160xf32>
    %24 = tpu.matmul %21, %23, %cst_19 {dimension_numbers = #tpu.dot_dimension_numbers<[1], [0], [0], [1], [0, 0, 1, 1], [], []>} : vector<5x160xbf16>, vector<160x160xbf16>, vector<5x160xf32> -> vector<5x160xf32>
    %25 = arith.addf %19, %24 : vector<5x160xf32>
    %c0_20 = arith.constant 0 : index
    %c0_21 = arith.constant 0 : index
    %26 = vector.load %arg3[%c0_20, %c0_21] : memref<1x160xf32, #tpu.memory_space<vmem>>, vector<1x160xf32>
    %27 = vector.broadcast %26 : vector<1x160xf32> to vector<5x160xf32>
    %28 = arith.addf %25, %27 : vector<5x160xf32>
    %cst_22 = arith.constant 0.000000e+00 : f32
    %29 = vector.broadcast %cst_22 : f32 to vector<5x160xf32>
    %30 = arith.maximumf %28, %29 : vector<5x160xf32>
    %c1_23 = arith.constant 1 : index
    %c0_24 = arith.constant 0 : index
    %31 = vector.load %arg7[%c1_23, %c0_24] : memref<7x160xf32, #tpu.memory_space<vmem>>, vector<5x160xf32>
    tpu.vector_store %arg7[%c1_23, %c0_24], %30 {strides = array<i32>} : memref<7x160xf32, #tpu.memory_space<vmem>>, vector<5x160xf32>,
    %c0_25 = arith.constant 0 : index
    %c0_26 = arith.constant 0 : index
    %32 = vector.load %arg7[%c0_25, %c0_26] : memref<7x160xf32, #tpu.memory_space<vmem>>, vector<7x160xf32>
    %33 = vector.extract_strided_slice %32 {offsets = [0, 0], sizes = [5, 160], strides = [1, 1]} : vector<7x160xf32> to vector<5x160xf32>
    %34 = arith.truncf %33 : vector<5x160xf32> to vector<5x160xbf16>
    %c0_27 = arith.constant 0 : index
    %c0_28 = arith.constant 0 : index
    %c0_29 = arith.constant 0 : index
    %35 = vector.load %arg4[%c0_27, %c0_28, %c0_29] : memref<3x160x160xbf16, #tpu.memory_space<vmem>>, vector<1x160x160xbf16>
    %36 = vector.shape_cast %35 : vector<1x160x160xbf16> to vector<160x160xbf16>
    %cst_30 = arith.constant dense<0.000000e+00> : vector<5x160xf32>
    %37 = tpu.matmul %34, %36, %cst_30 {dimension_numbers = #tpu.dot_dimension_numbers<[1], [0], [0], [1], [0, 0, 1, 1], [], []>} : vector<5x160xbf16>, vector<160x160xbf16>, vector<5x160xf32> -> vector<5x160xf32>
    %38 = vector.extract_strided_slice %32 {offsets = [1, 0], sizes = [5, 160], strides = [1, 1]} : vector<7x160xf32> to vector<5x160xf32>
    %39 = arith.truncf %38 : vector<5x160xf32> to vector<5x160xbf16>
    %c1_31 = arith.constant 1 : index
    %c0_32 = arith.constant 0 : index
    %c0_33 = arith.constant 0 : index
    %40 = vector.load %arg4[%c1_31, %c0_32, %c0_33] : memref<3x160x160xbf16, #tpu.memory_space<vmem>>, vector<1x160x160xbf16>
    %41 = vector.shape_cast %40 : vector<1x160x160xbf16> to vector<160x160xbf16>
    %cst_34 = arith.constant dense<0.000000e+00> : vector<5x160xf32>
    %42 = tpu.matmul %39, %41, %cst_34 {dimension_numbers = #tpu.dot_dimension_numbers<[1], [0], [0], [1], [0, 0, 1, 1], [], []>} : vector<5x160xbf16>, vector<160x160xbf16>, vector<5x160xf32> -> vector<5x160xf32>
    %43 = arith.addf %37, %42 : vector<5x160xf32>
    %44 = vector.extract_strided_slice %32 {offsets = [2, 0], sizes = [5, 160], strides = [1, 1]} : vector<7x160xf32> to vector<5x160xf32>
    %45 = arith.truncf %44 : vector<5x160xf32> to vector<5x160xbf16>
    %c2_35 = arith.constant 2 : index
    %c0_36 = arith.constant 0 : index
    %c0_37 = arith.constant 0 : index
    %46 = vector.load %arg4[%c2_35, %c0_36, %c0_37] : memref<3x160x160xbf16, #tpu.memory_space<vmem>>, vector<1x160x160xbf16>
    %47 = vector.shape_cast %46 : vector<1x160x160xbf16> to vector<160x160xbf16>
    %cst_38 = arith.constant dense<0.000000e+00> : vector<5x160xf32>
    %48 = tpu.matmul %45, %47, %cst_38 {dimension_numbers = #tpu.dot_dimension_numbers<[1], [0], [0], [1], [0, 0, 1, 1], [], []>} : vector<5x160xbf16>, vector<160x160xbf16>, vector<5x160xf32> -> vector<5x160xf32>
    %49 = arith.addf %43, %48 : vector<5x160xf32>
    %c0_39 = arith.constant 0 : index
    %c0_40 = arith.constant 0 : index
    %50 = vector.load %arg5[%c0_39, %c0_40] : memref<1x160xf32, #tpu.memory_space<vmem>>, vector<1x160xf32>
    %51 = vector.broadcast %50 : vector<1x160xf32> to vector<5x160xf32>
    %52 = arith.addf %49, %51 : vector<5x160xf32>
    %53 = arith.addf %52, %4 : vector<5x160xf32>
    %c0_41 = arith.constant 0 : index
    %c0_42 = arith.constant 0 : index
    %c0_43 = arith.constant 0 : index
    %54 = vector.load %arg6[%c0_41, %c0_42, %c0_43] : memref<1x5x160xf32, #tpu.memory_space<vmem>>, vector<1x5x160xf32>
    %55 = vector.shape_cast %54 : vector<1x5x160xf32> to vector<5x160xf32>
    %56 = vector.shape_cast %53 : vector<5x160xf32> to vector<1x5x160xf32>
    tpu.vector_store %arg6[%c0_41, %c0_42, %c0_43], %56 {strides = array<i32>} : memref<1x5x160xf32, #tpu.memory_space<vmem>>, vector<1x5x160xf32>,
    return
  }
  func.func @transform_0(%arg0: i32) -> (i32, i32, i32) {
    %c0_i32 = arith.constant 0 : i32
    %c0_i32_0 = arith.constant 0 : i32
    %c0_i32_1 = arith.constant 0 : i32
    return %arg0, %c0_i32, %c0_i32_0 : i32, i32, i32
  }
  func.func @transform_1(%arg0: i32) -> (i32, i32, i32) {
    %c0_i32 = arith.constant 0 : i32
    %c0_i32_0 = arith.constant 0 : i32
    %c0_i32_1 = arith.constant 0 : i32
    %c0_i32_2 = arith.constant 0 : i32
    return %c0_i32, %c0_i32_0, %c0_i32_1 : i32, i32, i32
  }
  func.func @transform_2(%arg0: i32) -> (i32, i32) {
    %c0_i32 = arith.constant 0 : i32
    %c0_i32_0 = arith.constant 0 : i32
    %c0_i32_1 = arith.constant 0 : i32
    return %c0_i32, %c0_i32_0 : i32, i32
  }
  func.func @transform_3(%arg0: i32) -> (i32, i32, i32) {
    %c0_i32 = arith.constant 0 : i32
    %c0_i32_0 = arith.constant 0 : i32
    %c0_i32_1 = arith.constant 0 : i32
    %c0_i32_2 = arith.constant 0 : i32
    return %c0_i32, %c0_i32_0, %c0_i32_1 : i32, i32, i32
  }
  func.func @transform_4(%arg0: i32) -> (i32, i32) {
    %c0_i32 = arith.constant 0 : i32
    %c0_i32_0 = arith.constant 0 : i32
    %c0_i32_1 = arith.constant 0 : i32
    return %c0_i32, %c0_i32_0 : i32, i32
  }
  func.func @transform_5(%arg0: i32) -> (i32, i32, i32) {
    %c0_i32 = arith.constant 0 : i32
    %c0_i32_0 = arith.constant 0 : i32
    %c0_i32_1 = arith.constant 0 : i32
    return %arg0, %c0_i32, %c0_i32_0 : i32, i32, i32
  }
}

module attributes {stable_mosaic.version = 11 : i64} {
  func.func @_conv_pool_kernel(%arg0: i32, %arg1: memref<1x5x160xf32, #tpu.memory_space<vmem>>, %arg2: memref<3x160x192xbf16, #tpu.memory_space<vmem>>, %arg3: memref<3x192x64xf32, #tpu.memory_space<vmem>>, %arg4: memref<3x1x3xf32, #tpu.memory_space<vmem>>, %arg5: memref<1x64xf32, #tpu.memory_space<vmem>>, %arg6: memref<1x1x64xf32, #tpu.memory_space<vmem>>) attributes {dimension_semantics = [#tpu.dimension_semantics<parallel>], iteration_bounds = array<i64: 2>, scalar_prefetch = 0 : i64, scratch_operands = 0 : i64, tpu.core_type = #tpu.core_type<tc>, window_params = [{transform_indices = @transform_0, window_bounds = array<i64: 1, 5, 160>}, {pipeline_mode = #tpu.pipeline_mode<synchronous>, transform_indices = @transform_1, window_bounds = array<i64: 3, 160, 192>}, {pipeline_mode = #tpu.pipeline_mode<synchronous>, transform_indices = @transform_2, window_bounds = array<i64: 3, 192, 64>}, {pipeline_mode = #tpu.pipeline_mode<synchronous>, transform_indices = @transform_3, window_bounds = array<i64: 3, 1, 3>}, {pipeline_mode = #tpu.pipeline_mode<synchronous>, transform_indices = @transform_4, window_bounds = array<i64: 1, 64>}, {transform_indices = @transform_5, window_bounds = array<i64: 1, 1, 64>}]} {
    %c0 = arith.constant 0 : index
    %c0_0 = arith.constant 0 : index
    %c0_1 = arith.constant 0 : index
    %0 = vector.load %arg1[%c0, %c0_0, %c0_1] : memref<1x5x160xf32, #tpu.memory_space<vmem>>, vector<1x5x160xf32>
    %1 = vector.shape_cast %0 : vector<1x5x160xf32> to vector<5x160xf32>
    %2 = vector.extract_strided_slice %1 {offsets = [0, 0], sizes = [3, 160], strides = [1, 1]} : vector<5x160xf32> to vector<3x160xf32>
    %3 = arith.truncf %2 : vector<3x160xf32> to vector<3x160xbf16>
    %c0_2 = arith.constant 0 : index
    %c0_3 = arith.constant 0 : index
    %c0_4 = arith.constant 0 : index
    %4 = vector.load %arg2[%c0_2, %c0_3, %c0_4] : memref<3x160x192xbf16, #tpu.memory_space<vmem>>, vector<1x160x192xbf16>
    %5 = vector.shape_cast %4 : vector<1x160x192xbf16> to vector<160x192xbf16>
    %cst = arith.constant dense<0.000000e+00> : vector<3x192xf32>
    %6 = tpu.matmul %3, %5, %cst {dimension_numbers = #tpu.dot_dimension_numbers<[1], [0], [0], [1], [0, 0, 1, 1], [], []>} : vector<3x160xbf16>, vector<160x192xbf16>, vector<3x192xf32> -> vector<3x192xf32>
    %7 = vector.extract_strided_slice %1 {offsets = [1, 0], sizes = [3, 160], strides = [1, 1]} : vector<5x160xf32> to vector<3x160xf32>
    %8 = arith.truncf %7 : vector<3x160xf32> to vector<3x160xbf16>
    %c1 = arith.constant 1 : index
    %c0_5 = arith.constant 0 : index
    %c0_6 = arith.constant 0 : index
    %9 = vector.load %arg2[%c1, %c0_5, %c0_6] : memref<3x160x192xbf16, #tpu.memory_space<vmem>>, vector<1x160x192xbf16>
    %10 = vector.shape_cast %9 : vector<1x160x192xbf16> to vector<160x192xbf16>
    %cst_7 = arith.constant dense<0.000000e+00> : vector<3x192xf32>
    %11 = tpu.matmul %8, %10, %cst_7 {dimension_numbers = #tpu.dot_dimension_numbers<[1], [0], [0], [1], [0, 0, 1, 1], [], []>} : vector<3x160xbf16>, vector<160x192xbf16>, vector<3x192xf32> -> vector<3x192xf32>
    %12 = arith.addf %6, %11 : vector<3x192xf32>
    %13 = vector.extract_strided_slice %1 {offsets = [2, 0], sizes = [3, 160], strides = [1, 1]} : vector<5x160xf32> to vector<3x160xf32>
    %14 = arith.truncf %13 : vector<3x160xf32> to vector<3x160xbf16>
    %c2 = arith.constant 2 : index
    %c0_8 = arith.constant 0 : index
    %c0_9 = arith.constant 0 : index
    %15 = vector.load %arg2[%c2, %c0_8, %c0_9] : memref<3x160x192xbf16, #tpu.memory_space<vmem>>, vector<1x160x192xbf16>
    %16 = vector.shape_cast %15 : vector<1x160x192xbf16> to vector<160x192xbf16>
    %cst_10 = arith.constant dense<0.000000e+00> : vector<3x192xf32>
    %17 = tpu.matmul %14, %16, %cst_10 {dimension_numbers = #tpu.dot_dimension_numbers<[1], [0], [0], [1], [0, 0, 1, 1], [], []>} : vector<3x160xbf16>, vector<160x192xbf16>, vector<3x192xf32> -> vector<3x192xf32>
    %18 = arith.addf %12, %17 : vector<3x192xf32>
    %c0_11 = arith.constant 0 : index
    %c0_12 = arith.constant 0 : index
    %c0_13 = arith.constant 0 : index
    %19 = vector.load %arg3[%c0_11, %c0_12, %c0_13] : memref<3x192x64xf32, #tpu.memory_space<vmem>>, vector<1x192x64xf32>
    %20 = vector.shape_cast %19 : vector<1x192x64xf32> to vector<192x64xf32>
    %cst_14 = arith.constant dense<0.000000e+00> : vector<3x64xf32>
    %21 = tpu.matmul %18, %20, %cst_14 {dimension_numbers = #tpu.dot_dimension_numbers<[1], [0], [0], [1], [0, 0, 1, 1], [], []>} : vector<3x192xf32>, vector<192x64xf32>, vector<3x64xf32> -> vector<3x64xf32>
    %c1_15 = arith.constant 1 : index
    %c0_16 = arith.constant 0 : index
    %c0_17 = arith.constant 0 : index
    %22 = vector.load %arg3[%c1_15, %c0_16, %c0_17] : memref<3x192x64xf32, #tpu.memory_space<vmem>>, vector<1x192x64xf32>
    %23 = vector.shape_cast %22 : vector<1x192x64xf32> to vector<192x64xf32>
    %cst_18 = arith.constant dense<0.000000e+00> : vector<3x64xf32>
    %24 = tpu.matmul %18, %23, %cst_18 {dimension_numbers = #tpu.dot_dimension_numbers<[1], [0], [0], [1], [0, 0, 1, 1], [], []>} : vector<3x192xf32>, vector<192x64xf32>, vector<3x64xf32> -> vector<3x64xf32>
    %25 = arith.maximumf %21, %24 : vector<3x64xf32>
    %c2_19 = arith.constant 2 : index
    %c0_20 = arith.constant 0 : index
    %c0_21 = arith.constant 0 : index
    %26 = vector.load %arg3[%c2_19, %c0_20, %c0_21] : memref<3x192x64xf32, #tpu.memory_space<vmem>>, vector<1x192x64xf32>
    %27 = vector.shape_cast %26 : vector<1x192x64xf32> to vector<192x64xf32>
    %cst_22 = arith.constant dense<0.000000e+00> : vector<3x64xf32>
    %28 = tpu.matmul %18, %27, %cst_22 {dimension_numbers = #tpu.dot_dimension_numbers<[1], [0], [0], [1], [0, 0, 1, 1], [], []>} : vector<3x192xf32>, vector<192x64xf32>, vector<3x64xf32> -> vector<3x64xf32>
    %29 = arith.maximumf %25, %28 : vector<3x64xf32>
    %c0_23 = arith.constant 0 : index
    %c0_24 = arith.constant 0 : index
    %c0_25 = arith.constant 0 : index
    %30 = vector.load %arg4[%c0_23, %c0_24, %c0_25] : memref<3x1x3xf32, #tpu.memory_space<vmem>>, vector<1x1x3xf32>
    %31 = vector.shape_cast %30 : vector<1x1x3xf32> to vector<1x3xf32>
    %cst_26 = arith.constant dense<0.000000e+00> : vector<1x64xf32>
    %32 = tpu.matmul %31, %29, %cst_26 {dimension_numbers = #tpu.dot_dimension_numbers<[1], [0], [0], [1], [0, 0, 1, 1], [], []>} : vector<1x3xf32>, vector<3x64xf32>, vector<1x64xf32> -> vector<1x64xf32>
    %c1_27 = arith.constant 1 : index
    %c0_28 = arith.constant 0 : index
    %c0_29 = arith.constant 0 : index
    %33 = vector.load %arg4[%c1_27, %c0_28, %c0_29] : memref<3x1x3xf32, #tpu.memory_space<vmem>>, vector<1x1x3xf32>
    %34 = vector.shape_cast %33 : vector<1x1x3xf32> to vector<1x3xf32>
    %cst_30 = arith.constant dense<0.000000e+00> : vector<1x64xf32>
    %35 = tpu.matmul %34, %29, %cst_30 {dimension_numbers = #tpu.dot_dimension_numbers<[1], [0], [0], [1], [0, 0, 1, 1], [], []>} : vector<1x3xf32>, vector<3x64xf32>, vector<1x64xf32> -> vector<1x64xf32>
    %36 = arith.maximumf %32, %35 : vector<1x64xf32>
    %c2_31 = arith.constant 2 : index
    %c0_32 = arith.constant 0 : index
    %c0_33 = arith.constant 0 : index
    %37 = vector.load %arg4[%c2_31, %c0_32, %c0_33] : memref<3x1x3xf32, #tpu.memory_space<vmem>>, vector<1x1x3xf32>
    %38 = vector.shape_cast %37 : vector<1x1x3xf32> to vector<1x3xf32>
    %cst_34 = arith.constant dense<0.000000e+00> : vector<1x64xf32>
    %39 = tpu.matmul %38, %29, %cst_34 {dimension_numbers = #tpu.dot_dimension_numbers<[1], [0], [0], [1], [0, 0, 1, 1], [], []>} : vector<1x3xf32>, vector<3x64xf32>, vector<1x64xf32> -> vector<1x64xf32>
    %40 = arith.maximumf %36, %39 : vector<1x64xf32>
    %c0_35 = arith.constant 0 : index
    %c0_36 = arith.constant 0 : index
    %41 = vector.load %arg5[%c0_35, %c0_36] : memref<1x64xf32, #tpu.memory_space<vmem>>, vector<1x64xf32>
    %42 = arith.addf %40, %41 : vector<1x64xf32>
    %c0_37 = arith.constant 0 : index
    %c0_38 = arith.constant 0 : index
    %c0_39 = arith.constant 0 : index
    %43 = vector.load %arg6[%c0_37, %c0_38, %c0_39] : memref<1x1x64xf32, #tpu.memory_space<vmem>>, vector<1x1x64xf32>
    %44 = vector.shape_cast %43 : vector<1x1x64xf32> to vector<1x64xf32>
    %45 = vector.shape_cast %42 : vector<1x64xf32> to vector<1x1x64xf32>
    tpu.vector_store %arg6[%c0_37, %c0_38, %c0_39], %45 {strides = array<i32>} : memref<1x1x64xf32, #tpu.memory_space<vmem>>, vector<1x1x64xf32>,
    return
  }
  func.func @transform_0(%arg0: i32) -> (i32, i32, i32) {
    %c0_i32 = arith.constant 0 : i32
    %c0_i32_0 = arith.constant 0 : i32
    %c0_i32_1 = arith.constant 0 : i32
    return %arg0, %c0_i32, %c0_i32_0 : i32, i32, i32
  }
  func.func @transform_1(%arg0: i32) -> (i32, i32, i32) {
    %c0_i32 = arith.constant 0 : i32
    %c0_i32_0 = arith.constant 0 : i32
    %c0_i32_1 = arith.constant 0 : i32
    %c0_i32_2 = arith.constant 0 : i32
    return %c0_i32, %c0_i32_0, %c0_i32_1 : i32, i32, i32
  }
  func.func @transform_2(%arg0: i32) -> (i32, i32, i32) {
    %c0_i32 = arith.constant 0 : i32
    %c0_i32_0 = arith.constant 0 : i32
    %c0_i32_1 = arith.constant 0 : i32
    %c0_i32_2 = arith.constant 0 : i32
    return %c0_i32, %c0_i32_0, %c0_i32_1 : i32, i32, i32
  }
  func.func @transform_3(%arg0: i32) -> (i32, i32, i32) {
    %c0_i32 = arith.constant 0 : i32
    %c0_i32_0 = arith.constant 0 : i32
    %c0_i32_1 = arith.constant 0 : i32
    %c0_i32_2 = arith.constant 0 : i32
    return %c0_i32, %c0_i32_0, %c0_i32_1 : i32, i32, i32
  }
  func.func @transform_4(%arg0: i32) -> (i32, i32) {
    %c0_i32 = arith.constant 0 : i32
    %c0_i32_0 = arith.constant 0 : i32
    %c0_i32_1 = arith.constant 0 : i32
    return %c0_i32, %c0_i32_0 : i32, i32
  }
  func.func @transform_5(%arg0: i32) -> (i32, i32, i32) {
    %c0_i32 = arith.constant 0 : i32
    %c0_i32_0 = arith.constant 0 : i32
    %c0_i32_1 = arith.constant 0 : i32
    return %arg0, %c0_i32, %c0_i32_0 : i32, i32, i32
  }
}

module attributes {stable_mosaic.version = 11 : i64} {
  func.func @_resblock_kernel(%arg0: i32, %arg1: memref<1x1x64xf32, #tpu.memory_space<vmem>>, %arg2: memref<3x64x64xbf16, #tpu.memory_space<vmem>>, %arg3: memref<1x64xf32, #tpu.memory_space<vmem>>, %arg4: memref<3x64x64xbf16, #tpu.memory_space<vmem>>, %arg5: memref<1x64xf32, #tpu.memory_space<vmem>>, %arg6: memref<1x1x64xf32, #tpu.memory_space<vmem>>, %arg7: memref<3x64xf32, #tpu.memory_space<vmem>>) attributes {dimension_semantics = [#tpu.dimension_semantics<parallel>], iteration_bounds = array<i64: 2>, scalar_prefetch = 0 : i64, scratch_operands = 1 : i64, tpu.core_type = #tpu.core_type<tc>, window_params = [{transform_indices = @transform_0, window_bounds = array<i64: 1, 1, 64>}, {pipeline_mode = #tpu.pipeline_mode<synchronous>, transform_indices = @transform_1, window_bounds = array<i64: 3, 64, 64>}, {pipeline_mode = #tpu.pipeline_mode<synchronous>, transform_indices = @transform_2, window_bounds = array<i64: 1, 64>}, {pipeline_mode = #tpu.pipeline_mode<synchronous>, transform_indices = @transform_3, window_bounds = array<i64: 3, 64, 64>}, {pipeline_mode = #tpu.pipeline_mode<synchronous>, transform_indices = @transform_4, window_bounds = array<i64: 1, 64>}, {transform_indices = @transform_5, window_bounds = array<i64: 1, 1, 64>}]} {
    %cst = arith.constant 0.000000e+00 : f32
    %0 = vector.broadcast %cst : f32 to vector<1x64xf32>
    %c0 = arith.constant 0 : index
    %c0_0 = arith.constant 0 : index
    %1 = vector.load %arg7[%c0, %c0_0] : memref<3x64xf32, #tpu.memory_space<vmem>>, vector<1x64xf32>
    tpu.vector_store %arg7[%c0, %c0_0], %0 {strides = array<i32>} : memref<3x64xf32, #tpu.memory_space<vmem>>, vector<1x64xf32>,
    %c2 = arith.constant 2 : index
    %c0_1 = arith.constant 0 : index
    %2 = vector.load %arg7[%c2, %c0_1] : memref<3x64xf32, #tpu.memory_space<vmem>>, vector<1x64xf32>
    tpu.vector_store %arg7[%c2, %c0_1], %0 {strides = array<i32>} : memref<3x64xf32, #tpu.memory_space<vmem>>, vector<1x64xf32>,
    %c0_2 = arith.constant 0 : index
    %c0_3 = arith.constant 0 : index
    %c0_4 = arith.constant 0 : index
    %3 = vector.load %arg1[%c0_2, %c0_3, %c0_4] : memref<1x1x64xf32, #tpu.memory_space<vmem>>, vector<1x1x64xf32>
    %4 = vector.shape_cast %3 : vector<1x1x64xf32> to vector<1x64xf32>
    %cst_5 = arith.constant 0.000000e+00 : f32
    %5 = vector.broadcast %cst_5 : f32 to vector<1x64xf32>
    %6 = arith.maximumf %4, %5 : vector<1x64xf32>
    %c1 = arith.constant 1 : index
    %c0_6 = arith.constant 0 : index
    %7 = vector.load %arg7[%c1, %c0_6] : memref<3x64xf32, #tpu.memory_space<vmem>>, vector<1x64xf32>
    tpu.vector_store %arg7[%c1, %c0_6], %6 {strides = array<i32>} : memref<3x64xf32, #tpu.memory_space<vmem>>, vector<1x64xf32>,
    %c0_7 = arith.constant 0 : index
    %c0_8 = arith.constant 0 : index
    %8 = vector.load %arg7[%c0_7, %c0_8] : memref<3x64xf32, #tpu.memory_space<vmem>>, vector<3x64xf32>
    %9 = vector.extract_strided_slice %8 {offsets = [0, 0], sizes = [1, 64], strides = [1, 1]} : vector<3x64xf32> to vector<1x64xf32>
    %10 = arith.truncf %9 : vector<1x64xf32> to vector<1x64xbf16>
    %c0_9 = arith.constant 0 : index
    %c0_10 = arith.constant 0 : index
    %c0_11 = arith.constant 0 : index
    %11 = vector.load %arg2[%c0_9, %c0_10, %c0_11] : memref<3x64x64xbf16, #tpu.memory_space<vmem>>, vector<1x64x64xbf16>
    %12 = vector.shape_cast %11 : vector<1x64x64xbf16> to vector<64x64xbf16>
    %cst_12 = arith.constant dense<0.000000e+00> : vector<1x64xf32>
    %13 = tpu.matmul %10, %12, %cst_12 {dimension_numbers = #tpu.dot_dimension_numbers<[1], [0], [0], [1], [0, 0, 1, 1], [], []>} : vector<1x64xbf16>, vector<64x64xbf16>, vector<1x64xf32> -> vector<1x64xf32>
    %14 = vector.extract_strided_slice %8 {offsets = [1, 0], sizes = [1, 64], strides = [1, 1]} : vector<3x64xf32> to vector<1x64xf32>
    %15 = arith.truncf %14 : vector<1x64xf32> to vector<1x64xbf16>
    %c1_13 = arith.constant 1 : index
    %c0_14 = arith.constant 0 : index
    %c0_15 = arith.constant 0 : index
    %16 = vector.load %arg2[%c1_13, %c0_14, %c0_15] : memref<3x64x64xbf16, #tpu.memory_space<vmem>>, vector<1x64x64xbf16>
    %17 = vector.shape_cast %16 : vector<1x64x64xbf16> to vector<64x64xbf16>
    %cst_16 = arith.constant dense<0.000000e+00> : vector<1x64xf32>
    %18 = tpu.matmul %15, %17, %cst_16 {dimension_numbers = #tpu.dot_dimension_numbers<[1], [0], [0], [1], [0, 0, 1, 1], [], []>} : vector<1x64xbf16>, vector<64x64xbf16>, vector<1x64xf32> -> vector<1x64xf32>
    %19 = arith.addf %13, %18 : vector<1x64xf32>
    %20 = vector.extract_strided_slice %8 {offsets = [2, 0], sizes = [1, 64], strides = [1, 1]} : vector<3x64xf32> to vector<1x64xf32>
    %21 = arith.truncf %20 : vector<1x64xf32> to vector<1x64xbf16>
    %c2_17 = arith.constant 2 : index
    %c0_18 = arith.constant 0 : index
    %c0_19 = arith.constant 0 : index
    %22 = vector.load %arg2[%c2_17, %c0_18, %c0_19] : memref<3x64x64xbf16, #tpu.memory_space<vmem>>, vector<1x64x64xbf16>
    %23 = vector.shape_cast %22 : vector<1x64x64xbf16> to vector<64x64xbf16>
    %cst_20 = arith.constant dense<0.000000e+00> : vector<1x64xf32>
    %24 = tpu.matmul %21, %23, %cst_20 {dimension_numbers = #tpu.dot_dimension_numbers<[1], [0], [0], [1], [0, 0, 1, 1], [], []>} : vector<1x64xbf16>, vector<64x64xbf16>, vector<1x64xf32> -> vector<1x64xf32>
    %25 = arith.addf %19, %24 : vector<1x64xf32>
    %c0_21 = arith.constant 0 : index
    %c0_22 = arith.constant 0 : index
    %26 = vector.load %arg3[%c0_21, %c0_22] : memref<1x64xf32, #tpu.memory_space<vmem>>, vector<1x64xf32>
    %27 = arith.addf %25, %26 : vector<1x64xf32>
    %cst_23 = arith.constant 0.000000e+00 : f32
    %28 = vector.broadcast %cst_23 : f32 to vector<1x64xf32>
    %29 = arith.maximumf %27, %28 : vector<1x64xf32>
    %c1_24 = arith.constant 1 : index
    %c0_25 = arith.constant 0 : index
    %30 = vector.load %arg7[%c1_24, %c0_25] : memref<3x64xf32, #tpu.memory_space<vmem>>, vector<1x64xf32>
    tpu.vector_store %arg7[%c1_24, %c0_25], %29 {strides = array<i32>} : memref<3x64xf32, #tpu.memory_space<vmem>>, vector<1x64xf32>,
    %c0_26 = arith.constant 0 : index
    %c0_27 = arith.constant 0 : index
    %31 = vector.load %arg7[%c0_26, %c0_27] : memref<3x64xf32, #tpu.memory_space<vmem>>, vector<3x64xf32>
    %32 = vector.extract_strided_slice %31 {offsets = [0, 0], sizes = [1, 64], strides = [1, 1]} : vector<3x64xf32> to vector<1x64xf32>
    %33 = arith.truncf %32 : vector<1x64xf32> to vector<1x64xbf16>
    %c0_28 = arith.constant 0 : index
    %c0_29 = arith.constant 0 : index
    %c0_30 = arith.constant 0 : index
    %34 = vector.load %arg4[%c0_28, %c0_29, %c0_30] : memref<3x64x64xbf16, #tpu.memory_space<vmem>>, vector<1x64x64xbf16>
    %35 = vector.shape_cast %34 : vector<1x64x64xbf16> to vector<64x64xbf16>
    %cst_31 = arith.constant dense<0.000000e+00> : vector<1x64xf32>
    %36 = tpu.matmul %33, %35, %cst_31 {dimension_numbers = #tpu.dot_dimension_numbers<[1], [0], [0], [1], [0, 0, 1, 1], [], []>} : vector<1x64xbf16>, vector<64x64xbf16>, vector<1x64xf32> -> vector<1x64xf32>
    %37 = vector.extract_strided_slice %31 {offsets = [1, 0], sizes = [1, 64], strides = [1, 1]} : vector<3x64xf32> to vector<1x64xf32>
    %38 = arith.truncf %37 : vector<1x64xf32> to vector<1x64xbf16>
    %c1_32 = arith.constant 1 : index
    %c0_33 = arith.constant 0 : index
    %c0_34 = arith.constant 0 : index
    %39 = vector.load %arg4[%c1_32, %c0_33, %c0_34] : memref<3x64x64xbf16, #tpu.memory_space<vmem>>, vector<1x64x64xbf16>
    %40 = vector.shape_cast %39 : vector<1x64x64xbf16> to vector<64x64xbf16>
    %cst_35 = arith.constant dense<0.000000e+00> : vector<1x64xf32>
    %41 = tpu.matmul %38, %40, %cst_35 {dimension_numbers = #tpu.dot_dimension_numbers<[1], [0], [0], [1], [0, 0, 1, 1], [], []>} : vector<1x64xbf16>, vector<64x64xbf16>, vector<1x64xf32> -> vector<1x64xf32>
    %42 = arith.addf %36, %41 : vector<1x64xf32>
    %43 = vector.extract_strided_slice %31 {offsets = [2, 0], sizes = [1, 64], strides = [1, 1]} : vector<3x64xf32> to vector<1x64xf32>
    %44 = arith.truncf %43 : vector<1x64xf32> to vector<1x64xbf16>
    %c2_36 = arith.constant 2 : index
    %c0_37 = arith.constant 0 : index
    %c0_38 = arith.constant 0 : index
    %45 = vector.load %arg4[%c2_36, %c0_37, %c0_38] : memref<3x64x64xbf16, #tpu.memory_space<vmem>>, vector<1x64x64xbf16>
    %46 = vector.shape_cast %45 : vector<1x64x64xbf16> to vector<64x64xbf16>
    %cst_39 = arith.constant dense<0.000000e+00> : vector<1x64xf32>
    %47 = tpu.matmul %44, %46, %cst_39 {dimension_numbers = #tpu.dot_dimension_numbers<[1], [0], [0], [1], [0, 0, 1, 1], [], []>} : vector<1x64xbf16>, vector<64x64xbf16>, vector<1x64xf32> -> vector<1x64xf32>
    %48 = arith.addf %42, %47 : vector<1x64xf32>
    %c0_40 = arith.constant 0 : index
    %c0_41 = arith.constant 0 : index
    %49 = vector.load %arg5[%c0_40, %c0_41] : memref<1x64xf32, #tpu.memory_space<vmem>>, vector<1x64xf32>
    %50 = arith.addf %48, %49 : vector<1x64xf32>
    %51 = arith.addf %50, %4 : vector<1x64xf32>
    %c0_42 = arith.constant 0 : index
    %c0_43 = arith.constant 0 : index
    %c0_44 = arith.constant 0 : index
    %52 = vector.load %arg6[%c0_42, %c0_43, %c0_44] : memref<1x1x64xf32, #tpu.memory_space<vmem>>, vector<1x1x64xf32>
    %53 = vector.shape_cast %52 : vector<1x1x64xf32> to vector<1x64xf32>
    %54 = vector.shape_cast %51 : vector<1x64xf32> to vector<1x1x64xf32>
    tpu.vector_store %arg6[%c0_42, %c0_43, %c0_44], %54 {strides = array<i32>} : memref<1x1x64xf32, #tpu.memory_space<vmem>>, vector<1x1x64xf32>,
    return
  }
  func.func @transform_0(%arg0: i32) -> (i32, i32, i32) {
    %c0_i32 = arith.constant 0 : i32
    %c0_i32_0 = arith.constant 0 : i32
    %c0_i32_1 = arith.constant 0 : i32
    return %arg0, %c0_i32, %c0_i32_0 : i32, i32, i32
  }
  func.func @transform_1(%arg0: i32) -> (i32, i32, i32) {
    %c0_i32 = arith.constant 0 : i32
    %c0_i32_0 = arith.constant 0 : i32
    %c0_i32_1 = arith.constant 0 : i32
    %c0_i32_2 = arith.constant 0 : i32
    return %c0_i32, %c0_i32_0, %c0_i32_1 : i32, i32, i32
  }
  func.func @transform_2(%arg0: i32) -> (i32, i32) {
    %c0_i32 = arith.constant 0 : i32
    %c0_i32_0 = arith.constant 0 : i32
    %c0_i32_1 = arith.constant 0 : i32
    return %c0_i32, %c0_i32_0 : i32, i32
  }
  func.func @transform_3(%arg0: i32) -> (i32, i32, i32) {
    %c0_i32 = arith.constant 0 : i32
    %c0_i32_0 = arith.constant 0 : i32
    %c0_i32_1 = arith.constant 0 : i32
    %c0_i32_2 = arith.constant 0 : i32
    return %c0_i32, %c0_i32_0, %c0_i32_1 : i32, i32, i32
  }
  func.func @transform_4(%arg0: i32) -> (i32, i32) {
    %c0_i32 = arith.constant 0 : i32
    %c0_i32_0 = arith.constant 0 : i32
    %c0_i32_1 = arith.constant 0 : i32
    return %c0_i32, %c0_i32_0 : i32, i32
  }
  func.func @transform_5(%arg0: i32) -> (i32, i32, i32) {
    %c0_i32 = arith.constant 0 : i32
    %c0_i32_0 = arith.constant 0 : i32
    %c0_i32_1 = arith.constant 0 : i32
    return %arg0, %c0_i32, %c0_i32_0 : i32, i32, i32
  }
}

module attributes {stable_mosaic.version = 11 : i64} {
  func.func @_fc_head_kernel(%arg0: i32, %arg1: memref<2x65xf32, #tpu.memory_space<vmem>>, %arg2: memref<65x256xbf16, #tpu.memory_space<vmem>>, %arg3: memref<1x256xf32, #tpu.memory_space<vmem>>, %arg4: memref<256x128xbf16, #tpu.memory_space<vmem>>, %arg5: memref<1x128xf32, #tpu.memory_space<vmem>>, %arg6: memref<128x2xbf16, #tpu.memory_space<vmem>>, %arg7: memref<1x2xf32, #tpu.memory_space<vmem>>, %arg8: memref<2x2xf32, #tpu.memory_space<vmem>>) attributes {dimension_semantics = [#tpu.dimension_semantics<parallel>], iteration_bounds = array<i64: 1>, scalar_prefetch = 0 : i64, scratch_operands = 0 : i64, tpu.core_type = #tpu.core_type<tc>, window_params = [{transform_indices = @transform_0, window_bounds = array<i64: 2, 65>}, {pipeline_mode = #tpu.pipeline_mode<synchronous>, transform_indices = @transform_1, window_bounds = array<i64: 65, 256>}, {pipeline_mode = #tpu.pipeline_mode<synchronous>, transform_indices = @transform_2, window_bounds = array<i64: 1, 256>}, {pipeline_mode = #tpu.pipeline_mode<synchronous>, transform_indices = @transform_3, window_bounds = array<i64: 256, 128>}, {pipeline_mode = #tpu.pipeline_mode<synchronous>, transform_indices = @transform_4, window_bounds = array<i64: 1, 128>}, {pipeline_mode = #tpu.pipeline_mode<synchronous>, transform_indices = @transform_5, window_bounds = array<i64: 128, 2>}, {pipeline_mode = #tpu.pipeline_mode<synchronous>, transform_indices = @transform_6, window_bounds = array<i64: 1, 2>}, {transform_indices = @transform_7, window_bounds = array<i64: 2, 2>}]} {
    %c0 = arith.constant 0 : index
    %c0_0 = arith.constant 0 : index
    %0 = vector.load %arg1[%c0, %c0_0] : memref<2x65xf32, #tpu.memory_space<vmem>>, vector<2x65xf32>
    %1 = arith.truncf %0 : vector<2x65xf32> to vector<2x65xbf16>
    %c0_1 = arith.constant 0 : index
    %c0_2 = arith.constant 0 : index
    %2 = vector.load %arg2[%c0_1, %c0_2] : memref<65x256xbf16, #tpu.memory_space<vmem>>, vector<65x256xbf16>
    %cst = arith.constant dense<0.000000e+00> : vector<2x256xf32>
    %3 = tpu.matmul %1, %2, %cst {dimension_numbers = #tpu.dot_dimension_numbers<[1], [0], [0], [1], [0, 0, 1, 1], [], []>} : vector<2x65xbf16>, vector<65x256xbf16>, vector<2x256xf32> -> vector<2x256xf32>
    %c0_3 = arith.constant 0 : index
    %c0_4 = arith.constant 0 : index
    %4 = vector.load %arg3[%c0_3, %c0_4] : memref<1x256xf32, #tpu.memory_space<vmem>>, vector<1x256xf32>
    %5 = vector.broadcast %4 : vector<1x256xf32> to vector<2x256xf32>
    %6 = arith.addf %3, %5 : vector<2x256xf32>
    %cst_5 = arith.constant 0.000000e+00 : f32
    %7 = vector.broadcast %cst_5 : f32 to vector<2x256xf32>
    %8 = arith.maximumf %6, %7 : vector<2x256xf32>
    %9 = arith.truncf %8 : vector<2x256xf32> to vector<2x256xbf16>
    %c0_6 = arith.constant 0 : index
    %c0_7 = arith.constant 0 : index
    %10 = vector.load %arg4[%c0_6, %c0_7] : memref<256x128xbf16, #tpu.memory_space<vmem>>, vector<256x128xbf16>
    %cst_8 = arith.constant dense<0.000000e+00> : vector<2x128xf32>
    %11 = tpu.matmul %9, %10, %cst_8 {dimension_numbers = #tpu.dot_dimension_numbers<[1], [0], [0], [1], [0, 0, 1, 1], [], []>} : vector<2x256xbf16>, vector<256x128xbf16>, vector<2x128xf32> -> vector<2x128xf32>
    %c0_9 = arith.constant 0 : index
    %c0_10 = arith.constant 0 : index
    %12 = vector.load %arg5[%c0_9, %c0_10] : memref<1x128xf32, #tpu.memory_space<vmem>>, vector<1x128xf32>
    %13 = vector.broadcast %12 : vector<1x128xf32> to vector<2x128xf32>
    %14 = arith.addf %11, %13 : vector<2x128xf32>
    %cst_11 = arith.constant 0.000000e+00 : f32
    %15 = vector.broadcast %cst_11 : f32 to vector<2x128xf32>
    %16 = arith.maximumf %14, %15 : vector<2x128xf32>
    %17 = arith.truncf %16 : vector<2x128xf32> to vector<2x128xbf16>
    %c0_12 = arith.constant 0 : index
    %c0_13 = arith.constant 0 : index
    %18 = vector.load %arg6[%c0_12, %c0_13] : memref<128x2xbf16, #tpu.memory_space<vmem>>, vector<128x2xbf16>
    %cst_14 = arith.constant dense<0.000000e+00> : vector<2x2xf32>
    %19 = tpu.matmul %17, %18, %cst_14 {dimension_numbers = #tpu.dot_dimension_numbers<[1], [0], [0], [1], [0, 0, 1, 1], [], []>} : vector<2x128xbf16>, vector<128x2xbf16>, vector<2x2xf32> -> vector<2x2xf32>
    %c0_15 = arith.constant 0 : index
    %c0_16 = arith.constant 0 : index
    %20 = vector.load %arg7[%c0_15, %c0_16] : memref<1x2xf32, #tpu.memory_space<vmem>>, vector<1x2xf32>
    %21 = vector.broadcast %20 : vector<1x2xf32> to vector<2x2xf32>
    %22 = arith.addf %19, %21 : vector<2x2xf32>
    %c0_17 = arith.constant 0 : index
    %c0_18 = arith.constant 0 : index
    %23 = vector.load %arg8[%c0_17, %c0_18] : memref<2x2xf32, #tpu.memory_space<vmem>>, vector<2x2xf32>
    tpu.vector_store %arg8[%c0_17, %c0_18], %22 {strides = array<i32>} : memref<2x2xf32, #tpu.memory_space<vmem>>, vector<2x2xf32>,
    return
  }
  func.func @transform_0(%arg0: i32) -> (i32, i32) {
    %c0_i32 = arith.constant 0 : i32
    %c0_i32_0 = arith.constant 0 : i32
    return %arg0, %c0_i32 : i32, i32
  }
  func.func @transform_1(%arg0: i32) -> (i32, i32) {
    %c0_i32 = arith.constant 0 : i32
    %c0_i32_0 = arith.constant 0 : i32
    %c0_i32_1 = arith.constant 0 : i32
    return %c0_i32, %c0_i32_0 : i32, i32
  }
  func.func @transform_2(%arg0: i32) -> (i32, i32) {
    %c0_i32 = arith.constant 0 : i32
    %c0_i32_0 = arith.constant 0 : i32
    %c0_i32_1 = arith.constant 0 : i32
    return %c0_i32, %c0_i32_0 : i32, i32
  }
  func.func @transform_3(%arg0: i32) -> (i32, i32) {
    %c0_i32 = arith.constant 0 : i32
    %c0_i32_0 = arith.constant 0 : i32
    %c0_i32_1 = arith.constant 0 : i32
    return %c0_i32, %c0_i32_0 : i32, i32
  }
  func.func @transform_4(%arg0: i32) -> (i32, i32) {
    %c0_i32 = arith.constant 0 : i32
    %c0_i32_0 = arith.constant 0 : i32
    %c0_i32_1 = arith.constant 0 : i32
    return %c0_i32, %c0_i32_0 : i32, i32
  }
  func.func @transform_5(%arg0: i32) -> (i32, i32) {
    %c0_i32 = arith.constant 0 : i32
    %c0_i32_0 = arith.constant 0 : i32
    %c0_i32_1 = arith.constant 0 : i32
    return %c0_i32, %c0_i32_0 : i32, i32
  }
  func.func @transform_6(%arg0: i32) -> (i32, i32) {
    %c0_i32 = arith.constant 0 : i32
    %c0_i32_0 = arith.constant 0 : i32
    %c0_i32_1 = arith.constant 0 : i32
    return %c0_i32, %c0_i32_0 : i32, i32
  }
  func.func @transform_7(%arg0: i32) -> (i32, i32) {
    %c0_i32 = arith.constant 0 : i32
    %c0_i32_0 = arith.constant 0 : i32
    return %arg0, %c0_i32 : i32, i32
  }
}

</mosaic_0001>

<bundles_post_ra>
// kernel: seperated_impala_forward.11
= control target key start
LH: loop header
LB: loop body
LE: loop exit
PB: predicated region body
PF: predicated region fallthrough
CT: control target
= control target key end

     0   :  { %s2348_s18 = smov 0   ;;  %s2945_s0 = inlined_call_operand.vmem [shape: f32[2,14,224], index: 0, kind: input, shape index: {}]   ;;  %s2946_s1 = inlined_call_operand.vmem [shape: bf16[3,224,224], index: 1, kind: input, shape index: {}]   ;;  %s2947_s2 = inlined_call_operand.vmem [shape: f32[1,224], index: 2, kind: input, shape index: {}]   ;;  %s2948_s3 = inlined_call_operand.vmem [shape: bf16[3,224,224], index: 3, kind: input, shape index: {}]   ;;  %s2949_s4 = inlined_call_operand.vmem [shape: f32[1,224], index: 4, kind: input, shape index: {}]   ;;  %s2950_s5 = inlined_call_operand.vmem [shape: f32[2,14,224], index: 5, kind: output, shape index: {}]  }
   0x1 LB: > { %s1729_s19 = sadd.s32 4294967295, %s2315_s18   ;;  %p1733_p0 = scmp.ge.s32.totalorder %s2315_s18, 1  ;;  %s2315_s18 = sphi %s2348_s18, %s15_s18  }
   0x2   : > { %p187_p1 = scmp.lt.s32.totalorder %s2315_s18, 3 }
   0x4   : > { %p188_p2 = pnand %p1733_p0, %p187_p1 }
   0x5   : > { %v2053_v0 = vld [vmem:[%s2946_s1 + $0xe4] ss:$8 sps:$4 sm:$0xff] (!%p188_p2)   ;;  %v226_v1 = vlaneseq (!%p188_p2)  ;;  %v2055_v2 = vld [vmem:[%s2946_s1 + $0xe0] ss:$8 sps:$4 sm:$0xff] (!%p188_p2)   ;;  %v2056_v3 = vld [vmem:[%s2946_s1 + $0xf4] ss:$8 sps:$4 sm:$0xff] (!%p188_p2)  }
   0x6   : > { %191 = sbr.rel (%p188_p2) target bundleno = 745 (0x2e9), region = 40  ;;  %486 = vmatprep.subr.bf16.mxu0 (!%p188_p2), %v2053_v0  ;;  %v2058_v4 = vld [vmem:[%s2946_s1 + $0xf0] ss:$8 sps:$4 sm:$0xff] (!%p188_p2)   ;;  %v2059_v5 = vld [vmem:[%s2946_s1 + $0x104] ss:$8 sps:$4 sm:$0xff] (!%p188_p2)   ;;  %p215_p3 = scmp.lt.s32.totalorder (!%p188_p2), %s1729_s19, 1 }
   0x7   : > { %487 = vmatpush1.bf16.msra.mxu0 (!%p188_p2), %v2055_v2  ;;  %vm228_vm0 = vcmp.lt.s32.totalorder (!%p188_p2), %v226_v1, 224  ;;  %v2317_v6 = vmov (!%p188_p2), 0.0   ;;  %v2061_v7 = vld [vmem:[%s2946_s1 + $0x100] ss:$8 sps:$4 sm:$0xff] (!%p188_p2)   ;;  %v2062_v8 = vld [vmem:[%s2946_s1 + $0x114] ss:$8 sps:$4 sm:$0xff] (!%p188_p2)  }
   0x8   : > { %488 = vmatprep.subr.bf16.mxu0 (!%p188_p2), %v2056_v3  ;;  %230 = vst.msk [vmem:[#allocation2] ss:$8 sm:$0x3] (!%p188_p2), %vm228_vm0, %v2317_v6  ;;  %233 = vst.msk [vmem:[#allocation2 + $0x17] ss:$8 sm:$0x3] (!%p188_p2), %vm228_vm0, %v2317_v6 }
   0x9   : > { %v2064_v9 = vld [vmem:[%s2946_s1 + $0x110] ss:$8 sps:$4 sm:$0xff] (!%p188_p2)   ;;  %v2065_v10 = vld [vmem:[%s2946_s1 + $0x124] ss:$8 sps:$4 sm:$0xff] (!%p188_p2)   ;;  %v2067_v11 = vld [vmem:[%s2946_s1 + $0x120] ss:$8 sps:$4 sm:$0xff] (!%p188_p2)  }
   0xa   : > { %v2068_v12 = vld [vmem:[%s2946_s1 + $0x134] ss:$8 sps:$4 sm:$0xff] (!%p188_p2)   ;;  %v2070_v13 = vld [vmem:[%s2946_s1 + $0x130] ss:$8 sps:$4 sm:$0xff] (!%p188_p2)   ;;  %v2071_v17 = vld [vmem:[%s2946_s1 + $0x144] ss:$8 sps:$4 sm:$0xff] (!%p188_p2)  }
   0xb   : > { %489 = vmatpush1.bf16.msra.mxu0 (!%p188_p2), %v2058_v4  ;;  %vm247_vm1 = vcmask (!%p188_p2), 1040384   ;;  %vm259_vm2 = vcmask (!%p188_p2), 785409   ;;  %vm262_vm3 = vcmask (!%p188_p2), 784384   ;;  %v2073_v25 = vld [vmem:[%s2946_s1 + $0x140] ss:$8 sps:$4 sm:$0xff] (!%p188_p2)   ;;  %vm482_vm4 = vcmask (!%p188_p2), 785408  }
   0xc   : > { %490 = vmatprep.subr.bf16.mxu0 (!%p188_p2), %v2059_v5  ;;  %v2074_v27 = vld [vmem:[%s2946_s1 + $0x154] ss:$8 sps:$4 sm:$0xff] (!%p188_p2)   ;;  %v2076_v31 = vld [vmem:[%s2946_s1 + $0x150] ss:$8 sps:$4 sm:$0xff] (!%p188_p2)   ;;  %v2077_v32 = vld [vmem:[%s2946_s1 + $0x164] ss:$8 sps:$4 sm:$0xff] (!%p188_p2)  }
   0xd   : > { %s2952_s19 = smov (!%p215_p3, %s1729_s19), 1  ;;  %v2079_v34 = vld [vmem:[%s2946_s1 + $0x160] ss:$8 sps:$4 sm:$0xff]   ;;  %v2080_v35 = vld [vmem:[%s2946_s1 + $0x174] ss:$8 sps:$4 sm:$0xff]   ;;  %vm1672_vm5 = vcmask 783360  }
   0xe   : > { %s2026_s13 = sshll.u32 %s2952_s19, 5  ;;  %v2082_v38 = vld [vmem:[%s2946_s1 + $0x170] ss:$8 sps:$4 sm:$0xff]   ;;  %v2083_v41 = vld [vmem:[%s2946_s1 + $0x184] ss:$8 sps:$4 sm:$0xff]  }
   0xf   : > { %491 = vmatpush1.bf16.msra.mxu0 %v2061_v7  ;;  %s2395_s20 = scalar_lea.vmem %s2945_s0, %s2026_s13  ;;  %v2085_v43 = vld [vmem:[%s2946_s1 + $0x180] ss:$8 sps:$4 sm:$0xff]   ;;  %v2086_v47 = vld [vmem:[%s2946_s1 + $0x194] ss:$8 sps:$4 sm:$0xff]   ;;  %v2088_v49 = vld [vmem:[%s2946_s1 + $0x190] ss:$8 sps:$4 sm:$0xff]   ;;  %s224_s28 = scalar_lea.vmem %s2950_s5, %s2026_s13 }
  0x10   : > { %492 = vmatprep.subr.bf16.mxu0 %v2062_v8  ;;  %v236_v14 = vld [vmem:[%s2395_s20 + $0x8] sm:$0xff]  ;;  %v238_v15 = vld [vmem:[%s2395_s20 + $0x18] sm:$0x3f]  ;;  %v235_v19 = vld [vmem:[%s2395_s20] sm:$0xff] }
  0x11   : > { %v240_v16 = vmax.f32 %v236_v14, 0.0  ;;  %v242_v18 = vmax.f32 %v238_v15, 0.0  ;;  %v237_v21 = vld [vmem:[%s2395_s20 + $0x10] sm:$0x3f]  ;;  %v239_v22 = vmax.f32 %v235_v19, 0.0 }
  0x12   : > { %v241_v24 = vmax.f32 %v237_v21, 0.0  ;;  %v2089_v50 = vld [vmem:[%s2946_s1 + $0x1a4] ss:$8 sps:$4 sm:$0xff]   ;;  %v2091_v52 = vld [vmem:[%s2946_s1 + $0x1a0] ss:$8 sps:$4 sm:$0xff]  }
  0x13   : > { %493 = vmatpush1.bf16.msra.mxu0 %v2064_v9  ;;  %v249_v20 = vrot.slane %v240_v16, 7  ;;  %v252_v23 = vrot.slane %v242_v18, 7  ;;  %v248_v26 = vrot.slane %v239_v22, 7  ;;  %v2092_v53 = vld [vmem:[%s2946_s1 + $0x1b4] ss:$8 sps:$4 sm:$0xff]  }
  0x14   : > { %494 = vmatprep.subr.bf16.mxu0 %v2065_v10  ;;  %v250_v29 = vrot.slane %v241_v24, 7  ;;  %v2094_v56 = vld [vmem:[%s2946_s1 + $0x1b0] ss:$8 sps:$4 sm:$0xff]   ;;  %v2097_v57 = vld [vmem:[%s2946_s1 + $0x4] ss:$8 sps:$4 sm:$0xff]  }
  0x15   : > { %260 = vst.msk [vmem:[#allocation2 + $0x8] sm:$0xfe] %vm259_vm2, %v249_v20  ;;  %v253_v28 = vsel %vm247_vm1, %v249_v20, %v252_v23  ;;  %258 = vst [vmem:[#allocation2] sm:$0xfe] %v248_v26  ;;  %v2095_v59 = vld [vmem:[%s2946_s1] ss:$8 sps:$4 sm:$0xff]  }
  0x16   : > { %263 = vst.msk [vmem:[#allocation2 + $0x18] sm:$0x7f] %vm262_vm3, %v253_v28  ;;  %v251_v30 = vsel %vm247_vm1, %v248_v26, %v250_v29  ;;  %v2100_v60 = vld [vmem:[%s2946_s1 + $0x14] ss:$8 sps:$4 sm:$0xff]   ;;  %v2098_v61 = vld [vmem:[%s2946_s1 + $0x10] ss:$8 sps:$4 sm:$0xff]  }
  0x17   : > { %495 = vmatpush1.bf16.msra.mxu0 %v2067_v11  ;;  %261 = vst [vmem:[#allocation2 + $0x10] sm:$0x7f] %v251_v30  ;;  %v2103_v62 = vld [vmem:[%s2946_s1 + $0x24] ss:$8 sps:$4 sm:$0xff]   ;;  %v2181_v0 = vld [vmem:[%s2948_s3 + $0xe0] ss:$8 sps:$4 sm:$0xff]  }
  0x18   : > { %496 = vmatprep.subr.bf16.mxu0 %v2068_v12  ;;  %v2179_v63 = vld [vmem:[%s2948_s3 + $0xe4] ss:$8 sps:$4 sm:$0xff]   ;;  %v2182_v2 = vld [vmem:[%s2948_s3 + $0xf4] ss:$8 sps:$4 sm:$0xff]   ;;  %v2101_v3 = vld [vmem:[%s2946_s1 + $0x20] ss:$8 sps:$4 sm:$0xff]  }
  0x19   : > { %1197 = vmatprep.subr.bf16.mxu1 %v2179_v63  ;;  %v2184_v4 = vld [vmem:[%s2948_s3 + $0xf0] ss:$8 sps:$4 sm:$0xff]   ;;  %v2106_v5 = vld [vmem:[%s2946_s1 + $0x34] ss:$8 sps:$4 sm:$0xff]   ;;  %v2185_v6 = vld [vmem:[%s2948_s3 + $0x104] ss:$8 sps:$4 sm:$0xff]  }
  0x1a   : > { %1198 = vmatpush1.bf16.msra.mxu1 %v2181_v0  ;;  %v2104_v7 = vld [vmem:[%s2946_s1 + $0x30] ss:$8 sps:$4 sm:$0xff]   ;;  %v2187_v8 = vld [vmem:[%s2948_s3 + $0x100] ss:$8 sps:$4 sm:$0xff]   ;;  %v2109_v9 = vld [vmem:[%s2946_s1 + $0x44] ss:$8 sps:$4 sm:$0xff]  }
  0x1b   : > { %497 = vmatpush1.bf16.msra.mxu0 %v2070_v13  ;;  %1199 = vmatprep.subr.bf16.mxu1 %v2182_v2  ;;  %v2188_v10 = vld [vmem:[%s2948_s3 + $0x114] ss:$8 sps:$4 sm:$0xff]   ;;  %v2107_v11 = vld [vmem:[%s2946_s1 + $0x40] ss:$8 sps:$4 sm:$0xff]   ;;  %v2190_v12 = vld [vmem:[%s2948_s3 + $0x110] ss:$8 sps:$4 sm:$0xff]  }
  0x1c   : > { %498 = vmatprep.subr.bf16.mxu0 %v2071_v17  ;;  %v265_v33 = vld [vmem:[#allocation2 + $0x8] sm:$0xff]  ;;  %v264_v44 = vld [vmem:[#allocation2] sm:$0xff]  ;;  %v2112_v13 = vld [vmem:[%s2946_s1 + $0x54] ss:$8 sps:$4 sm:$0xff]  }
  0x1d   : > { %v267_v36 = vld [vmem:[#allocation2 + $0x18] sm:$0xff]  ;;  %v2191_v14 = vld [vmem:[%s2948_s3 + $0x124] ss:$8 sps:$4 sm:$0xff]   ;;  %v2193_v16 = vld [vmem:[%s2948_s3 + $0x120] ss:$8 sps:$4 sm:$0xff]  }
  0x1e   : > { %v2432_v37 = vpack.c.bf16 %v267_v36, %v265_v33  ;;  %v266_v46 = vld [vmem:[#allocation2 + $0x10] sm:$0xff]  ;;  %1200 = vmatpush1.bf16.msra.mxu1 %v2184_v4  ;;  %v2115_v17 = vld [vmem:[%s2946_s1 + $0x64] ss:$8 sps:$4 sm:$0xff]   ;;  %v2113_v19 = vld [vmem:[%s2946_s1 + $0x60] ss:$8 sps:$4 sm:$0xff]  }
  0x1f   : > { %499 = vmatpush1.bf16.msra.mxu0 %v2073_v25  ;;  %v2449_v48 = vpack.c.bf16 %v266_v46, %v264_v44  ;;  %1201 = vmatprep.subr.bf16.mxu1 %v2185_v6  ;;  %v2110_v15 = vld [vmem:[%s2946_s1 + $0x50] ss:$8 sps:$4 sm:$0xff]   ;;  %v2194_v18 = vld [vmem:[%s2948_s3 + $0x134] ss:$8 sps:$4 sm:$0xff]   ;;  %v2197_v22 = vld [vmem:[%s2948_s3 + $0x144] ss:$8 sps:$4 sm:$0xff]  }
  0x20   : > { %500 = vmatprep.subr.bf16.mxu0 %v2074_v27  ;;  %v335_v39 = vshrl.u32 %v2432_v37, 16  ;;  %v337_v40 = vshll.u32 %v2432_v37, 16  ;;  %v2196_v20 = vld [vmem:[%s2948_s3 + $0x130] ss:$8 sps:$4 sm:$0xff]   ;;  %v2118_v21 = vld [vmem:[%s2946_s1 + $0x74] ss:$8 sps:$4 sm:$0xff]  }
  0x21   : > { %v330_v51 = vshll.u32 %v2449_v48, 16  ;;  %v328_v54 = vshrl.u32 %v2449_v48, 16  ;;  %v2116_v23 = vld [vmem:[%s2946_s1 + $0x70] ss:$8 sps:$4 sm:$0xff]   ;;  %v2199_v24 = vld [vmem:[%s2948_s3 + $0x140] ss:$8 sps:$4 sm:$0xff]  }
  0x22   : > { %v339_v42 = vrot.slane %v337_v40, 1  ;;  %1202 = vmatpush1.bf16.msra.mxu1 %v2187_v8  ;;  %v2121_v25 = vld [vmem:[%s2946_s1 + $0x84] ss:$8 sps:$4 sm:$0xff]   ;;  %v2200_v26 = vld [vmem:[%s2948_s3 + $0x154] ss:$8 sps:$4 sm:$0xff]  }
  0x23   : > { %501 = vmatpush1.bf16.msra.mxu0 %v2076_v31  ;;  %v332_v55 = vrot.slane %v330_v51, 1  ;;  %1203 = vmatprep.subr.bf16.mxu1 %v2188_v10  ;;  %v2119_v27 = vld [vmem:[%s2946_s1 + $0x80] ss:$8 sps:$4 sm:$0xff]   ;;  %v2124_v28 = vld [vmem:[%s2946_s1 + $0x94] ss:$8 sps:$4 sm:$0xff]  }
  0x24   : > { %502 = vmatprep.subr.bf16.mxu0 %v2077_v32  ;;  %v340_v45 = vor.u32 %v339_v42, %v335_v39  ;;  %v2122_v29 = vld [vmem:[%s2946_s1 + $0x90] ss:$8 sps:$4 sm:$0xff]   ;;  %v2127_v30 = vld [vmem:[%s2946_s1 + $0xa4] ss:$8 sps:$4 sm:$0xff]   ;;  %v2125_v31 = vld [vmem:[%s2946_s1 + $0xa0] ss:$8 sps:$4 sm:$0xff]  }
  0x25   : > { %v333_v58 = vor.u32 %v332_v55, %v328_v54  ;;  %v2130_v32 = vld [vmem:[%s2946_s1 + $0xb4] ss:$8 sps:$4 sm:$0xff]   ;;  %v2128_v33 = vld [vmem:[%s2946_s1 + $0xb0] ss:$8 sps:$4 sm:$0xff]   ;;  %v2139_v39 = vld [vmem:[%s2946_s1 + $0x1c4] ss:$8 sps:$4 sm:$0xff]  }
  0x26   : > { %1794 = vmatprep.mubr.msk.bf16.mxu0 %vm482_vm4, %v340_v45  ;;  %1204 = vmatpush1.bf16.msra.mxu1 %v2190_v12  ;;  %v2136_v36 = vld [vmem:[%s2946_s1 + $0xd4] ss:$8 sps:$4 sm:$0xff]   ;;  %v2137_v40 = vld [vmem:[%s2946_s1 + $0x1c0] ss:$8 sps:$4 sm:$0xff]   ;;  %v2145_v44 = vld [vmem:[%s2946_s1 + $0x1e4] ss:$8 sps:$4 sm:$0xff]  }
  0x27   : > { %503 = vmatpush1.bf16.msra.mxu0 %v2079_v34  ;;  %1205 = vmatprep.subr.bf16.mxu1 %v2191_v14  ;;  %v2133_v34 = vld [vmem:[%s2946_s1 + $0xc4] ss:$8 sps:$4 sm:$0xff]   ;;  %v2142_v42 = vld [vmem:[%s2946_s1 + $0x1d4] ss:$8 sps:$4 sm:$0xff]   ;;  %v2146_v46 = vld [vmem:[%s2946_s1 + $0x1f0] ss:$8 sps:$4 sm:$0xff]  }
  0x28   : > { %504 = vmatprep.subr.bf16.mxu0 %v2080_v35  ;;  %v2131_v35 = vld [vmem:[%s2946_s1 + $0xc0] ss:$8 sps:$4 sm:$0xff]   ;;  %v2148_v45 = vld [vmem:[%s2946_s1 + $0x1f4] ss:$8 sps:$4 sm:$0xff]   ;;  %v2152_v51 = vld [vmem:[%s2946_s1 + $0x210] ss:$8 sps:$4 sm:$0xff]  }
  0x29   : > { %v2160_v54 = vld [vmem:[%s2946_s1 + $0x234] ss:$8 sps:$4 sm:$0xff]   ;;  %v2158_v55 = vld [vmem:[%s2946_s1 + $0x230] ss:$8 sps:$4 sm:$0xff]   ;;  %v2175_v0 = vld [vmem:[%s2946_s1 + $0x284] ss:$8 sps:$4 sm:$0xff]  }
  0x2a   : > { %1206 = vmatpush1.bf16.msra.mxu1 %v2193_v16  ;;  %v2170_v63 = vld [vmem:[%s2946_s1 + $0x270] ss:$8 sps:$4 sm:$0xff]   ;;  %v2173_v2 = vld [vmem:[%s2946_s1 + $0x280] ss:$8 sps:$4 sm:$0xff]   ;;  %v2209_v10 = vld [vmem:[%s2948_s3 + $0x184] ss:$8 sps:$4 sm:$0xff]  }
  0x2b   : > { %505 = vmatpush1.bf16.msra.mxu0 %v2082_v38  ;;  %1207 = vmatprep.subr.bf16.mxu1 %v2194_v18  ;;  %v2134_v38 = vld [vmem:[%s2946_s1 + $0xd0] ss:$8 sps:$4 sm:$0xff]   ;;  %v2205_v8 = vld [vmem:[%s2948_s3 + $0x160] ss:$8 sps:$4 sm:$0xff]   ;;  %v2212_v12 = vld [vmem:[%s2948_s3 + $0x194] ss:$8 sps:$4 sm:$0xff]  }
  0x2c   : > { %506 = vmatprep.subr.bf16.mxu0 %v2083_v41  ;;  %v746_v41 = vrot.slane %v2432_v37, 1  ;;  %v2176_v4 = vld [vmem:[%s2946_s1 + $0x290] ss:$8 sps:$4 sm:$0xff]   ;;  %v2215_v14 = vld [vmem:[%s2948_s3 + $0x1a4] ss:$8 sps:$4 sm:$0xff]  }
  0x2d   : > { %v2202_v6 = vld [vmem:[%s2948_s3 + $0x150] ss:$8 sps:$4 sm:$0xff]   ;;  %v2218_v16 = vld [vmem:[%s2948_s3 + $0x1b4] ss:$8 sps:$4 sm:$0xff]   ;;  %v2223_v18 = vld [vmem:[%s2948_s3 + $0x4] ss:$8 sps:$4 sm:$0xff]  }
  0x2e   : > { %1208 = vmatpush1.bf16.msra.mxu1 %v2196_v20 }
  0x2f   : > { %507 = vmatpush1.bf16.msra.mxu0 %v2085_v43  ;;  %1209 = vmatprep.subr.bf16.mxu1 %v2197_v22  ;;  %v2140_v43 = vld [vmem:[%s2946_s1 + $0x1d0] ss:$8 sps:$4 sm:$0xff]  }
  0x30   : > { %508 = vmatprep.subr.bf16.mxu0 %v2086_v47  ;;  %v2151_v47 = vld [vmem:[%s2946_s1 + $0x204] ss:$8 sps:$4 sm:$0xff]  }
  0x32   : > { %1210 = vmatpush1.bf16.msra.mxu1 %v2199_v24 }
  0x33   : > { %509 = vmatpush1.bf16.msra.mxu0 %v2088_v49  ;;  %1211 = vmatprep.subr.bf16.mxu1 %v2200_v26  ;;  %v2149_v49 = vld [vmem:[%s2946_s1 + $0x200] ss:$8 sps:$4 sm:$0xff]  }
  0x34   : > { %510 = vmatprep.subr.bf16.mxu0 %v2089_v50  ;;  %v2154_v50 = vld [vmem:[%s2946_s1 + $0x214] ss:$8 sps:$4 sm:$0xff]  }
  0x36   : > { %1212 = vmatpush1.bf16.msra.mxu1 %v2202_v6  ;;  %v2239_v6 = vld [vmem:[%s2948_s3 + $0x60] ss:$8 sps:$4 sm:$0xff]  }
  0x37   : > { %511 = vmatpush1.bf16.msra.mxu0 %v2091_v52  ;;  %v2157_v52 = vld [vmem:[%s2946_s1 + $0x224] ss:$8 sps:$4 sm:$0xff]  }
  0x38   : > { %512 = vmatprep.subr.bf16.mxu0 %v2092_v53  ;;  %v2155_v53 = vld [vmem:[%s2946_s1 + $0x220] ss:$8 sps:$4 sm:$0xff]  }
  0x3b   : > { %513 = vmatpush1.bf16.msra.mxu0 %v2094_v56  ;;  %v2163_v56 = vld [vmem:[%s2946_s1 + $0x244] ss:$8 sps:$4 sm:$0xff]  }
  0x3c   : > { %671 = vmatprep.subr.bf16.mxu0 %v2097_v57  ;;  %v2161_v57 = vld [vmem:[%s2946_s1 + $0x240] ss:$8 sps:$4 sm:$0xff]  }
  0x3e   : > { %519 = vmatmul.mubr.bf16.vlgmr.msra.gmra.mrb[0].mxu0 %v333_v58  ;;  %v2166_v58 = vld [vmem:[%s2946_s1 + $0x254] ss:$8 sps:$4 sm:$0xff]  }
  0x3f   : > { %672 = vmatpush1.bf16.msra.mxu0 %v2095_v59  ;;  %1823 = vmatprep.mubr.msk.bf16.mxu0 %vm482_vm4, %v2432_v37  ;;  %v2143_v37 = vld [vmem:[%s2946_s1 + $0x1e0] ss:$8 sps:$4 sm:$0xff]   ;;  %v2164_v59 = vld [vmem:[%s2946_s1 + $0x250] ss:$8 sps:$4 sm:$0xff]  }
  0x40   : > { %673 = vmatprep.subr.bf16.mxu0 %v2100_v60  ;;  %v2169_v60 = vld [vmem:[%s2946_s1 + $0x264] ss:$8 sps:$4 sm:$0xff]  }
  0x43   : > { %674 = vmatpush1.bf16.msra.mxu0 %v2098_v61  ;;  %v2167_v61 = vld [vmem:[%s2946_s1 + $0x260] ss:$8 sps:$4 sm:$0xff]  }
  0x44   : > { %675 = vmatprep.subr.bf16.mxu0 %v2103_v62  ;;  %v2172_v62 = vld [vmem:[%s2946_s1 + $0x274] ss:$8 sps:$4 sm:$0xff]  }
  0x47   : > { %676 = vmatpush1.bf16.msra.mxu0 %v2101_v3  ;;  %v2178_v3 = vld [vmem:[%s2946_s1 + $0x294] ss:$8 sps:$4 sm:$0xff]  }
  0x48   : > { %677 = vmatprep.subr.bf16.mxu0 %v2106_v5  ;;  %v745_v5 = vrot.slane %v2449_v48, 1 }
  0x4b   : > { %678 = vmatpush1.bf16.msra.mxu0 %v2104_v7  ;;  %v2203_v7 = vld [vmem:[%s2948_s3 + $0x164] ss:$8 sps:$4 sm:$0xff]  }
  0x4c   : > { %679 = vmatprep.subr.bf16.mxu0 %v2109_v9  ;;  %1213 = vmatprep.subr.bf16.mxu1 %v2203_v7  ;;  %v2208_v9 = vld [vmem:[%s2948_s3 + $0x170] ss:$8 sps:$4 sm:$0xff]   ;;  %v2244_v7 = vld [vmem:[%s2948_s3 + $0x74] ss:$8 sps:$4 sm:$0xff]  }
  0x4d   : > { %1214 = vmatpush1.bf16.msra.mxu1 %v2205_v8  ;;  %v2242_v8 = vld [vmem:[%s2948_s3 + $0x70] ss:$8 sps:$4 sm:$0xff]  }
  0x4f   : > { %680 = vmatpush1.bf16.msra.mxu0 %v2107_v11  ;;  %v2211_v11 = vld [vmem:[%s2948_s3 + $0x180] ss:$8 sps:$4 sm:$0xff]  }
  0x50   : > { %681 = vmatprep.subr.bf16.mxu0 %v2112_v13  ;;  %v2214_v13 = vld [vmem:[%s2948_s3 + $0x190] ss:$8 sps:$4 sm:$0xff]  }
  0x53   : > { %682 = vmatpush1.bf16.msra.mxu0 %v2110_v15  ;;  %v2217_v15 = vld [vmem:[%s2948_s3 + $0x1a0] ss:$8 sps:$4 sm:$0xff]  }
  0x54   : > { %683 = vmatprep.subr.bf16.mxu0 %v2115_v17  ;;  %v2220_v17 = vld [vmem:[%s2948_s3 + $0x1b0] ss:$8 sps:$4 sm:$0xff]  }
  0x57   : > { %684 = vmatpush1.bf16.msra.mxu0 %v2113_v19  ;;  %v2730_v19 = vshrl.u32 %v226_v1, 7 }
  0x58   : > { %685 = vmatprep.subr.bf16.mxu0 %v2118_v21  ;;  %v938_v21 = vld [vmem:[%s2947_s2] sm:$0x3] }
  0x59   : > { %v942_v20 = vsub.s32 0, %v2730_v19  ;;  %v946_v22 = vsub.s32 1, %v2730_v19 }
  0x5b   : > { %686 = vmatpush1.bf16.msra.mxu0 %v2116_v23  ;;  %v943_v23 = vrot.slane %v938_v21, %v942_v20  ;;  %v947_v24 = vrot.slane %v938_v21, %v946_v22  ;;  %v2260_v21 = vld [vmem:[%s2948_s3 + $0xd0] ss:$8 sps:$4 sm:$0xff]  }
  0x5c   : > { %687 = vmatprep.subr.bf16.mxu0 %v2121_v25 }
  0x5f   : > { %688 = vmatpush1.bf16.msra.mxu0 %v2119_v27 }
  0x60   : > { %689 = vmatprep.subr.bf16.mxu0 %v2124_v28 }
  0x63   : > { %690 = vmatpush1.bf16.msra.mxu0 %v2122_v29 }
  0x64   : > { %691 = vmatprep.subr.bf16.mxu0 %v2127_v30 }
  0x67   : > { %692 = vmatpush1.bf16.msra.mxu0 %v2125_v31 }
  0x68   : > { %693 = vmatprep.subr.bf16.mxu0 %v2130_v32 }
  0x6b   : > { %694 = vmatpush1.bf16.msra.mxu0 %v2128_v33 }
  0x6c   : > { %695 = vmatprep.subr.bf16.mxu0 %v2133_v34 }
  0x6f   : > { %696 = vmatpush1.bf16.msra.mxu0 %v2131_v35 }
  0x70   : > { %697 = vmatprep.subr.bf16.mxu0 %v2136_v36 }
  0x73   : > { %698 = vmatpush1.bf16.msra.mxu0 %v2134_v38 }
  0x74   : > { %891 = vmatprep.subr.bf16.mxu0 %v2139_v39 }
  0x76   : > { %704 = vmatmul.mubr.bf16.vlgmr.msra.gmra.mrb[0].mxu0 %v2449_v48  ;;  %v2206_v48 = vld [vmem:[%s2948_s3 + $0x174] ss:$8 sps:$4 sm:$0xff]  }
  0x77   : > { %892 = vmatpush1.bf16.msra.mxu0 %v2137_v40  ;;  %1880 = vmatprep.mubr.msk.bf16.mxu0 %vm482_vm4, %v746_v41 }
  0x78   : > { %893 = vmatprep.subr.bf16.mxu0 %v2142_v42  ;;  %1215 = vmatprep.subr.bf16.mxu1 %v2206_v48  ;;  %v2247_v48 = vld [vmem:[%s2948_s3 + $0x84] ss:$8 sps:$4 sm:$0xff]  }
  0x79   : > { %1216 = vmatpush1.bf16.msra.mxu1 %v2208_v9  ;;  %v2245_v9 = vld [vmem:[%s2948_s3 + $0x80] ss:$8 sps:$4 sm:$0xff]  }
  0x7a   : > { %1217 = vmatprep.subr.bf16.mxu1 %v2209_v10  ;;  %v2250_v10 = vld [vmem:[%s2948_s3 + $0x94] ss:$8 sps:$4 sm:$0xff]  }
  0x7b   : > { %894 = vmatpush1.bf16.msra.mxu0 %v2140_v43 }
  0x7c   : > { %895 = vmatprep.subr.bf16.mxu0 %v2145_v44 }
  0x7d   : > { %1218 = vmatpush1.bf16.msra.mxu1 %v2211_v11  ;;  %v2248_v11 = vld [vmem:[%s2948_s3 + $0x90] ss:$8 sps:$4 sm:$0xff]  }
  0x7e   : > { %1219 = vmatprep.subr.bf16.mxu1 %v2212_v12  ;;  %v2253_v12 = vld [vmem:[%s2948_s3 + $0xa4] ss:$8 sps:$4 sm:$0xff]  }
  0x7f   : > { %896 = vmatpush1.bf16.msra.mxu0 %v2143_v37 }
  0x80   : > { %897 = vmatprep.subr.bf16.mxu0 %v2148_v45 }
  0x81   : > { %1220 = vmatpush1.bf16.msra.mxu1 %v2214_v13  ;;  %v2251_v13 = vld [vmem:[%s2948_s3 + $0xa0] ss:$8 sps:$4 sm:$0xff]  }
  0x82   : > { %1221 = vmatprep.subr.bf16.mxu1 %v2215_v14  ;;  %v2256_v14 = vld [vmem:[%s2948_s3 + $0xb4] ss:$8 sps:$4 sm:$0xff]  }
  0x83   : > { %898 = vmatpush1.bf16.msra.mxu0 %v2146_v46 }
  0x84   : > { %899 = vmatprep.subr.bf16.mxu0 %v2151_v47 }
  0x85   : > { %1222 = vmatpush1.bf16.msra.mxu1 %v2217_v15  ;;  %v2254_v15 = vld [vmem:[%s2948_s3 + $0xb0] ss:$8 sps:$4 sm:$0xff]  }
  0x86   : > { %1223 = vmatprep.subr.bf16.mxu1 %v2218_v16  ;;  %v2259_v16 = vld [vmem:[%s2948_s3 + $0xc4] ss:$8 sps:$4 sm:$0xff]  }
  0x87   : > { %900 = vmatpush1.bf16.msra.mxu0 %v2149_v49 }
  0x88   : > { %901 = vmatprep.subr.bf16.mxu0 %v2154_v50 }
  0x89   : > { %1224 = vmatpush1.bf16.msra.mxu1 %v2220_v17  ;;  %v2257_v17 = vld [vmem:[%s2948_s3 + $0xc0] ss:$8 sps:$4 sm:$0xff]  }
  0x8a   : > { %1382 = vmatprep.subr.bf16.mxu1 %v2223_v18  ;;  %v2262_v18 = vld [vmem:[%s2948_s3 + $0xd4] ss:$8 sps:$4 sm:$0xff]  }
  0x8b   : > { %902 = vmatpush1.bf16.msra.mxu0 %v2152_v51 }
  0x8c   : > { %903 = vmatprep.subr.bf16.mxu0 %v2157_v52 }
  0x8f   : > { %904 = vmatpush1.bf16.msra.mxu0 %v2155_v53 }
  0x90   : > { %905 = vmatprep.subr.bf16.mxu0 %v2160_v54 }
  0x93   : > { %906 = vmatpush1.bf16.msra.mxu0 %v2158_v55 }
  0x94   : > { %907 = vmatprep.subr.bf16.mxu0 %v2163_v56  ;;  %v2221_v56 = vld [vmem:[%s2948_s3] ss:$8 sps:$4 sm:$0xff]  }
  0x97   : > { %908 = vmatpush1.bf16.msra.mxu0 %v2161_v57 }
  0x98   : > { %909 = vmatprep.subr.bf16.mxu0 %v2166_v58  ;;  %v2226_v58 = vld [vmem:[%s2948_s3 + $0x14] ss:$8 sps:$4 sm:$0xff]  }
  0x9b   : > { %910 = vmatpush1.bf16.msra.mxu0 %v2164_v59  ;;  %v2224_v59 = vld [vmem:[%s2948_s3 + $0x10] ss:$8 sps:$4 sm:$0xff]  }
  0x9c   : > { %911 = vmatprep.subr.bf16.mxu0 %v2169_v60  ;;  %v2229_v60 = vld [vmem:[%s2948_s3 + $0x24] ss:$8 sps:$4 sm:$0xff]  }
  0x9f   : > { %912 = vmatpush1.bf16.msra.mxu0 %v2167_v61  ;;  %v2227_v61 = vld [vmem:[%s2948_s3 + $0x20] ss:$8 sps:$4 sm:$0xff]  }
  0xa0   : > { %913 = vmatprep.subr.bf16.mxu0 %v2172_v62  ;;  %v2232_v62 = vld [vmem:[%s2948_s3 + $0x34] ss:$8 sps:$4 sm:$0xff]  }
  0xa3   : > { %914 = vmatpush1.bf16.msra.mxu0 %v2170_v63  ;;  %v2230_v63 = vld [vmem:[%s2948_s3 + $0x30] ss:$8 sps:$4 sm:$0xff]  }
  0xa4   : > { %915 = vmatprep.subr.bf16.mxu0 %v2175_v0  ;;  %v2235_v0 = vld [vmem:[%s2948_s3 + $0x44] ss:$8 sps:$4 sm:$0xff]  }
  0xa7   : > { %916 = vmatpush1.bf16.msra.mxu0 %v2173_v2  ;;  %v2233_v2 = vld [vmem:[%s2948_s3 + $0x40] ss:$8 sps:$4 sm:$0xff]  }
  0xa8   : > { %917 = vmatprep.subr.bf16.mxu0 %v2178_v3  ;;  %v2238_v3 = vld [vmem:[%s2948_s3 + $0x54] ss:$8 sps:$4 sm:$0xff]  }
  0xab   : > { %918 = vmatpush1.bf16.msra.mxu0 %v2176_v4  ;;  %v2236_v4 = vld [vmem:[%s2948_s3 + $0x50] ss:$8 sps:$4 sm:$0xff]  }
  0xae   : > { %924 = vmatmul.mubr.bf16.vlgmr.msra.gmra.mrb[0].mxu0 %v745_v5  ;;  %v2241_v5 = vld [vmem:[%s2948_s3 + $0x64] ss:$8 sps:$4 sm:$0xff]  }
 0x181   : > { %v925_v25 = vpop.f32.mrb[0].mxu0 }
 0x182   : > { %v950_v26 = vadd.f32 %v943_v23, %v925_v25  ;;  %v927_v27 = vpop.f32.mrb[1].mxu0  ;;  %v2268_v25 = vld [vmem:[%s2948_s3 + $0x1d4] ss:$8 sps:$4 sm:$0xff]  }
 0x183   : > { %v951_v28 = vadd.f32 %v947_v24, %v927_v27  ;;  %v929_v1 = vpop.f32.mrb[2].mxu0  ;;  %v2266_v27 = vld [vmem:[%s2948_s3 + $0x1d0] ss:$8 sps:$4 sm:$0xff]  }
 0x184   : > { %v954_v29 = vmax.f32 %v950_v26, 0.0  ;;  %v952_v30 = vadd.f32 %v943_v23, %v929_v1  ;;  %v931_v31 = vpop.f32.mrb[3].mxu0  ;;  %v2265_v23 = vld [vmem:[%s2948_s3 + $0x1c4] ss:$8 sps:$4 sm:$0xff]   ;;  %v2269_v1 = vld [vmem:[%s2948_s3 + $0x1e0] ss:$8 sps:$4 sm:$0xff]  }
 0x185   : > { %v955_v32 = vmax.f32 %v951_v28, 0.0  ;;  %v953_v33 = vadd.f32 %v947_v24, %v931_v31  ;;  %v2263_v24 = vld [vmem:[%s2948_s3 + $0x1c0] ss:$8 sps:$4 sm:$0xff]   ;;  %v2271_v28 = vld [vmem:[%s2948_s3 + $0x1e4] ss:$8 sps:$4 sm:$0xff]  }
 0x186   : > { %v962_v34 = vrot.slane %v954_v29, 7  ;;  %v956_v35 = vmax.f32 %v952_v30, 0.0  ;;  %v2274_v29 = vld [vmem:[%s2948_s3 + $0x1f4] ss:$8 sps:$4 sm:$0xff]   ;;  %v2272_v30 = vld [vmem:[%s2948_s3 + $0x1f0] ss:$8 sps:$4 sm:$0xff]  }
 0x187   : > { %v963_v36 = vrot.slane %v955_v32, 7  ;;  %v957_v38 = vmax.f32 %v953_v33, 0.0  ;;  %v2277_v31 = vld [vmem:[%s2948_s3 + $0x204] ss:$8 sps:$4 sm:$0xff]   ;;  %v2275_v32 = vld [vmem:[%s2948_s3 + $0x200] ss:$8 sps:$4 sm:$0xff]  }
 0x188   : > { %972 = vst [vmem:[#allocation2] sm:$0xfe] %v962_v34  ;;  %v964_v39 = vrot.slane %v956_v35, 7  ;;  %v2280_v33 = vld [vmem:[%s2948_s3 + $0x214] ss:$8 sps:$4 sm:$0xff]  }
 0x189   : > { %973 = vst.msk [vmem:[#allocation2 + $0x8] sm:$0xfe] %vm259_vm2, %v963_v36  ;;  %v966_v40 = vrot.slane %v957_v38, 7  ;;  %v2283_v35 = vld [vmem:[%s2948_s3 + $0x224] ss:$8 sps:$4 sm:$0xff]  }
 0x18a   : > { %v965_v41 = vsel %vm247_vm1, %v962_v34, %v964_v39  ;;  %v2278_v34 = vld [vmem:[%s2948_s3 + $0x210] ss:$8 sps:$4 sm:$0xff]   ;;  %v2286_v38 = vld [vmem:[%s2948_s3 + $0x234] ss:$8 sps:$4 sm:$0xff]  }
 0x18b   : > { %974 = vst [vmem:[#allocation2 + $0x10] sm:$0x7f] %v965_v41  ;;  %v967_v42 = vsel %vm247_vm1, %v963_v36, %v966_v40  ;;  %v2281_v36 = vld [vmem:[%s2948_s3 + $0x220] ss:$8 sps:$4 sm:$0xff]   ;;  %v2284_v39 = vld [vmem:[%s2948_s3 + $0x230] ss:$8 sps:$4 sm:$0xff]  }
 0x18c   : > { %975 = vst.msk [vmem:[#allocation2 + $0x18] sm:$0x7f] %vm262_vm3, %v967_v42  ;;  %v2289_v40 = vld [vmem:[%s2948_s3 + $0x244] ss:$8 sps:$4 sm:$0xff]   ;;  %v2287_v41 = vld [vmem:[%s2948_s3 + $0x240] ss:$8 sps:$4 sm:$0xff]  }
 0x18d   : > { %v2292_v42 = vld [vmem:[%s2948_s3 + $0x254] ss:$8 sps:$4 sm:$0xff]  }
 0x18f   : > { %v976_v43 = vld [vmem:[#allocation2] sm:$0xff] }
 0x190   : > { %v977_v37 = vld [vmem:[#allocation2 + $0x8] sm:$0xff] }
 0x192   : > { %v978_v44 = vld [vmem:[#allocation2 + $0x10] sm:$0xff] }
 0x193   : > { %v979_v45 = vld [vmem:[#allocation2 + $0x18] sm:$0xff]  ;;  %v2745_v46 = vpack.c.bf16 %v978_v44, %v976_v43  ;;  %v2295_v44 = vld [vmem:[%s2948_s3 + $0x264] ss:$8 sps:$4 sm:$0xff]  }
 0x194   : > { %v2747_v47 = vpack.c.bf16 %v979_v45, %v977_v37  ;;  %v2290_v43 = vld [vmem:[%s2948_s3 + $0x250] ss:$8 sps:$4 sm:$0xff]   ;;  %v2293_v37 = vld [vmem:[%s2948_s3 + $0x260] ss:$8 sps:$4 sm:$0xff]   ;;  %v2298_v45 = vld [vmem:[%s2948_s3 + $0x274] ss:$8 sps:$4 sm:$0xff]  }
 0x195   : > { %v1042_v49 = vshll.u32 %v2745_v46, 16  ;;  %v1040_v54 = vshrl.u32 %v2745_v46, 16 }
 0x196   : > { %v1049_v50 = vshll.u32 %v2747_v47, 16  ;;  %v1047_v52 = vshrl.u32 %v2747_v47, 16  ;;  %v1457_v26 = vrot.slane %v2747_v47, 1 }
 0x197   : > { %v1044_v51 = vrot.slane %v1042_v49, 1  ;;  %v2301_v49 = vld [vmem:[%s2948_s3 + $0x284] ss:$8 sps:$4 sm:$0xff]  }
 0x198   : > { %v1051_v53 = vrot.slane %v1049_v50, 1  ;;  %v2299_v50 = vld [vmem:[%s2948_s3 + $0x280] ss:$8 sps:$4 sm:$0xff]  }
 0x199   : > { %v1045_v57 = vor.u32 %v1044_v51, %v1040_v54  ;;  %v2304_v51 = vld [vmem:[%s2948_s3 + $0x294] ss:$8 sps:$4 sm:$0xff]   ;;  %v1649_v54 = vld [vmem:[%s2949_s4] sm:$0x3] }
 0x19a   : > { %v1052_v55 = vor.u32 %v1051_v53, %v1047_v52  ;;  %v2302_v52 = vld [vmem:[%s2948_s3 + $0x290] ss:$8 sps:$4 sm:$0xff]   ;;  %v1456_v53 = vrot.slane %v2745_v46, 1 }
 0x19c   : > { %1937 = vmatprep.mubr.msk.bf16.mxu1 %vm482_vm4, %v1052_v55  ;;  %v1654_v55 = vrot.slane %v1649_v54, %v942_v20  ;;  %v2306_v20 = vld [vmem:[%s2395_s20 + $0x8] sm:$0xff] }
 0x19d   : > { %1230 = vmatmul.mubr.bf16.vlgmr.msra.gmra.mrb[0].mxu1 %v1045_v57 }
 0x19e   : > { %1383 = vmatpush1.bf16.msra.mxu1 %v2221_v56  ;;  %1966 = vmatprep.mubr.msk.bf16.mxu1 %vm482_vm4, %v2747_v47  ;;  %v2296_v47 = vld [vmem:[%s2948_s3 + $0x270] ss:$8 sps:$4 sm:$0xff]   ;;  %v1658_v56 = vrot.slane %v1649_v54, %v946_v22 }
 0x19f   : > { %1384 = vmatprep.subr.bf16.mxu1 %v2226_v58  ;;  %v2307_v22 = vld [vmem:[%s2395_s20 + $0x10] sm:$0x3f] }
 0x1a2   : > { %1385 = vmatpush1.bf16.msra.mxu1 %v2224_v59 }
 0x1a3   : > { %1386 = vmatprep.subr.bf16.mxu1 %v2229_v60 }
 0x1a6   : > { %1387 = vmatpush1.bf16.msra.mxu1 %v2227_v61  ;;  %v2305_v61 = vld [vmem:[%s2395_s20] sm:$0xff] }
 0x1a7   : > { %1388 = vmatprep.subr.bf16.mxu1 %v2232_v62 }
 0x1aa   : > { %1389 = vmatpush1.bf16.msra.mxu1 %v2230_v63 }
 0x1ab   : > { %1390 = vmatprep.subr.bf16.mxu1 %v2235_v0 }
 0x1ae   : > { %1391 = vmatpush1.bf16.msra.mxu1 %v2233_v2 }
 0x1af   : > { %1392 = vmatprep.subr.bf16.mxu1 %v2238_v3 }
 0x1b2   : > { %1393 = vmatpush1.bf16.msra.mxu1 %v2236_v4  ;;  %v2308_v4 = vld [vmem:[%s2395_s20 + $0x18] sm:$0x3f] }
 0x1b3   : > { %1394 = vmatprep.subr.bf16.mxu1 %v2241_v5 }
 0x1b6   : > { %1395 = vmatpush1.bf16.msra.mxu1 %v2239_v6 }
 0x1b7   : > { %1396 = vmatprep.subr.bf16.mxu1 %v2244_v7 }
 0x1ba   : > { %1397 = vmatpush1.bf16.msra.mxu1 %v2242_v8 }
 0x1bb   : > { %1398 = vmatprep.subr.bf16.mxu1 %v2247_v48 }
 0x1be   : > { %1399 = vmatpush1.bf16.msra.mxu1 %v2245_v9 }
 0x1bf   : > { %1400 = vmatprep.subr.bf16.mxu1 %v2250_v10 }
 0x1c2   : > { %1401 = vmatpush1.bf16.msra.mxu1 %v2248_v11 }
 0x1c3   : > { %1402 = vmatprep.subr.bf16.mxu1 %v2253_v12 }
 0x1c6   : > { %1403 = vmatpush1.bf16.msra.mxu1 %v2251_v13 }
 0x1c7   : > { %1404 = vmatprep.subr.bf16.mxu1 %v2256_v14 }
 0x1ca   : > { %1405 = vmatpush1.bf16.msra.mxu1 %v2254_v15 }
 0x1cb   : > { %1406 = vmatprep.subr.bf16.mxu1 %v2259_v16 }
 0x1ce   : > { %1407 = vmatpush1.bf16.msra.mxu1 %v2257_v17 }
 0x1cf   : > { %1408 = vmatprep.subr.bf16.mxu1 %v2262_v18 }
 0x1d2   : > { %1409 = vmatpush1.bf16.msra.mxu1 %v2260_v21 }
 0x1d3   : > { %1602 = vmatprep.subr.bf16.mxu1 %v2265_v23 }
 0x1d5   : > { %1415 = vmatmul.mubr.bf16.vlgmr.msra.gmra.mrb[0].mxu1 %v2745_v46 }
 0x1d6   : > { %1603 = vmatpush1.bf16.msra.mxu1 %v2263_v24  ;;  %2023 = vmatprep.mubr.msk.bf16.mxu1 %vm482_vm4, %v1457_v26 }
 0x1d7   : > { %1604 = vmatprep.subr.bf16.mxu1 %v2268_v25 }
 0x1da   : > { %1605 = vmatpush1.bf16.msra.mxu1 %v2266_v27 }
 0x1db   : > { %1606 = vmatprep.subr.bf16.mxu1 %v2271_v28 }
 0x1de   : > { %1607 = vmatpush1.bf16.msra.mxu1 %v2269_v1 }
 0x1df   : > { %1608 = vmatprep.subr.bf16.mxu1 %v2274_v29 }
 0x1e2   : > { %1609 = vmatpush1.bf16.msra.mxu1 %v2272_v30 }
 0x1e3   : > { %1610 = vmatprep.subr.bf16.mxu1 %v2277_v31 }
 0x1e6   : > { %1611 = vmatpush1.bf16.msra.mxu1 %v2275_v32 }
 0x1e7   : > { %1612 = vmatprep.subr.bf16.mxu1 %v2280_v33 }
 0x1ea   : > { %1613 = vmatpush1.bf16.msra.mxu1 %v2278_v34 }
 0x1eb   : > { %1614 = vmatprep.subr.bf16.mxu1 %v2283_v35 }
 0x1ee   : > { %1615 = vmatpush1.bf16.msra.mxu1 %v2281_v36 }
 0x1ef   : > { %1616 = vmatprep.subr.bf16.mxu1 %v2286_v38 }
 0x1f2   : > { %1617 = vmatpush1.bf16.msra.mxu1 %v2284_v39 }
 0x1f3   : > { %1618 = vmatprep.subr.bf16.mxu1 %v2289_v40 }
 0x1f6   : > { %1619 = vmatpush1.bf16.msra.mxu1 %v2287_v41 }
 0x1f7   : > { %1620 = vmatprep.subr.bf16.mxu1 %v2292_v42 }
 0x1fa   : > { %1621 = vmatpush1.bf16.msra.mxu1 %v2290_v43 }
 0x1fb   : > { %1622 = vmatprep.subr.bf16.mxu1 %v2295_v44 }
 0x1fe   : > { %1623 = vmatpush1.bf16.msra.mxu1 %v2293_v37 }
 0x1ff   : > { %1624 = vmatprep.subr.bf16.mxu1 %v2298_v45 }
 0x202   : > { %1625 = vmatpush1.bf16.msra.mxu1 %v2296_v47 }
 0x203   : > { %1626 = vmatprep.subr.bf16.mxu1 %v2301_v49 }
 0x206   : > { %1627 = vmatpush1.bf16.msra.mxu1 %v2299_v50 }
 0x207   : > { %1628 = vmatprep.subr.bf16.mxu1 %v2304_v51 }
 0x20a   : > { %1629 = vmatpush1.bf16.msra.mxu1 %v2302_v52 }
 0x20d   : > { %1635 = vmatmul.mubr.bf16.vlgmr.msra.gmra.mrb[0].mxu1 %v1456_v53 }
 0x2e0   : > { %v1636_v57 = vpop.f32.mrb[0].mxu1 }
 0x2e1   : > { %v1661_v58 = vadd.f32 %v1654_v55, %v1636_v57  ;;  %v1638_v59 = vpop.f32.mrb[1].mxu1 }
 0x2e2   : > { %v1662_v46 = vadd.f32 %v1658_v56, %v1638_v59  ;;  %v1640_v60 = vpop.f32.mrb[2].mxu1 }
 0x2e3   : > { %v1665_v62 = vadd.f32 %v2305_v61, %v1661_v58  ;;  %v1663_v63 = vadd.f32 %v1654_v55, %v1640_v60  ;;  %v1642_v0 = vpop.f32.mrb[3].mxu1 }
 0x2e4   : > { %v1666_v2 = vadd.f32 %v2306_v20, %v1662_v46  ;;  %v1664_v19 = vadd.f32 %v1658_v56, %v1642_v0 }
 0x2e5   : > { %1669 = vst [vmem:[%s224_s28] sm:$0xff] %v1665_v62  ;;  %v1667_v3 = vadd.f32 %v2307_v22, %v1663_v63 }
 0x2e6   : > { %1670 = vst.msk [vmem:[%s224_s28 + $0x8] sm:$0xff] %vm482_vm4, %v1666_v2  ;;  %v1668_v5 = vadd.f32 %v2308_v4, %v1664_v19 }
 0x2e7   : > { %1671 = vst [vmem:[%s224_s28 + $0x10] sm:$0x3f] %v1667_v3 }
 0x2e8   : > { %1673 = vst.msk [vmem:[%s224_s28 + $0x18] sm:$0x3f] %vm1672_vm5, %v1668_v5 }
 0x2e9 PF: > { %s15_s18 = sadd.s32 1, %s2315_s18  }
 0x2ea   : > { %p12_p4 = scmp.ge.s32.totalorder %s15_s18, 4  }
 0x2ec   :  { %14 = sbr.rel (!%p12_p4) target bundleno = 1 (0x1), region = 75 }

// kernel: seperated_impala_forward.10
= control target key start
LH: loop header
LB: loop body
LE: loop exit
PB: predicated region body
PF: predicated region fallthrough
CT: control target
= control target key end

     0   :  { %s3331_s18 = smov 0   ;;  %s4840_s0 = inlined_call_operand.vmem [shape: f32[2,32,96], index: 0, kind: input, shape index: {}]   ;;  %s4841_s1 = inlined_call_operand.vmem [shape: bf16[3,96,480], index: 1, kind: input, shape index: {}]   ;;  %s4842_s2 = inlined_call_operand.vmem [shape: f32[3,480,224], index: 2, kind: input, shape index: {}]   ;;  %s4843_s3 = inlined_call_operand.vmem [shape: f32[3,14,30], index: 3, kind: input, shape index: {}]   ;;  %s4844_s4 = inlined_call_operand.vmem [shape: f32[1,224], index: 4, kind: input, shape index: {}]   ;;  %s4845_s5 = inlined_call_operand.vmem [shape: f32[2,14,224], index: 5, kind: output, shape index: {}]  }
   0x1 LB: > { %s2312_s19 = sadd.s32 4294967295, %s3296_s18   ;;  %p2316_p0 = scmp.ge.s32.totalorder %s3296_s18, 1  ;;  %s3296_s18 = sphi %s3331_s18, %s15_s18  }
   0x2   : > { %p187_p1 = scmp.lt.s32.totalorder %s3296_s18, 3 }
   0x4   : > { %p188_p2 = pnand %p2316_p0, %p187_p1 }
   0x5   : > { %v3182_v0 = vld [vmem:[%s4841_s1 + $0xc4] ss:$16 sps:$4 sm:$0xff] (!%p188_p2)   ;;  %v3184_v1 = vld [vmem:[%s4841_s1 + $0xcc] ss:$16 sps:$4 sm:$0xff] (!%p188_p2)   ;;  %v3298_v2 = vmov (!%p188_p2), 0   ;;  %p215_p3 = scmp.lt.s32.totalorder (!%p188_p2), %s2312_s19, 1 }
   0x6   : > { %191 = sbr.rel (%p188_p2) target bundleno = 878 (0x36e), region = 40  ;;  %456 = vmatprep.mubr.bf16.mxu0 (!%p188_p2), %v3298_v2  ;;  %509 = vmatprep.mubr.bf16.mxu1 (!%p188_p2), %v3298_v2  ;;  %v3186_v3 = vld [vmem:[%s4841_s1 + $0xc0] ss:$16 sps:$4 sm:$0xff] (!%p188_p2)   ;;  %v3187_v4 = vld [vmem:[%s4841_s1 + $0xc8] ss:$16 sps:$4 sm:$0xff] (!%p188_p2)   ;;  %vm417_vm1 = vcmask (!%p188_p2), 785408  }
   0x7   : > { %424 = vmatprep.subr.bf16.mxu0 (!%p188_p2), %v3182_v0  ;;  %477 = vmatprep.subr.bf16.mxu1 (!%p188_p2), %v3184_v1  ;;  %v3188_v5 = vld [vmem:[%s4841_s1 + $0xe4] ss:$16 sps:$4 sm:$0xff] (!%p188_p2)   ;;  %v3190_v6 = vld [vmem:[%s4841_s1 + $0xec] ss:$16 sps:$4 sm:$0xff] (!%p188_p2)   ;;  %v3192_v7 = vld [vmem:[%s4841_s1 + $0xe0] ss:$16 sps:$4 sm:$0xff] (!%p188_p2)  }
   0x8   : > { %425 = vmatpush1.bf16.msra.mxu0 (!%p188_p2), %v3186_v3  ;;  %478 = vmatpush1.bf16.msra.mxu1 (!%p188_p2), %v3187_v4  ;;  %v3193_v8 = vld [vmem:[%s4841_s1 + $0xe8] ss:$16 sps:$4 sm:$0xff] (!%p188_p2)   ;;  %v3194_v9 = vld [vmem:[%s4841_s1 + $0x104] ss:$16 sps:$4 sm:$0xff] (!%p188_p2)   ;;  %v3196_v10 = vld [vmem:[%s4841_s1 + $0x10c] ss:$16 sps:$4 sm:$0xff] (!%p188_p2)  }
   0x9   : > { %426 = vmatprep.subr.bf16.mxu0 (!%p188_p2), %v3188_v5  ;;  %479 = vmatprep.subr.bf16.mxu1 (!%p188_p2), %v3190_v6  ;;  %v3198_v11 = vld [vmem:[%s4841_s1 + $0x100] ss:$16 sps:$4 sm:$0xff] (!%p188_p2)   ;;  %v3199_v12 = vld [vmem:[%s4841_s1 + $0x108] ss:$16 sps:$4 sm:$0xff] (!%p188_p2)   ;;  %v3200_v13 = vld [vmem:[%s4841_s1 + $0x124] ss:$16 sps:$4 sm:$0xff] (!%p188_p2)  }
   0xa   : > { %v3202_v14 = vld [vmem:[%s4841_s1 + $0x12c] ss:$16 sps:$4 sm:$0xff] (!%p188_p2)   ;;  %v3204_v15 = vld [vmem:[%s4841_s1 + $0x120] ss:$16 sps:$4 sm:$0xff] (!%p188_p2)   ;;  %v3205_v16 = vld [vmem:[%s4841_s1 + $0x128] ss:$16 sps:$4 sm:$0xff] (!%p188_p2)  }
   0xb   : > { %v3206_v17 = vld [vmem:[%s4841_s1 + $0x144] ss:$16 sps:$4 sm:$0xff] (!%p188_p2)   ;;  %v3208_v18 = vld [vmem:[%s4841_s1 + $0x14c] ss:$16 sps:$4 sm:$0xff] (!%p188_p2)   ;;  %v3210_v19 = vld [vmem:[%s4841_s1 + $0x140] ss:$16 sps:$4 sm:$0xff] (!%p188_p2)  }
   0xc   : > { %427 = vmatpush1.bf16.msra.mxu0 (!%p188_p2), %v3192_v7  ;;  %480 = vmatpush1.bf16.msra.mxu1 (!%p188_p2), %v3193_v8  ;;  %v3211_v20 = vld [vmem:[%s4841_s1 + $0x148] ss:$16 sps:$4 sm:$0xff] (!%p188_p2)   ;;  %v3212_v21 = vld [vmem:[%s4841_s1 + $0x164] ss:$16 sps:$4 sm:$0xff] (!%p188_p2)   ;;  %v3214_v22 = vld [vmem:[%s4841_s1 + $0x16c] ss:$16 sps:$4 sm:$0xff] (!%p188_p2)  }
   0xd   : > { %s4849_s19 = smov (!%p215_p3, %s2312_s19), 1  ;;  %428 = vmatprep.subr.bf16.mxu0 %v3194_v9  ;;  %481 = vmatprep.subr.bf16.mxu1 %v3196_v10  ;;  %v3216_v23 = vld [vmem:[%s4841_s1 + $0x160] ss:$16 sps:$4 sm:$0xff]   ;;  %v3217_v24 = vld [vmem:[%s4841_s1 + $0x168] ss:$16 sps:$4 sm:$0xff]   ;;  %vm787_vm2 = vcmask 1046528  }
   0xe   : > { %s2723_s6 = sshll.u32 %s4849_s19, 5  ;;  %v3220_v29 = vld [vmem:[%s4841_s1 + $0x4] ss:$16 sps:$4 sm:$0xff]   ;;  %v3223_v32 = vld [vmem:[%s4841_s1 + $0xc] ss:$16 sps:$4 sm:$0xff]   ;;  %vm1972_vm3 = vcmask 1045504  }
   0xf   : > { %s219_s15 = scalar_lea.vmem %s4840_s0, %s2723_s6  ;;  %v3218_v38 = vld [vmem:[%s4841_s1] ss:$16 sps:$4 sm:$0xff]   ;;  %vm281_vm0 = vsmask.f32 7424  ;;  %v3221_v39 = vld [vmem:[%s4841_s1 + $0x8] ss:$16 sps:$4 sm:$0xff]   ;;  %s224_s22 = scalar_lea.vmem %s4845_s5, %s2723_s6 }
  0x10   : > { %429 = vmatpush1.bf16.msra.mxu0 %v3198_v11  ;;  %482 = vmatpush1.bf16.msra.mxu1 %v3199_v12  ;;  %v226_v25 = vld [vmem:[%s219_s15] sm:$0xff]  ;;  %v227_v26 = vld [vmem:[%s219_s15 + $0x8] sm:$0xff]  ;;  %v228_v27 = vld [vmem:[%s219_s15 + $0x10] sm:$0xff]  ;;  %vm3300_vm4 = vmmov 1   ;;  %vm1965_vm6 = vcmask 244736   ;;  %vm2255_vm7 = vcmask 783360  }
  0x11   : > { %430 = vmatprep.subr.bf16.mxu0 %v3200_v13  ;;  %483 = vmatprep.subr.bf16.mxu1 %v3202_v14  ;;  %v229_v28 = vld [vmem:[%s219_s15 + $0x18] sm:$0xff]  ;;  %v3428_v30 = vpack.c.bf16 %v227_v26, %v226_v25  ;;  %v3226_v41 = vld [vmem:[%s4841_s1 + $0x24] ss:$16 sps:$4 sm:$0xff]   ;;  %v3224_v44 = vld [vmem:[%s4841_s1 + $0x20] ss:$16 sps:$4 sm:$0xff]  }
  0x12   : > { %v3430_v31 = vpack.c.bf16 %v229_v28, %v228_v27  ;;  %v3229_v42 = vld [vmem:[%s4841_s1 + $0x2c] ss:$16 sps:$4 sm:$0xff]   ;;  %v3227_v46 = vld [vmem:[%s4841_s1 + $0x28] ss:$16 sps:$4 sm:$0xff]   ;;  %v3232_v47 = vld [vmem:[%s4841_s1 + $0x44] ss:$16 sps:$4 sm:$0xff]  }
  0x13   : > { %v283_v33 = vshrl.u32 %v3428_v30, 16  ;;  %v285_v34 = vshll.u32 %v3428_v30, 16  ;;  %v3235_v48 = vld [vmem:[%s4841_s1 + $0x4c] ss:$16 sps:$4 sm:$0xff]   ;;  %v3230_v49 = vld [vmem:[%s4841_s1 + $0x40] ss:$16 sps:$4 sm:$0xff]   ;;  %vm4784_vm5 = vmpackc.low %vm1972_vm3, %vm3300_vm4 }
  0x14   : > { %431 = vmatpush1.bf16.msra.mxu0 %v3204_v15  ;;  %484 = vmatpush1.bf16.msra.mxu1 %v3205_v16  ;;  %v290_v35 = vshll.u32 %v3430_v31, 16  ;;  %v294_v45 = vshrl.u32 %v3430_v31, 16  ;;  %v3233_v51 = vld [vmem:[%s4841_s1 + $0x48] ss:$16 sps:$4 sm:$0xff]   ;;  %v3238_v52 = vld [vmem:[%s4841_s1 + $0x64] ss:$16 sps:$4 sm:$0xff]  }
  0x15   : > { %432 = vmatprep.subr.bf16.mxu0 %v3206_v17  ;;  %485 = vmatprep.subr.bf16.mxu1 %v3208_v18  ;;  %v287_v36 = vrot.slane %v285_v34, 1  ;;  %v3241_v53 = vld [vmem:[%s4841_s1 + $0x6c] ss:$16 sps:$4 sm:$0xff]   ;;  %v3236_v54 = vld [vmem:[%s4841_s1 + $0x60] ss:$16 sps:$4 sm:$0xff]  }
  0x16   : > { %v292_v37 = vrot.slane %v290_v35, 1  ;;  %v3239_v55 = vld [vmem:[%s4841_s1 + $0x68] ss:$16 sps:$4 sm:$0xff]   ;;  %v3244_v56 = vld [vmem:[%s4841_s1 + $0x84] ss:$16 sps:$4 sm:$0xff]  }
  0x17   : > { %v288_v40 = vor.u32 %v287_v36, %v283_v33  ;;  %v3247_v57 = vld [vmem:[%s4841_s1 + $0x8c] ss:$16 sps:$4 sm:$0xff]   ;;  %v3242_v58 = vld [vmem:[%s4841_s1 + $0x80] ss:$16 sps:$4 sm:$0xff]   ;;  %v3245_v59 = vld [vmem:[%s4841_s1 + $0x88] ss:$16 sps:$4 sm:$0xff]  }
  0x18   : > { %433 = vmatpush1.bf16.msra.mxu0 %v3210_v19  ;;  %486 = vmatpush1.bf16.msra.mxu1 %v3211_v20  ;;  %v296_v50 = vor.u32 %v294_v45, %v292_v37  ;;  %v3250_v60 = vld [vmem:[%s4841_s1 + $0xa4] ss:$16 sps:$4 sm:$0xff]   ;;  %v3253_v61 = vld [vmem:[%s4841_s1 + $0xac] ss:$16 sps:$4 sm:$0xff]   ;;  %v3248_v62 = vld [vmem:[%s4841_s1 + $0xa0] ss:$16 sps:$4 sm:$0xff]  }
  0x19   : > { %434 = vmatprep.subr.bf16.mxu0 %v3212_v21  ;;  %487 = vmatprep.subr.bf16.mxu1 %v3214_v22  ;;  %v293_v43 = vsel %vm281_vm0, %v288_v40, %v292_v37  ;;  %v3251_v63 = vld [vmem:[%s4841_s1 + $0xa8] ss:$16 sps:$4 sm:$0xff]   ;;  %v3256_v0 = vld [vmem:[%s4841_s1 + $0x184] ss:$16 sps:$4 sm:$0xff]   ;;  %v3259_v1 = vld [vmem:[%s4841_s1 + $0x18c] ss:$16 sps:$4 sm:$0xff]  }
  0x1a   : > { %v3254_v3 = vld [vmem:[%s4841_s1 + $0x180] ss:$16 sps:$4 sm:$0xff]   ;;  %v3257_v4 = vld [vmem:[%s4841_s1 + $0x188] ss:$16 sps:$4 sm:$0xff]   ;;  %v3262_v5 = vld [vmem:[%s4841_s1 + $0x1a4] ss:$16 sps:$4 sm:$0xff]  }
  0x1b   : > { %v3265_v6 = vld [vmem:[%s4841_s1 + $0x1ac] ss:$16 sps:$4 sm:$0xff]   ;;  %v3260_v7 = vld [vmem:[%s4841_s1 + $0x1a0] ss:$16 sps:$4 sm:$0xff]   ;;  %v3263_v8 = vld [vmem:[%s4841_s1 + $0x1a8] ss:$16 sps:$4 sm:$0xff]  }
  0x1c   : > { %435 = vmatpush1.bf16.msra.mxu0 %v3216_v23  ;;  %488 = vmatpush1.bf16.msra.mxu1 %v3217_v24  ;;  %v3268_v9 = vld [vmem:[%s4841_s1 + $0x1c4] ss:$16 sps:$4 sm:$0xff]   ;;  %v3271_v10 = vld [vmem:[%s4841_s1 + $0x1cc] ss:$16 sps:$4 sm:$0xff]   ;;  %v3266_v11 = vld [vmem:[%s4841_s1 + $0x1c0] ss:$16 sps:$4 sm:$0xff]  }
  0x1d   : > { %654 = vmatprep.subr.bf16.mxu0 %v3220_v29  ;;  %707 = vmatprep.subr.bf16.mxu1 %v3223_v32  ;;  %v3269_v12 = vld [vmem:[%s4841_s1 + $0x1c8] ss:$16 sps:$4 sm:$0xff]   ;;  %v3274_v13 = vld [vmem:[%s4841_s1 + $0x1e4] ss:$16 sps:$4 sm:$0xff]   ;;  %v3277_v14 = vld [vmem:[%s4841_s1 + $0x1ec] ss:$16 sps:$4 sm:$0xff]  }
  0x1e   : > { %v3272_v15 = vld [vmem:[%s4841_s1 + $0x1e0] ss:$16 sps:$4 sm:$0xff]   ;;  %v3275_v16 = vld [vmem:[%s4841_s1 + $0x1e8] ss:$16 sps:$4 sm:$0xff]   ;;  %v3280_v17 = vld [vmem:[%s4841_s1 + $0x204] ss:$16 sps:$4 sm:$0xff]  }
  0x1f   : > { %2369 = vmatmul.mubr.msk.bf16.vlgmr.msra.gmra.mrb[0].mxu0 %vm417_vm1, %v293_v43  ;;  %2371 = vmatmul.mubr.msk.bf16.vlgmr.msra.gmra.mrb[0].mxu1 %vm417_vm1, %v293_v43  ;;  %v3283_v18 = vld [vmem:[%s4841_s1 + $0x20c] ss:$16 sps:$4 sm:$0xff]   ;;  %v3278_v19 = vld [vmem:[%s4841_s1 + $0x200] ss:$16 sps:$4 sm:$0xff]   ;;  %v3281_v20 = vld [vmem:[%s4841_s1 + $0x208] ss:$16 sps:$4 sm:$0xff]  }
  0x20   : > { %655 = vmatpush1.bf16.msra.mxu0 %v3218_v38  ;;  %708 = vmatpush1.bf16.msra.mxu1 %v3221_v39  ;;  %v3286_v21 = vld [vmem:[%s4841_s1 + $0x224] ss:$16 sps:$4 sm:$0xff]   ;;  %v3289_v22 = vld [vmem:[%s4841_s1 + $0x22c] ss:$16 sps:$4 sm:$0xff]   ;;  %v3284_v27 = vld [vmem:[%s4841_s1 + $0x220] ss:$16 sps:$4 sm:$0xff]  }
  0x21   : > { %656 = vmatprep.subr.bf16.mxu0 %v3226_v41  ;;  %709 = vmatprep.subr.bf16.mxu1 %v3229_v42  ;;  %v1040_v23 = vld [vmem:[%s4842_s2 + $0x8] sm:$0xff]  ;;  %v1042_v24 = vld [vmem:[%s4842_s2 + $0x18] sm:$0xff]  ;;  %v788_v29 = vrot.slane %v3428_v30, 1  ;;  %v3611_v32 = vrot.slane %v3430_v31, 1  ;;  %v1039_v34 = vld [vmem:[%s4842_s2] sm:$0xff] }
  0x22   : > { %466 = vmatprep.mubr.bf16.mxu0 %v3298_v2  ;;  %519 = vmatprep.mubr.bf16.mxu1 %v3298_v2  ;;  %v1104_v25 = vld [vmem:[%s4842_s2 + $0x208] sm:$0xff]  ;;  %v1106_v26 = vld [vmem:[%s4842_s2 + $0x218] sm:$0xff]  ;;  %v2725_v33 = vpack.c.bf16 %v1042_v24, %v1040_v23  ;;  %v1041_v35 = vld [vmem:[%s4842_s2 + $0x10] sm:$0xff] }
  0x23   : > { %v3287_v28 = vld [vmem:[%s4841_s1 + $0x228] ss:$16 sps:$4 sm:$0xff]   ;;  %v2789_v36 = vpack.c.bf16 %v1106_v26, %v1104_v25  ;;  %v1105_v37 = vld [vmem:[%s4842_s2 + $0x210] sm:$0xff]  ;;  %v790_v41 = vsel %vm787_vm2, %v788_v29, %v3611_v32  ;;  %v2727_v42 = vpack.c.bf16 %v1041_v35, %v1039_v34  ;;  %v1043_v43 = vld [vmem:[%s4842_s2 + $0x20] sm:$0xff] }
  0x24   : > { %657 = vmatpush1.bf16.msra.mxu0 %v3224_v44  ;;  %710 = vmatpush1.bf16.msra.mxu1 %v3227_v46  ;;  %v1046_v38 = vld [vmem:[%s4842_s2 + $0x38] sm:$0xff]  ;;  %v1108_v39 = vld [vmem:[%s4842_s2 + $0x228] sm:$0xff]  ;;  %v1045_v44 = vld [vmem:[%s4842_s2 + $0x30] sm:$0xff] }
  0x25   : > { %658 = vmatprep.subr.bf16.mxu0 %v3232_v47  ;;  %711 = vmatprep.subr.bf16.mxu1 %v3235_v48  ;;  %v1110_v40 = vld [vmem:[%s4842_s2 + $0x238] sm:$0xff]  ;;  %v1048_v47 = vld [vmem:[%s4842_s2 + $0x48] sm:$0xff]  ;;  %v1123_v35 = vld [vmem:[%s4842_s2 + $0x2a0] sm:$0xff] }
  0x26   : > { %v2793_v48 = vpack.c.bf16 %v1110_v40, %v1108_v39  ;;  %v1062_v23 = vld [vmem:[%s4842_s2 + $0xb8] sm:$0xff]  ;;  %v1124_v24 = vld [vmem:[%s4842_s2 + $0x2a8] sm:$0xff]  ;;  %v1063_v39 = vld [vmem:[%s4842_s2 + $0xc0] sm:$0xff] }
  0x27   : > { %2370 = vmatmul.mubr.msk.bf16.gmra.mrb[4].mxu0 %vm417_vm1, %v296_v50  ;;  %2372 = vmatmul.mubr.msk.bf16.gmra.mrb[4].mxu1 %vm417_vm1, %v296_v50  ;;  %v1109_v50 = vld [vmem:[%s4842_s2 + $0x230] sm:$0xff]  ;;  %v1126_v25 = vld [vmem:[%s4842_s2 + $0x2b8] sm:$0xff] }
  0x28   : > { %659 = vmatpush1.bf16.msra.mxu0 %v3230_v49  ;;  %712 = vmatpush1.bf16.msra.mxu1 %v3233_v51  ;;  %v1107_v49 = vld [vmem:[%s4842_s2 + $0x220] sm:$0xff]  ;;  %v1050_v51 = vld [vmem:[%s4842_s2 + $0x58] sm:$0xff]  ;;  %v2809_v34 = vpack.c.bf16 %v1126_v25, %v1124_v24  ;;  %v1065_v40 = vld [vmem:[%s4842_s2 + $0xd0] sm:$0xff] }
  0x29   : > { %660 = vmatprep.subr.bf16.mxu0 %v3238_v52  ;;  %713 = vmatprep.subr.bf16.mxu1 %v3241_v53  ;;  %v1112_v52 = vld [vmem:[%s4842_s2 + $0x248] sm:$0xff]  ;;  %v1114_v53 = vld [vmem:[%s4842_s2 + $0x258] sm:$0xff]  ;;  %v1081_v24 = vld [vmem:[%s4842_s2 + $0x150] sm:$0xff] }
  0x2a   : > { %686 = vmatprep.mubr.bf16.mxu0 %v3298_v2  ;;  %739 = vmatprep.mubr.bf16.mxu1 %v3298_v2 }
  0x2c   : > { %661 = vmatpush1.bf16.msra.mxu0 %v3236_v54  ;;  %714 = vmatpush1.bf16.msra.mxu1 %v3239_v55  ;;  %v2731_v54 = vpack.c.bf16 %v1045_v44, %v1043_v43  ;;  %v1047_v55 = vld [vmem:[%s4842_s2 + $0x40] sm:$0xff]  ;;  %v1068_v43 = vld [vmem:[%s4842_s2 + $0xe8] sm:$0xff] }
  0x2d   : > { %662 = vmatprep.subr.bf16.mxu0 %v3244_v56  ;;  %715 = vmatprep.subr.bf16.mxu1 %v3247_v57  ;;  %v1049_v56 = vld [vmem:[%s4842_s2 + $0x50] sm:$0xff]  ;;  %v2795_v57 = vpack.c.bf16 %v1109_v50, %v1107_v49  ;;  %v1134_v49 = vld [vmem:[%s4842_s2 + $0x2f8] sm:$0xff]  ;;  %v2751_v50 = vpack.c.bf16 %v1065_v40, %v1063_v39  ;;  %v1088_v39 = vld [vmem:[%s4842_s2 + $0x188] sm:$0xff] }
  0x30   : > { %663 = vmatpush1.bf16.msra.mxu0 %v3242_v58  ;;  %716 = vmatpush1.bf16.msra.mxu1 %v3245_v59  ;;  %v2733_v58 = vpack.c.bf16 %v1050_v51, %v1048_v47  ;;  %v1052_v59 = vld [vmem:[%s4842_s2 + $0x68] sm:$0xff]  ;;  %v1070_v47 = vld [vmem:[%s4842_s2 + $0xf8] sm:$0xff]  ;;  %v1067_v51 = vld [vmem:[%s4842_s2 + $0xe0] sm:$0xff] }
  0x31   : > { %664 = vmatprep.subr.bf16.mxu0 %v3250_v60  ;;  %717 = vmatprep.subr.bf16.mxu1 %v3253_v61  ;;  %v1111_v60 = vld [vmem:[%s4842_s2 + $0x240] sm:$0xff]  ;;  %v1113_v61 = vld [vmem:[%s4842_s2 + $0x250] sm:$0xff] }
  0x34   : > { %665 = vmatpush1.bf16.msra.mxu0 %v3248_v62  ;;  %718 = vmatpush1.bf16.msra.mxu1 %v3251_v63  ;;  %v1054_v62 = vld [vmem:[%s4842_s2 + $0x78] sm:$0xff]  ;;  %v1116_v63 = vld [vmem:[%s4842_s2 + $0x268] sm:$0xff] }
  0x35   : > { %917 = vmatprep.subr.bf16.mxu0 %v3256_v0  ;;  %970 = vmatprep.subr.bf16.mxu1 %v3259_v1  ;;  %v1118_v0 = vld [vmem:[%s4842_s2 + $0x278] sm:$0xff]  ;;  %v2735_v1 = vpack.c.bf16 %v1049_v56, %v1047_v55  ;;  %v1072_v55 = vld [vmem:[%s4842_s2 + $0x108] sm:$0xff] }
  0x37   : > { %2397 = vmatmul.mubr.msk.bf16.vlgmr.msra.gmra.mrb[0].mxu0 %vm417_vm1, %v3428_v30  ;;  %2399 = vmatmul.mubr.msk.bf16.vlgmr.msra.gmra.mrb[0].mxu1 %vm417_vm1, %v3428_v30  ;;  %v1044_v30 = vld [vmem:[%s4842_s2 + $0x28] sm:$0xff] }
  0x38   : > { %918 = vmatpush1.bf16.msra.mxu0 %v3254_v3  ;;  %971 = vmatpush1.bf16.msra.mxu1 %v3257_v4  ;;  %v2729_v46 = vpack.c.bf16 %v1046_v38, %v1044_v30  ;;  %v1051_v3 = vld [vmem:[%s4842_s2 + $0x60] sm:$0xff]  ;;  %v1053_v4 = vld [vmem:[%s4842_s2 + $0x70] sm:$0xff]  ;;  %v1066_v30 = vld [vmem:[%s4842_s2 + $0xd8] sm:$0xff] }
  0x39   : > { %919 = vmatprep.subr.bf16.mxu0 %v3262_v5  ;;  %972 = vmatprep.subr.bf16.mxu1 %v3265_v6  ;;  %v2799_v5 = vpack.c.bf16 %v1113_v61, %v1111_v60  ;;  %v2737_v6 = vpack.c.bf16 %v1054_v62, %v1052_v59  ;;  %v1074_v59 = vld [vmem:[%s4842_s2 + $0x118] sm:$0xff]  ;;  %v1071_v62 = vld [vmem:[%s4842_s2 + $0x100] sm:$0xff] }
  0x3a   : > { %696 = vmatprep.mubr.bf16.mxu0 %v3298_v2  ;;  %749 = vmatprep.mubr.bf16.mxu1 %v3298_v2  ;;  %v1138_v60 = vld [vmem:[%s4842_s2 + $0x318] sm:$0xff] }
  0x3c   : > { %920 = vmatpush1.bf16.msra.mxu0 %v3260_v7  ;;  %973 = vmatpush1.bf16.msra.mxu1 %v3263_v8  ;;  %v1056_v7 = vld [vmem:[%s4842_s2 + $0x88] sm:$0xff]  ;;  %v2801_v8 = vpack.c.bf16 %v1118_v0, %v1116_v63  ;;  %v1073_v63 = vld [vmem:[%s4842_s2 + $0x110] sm:$0xff] }
  0x3d   : > { %921 = vmatprep.subr.bf16.mxu0 %v3268_v9  ;;  %974 = vmatprep.subr.bf16.mxu1 %v3271_v10  ;;  %v1115_v9 = vld [vmem:[%s4842_s2 + $0x260] sm:$0xff]  ;;  %v1117_v10 = vld [vmem:[%s4842_s2 + $0x270] sm:$0xff] }
  0x3f   : > { %2398 = vmatmul.mubr.msk.bf16.gmra.mrb[4].mxu0 %vm417_vm1, %v3430_v31  ;;  %2400 = vmatmul.mubr.msk.bf16.gmra.mrb[4].mxu1 %vm417_vm1, %v3430_v31  ;;  %v1103_v31 = vld [vmem:[%s4842_s2 + $0x200] sm:$0xff] }
  0x40   : > { %922 = vmatpush1.bf16.msra.mxu0 %v3266_v11  ;;  %975 = vmatpush1.bf16.msra.mxu1 %v3269_v12  ;;  %v2791_v45 = vpack.c.bf16 %v1105_v37, %v1103_v31  ;;  %v1058_v11 = vld [vmem:[%s4842_s2 + $0x98] sm:$0xff]  ;;  %v1120_v12 = vld [vmem:[%s4842_s2 + $0x288] sm:$0xff] }
  0x41   : > { %923 = vmatprep.subr.bf16.mxu0 %v3274_v13  ;;  %976 = vmatprep.subr.bf16.mxu1 %v3277_v14  ;;  %v1122_v13 = vld [vmem:[%s4842_s2 + $0x298] sm:$0xff]  ;;  %v2739_v14 = vpack.c.bf16 %v1053_v4, %v1051_v3  ;;  %v1128_v31 = vld [vmem:[%s4842_s2 + $0x2c8] sm:$0xff] }
  0x42   : > { %949 = vmatprep.mubr.bf16.mxu0 %v3298_v2  ;;  %1002 = vmatprep.mubr.bf16.mxu1 %v3298_v2  ;;  %v1130_v37 = vld [vmem:[%s4842_s2 + $0x2d8] sm:$0xff]  ;;  %v1076_v3 = vld [vmem:[%s4842_s2 + $0x128] sm:$0xff] }
  0x43   : > { %v2813_v44 = vpack.c.bf16 %v1130_v37, %v1128_v31  ;;  %v1085_v31 = vld [vmem:[%s4842_s2 + $0x170] sm:$0xff] }
  0x44   : > { %924 = vmatpush1.bf16.msra.mxu0 %v3272_v15  ;;  %977 = vmatpush1.bf16.msra.mxu1 %v3275_v16  ;;  %v1055_v15 = vld [vmem:[%s4842_s2 + $0x80] sm:$0xff]  ;;  %v1057_v16 = vld [vmem:[%s4842_s2 + $0x90] sm:$0xff] }
  0x45   : > { %925 = vmatprep.subr.bf16.mxu0 %v3280_v17  ;;  %978 = vmatprep.subr.bf16.mxu1 %v3283_v18  ;;  %v2803_v17 = vpack.c.bf16 %v1117_v10, %v1115_v9  ;;  %v2741_v18 = vpack.c.bf16 %v1058_v11, %v1056_v7  ;;  %v2743_v26 = vpack.c.bf16 %v1057_v16, %v1055_v15  ;;  %v1078_v7 = vld [vmem:[%s4842_s2 + $0x138] sm:$0xff]  ;;  %v1075_v11 = vld [vmem:[%s4842_s2 + $0x120] sm:$0xff]  ;;  %v1080_v15 = vld [vmem:[%s4842_s2 + $0x148] sm:$0xff] }
  0x46   : > { %v1142_v9 = vld [vmem:[%s4842_s2 + $0x338] sm:$0xff]  ;;  %v2759_v10 = vpack.c.bf16 %v1073_v63, %v1071_v62  ;;  %v1155_v63 = vld [vmem:[%s4842_s2 + $0x3a0] sm:$0xff] }
  0x48   : > { %926 = vmatpush1.bf16.msra.mxu0 %v3278_v19  ;;  %979 = vmatpush1.bf16.msra.mxu1 %v3281_v20  ;;  %v1060_v19 = vld [vmem:[%s4842_s2 + $0xa8] sm:$0xff]  ;;  %v2805_v20 = vpack.c.bf16 %v1122_v13, %v1120_v12  ;;  %v1077_v12 = vld [vmem:[%s4842_s2 + $0x130] sm:$0xff] }
  0x49   : > { %927 = vmatprep.subr.bf16.mxu0 %v3286_v21  ;;  %980 = vmatprep.subr.bf16.mxu1 %v3289_v22  ;;  %v1119_v21 = vld [vmem:[%s4842_s2 + $0x280] sm:$0xff]  ;;  %v1121_v22 = vld [vmem:[%s4842_s2 + $0x290] sm:$0xff] }
  0x4a   : > { %v2807_v29 = vpack.c.bf16 %v1121_v22, %v1119_v21  ;;  %v1146_v21 = vld [vmem:[%s4842_s2 + $0x358] sm:$0xff]  ;;  %v2763_v22 = vpack.c.bf16 %v1077_v12, %v1075_v11 }
  0x4c   : > { %928 = vmatpush1.bf16.msra.mxu0 %v3284_v27  ;;  %981 = vmatpush1.bf16.msra.mxu1 %v3287_v28  ;;  %v1059_v27 = vld [vmem:[%s4842_s2 + $0xa0] sm:$0xff]  ;;  %v1061_v28 = vld [vmem:[%s4842_s2 + $0xb0] sm:$0xff] }
  0x4d   : > { %2726 = vmatprep.subr.bf16.mxu0 %v2725_v33  ;;  %2790 = vmatprep.subr.bf16.mxu1 %v2789_v36  ;;  %v1064_v33 = vld [vmem:[%s4842_s2 + $0xc8] sm:$0xff]  ;;  %v1125_v36 = vld [vmem:[%s4842_s2 + $0x2b0] sm:$0xff]  ;;  %v2747_v38 = vpack.c.bf16 %v1061_v28, %v1059_v27 }
  0x4e   : > { %v1084_v27 = vld [vmem:[%s4842_s2 + $0x168] sm:$0xff] }
  0x4f   : > { %2449 = vmatmul.mubr.msk.bf16.vlgmr.msra.gmra.mrb[0].mxu0 %vm417_vm1, %v790_v41  ;;  %2451 = vmatmul.mubr.msk.bf16.vlgmr.msra.gmra.mrb[0].mxu1 %vm417_vm1, %v790_v41  ;;  %v2811_v41 = vpack.c.bf16 %v1125_v36, %v1123_v35  ;;  %v1150_v35 = vld [vmem:[%s4842_s2 + $0x378] sm:$0xff] }
  0x50   : > { %959 = vmatprep.mubr.bf16.mxu0 %v3298_v2  ;;  %1012 = vmatprep.mubr.bf16.mxu1 %v3298_v2  ;;  %v2797_v2 = vpack.c.bf16 %v1114_v53, %v1112_v52  ;;  %v1069_v52 = vld [vmem:[%s4842_s2 + $0xf0] sm:$0xff] }
  0x51   : > { %2728 = vmatpush1.bf16.msra.mxu0 %v2727_v42  ;;  %2792 = vmatpush1.bf16.msra.mxu1 %v2791_v45  ;;  %v2749_v42 = vpack.c.bf16 %v1066_v30, %v1064_v33  ;;  %v1127_v45 = vld [vmem:[%s4842_s2 + $0x2c0] sm:$0xff]  ;;  %v2755_v61 = vpack.c.bf16 %v1069_v52, %v1067_v51  ;;  %v1086_v33 = vld [vmem:[%s4842_s2 + $0x178] sm:$0xff]  ;;  %v1092_v51 = vld [vmem:[%s4842_s2 + $0x1a8] sm:$0xff] }
  0x52   : > { %2730 = vmatprep.subr.bf16.mxu0 %v2729_v46  ;;  %2794 = vmatprep.subr.bf16.mxu1 %v2793_v48  ;;  %v1129_v46 = vld [vmem:[%s4842_s2 + $0x2d0] sm:$0xff]  ;;  %v1132_v48 = vld [vmem:[%s4842_s2 + $0x2e8] sm:$0xff]  ;;  %v1083_v30 = vld [vmem:[%s4842_s2 + $0x160] sm:$0xff] }
  0x53   : > { %v2815_v53 = vpack.c.bf16 %v1129_v46, %v1127_v45  ;;  %v2817_v56 = vpack.c.bf16 %v1134_v49, %v1132_v48  ;;  %v1154_v45 = vld [vmem:[%s4842_s2 + $0x398] sm:$0xff]  ;;  %v2771_v46 = vpack.c.bf16 %v1085_v31, %v1083_v30  ;;  %v1089_v48 = vld [vmem:[%s4842_s2 + $0x190] sm:$0xff] }
  0x54   : > { %v2463_v30 = vld [vmem:[%s4842_s2 + $0x3f0] sm:$0xff] }
  0x55   : > { %2732 = vmatpush1.bf16.msra.mxu0 %v2731_v54  ;;  %2796 = vmatpush1.bf16.msra.mxu1 %v2795_v57  ;;  %v2753_v54 = vpack.c.bf16 %v1070_v47, %v1068_v43  ;;  %v1131_v57 = vld [vmem:[%s4842_s2 + $0x2e0] sm:$0xff]  ;;  %v1090_v43 = vld [vmem:[%s4842_s2 + $0x198] sm:$0xff] }
  0x56   : > { %2734 = vmatprep.subr.bf16.mxu0 %v2733_v58  ;;  %2798 = vmatprep.subr.bf16.mxu1 %v2797_v2  ;;  %v1133_v58 = vld [vmem:[%s4842_s2 + $0x2f0] sm:$0xff]  ;;  %v1136_v2 = vld [vmem:[%s4842_s2 + $0x308] sm:$0xff]  ;;  %v1087_v47 = vld [vmem:[%s4842_s2 + $0x180] sm:$0xff] }
  0x57   : > { %2450 = vmatmul.mubr.msk.bf16.gmra.mrb[4].mxu0 %vm417_vm1, %v3611_v32  ;;  %2452 = vmatmul.mubr.msk.bf16.gmra.mrb[4].mxu1 %vm417_vm1, %v3611_v32  ;;  %v2745_v32 = vpack.c.bf16 %v1062_v23, %v1060_v19  ;;  %v2819_v0 = vpack.c.bf16 %v1133_v58, %v1131_v57  ;;  %v2821_v4 = vpack.c.bf16 %v1138_v60, %v1136_v2  ;;  %v1082_v19 = vld [vmem:[%s4842_s2 + $0x158] sm:$0xff]  ;;  %v1079_v23 = vld [vmem:[%s4842_s2 + $0x140] sm:$0xff] }
  0x58   : > { %v2767_v36 = vpack.c.bf16 %v1081_v24, %v1079_v23  ;;  %v1158_v57 = vld [vmem:[%s4842_s2 + $0x3b8] sm:$0xff]  ;;  %v2775_v58 = vpack.c.bf16 %v1089_v48, %v1087_v47  ;;  %v2459_v23 = vld [vmem:[%s4842_s2 + $0x3d0] sm:$0xff]  ;;  %v2581_v24 = vld [vmem:[%s4842_s2 + $0x780] sm:$0xff] }
  0x59   : > { %2736 = vmatpush1.bf16.msra.mxu0 %v2735_v1  ;;  %2800 = vmatpush1.bf16.msra.mxu1 %v2799_v5  ;;  %v2757_v1 = vpack.c.bf16 %v1074_v59, %v1072_v55  ;;  %v1135_v5 = vld [vmem:[%s4842_s2 + $0x300] sm:$0xff]  ;;  %v1094_v55 = vld [vmem:[%s4842_s2 + $0x1b8] sm:$0xff] }
  0x5a   : > { %2738 = vmatprep.subr.bf16.mxu0 %v2737_v6  ;;  %2802 = vmatprep.subr.bf16.mxu1 %v2801_v8  ;;  %v1137_v6 = vld [vmem:[%s4842_s2 + $0x310] sm:$0xff]  ;;  %v1140_v8 = vld [vmem:[%s4842_s2 + $0x328] sm:$0xff]  ;;  %v1091_v59 = vld [vmem:[%s4842_s2 + $0x1a0] sm:$0xff]  ;;  %v2777_v60 = vpack.c.bf16 %v1094_v55, %v1092_v51 }
  0x5b   : > { %v2823_v13 = vpack.c.bf16 %v1137_v6, %v1135_v5  ;;  %v2825_v16 = vpack.c.bf16 %v1142_v9, %v1140_v8  ;;  %v1097_v8 = vld [vmem:[%s4842_s2 + $0x1d0] sm:$0xff]  ;;  %v1100_v9 = vld [vmem:[%s4842_s2 + $0x1e8] sm:$0xff]  ;;  %v2592_v47 = vld [vmem:[%s4842_s2 + $0x7d8] sm:$0xff] }
  0x5c   : > { %v2467_v55 = vld [vmem:[%s4842_s2 + $0x410] sm:$0xff] }
  0x5d   : > { %2740 = vmatpush1.bf16.msra.mxu0 %v2739_v14  ;;  %2804 = vmatpush1.bf16.msra.mxu1 %v2803_v17  ;;  %v2761_v14 = vpack.c.bf16 %v1078_v7, %v1076_v3  ;;  %v1139_v17 = vld [vmem:[%s4842_s2 + $0x320] sm:$0xff]  ;;  %v1098_v3 = vld [vmem:[%s4842_s2 + $0x1d8] sm:$0xff] }
  0x5e   : > { %2742 = vmatprep.subr.bf16.mxu0 %v2741_v18  ;;  %2806 = vmatprep.subr.bf16.mxu1 %v2805_v20  ;;  %v1141_v18 = vld [vmem:[%s4842_s2 + $0x330] sm:$0xff]  ;;  %v1144_v20 = vld [vmem:[%s4842_s2 + $0x348] sm:$0xff]  ;;  %v1095_v7 = vld [vmem:[%s4842_s2 + $0x1c0] sm:$0xff] }
  0x5f   : > { %v2827_v25 = vpack.c.bf16 %v1141_v18, %v1139_v17  ;;  %v2829_v28 = vpack.c.bf16 %v1146_v21, %v1144_v20  ;;  %v2783_v11 = vpack.c.bf16 %v1097_v8, %v1095_v7  ;;  %v2460_v17 = vld [vmem:[%s4842_s2 + $0x3d8] sm:$0xff]  ;;  %v2582_v18 = vld [vmem:[%s4842_s2 + $0x788] sm:$0xff]  ;;  %v2595_v7 = vld [vmem:[%s4842_s2 + $0x7f0] sm:$0xff] }
  0x60   : > { %v2584_v20 = vld [vmem:[%s4842_s2 + $0x798] sm:$0xff] }
  0x61   : > { %2744 = vmatpush1.bf16.msra.mxu0 %v2743_v26  ;;  %2808 = vmatpush1.bf16.msra.mxu1 %v2807_v29  ;;  %v2765_v26 = vpack.c.bf16 %v1082_v19, %v1080_v15  ;;  %v1143_v29 = vld [vmem:[%s4842_s2 + $0x340] sm:$0xff]  ;;  %v2965_v21 = vpack.c.bf16 %v2584_v20, %v2582_v18 }
  0x62   : > { %2746 = vmatprep.subr.bf16.mxu0 %v2745_v32  ;;  %2810 = vmatprep.subr.bf16.mxu1 %v2809_v34  ;;  %v1145_v32 = vld [vmem:[%s4842_s2 + $0x350] sm:$0xff]  ;;  %v1148_v34 = vld [vmem:[%s4842_s2 + $0x368] sm:$0xff]  ;;  %v2473_v20 = vld [vmem:[%s4842_s2 + $0x440] sm:$0xff] }
  0x63   : > { %v2831_v37 = vpack.c.bf16 %v1145_v32, %v1143_v29  ;;  %v2833_v40 = vpack.c.bf16 %v1150_v35, %v1148_v34  ;;  %v2588_v29 = vld [vmem:[%s4842_s2 + $0x7b8] sm:$0xff] }
  0x65   : > { %2748 = vmatpush1.bf16.msra.mxu0 %v2747_v38  ;;  %2812 = vmatpush1.bf16.msra.mxu1 %v2811_v41  ;;  %v2769_v38 = vpack.c.bf16 %v1086_v33, %v1084_v27  ;;  %v1147_v41 = vld [vmem:[%s4842_s2 + $0x360] sm:$0xff]  ;;  %v2464_v27 = vld [vmem:[%s4842_s2 + $0x3f8] sm:$0xff] }
  0x66   : > { %2750 = vmatprep.subr.bf16.mxu0 %v2749_v42  ;;  %2814 = vmatprep.subr.bf16.mxu1 %v2813_v44  ;;  %v1149_v42 = vld [vmem:[%s4842_s2 + $0x370] sm:$0xff]  ;;  %v1152_v44 = vld [vmem:[%s4842_s2 + $0x388] sm:$0xff] }
  0x67   : > { %v2835_v49 = vpack.c.bf16 %v1149_v42, %v1147_v41  ;;  %v2837_v52 = vpack.c.bf16 %v1154_v45, %v1152_v44  ;;  %v2468_v45 = vld [vmem:[%s4842_s2 + $0x418] sm:$0xff] }
  0x69   : > { %2752 = vmatpush1.bf16.msra.mxu0 %v2751_v50  ;;  %2816 = vmatpush1.bf16.msra.mxu1 %v2815_v53  ;;  %v2773_v50 = vpack.c.bf16 %v1090_v43, %v1088_v39  ;;  %v1151_v53 = vld [vmem:[%s4842_s2 + $0x380] sm:$0xff]  ;;  %v2587_v39 = vld [vmem:[%s4842_s2 + $0x7b0] sm:$0xff] }
  0x6a   : > { %2754 = vmatprep.subr.bf16.mxu0 %v2753_v54  ;;  %2818 = vmatprep.subr.bf16.mxu1 %v2817_v56  ;;  %v1153_v54 = vld [vmem:[%s4842_s2 + $0x390] sm:$0xff]  ;;  %v1156_v56 = vld [vmem:[%s4842_s2 + $0x3a8] sm:$0xff] }
  0x6b   : > { %v2839_v2 = vpack.c.bf16 %v1153_v54, %v1151_v53  ;;  %v2841_v62 = vpack.c.bf16 %v1158_v57, %v1156_v56  ;;  %v2589_v56 = vld [vmem:[%s4842_s2 + $0x7c0] sm:$0xff]  ;;  %v2591_v57 = vld [vmem:[%s4842_s2 + $0x7d0] sm:$0xff] }
  0x6d   : > { %2756 = vmatpush1.bf16.msra.mxu0 %v2755_v61  ;;  %2820 = vmatpush1.bf16.msra.mxu1 %v2819_v0  ;;  %v1093_v61 = vld [vmem:[%s4842_s2 + $0x1b0] sm:$0xff] }
  0x6e   : > { %2758 = vmatprep.subr.bf16.mxu0 %v2757_v1  ;;  %2822 = vmatprep.subr.bf16.mxu1 %v2821_v4  ;;  %v1157_v0 = vld [vmem:[%s4842_s2 + $0x3b0] sm:$0xff]  ;;  %v1096_v1 = vld [vmem:[%s4842_s2 + $0x1c8] sm:$0xff]  ;;  %v2779_v4 = vpack.c.bf16 %v1093_v61, %v1091_v59  ;;  %v2472_v59 = vld [vmem:[%s4842_s2 + $0x438] sm:$0xff] }
  0x6f   : > { %v2843_v5 = vpack.c.bf16 %v1157_v0, %v1155_v63  ;;  %v2781_v6 = vpack.c.bf16 %v1098_v3, %v1096_v1  ;;  %v2975_v0 = vpack.c.bf16 %v2591_v57, %v2589_v56  ;;  %v2469_v1 = vld [vmem:[%s4842_s2 + $0x420] sm:$0xff]  ;;  %v2607_v56 = vld [vmem:[%s4842_s2 + $0x850] sm:$0xff]  ;;  %v2486_v57 = vld [vmem:[%s4842_s2 + $0x4a8] sm:$0xff] }
  0x71   : > { %2760 = vmatpush1.bf16.msra.mxu0 %v2759_v10  ;;  %2824 = vmatpush1.bf16.msra.mxu1 %v2823_v13  ;;  %v1102_v10 = vld [vmem:[%s4842_s2 + $0x1f8] sm:$0xff]  ;;  %v1099_v13 = vld [vmem:[%s4842_s2 + $0x1e0] sm:$0xff] }
  0x72   : > { %2762 = vmatprep.subr.bf16.mxu0 %v2761_v14  ;;  %2826 = vmatprep.subr.bf16.mxu1 %v2825_v16  ;;  %v2785_v12 = vpack.c.bf16 %v1102_v10, %v1100_v9  ;;  %v1101_v14 = vld [vmem:[%s4842_s2 + $0x1f0] sm:$0xff]  ;;  %v2458_v16 = vld [vmem:[%s4842_s2 + $0x3c8] sm:$0xff] }
  0x73   : > { %v2787_v15 = vpack.c.bf16 %v1101_v14, %v1099_v13  ;;  %v2845_v19 = vpack.c.bf16 %v2460_v17, %v2458_v16  ;;  %v2598_v16 = vld [vmem:[%s4842_s2 + $0x808] sm:$0xff]  ;;  %v2600_v17 = vld [vmem:[%s4842_s2 + $0x818] sm:$0xff] }
  0x75   : > { %2764 = vmatpush1.bf16.msra.mxu0 %v2763_v22  ;;  %2828 = vmatpush1.bf16.msra.mxu1 %v2827_v25  ;;  %v2457_v22 = vld [vmem:[%s4842_s2 + $0x3c0] sm:$0xff]  ;;  %v2583_v25 = vld [vmem:[%s4842_s2 + $0x790] sm:$0xff] }
  0x76   : > { %2766 = vmatprep.subr.bf16.mxu0 %v2765_v26  ;;  %2830 = vmatprep.subr.bf16.mxu1 %v2829_v28  ;;  %v2462_v26 = vld [vmem:[%s4842_s2 + $0x3e8] sm:$0xff]  ;;  %v2847_v34 = vpack.c.bf16 %v2459_v23, %v2457_v22  ;;  %v2967_v35 = vpack.c.bf16 %v2583_v25, %v2581_v24  ;;  %v2597_v22 = vld [vmem:[%s4842_s2 + $0x800] sm:$0xff]  ;;  %v2599_v23 = vld [vmem:[%s4842_s2 + $0x810] sm:$0xff] }
  0x77   : > { %v2586_v28 = vld [vmem:[%s4842_s2 + $0x7a8] sm:$0xff]  ;;  %v2849_v43 = vpack.c.bf16 %v2464_v27, %v2462_v26  ;;  %v2981_v26 = vpack.c.bf16 %v2600_v17, %v2598_v16  ;;  %v2480_v27 = vld [vmem:[%s4842_s2 + $0x478] sm:$0xff] }
  0x78   : > { %v2969_v44 = vpack.c.bf16 %v2588_v29, %v2586_v28  ;;  %v2478_v24 = vld [vmem:[%s4842_s2 + $0x468] sm:$0xff]  ;;  %v2604_v29 = vld [vmem:[%s4842_s2 + $0x838] sm:$0xff] }
  0x79   : > { %2768 = vmatpush1.bf16.msra.mxu0 %v2767_v36  ;;  %2832 = vmatpush1.bf16.msra.mxu1 %v2831_v37  ;;  %v2461_v36 = vld [vmem:[%s4842_s2 + $0x3e0] sm:$0xff]  ;;  %v2602_v28 = vld [vmem:[%s4842_s2 + $0x828] sm:$0xff]  ;;  %v2616_v16 = vld [vmem:[%s4842_s2 + $0x898] sm:$0xff] }
  0x7a   : > { %2770 = vmatprep.subr.bf16.mxu0 %v2769_v38  ;;  %2834 = vmatprep.subr.bf16.mxu1 %v2833_v40  ;;  %v2585_v38 = vld [vmem:[%s4842_s2 + $0x7a0] sm:$0xff]  ;;  %v2466_v40 = vld [vmem:[%s4842_s2 + $0x408] sm:$0xff] }
  0x7b   : > { %v2971_v51 = vpack.c.bf16 %v2587_v39, %v2585_v38  ;;  %v2853_v53 = vpack.c.bf16 %v2468_v45, %v2466_v40  ;;  %v2865_v38 = vpack.c.bf16 %v2480_v27, %v2478_v24  ;;  %v2985_v39 = vpack.c.bf16 %v2604_v29, %v2602_v28  ;;  %v2601_v40 = vld [vmem:[%s4842_s2 + $0x820] sm:$0xff]  ;;  %v2606_v45 = vld [vmem:[%s4842_s2 + $0x848] sm:$0xff]  ;;  %v2615_v24 = vld [vmem:[%s4842_s2 + $0x890] sm:$0xff] }
  0x7c   : > { %v2618_v27 = vld [vmem:[%s4842_s2 + $0x8a8] sm:$0xff]  ;;  %v2620_v28 = vld [vmem:[%s4842_s2 + $0x8b8] sm:$0xff] }
  0x7d   : > { %2772 = vmatpush1.bf16.msra.mxu0 %v2771_v46  ;;  %2836 = vmatpush1.bf16.msra.mxu1 %v2835_v49  ;;  %v2590_v46 = vld [vmem:[%s4842_s2 + $0x7c8] sm:$0xff] }
  0x7e   : > { %2774 = vmatprep.subr.bf16.mxu0 %v2773_v50  ;;  %2838 = vmatprep.subr.bf16.mxu1 %v2837_v52  ;;  %v2851_v50 = vpack.c.bf16 %v2463_v30, %v2461_v36  ;;  %v2465_v52 = vld [vmem:[%s4842_s2 + $0x400] sm:$0xff]  ;;  %v2973_v54 = vpack.c.bf16 %v2592_v47, %v2590_v46  ;;  %v2479_v30 = vld [vmem:[%s4842_s2 + $0x470] sm:$0xff]  ;;  %v2608_v46 = vld [vmem:[%s4842_s2 + $0x858] sm:$0xff] }
  0x7f   : > { %v2855_v63 = vpack.c.bf16 %v2467_v55, %v2465_v52  ;;  %v2477_v36 = vld [vmem:[%s4842_s2 + $0x460] sm:$0xff]  ;;  %v2483_v52 = vld [vmem:[%s4842_s2 + $0x490] sm:$0xff] }
  0x80   : > { %v2867_v47 = vpack.c.bf16 %v2479_v30, %v2477_v36  ;;  %v2605_v55 = vld [vmem:[%s4842_s2 + $0x840] sm:$0xff]  ;;  %v2495_v36 = vld [vmem:[%s4842_s2 + $0x4f0] sm:$0xff] }
  0x81   : > { %2776 = vmatpush1.bf16.msra.mxu0 %v2775_v58  ;;  %2840 = vmatpush1.bf16.msra.mxu1 %v2839_v2  ;;  %v2470_v58 = vld [vmem:[%s4842_s2 + $0x428] sm:$0xff] }
  0x82   : > { %2778 = vmatprep.subr.bf16.mxu0 %v2777_v60  ;;  %2842 = vmatprep.subr.bf16.mxu1 %v2841_v62  ;;  %v2594_v2 = vld [vmem:[%s4842_s2 + $0x7e8] sm:$0xff]  ;;  %v2596_v60 = vld [vmem:[%s4842_s2 + $0x7f8] sm:$0xff]  ;;  %v2857_v10 = vpack.c.bf16 %v2472_v59, %v2470_v58 }
  0x83   : > { %v2488_v58 = vld [vmem:[%s4842_s2 + $0x4b8] sm:$0xff]  ;;  %v2610_v59 = vld [vmem:[%s4842_s2 + $0x868] sm:$0xff] }
  0x85   : > { %2780 = vmatpush1.bf16.msra.mxu0 %v2779_v4  ;;  %2844 = vmatpush1.bf16.msra.mxu1 %v2843_v5  ;;  %v2471_v5 = vld [vmem:[%s4842_s2 + $0x430] sm:$0xff] }
  0x86   : > { %2782 = vmatprep.subr.bf16.mxu0 %v2781_v6  ;;  %2846 = vmatprep.subr.bf16.mxu1 %v2845_v19  ;;  %v2593_v6 = vld [vmem:[%s4842_s2 + $0x7e0] sm:$0xff]  ;;  %v2859_v18 = vpack.c.bf16 %v2471_v5, %v2469_v1  ;;  %v2487_v1 = vld [vmem:[%s4842_s2 + $0x4b0] sm:$0xff]  ;;  %v2873_v5 = vpack.c.bf16 %v2488_v58, %v2486_v57  ;;  %v2504_v57 = vld [vmem:[%s4842_s2 + $0x538] sm:$0xff] }
  0x87   : > { %v2979_v19 = vpack.c.bf16 %v2595_v7, %v2593_v6  ;;  %v2609_v7 = vld [vmem:[%s4842_s2 + $0x860] sm:$0xff]  ;;  %v2626_v58 = vld [vmem:[%s4842_s2 + $0x8e8] sm:$0xff] }
  0x89   : > { %2784 = vmatpush1.bf16.msra.mxu0 %v2783_v11  ;;  %v2977_v11 = vpack.c.bf16 %v2596_v60, %v2594_v2  ;;  %v2612_v2 = vld [vmem:[%s4842_s2 + $0x878] sm:$0xff] }
  0x8a   : > { %2786 = vmatprep.subr.bf16.mxu0 %v2785_v12  ;;  %v2474_v12 = vld [vmem:[%s4842_s2 + $0x448] sm:$0xff]  ;;  %v2993_v6 = vpack.c.bf16 %v2612_v2, %v2610_v59  ;;  %v2628_v59 = vld [vmem:[%s4842_s2 + $0x8f8] sm:$0xff] }
  0x8d   : > { %2788 = vmatpush1.bf16.msra.mxu0 %v2787_v15  ;;  %v2476_v15 = vld [vmem:[%s4842_s2 + $0x458] sm:$0xff] }
  0x8e   : > { %2966 = vmatprep.subr.bf16.mxu0 %v2965_v21  ;;  %v2475_v21 = vld [vmem:[%s4842_s2 + $0x450] sm:$0xff]  ;;  %v2861_v25 = vpack.c.bf16 %v2476_v15, %v2474_v12  ;;  %v2492_v12 = vld [vmem:[%s4842_s2 + $0x4d8] sm:$0xff]  ;;  %v2614_v15 = vld [vmem:[%s4842_s2 + $0x888] sm:$0xff] }
 0x122   : > { %v4006_v32 = vpop.f32.mrb[0].mxu0  ;;  %v4008_v33 = vpop.f32.mrb[0].mxu1 }
 0x123   : > { %v4016_v31 = vpop.f32.mrb[1].mxu0  ;;  %v4018_v37 = vpop.f32.mrb[1].mxu1 }
 0x124   : > { %v4029_v41 = vpop.f32.mrb[2].mxu0  ;;  %v4031_v42 = vpop.f32.mrb[2].mxu1  ;;  %1235 = vmatprep.mubr.f32.mxu0 %v4016_v31  ;;  %2453 = vmatprep.mubr.msk.f32.mxu1 %vm417_vm1, %v4018_v37 }
 0x125   : > { %v4045_v48 = vpop.f32.mrb[3].mxu0  ;;  %v4047_v49 = vpop.f32.mrb[3].mxu1  ;;  %1236 = vmatmul.mubr.f32.vlgmr.msra.gmra.mrb[8].mxu0 %v4006_v32  ;;  %1325 = vmatmul.mubr.f32.vlgmr.msra.gmra.mrb[8].mxu1 %v4008_v33 }
 0x126   : > { %2848 = vmatpush1.bf16.msra.mxu1 %v2847_v34  ;;  %2968 = vmatpush1.bf16.msra.mxu0 %v2967_v35  ;;  %v2863_v34 = vpack.c.bf16 %v2475_v21, %v2473_v20  ;;  %v2983_v35 = vpack.c.bf16 %v2599_v23, %v2597_v22  ;;  %v2491_v20 = vld [vmem:[%s4842_s2 + $0x4d0] sm:$0xff]  ;;  %v2997_v22 = vpack.c.bf16 %v2616_v16, %v2614_v15  ;;  %v2613_v23 = vld [vmem:[%s4842_s2 + $0x880] sm:$0xff]  ;;  %v2632_v15 = vld [vmem:[%s4842_s2 + $0x918] sm:$0xff] }
 0x127   : > { %1241 = vmatprep.mubr.f32.mxu0 %v4045_v48  ;;  %2454 = vmatprep.mubr.msk.f32.mxu1 %vm417_vm1, %v4047_v49 }
 0x128   : > { %2850 = vmatprep.subr.bf16.mxu1 %v2849_v43  ;;  %2970 = vmatprep.subr.bf16.mxu0 %v2969_v44  ;;  %v2603_v43 = vld [vmem:[%s4842_s2 + $0x830] sm:$0xff]  ;;  %v2482_v44 = vld [vmem:[%s4842_s2 + $0x488] sm:$0xff] }
 0x129   : > { %1242 = vmatmul.mubr.f32.gmra.mrb[10].mxu0 %v4029_v41  ;;  %1331 = vmatmul.mubr.f32.gmra.mrb[10].mxu1 %v4031_v42 }
 0x12a   : > { %2852 = vmatpush1.bf16.msra.mxu1 %v2851_v50  ;;  %2972 = vmatpush1.bf16.msra.mxu0 %v2971_v51  ;;  %v4080_v61 = vpop.f32.mrb[4].mxu0  ;;  %v4082_v62 = vpop.f32.mrb[4].mxu1  ;;  %v2987_v50 = vpack.c.bf16 %v2603_v43, %v2601_v40  ;;  %v2481_v51 = vld [vmem:[%s4842_s2 + $0x480] sm:$0xff]  ;;  %v2619_v40 = vld [vmem:[%s4842_s2 + $0x8b0] sm:$0xff]  ;;  %v2498_v43 = vld [vmem:[%s4842_s2 + $0x508] sm:$0xff] }
 0x12b   : > { %v4087_v3 = vpop.f32.mrb[5].mxu0  ;;  %v4089_v4 = vpop.f32.mrb[5].mxu1  ;;  %2854 = vmatprep.subr.bf16.mxu1 %v2853_v53  ;;  %2974 = vmatprep.subr.bf16.mxu0 %v2973_v54  ;;  %v2989_v54 = vpack.c.bf16 %v2608_v46, %v2606_v45  ;;  %v2871_v60 = vpack.c.bf16 %v2483_v52, %v2481_v51  ;;  %v2624_v45 = vld [vmem:[%s4842_s2 + $0x8d8] sm:$0xff]  ;;  %v2499_v51 = vld [vmem:[%s4842_s2 + $0x510] sm:$0xff] }
 0x12c   : > { %v4100_v8 = vpop.f32.mrb[6].mxu0  ;;  %v4102_v9 = vpop.f32.mrb[6].mxu1  ;;  %1247 = vmatprep.mubr.f32.mxu0 %v4087_v3  ;;  %2455 = vmatprep.mubr.msk.f32.mxu1 %vm417_vm1, %v4089_v4 }
 0x12d   : > { %v4110_v13 = vpop.f32.mrb[7].mxu0  ;;  %v4112_v14 = vpop.f32.mrb[7].mxu1  ;;  %1248 = vmatmul.mubr.f32.gmra.mrb[12].mxu0 %v4080_v61  ;;  %1337 = vmatmul.mubr.f32.gmra.mrb[12].mxu1 %v4082_v62 }
 0x12e   : > { %2856 = vmatpush1.bf16.msra.mxu1 %v2855_v63  ;;  %2976 = vmatpush1.bf16.msra.mxu0 %v2975_v0  ;;  %v2991_v63 = vpack.c.bf16 %v2607_v56, %v2605_v55  ;;  %v2485_v0 = vld [vmem:[%s4842_s2 + $0x4a0] sm:$0xff]  ;;  %v2623_v55 = vld [vmem:[%s4842_s2 + $0x8d0] sm:$0xff]  ;;  %v2502_v56 = vld [vmem:[%s4842_s2 + $0x528] sm:$0xff] }
 0x12f   : > { %1253 = vmatprep.mubr.f32.mxu0 %v4110_v13  ;;  %2456 = vmatprep.mubr.msk.f32.mxu1 %vm417_vm1, %v4112_v14  ;;  %v2875_v17 = vpack.c.bf16 %v2487_v1, %v2485_v0  ;;  %v2503_v0 = vld [vmem:[%s4842_s2 + $0x530] sm:$0xff]  ;;  %v2889_v1 = vpack.c.bf16 %v2504_v57, %v2502_v56  ;;  %v2520_v56 = vld [vmem:[%s4842_s2 + $0x5b8] sm:$0xff]  ;;  %v2642_v57 = vld [vmem:[%s4842_s2 + $0x968] sm:$0xff] }
 0x130   : > { %2858 = vmatprep.subr.bf16.mxu1 %v2857_v10  ;;  %2978 = vmatprep.subr.bf16.mxu0 %v2977_v11  ;;  %v2611_v10 = vld [vmem:[%s4842_s2 + $0x870] sm:$0xff]  ;;  %v2490_v11 = vld [vmem:[%s4842_s2 + $0x4c8] sm:$0xff] }
 0x131   : > { %1254 = vmatmul.mubr.f32.gmra.mrb[14].mxu0 %v4100_v8  ;;  %1343 = vmatmul.mubr.f32.gmra.mrb[14].mxu1 %v4102_v9  ;;  %v2877_v21 = vpack.c.bf16 %v2492_v12, %v2490_v11  ;;  %v2508_v11 = vld [vmem:[%s4842_s2 + $0x558] sm:$0xff]  ;;  %v2630_v12 = vld [vmem:[%s4842_s2 + $0x908] sm:$0xff] }
 0x132   : > { %2860 = vmatpush1.bf16.msra.mxu1 %v2859_v18  ;;  %2980 = vmatpush1.bf16.msra.mxu0 %v2979_v19  ;;  %v2995_v18 = vpack.c.bf16 %v2611_v10, %v2609_v7  ;;  %v2489_v19 = vld [vmem:[%s4842_s2 + $0x4c0] sm:$0xff]  ;;  %v2627_v7 = vld [vmem:[%s4842_s2 + $0x8f0] sm:$0xff]  ;;  %v2506_v10 = vld [vmem:[%s4842_s2 + $0x548] sm:$0xff] }
 0x133   : > { %1534 = vmatprep.mubr.f32.mxu1 %v4016_v31  ;;  %1841 = vmatprep.mubr.f32.mxu0 %v4016_v31  ;;  %v2484_v31 = vld [vmem:[%s4842_s2 + $0x498] sm:$0xff]  ;;  %v2879_v29 = vpack.c.bf16 %v2491_v20, %v2489_v19  ;;  %v2507_v19 = vld [vmem:[%s4842_s2 + $0x550] sm:$0xff]  ;;  %v2893_v20 = vpack.c.bf16 %v2508_v11, %v2506_v10  ;;  %v2646_v11 = vld [vmem:[%s4842_s2 + $0x988] sm:$0xff] }
 0x134   : > { %2862 = vmatprep.subr.bf16.mxu1 %v2861_v25  ;;  %2982 = vmatprep.subr.bf16.mxu0 %v2981_v26  ;;  %v2869_v53 = vpack.c.bf16 %v2484_v31, %v2482_v44  ;;  %v2494_v25 = vld [vmem:[%s4842_s2 + $0x4e8] sm:$0xff]  ;;  %v2496_v26 = vld [vmem:[%s4842_s2 + $0x4f8] sm:$0xff] }
 0x135   : > { %v2881_v30 = vpack.c.bf16 %v2496_v26, %v2494_v25  ;;  %v2500_v44 = vld [vmem:[%s4842_s2 + $0x518] sm:$0xff]  ;;  %v2622_v31 = vld [vmem:[%s4842_s2 + $0x8c8] sm:$0xff] }
 0x136   : > { %2864 = vmatpush1.bf16.msra.mxu1 %v2863_v34  ;;  %2984 = vmatpush1.bf16.msra.mxu0 %v2983_v35  ;;  %v2999_v34 = vpack.c.bf16 %v2615_v24, %v2613_v23  ;;  %v2493_v35 = vld [vmem:[%s4842_s2 + $0x4e0] sm:$0xff]  ;;  %v2885_v52 = vpack.c.bf16 %v2500_v44, %v2498_v43  ;;  %v2631_v23 = vld [vmem:[%s4842_s2 + $0x910] sm:$0xff]  ;;  %v2510_v24 = vld [vmem:[%s4842_s2 + $0x568] sm:$0xff] }
 0x137   : > { %2866 = vmatprep.subr.bf16.mxu1 %v2865_v38  ;;  %2986 = vmatprep.subr.bf16.mxu0 %v2985_v39  ;;  %v3001_v38 = vpack.c.bf16 %v2620_v28, %v2618_v27  ;;  %v2617_v39 = vld [vmem:[%s4842_s2 + $0x8a0] sm:$0xff]  ;;  %v2883_v46 = vpack.c.bf16 %v2495_v36, %v2493_v35  ;;  %v2512_v25 = vld [vmem:[%s4842_s2 + $0x578] sm:$0xff]  ;;  %v2634_v26 = vld [vmem:[%s4842_s2 + $0x928] sm:$0xff] }
 0x138   : > { %v2636_v27 = vld [vmem:[%s4842_s2 + $0x938] sm:$0xff]  ;;  %v2511_v35 = vld [vmem:[%s4842_s2 + $0x570] sm:$0xff]  ;;  %v2897_v36 = vpack.c.bf16 %v2512_v25, %v2510_v24  ;;  %v2638_v44 = vld [vmem:[%s4842_s2 + $0x948] sm:$0xff] }
 0x139   : > { %v2516_v43 = vld [vmem:[%s4842_s2 + $0x598] sm:$0xff]  ;;  %v2650_v25 = vld [vmem:[%s4842_s2 + $0x9a8] sm:$0xff] }
 0x13a   : > { %2868 = vmatpush1.bf16.msra.mxu1 %v2867_v47  ;;  %2988 = vmatpush1.bf16.msra.mxu0 %v2987_v50  ;;  %v3003_v47 = vpack.c.bf16 %v2619_v40, %v2617_v39  ;;  %v2497_v50 = vld [vmem:[%s4842_s2 + $0x500] sm:$0xff]  ;;  %v2635_v39 = vld [vmem:[%s4842_s2 + $0x930] sm:$0xff]  ;;  %v2514_v40 = vld [vmem:[%s4842_s2 + $0x588] sm:$0xff] }
 0x13b   : > { %2870 = vmatprep.subr.bf16.mxu1 %v2869_v53  ;;  %2990 = vmatprep.subr.bf16.mxu0 %v2989_v54  ;;  %v3005_v53 = vpack.c.bf16 %v2624_v45, %v2622_v31  ;;  %v2621_v54 = vld [vmem:[%s4842_s2 + $0x8c0] sm:$0xff]  ;;  %v2887_v2 = vpack.c.bf16 %v2499_v51, %v2497_v50  ;;  %v2640_v31 = vld [vmem:[%s4842_s2 + $0x958] sm:$0xff]  ;;  %v2515_v50 = vld [vmem:[%s4842_s2 + $0x590] sm:$0xff]  ;;  %v2901_v51 = vpack.c.bf16 %v2516_v43, %v2514_v40 }
 0x13c   : > { %v2524_v10 = vld [vmem:[%s4842_s2 + $0x5d8] sm:$0xff]  ;;  %v2654_v43 = vld [vmem:[%s4842_s2 + $0x9c8] sm:$0xff] }
 0x13d   : > { %v2528_v24 = vld [vmem:[%s4842_s2 + $0x5f8] sm:$0xff] }
 0x13e   : > { %2872 = vmatpush1.bf16.msra.mxu1 %v2871_v60  ;;  %2992 = vmatpush1.bf16.msra.mxu0 %v2991_v63  ;;  %v3007_v60 = vpack.c.bf16 %v2623_v55, %v2621_v54  ;;  %v2501_v63 = vld [vmem:[%s4842_s2 + $0x520] sm:$0xff]  ;;  %v2639_v54 = vld [vmem:[%s4842_s2 + $0x950] sm:$0xff]  ;;  %v2518_v55 = vld [vmem:[%s4842_s2 + $0x5a8] sm:$0xff] }
 0x13f   : > { %2874 = vmatprep.subr.bf16.mxu1 %v2873_v5  ;;  %2994 = vmatprep.subr.bf16.mxu0 %v2993_v6  ;;  %v3009_v5 = vpack.c.bf16 %v2628_v59, %v2626_v58  ;;  %v2625_v6 = vld [vmem:[%s4842_s2 + $0x8e0] sm:$0xff]  ;;  %v2891_v16 = vpack.c.bf16 %v2503_v0, %v2501_v63  ;;  %v2644_v58 = vld [vmem:[%s4842_s2 + $0x978] sm:$0xff]  ;;  %v2519_v63 = vld [vmem:[%s4842_s2 + $0x5b0] sm:$0xff]  ;;  %v2905_v0 = vpack.c.bf16 %v2520_v56, %v2518_v55 }
 0x140   : > { %v2532_v40 = vld [vmem:[%s4842_s2 + $0x618] sm:$0xff] }
 0x141   : > { %v2660_v55 = vld [vmem:[%s4842_s2 + $0x9f8] sm:$0xff] }
 0x142   : > { %2876 = vmatpush1.bf16.msra.mxu1 %v2875_v17  ;;  %2996 = vmatpush1.bf16.msra.mxu0 %v2995_v18  ;;  %v3011_v17 = vpack.c.bf16 %v2627_v7, %v2625_v6  ;;  %v2505_v18 = vld [vmem:[%s4842_s2 + $0x540] sm:$0xff]  ;;  %v2643_v6 = vld [vmem:[%s4842_s2 + $0x970] sm:$0xff]  ;;  %v2522_v7 = vld [vmem:[%s4842_s2 + $0x5c8] sm:$0xff] }
 0x143   : > { %2878 = vmatprep.subr.bf16.mxu1 %v2877_v21  ;;  %2998 = vmatprep.subr.bf16.mxu0 %v2997_v22  ;;  %v3013_v21 = vpack.c.bf16 %v2632_v15, %v2630_v12  ;;  %v2629_v22 = vld [vmem:[%s4842_s2 + $0x900] sm:$0xff]  ;;  %v2895_v28 = vpack.c.bf16 %v2507_v19, %v2505_v18  ;;  %v2648_v12 = vld [vmem:[%s4842_s2 + $0x998] sm:$0xff] }
 0x144   : > { %v3029_v18 = vpack.c.bf16 %v2648_v12, %v2646_v11  ;;  %v2521_v19 = vld [vmem:[%s4842_s2 + $0x5c0] sm:$0xff] }
 0x145   : > { %v2661_v11 = vld [vmem:[%s4842_s2 + $0xa00] sm:$0xff] }
 0x146   : > { %2880 = vmatpush1.bf16.msra.mxu1 %v2879_v29  ;;  %3000 = vmatpush1.bf16.msra.mxu0 %v2999_v34  ;;  %v3015_v29 = vpack.c.bf16 %v2631_v23, %v2629_v22  ;;  %v2509_v34 = vld [vmem:[%s4842_s2 + $0x560] sm:$0xff]  ;;  %v2647_v22 = vld [vmem:[%s4842_s2 + $0x990] sm:$0xff]  ;;  %v2526_v23 = vld [vmem:[%s4842_s2 + $0x5e8] sm:$0xff] }
 0x147   : > { %2882 = vmatprep.subr.bf16.mxu1 %v2881_v30  ;;  %3002 = vmatprep.subr.bf16.mxu0 %v3001_v38  ;;  %v3017_v30 = vpack.c.bf16 %v2636_v27, %v2634_v26  ;;  %v2633_v38 = vld [vmem:[%s4842_s2 + $0x920] sm:$0xff]  ;;  %v2899_v45 = vpack.c.bf16 %v2511_v35, %v2509_v34  ;;  %v2652_v26 = vld [vmem:[%s4842_s2 + $0x9b8] sm:$0xff]  ;;  %v2527_v34 = vld [vmem:[%s4842_s2 + $0x5f0] sm:$0xff]  ;;  %v2913_v35 = vpack.c.bf16 %v2528_v24, %v2526_v23 }
 0x148   : > { %v2543_v23 = vld [vmem:[%s4842_s2 + $0x670] sm:$0xff]  ;;  %v2665_v24 = vld [vmem:[%s4842_s2 + $0xa20] sm:$0xff] }
 0x14a   : > { %2884 = vmatpush1.bf16.msra.mxu1 %v2883_v46  ;;  %3004 = vmatpush1.bf16.msra.mxu0 %v3003_v47  ;;  %v3019_v46 = vpack.c.bf16 %v2635_v39, %v2633_v38  ;;  %v2513_v47 = vld [vmem:[%s4842_s2 + $0x580] sm:$0xff]  ;;  %v2651_v38 = vld [vmem:[%s4842_s2 + $0x9b0] sm:$0xff]  ;;  %v2530_v39 = vld [vmem:[%s4842_s2 + $0x608] sm:$0xff] }
 0x14b   : > { %2886 = vmatprep.subr.bf16.mxu1 %v2885_v52  ;;  %3006 = vmatprep.subr.bf16.mxu0 %v3005_v53  ;;  %v3021_v52 = vpack.c.bf16 %v2640_v31, %v2638_v44  ;;  %v2637_v53 = vld [vmem:[%s4842_s2 + $0x940] sm:$0xff]  ;;  %v2903_v59 = vpack.c.bf16 %v2515_v50, %v2513_v47  ;;  %v2656_v44 = vld [vmem:[%s4842_s2 + $0x9d8] sm:$0xff]  ;;  %v2917_v47 = vpack.c.bf16 %v2532_v40, %v2530_v39 }
 0x14c   : > { %v3037_v50 = vpack.c.bf16 %v2656_v44, %v2654_v43  ;;  %v2669_v39 = vld [vmem:[%s4842_s2 + $0xa40] sm:$0xff]  ;;  %v2671_v43 = vld [vmem:[%s4842_s2 + $0xa50] sm:$0xff]  ;;  %v2550_v44 = vld [vmem:[%s4842_s2 + $0x6a8] sm:$0xff] }
 0x14e   : > { %2888 = vmatpush1.bf16.msra.mxu1 %v2887_v2  ;;  %3008 = vmatpush1.bf16.msra.mxu0 %v3007_v60  ;;  %v3023_v2 = vpack.c.bf16 %v2639_v54, %v2637_v53  ;;  %v2517_v60 = vld [vmem:[%s4842_s2 + $0x5a0] sm:$0xff]  ;;  %v2536_v53 = vld [vmem:[%s4842_s2 + $0x638] sm:$0xff]  ;;  %v2658_v54 = vld [vmem:[%s4842_s2 + $0x9e8] sm:$0xff] }
 0x14f   : > { %2890 = vmatprep.subr.bf16.mxu1 %v2889_v1  ;;  %3010 = vmatprep.subr.bf16.mxu0 %v3009_v5  ;;  %v3025_v1 = vpack.c.bf16 %v2644_v58, %v2642_v57  ;;  %v2641_v5 = vld [vmem:[%s4842_s2 + $0x960] sm:$0xff]  ;;  %v2907_v15 = vpack.c.bf16 %v2519_v63, %v2517_v60  ;;  %v2535_v58 = vld [vmem:[%s4842_s2 + $0x630] sm:$0xff]  ;;  %v2538_v63 = vld [vmem:[%s4842_s2 + $0x648] sm:$0xff] }
 0x150   : > { %v2533_v57 = vld [vmem:[%s4842_s2 + $0x620] sm:$0xff] }
 0x151   : > { %v2657_v60 = vld [vmem:[%s4842_s2 + $0x9e0] sm:$0xff] }
 0x152   : > { %2892 = vmatpush1.bf16.msra.mxu1 %v2891_v16  ;;  %3012 = vmatpush1.bf16.msra.mxu0 %v3011_v17  ;;  %v3027_v16 = vpack.c.bf16 %v2643_v6, %v2641_v5  ;;  %v2909_v17 = vpack.c.bf16 %v2524_v10, %v2522_v7  ;;  %v2664_v5 = vld [vmem:[%s4842_s2 + $0xa18] sm:$0xff]  ;;  %v2923_v6 = vpack.c.bf16 %v2535_v58, %v2533_v57  ;;  %v2537_v7 = vld [vmem:[%s4842_s2 + $0x640] sm:$0xff]  ;;  %v2539_v10 = vld [vmem:[%s4842_s2 + $0x650] sm:$0xff] }
 0x153   : > { %2894 = vmatprep.subr.bf16.mxu1 %v2893_v20  ;;  %3014 = vmatprep.subr.bf16.mxu0 %v3013_v21  ;;  %v2523_v20 = vld [vmem:[%s4842_s2 + $0x5d0] sm:$0xff]  ;;  %v2645_v21 = vld [vmem:[%s4842_s2 + $0x980] sm:$0xff]  ;;  %v2680_v57 = vld [vmem:[%s4842_s2 + $0xa98] sm:$0xff] }
 0x154   : > { %v2911_v27 = vpack.c.bf16 %v2523_v20, %v2521_v19  ;;  %v2668_v19 = vld [vmem:[%s4842_s2 + $0xa38] sm:$0xff]  ;;  %v2927_v20 = vpack.c.bf16 %v2539_v10, %v2537_v7 }
 0x155   : > { %v2684_v7 = vld [vmem:[%s4842_s2 + $0xab8] sm:$0xff] }
 0x156   : > { %2896 = vmatpush1.bf16.msra.mxu1 %v2895_v28  ;;  %3016 = vmatpush1.bf16.msra.mxu0 %v3015_v29  ;;  %v3031_v28 = vpack.c.bf16 %v2647_v22, %v2645_v21  ;;  %v2525_v29 = vld [vmem:[%s4842_s2 + $0x5e0] sm:$0xff] }
 0x157   : > { %2898 = vmatprep.subr.bf16.mxu1 %v2897_v36  ;;  %3018 = vmatprep.subr.bf16.mxu0 %v3017_v30  ;;  %v3033_v36 = vpack.c.bf16 %v2652_v26, %v2650_v25  ;;  %v2649_v30 = vld [vmem:[%s4842_s2 + $0x9a0] sm:$0xff]  ;;  %v2915_v31 = vpack.c.bf16 %v2527_v34, %v2525_v29  ;;  %v2546_v26 = vld [vmem:[%s4842_s2 + $0x688] sm:$0xff]  ;;  %v2672_v29 = vld [vmem:[%s4842_s2 + $0xa58] sm:$0xff] }
 0x15a   : > { %2900 = vmatpush1.bf16.msra.mxu1 %v2899_v45  ;;  %3020 = vmatpush1.bf16.msra.mxu0 %v3019_v46  ;;  %v2529_v45 = vld [vmem:[%s4842_s2 + $0x600] sm:$0xff]  ;;  %v2531_v46 = vld [vmem:[%s4842_s2 + $0x610] sm:$0xff] }
 0x15b   : > { %2902 = vmatprep.subr.bf16.mxu1 %v2901_v51  ;;  %3022 = vmatprep.subr.bf16.mxu0 %v3021_v52  ;;  %v2653_v51 = vld [vmem:[%s4842_s2 + $0x9c0] sm:$0xff]  ;;  %v2534_v52 = vld [vmem:[%s4842_s2 + $0x628] sm:$0xff]  ;;  %v2919_v56 = vpack.c.bf16 %v2531_v46, %v2529_v45  ;;  %v2676_v45 = vld [vmem:[%s4842_s2 + $0xa78] sm:$0xff] }
 0x15e   : > { %2904 = vmatpush1.bf16.msra.mxu1 %v2903_v59  ;;  %3024 = vmatpush1.bf16.msra.mxu0 %v3023_v2  ;;  %v2921_v59 = vpack.c.bf16 %v2536_v53, %v2534_v52  ;;  %v3041_v2 = vpack.c.bf16 %v2660_v55, %v2658_v54  ;;  %v2673_v52 = vld [vmem:[%s4842_s2 + $0xa60] sm:$0xff]  ;;  %v2675_v54 = vld [vmem:[%s4842_s2 + $0xa70] sm:$0xff]  ;;  %v2554_v55 = vld [vmem:[%s4842_s2 + $0x6c8] sm:$0xff] }
 0x15f   : > { %2906 = vmatprep.subr.bf16.mxu1 %v2905_v0  ;;  %3026 = vmatprep.subr.bf16.mxu0 %v3025_v1  ;;  %v2540_v0 = vld [vmem:[%s4842_s2 + $0x658] sm:$0xff]  ;;  %v2662_v1 = vld [vmem:[%s4842_s2 + $0xa08] sm:$0xff] }
 0x160   : > { %v2925_v12 = vpack.c.bf16 %v2540_v0, %v2538_v63  ;;  %v2677_v63 = vld [vmem:[%s4842_s2 + $0xa80] sm:$0xff] }
 0x162   : > { %2908 = vmatpush1.bf16.msra.mxu1 %v2907_v15  ;;  %3028 = vmatpush1.bf16.msra.mxu0 %v3027_v16  ;;  %v3045_v15 = vpack.c.bf16 %v2664_v5, %v2662_v1  ;;  %v2542_v16 = vld [vmem:[%s4842_s2 + $0x668] sm:$0xff]  ;;  %v2679_v1 = vld [vmem:[%s4842_s2 + $0xa90] sm:$0xff] }
 0x163   : > { %2910 = vmatprep.subr.bf16.mxu1 %v2909_v17  ;;  %3030 = vmatprep.subr.bf16.mxu0 %v3029_v18  ;;  %v2544_v17 = vld [vmem:[%s4842_s2 + $0x678] sm:$0xff]  ;;  %v2666_v18 = vld [vmem:[%s4842_s2 + $0xa28] sm:$0xff] }
 0x164   : > { %v2929_v22 = vpack.c.bf16 %v2544_v17, %v2542_v16  ;;  %v3049_v25 = vpack.c.bf16 %v2668_v19, %v2666_v18  ;;  %v2558_v5 = vld [vmem:[%s4842_s2 + $0x6e8] sm:$0xff]  ;;  %v2681_v16 = vld [vmem:[%s4842_s2 + $0xaa0] sm:$0xff]  ;;  %v2683_v18 = vld [vmem:[%s4842_s2 + $0xab0] sm:$0xff] }
 0x165   : > { %1535 = vmatmul.mubr.f32.vlgmr.msra.gmra.mrb[16].mxu1 %v4006_v32  ;;  %1842 = vmatmul.mubr.f32.vlgmr.msra.gmra.mrb[16].mxu0 %v4006_v32  ;;  %v3035_v32 = vpack.c.bf16 %v2651_v38, %v2649_v30  ;;  %v2545_v30 = vld [vmem:[%s4842_s2 + $0x680] sm:$0xff]  ;;  %v2547_v38 = vld [vmem:[%s4842_s2 + $0x690] sm:$0xff]  ;;  %v2562_v19 = vld [vmem:[%s4842_s2 + $0x708] sm:$0xff] }
 0x166   : > { %1540 = vmatprep.mubr.f32.mxu1 %v4045_v48  ;;  %2912 = vmatpush1.bf16.msra.mxu1 %v2911_v27  ;;  %v2548_v27 = vld [vmem:[%s4842_s2 + $0x698] sm:$0xff]  ;;  %v2935_v46 = vpack.c.bf16 %v2547_v38, %v2545_v30 }
 0x167   : > { %1847 = vmatprep.mubr.f32.mxu0 %v4045_v48  ;;  %3032 = vmatpush1.bf16.msra.mxu0 %v3031_v28  ;;  %v2655_v48 = vld [vmem:[%s4842_s2 + $0x9d0] sm:$0xff]  ;;  %v2670_v28 = vld [vmem:[%s4842_s2 + $0xa48] sm:$0xff] }
 0x168   : > { %2914 = vmatprep.subr.bf16.mxu1 %v2913_v35  ;;  %3034 = vmatprep.subr.bf16.mxu0 %v3033_v36  ;;  %v2933_v36 = vpack.c.bf16 %v2548_v27, %v2546_v26  ;;  %v3053_v40 = vpack.c.bf16 %v2672_v29, %v2670_v28  ;;  %v2685_v26 = vld [vmem:[%s4842_s2 + $0xac0] sm:$0xff]  ;;  %v2687_v28 = vld [vmem:[%s4842_s2 + $0xad0] sm:$0xff]  ;;  %v2566_v29 = vld [vmem:[%s4842_s2 + $0x728] sm:$0xff] }
 0x169   : > { %1541 = vmatmul.mubr.f32.gmra.mrb[18].mxu1 %v4029_v41  ;;  %1848 = vmatmul.mubr.f32.gmra.mrb[18].mxu0 %v4029_v41  ;;  %v3039_v41 = vpack.c.bf16 %v2655_v48, %v2653_v51  ;;  %v2549_v51 = vld [vmem:[%s4842_s2 + $0x6a0] sm:$0xff]  ;;  %v2551_v48 = vld [vmem:[%s4842_s2 + $0x6b0] sm:$0xff]  ;;  %v3071_v38 = vpack.c.bf16 %v2687_v28, %v2685_v26 }
 0x16a   : > { %1546 = vmatprep.mubr.f32.mxu1 %v4087_v3  ;;  %2916 = vmatpush1.bf16.msra.mxu1 %v2915_v31  ;;  %v2552_v31 = vld [vmem:[%s4842_s2 + $0x6b8] sm:$0xff]  ;;  %v2939_v58 = vpack.c.bf16 %v2551_v48, %v2549_v51 }
 0x16b   : > { %1853 = vmatprep.mubr.f32.mxu0 %v4087_v3  ;;  %3036 = vmatpush1.bf16.msra.mxu0 %v3035_v32  ;;  %v2659_v3 = vld [vmem:[%s4842_s2 + $0x9f0] sm:$0xff]  ;;  %v2674_v32 = vld [vmem:[%s4842_s2 + $0xa68] sm:$0xff] }
 0x16c   : > { %2918 = vmatprep.subr.bf16.mxu1 %v2917_v47  ;;  %3038 = vmatprep.subr.bf16.mxu0 %v3037_v50  ;;  %v3055_v47 = vpack.c.bf16 %v2671_v43, %v2669_v39  ;;  %v2937_v50 = vpack.c.bf16 %v2552_v31, %v2550_v44  ;;  %v3057_v53 = vpack.c.bf16 %v2676_v45, %v2674_v32  ;;  %v2567_v43 = vld [vmem:[%s4842_s2 + $0x730] sm:$0xff]  ;;  %v2689_v44 = vld [vmem:[%s4842_s2 + $0xae0] sm:$0xff]  ;;  %v2570_v45 = vld [vmem:[%s4842_s2 + $0x748] sm:$0xff] }
 0x16d   : > { %1547 = vmatmul.mubr.f32.gmra.mrb[20].mxu1 %v4080_v61  ;;  %1854 = vmatmul.mubr.f32.gmra.mrb[20].mxu0 %v4080_v61  ;;  %v3043_v61 = vpack.c.bf16 %v2659_v3, %v2657_v60  ;;  %v2553_v60 = vld [vmem:[%s4842_s2 + $0x6c0] sm:$0xff]  ;;  %v2555_v3 = vld [vmem:[%s4842_s2 + $0x6d0] sm:$0xff] }
 0x16e   : > { %1552 = vmatprep.mubr.f32.mxu1 %v4110_v13  ;;  %2920 = vmatpush1.bf16.msra.mxu1 %v2919_v56  ;;  %v2556_v56 = vld [vmem:[%s4842_s2 + $0x6d8] sm:$0xff]  ;;  %v2943_v10 = vpack.c.bf16 %v2555_v3, %v2553_v60  ;;  %v2691_v32 = vld [vmem:[%s4842_s2 + $0xaf0] sm:$0xff] }
 0x16f   : > { %1859 = vmatprep.mubr.f32.mxu0 %v4110_v13  ;;  %3040 = vmatpush1.bf16.msra.mxu0 %v3039_v41  ;;  %v2663_v13 = vld [vmem:[%s4842_s2 + $0xa10] sm:$0xff]  ;;  %v2678_v41 = vld [vmem:[%s4842_s2 + $0xa88] sm:$0xff]  ;;  %v3075_v48 = vpack.c.bf16 %v2691_v32, %v2689_v44 }
 0x170   : > { %2922 = vmatprep.subr.bf16.mxu1 %v2921_v59  ;;  %3042 = vmatprep.subr.bf16.mxu0 %v3041_v2  ;;  %v3047_v21 = vpack.c.bf16 %v2663_v13, %v2661_v11  ;;  %v3059_v59 = vpack.c.bf16 %v2675_v54, %v2673_v52  ;;  %v2941_v2 = vpack.c.bf16 %v2556_v56, %v2554_v55  ;;  %v2559_v13 = vld [vmem:[%s4842_s2 + $0x6f0] sm:$0xff]  ;;  %v2693_v55 = vld [vmem:[%s4842_s2 + $0xb00] sm:$0xff] }
 0x171   : > { %1553 = vmatmul.mubr.f32.gmra.mrb[22].mxu1 %v4100_v8  ;;  %1860 = vmatmul.mubr.f32.gmra.mrb[22].mxu0 %v4100_v8  ;;  %v2541_v8 = vld [vmem:[%s4842_s2 + $0x660] sm:$0xff]  ;;  %v3061_v0 = vpack.c.bf16 %v2680_v57, %v2678_v41  ;;  %v3063_v11 = vpack.c.bf16 %v2679_v1, %v2677_v63  ;;  %v2571_v54 = vld [vmem:[%s4842_s2 + $0x750] sm:$0xff]  ;;  %v2574_v57 = vld [vmem:[%s4842_s2 + $0x768] sm:$0xff] }
 0x172   : > { %2924 = vmatpush1.bf16.msra.mxu1 %v2923_v6  ;;  %2577 = vmatprep.mubr.msk.f32.mxu1 %vm417_vm1, %v4018_v37  ;;  %v2931_v34 = vpack.c.bf16 %v2543_v23, %v2541_v8  ;;  %v2560_v6 = vld [vmem:[%s4842_s2 + $0x6f8] sm:$0xff]  ;;  %v3067_v23 = vpack.c.bf16 %v2683_v18, %v2681_v16  ;;  %v2695_v41 = vld [vmem:[%s4842_s2 + $0xb10] sm:$0xff] }
 0x173   : > { %3044 = vmatpush1.bf16.msra.mxu0 %v3043_v61  ;;  %2701 = vmatprep.mubr.msk.f32.mxu0 %vm417_vm1, %v4018_v37  ;;  %v2667_v37 = vld [vmem:[%s4842_s2 + $0xa30] sm:$0xff]  ;;  %v2682_v61 = vld [vmem:[%s4842_s2 + $0xaa8] sm:$0xff]  ;;  %v3079_v3 = vpack.c.bf16 %v2695_v41, %v2693_v55 }
 0x174   : > { %2926 = vmatprep.subr.bf16.mxu1 %v2925_v12  ;;  %3046 = vmatprep.subr.bf16.mxu0 %v3045_v15  ;;  %v3051_v35 = vpack.c.bf16 %v2667_v37, %v2665_v24  ;;  %v2945_v12 = vpack.c.bf16 %v2560_v6, %v2558_v5  ;;  %v2557_v15 = vld [vmem:[%s4842_s2 + $0x6e0] sm:$0xff]  ;;  %v3065_v17 = vpack.c.bf16 %v2684_v7, %v2682_v61  ;;  %v2563_v37 = vld [vmem:[%s4842_s2 + $0x710] sm:$0xff] }
 0x175   : > { %v2947_v8 = vpack.c.bf16 %v2559_v13, %v2557_v15  ;;  %v2575_v1 = vld [vmem:[%s4842_s2 + $0x770] sm:$0xff]  ;;  %v2697_v6 = vld [vmem:[%s4842_s2 + $0xb20] sm:$0xff] }
 0x176   : > { %2928 = vmatpush1.bf16.msra.mxu1 %v2927_v20  ;;  %v2564_v20 = vld [vmem:[%s4842_s2 + $0x718] sm:$0xff]  ;;  %v2699_v61 = vld [vmem:[%s4842_s2 + $0xb30] sm:$0xff] }
 0x177   : > { %3048 = vmatpush1.bf16.msra.mxu0 %v3047_v21  ;;  %2930 = vmatprep.subr.bf16.mxu1 %v2929_v22  ;;  %v2686_v21 = vld [vmem:[%s4842_s2 + $0xac8] sm:$0xff]  ;;  %v2688_v22 = vld [vmem:[%s4842_s2 + $0xad8] sm:$0xff]  ;;  %v2949_v24 = vpack.c.bf16 %v2564_v20, %v2562_v19 }
 0x178   : > { %3050 = vmatprep.subr.bf16.mxu0 %v3049_v25  ;;  %v2561_v25 = vld [vmem:[%s4842_s2 + $0x700] sm:$0xff]  ;;  %v3069_v27 = vpack.c.bf16 %v2688_v22, %v2686_v21 }
 0x179   : > { %v2951_v30 = vpack.c.bf16 %v2563_v37, %v2561_v25 }
 0x17a   : > { %2932 = vmatpush1.bf16.msra.mxu1 %v2931_v34  ;;  %v2568_v34 = vld [vmem:[%s4842_s2 + $0x738] sm:$0xff] }
 0x17b   : > { %3052 = vmatpush1.bf16.msra.mxu0 %v3051_v35  ;;  %2934 = vmatprep.subr.bf16.mxu1 %v2933_v36  ;;  %v2690_v35 = vld [vmem:[%s4842_s2 + $0xae8] sm:$0xff]  ;;  %v2692_v36 = vld [vmem:[%s4842_s2 + $0xaf8] sm:$0xff]  ;;  %v2953_v39 = vpack.c.bf16 %v2568_v34, %v2566_v29 }
 0x17c   : > { %3054 = vmatprep.subr.bf16.mxu0 %v3053_v40  ;;  %v2565_v40 = vld [vmem:[%s4842_s2 + $0x720] sm:$0xff]  ;;  %v3073_v31 = vpack.c.bf16 %v2692_v36, %v2690_v35 }
 0x17d   : > { %v2955_v51 = vpack.c.bf16 %v2567_v43, %v2565_v40 }
 0x17e   : > { %2936 = vmatpush1.bf16.msra.mxu1 %v2935_v46  ;;  %v2572_v46 = vld [vmem:[%s4842_s2 + $0x758] sm:$0xff] }
 0x17f   : > { %3056 = vmatpush1.bf16.msra.mxu0 %v3055_v47  ;;  %2938 = vmatprep.subr.bf16.mxu1 %v2937_v50  ;;  %v2694_v47 = vld [vmem:[%s4842_s2 + $0xb08] sm:$0xff]  ;;  %v2696_v50 = vld [vmem:[%s4842_s2 + $0xb18] sm:$0xff]  ;;  %v2957_v52 = vpack.c.bf16 %v2572_v46, %v2570_v45 }
 0x180   : > { %3058 = vmatprep.subr.bf16.mxu0 %v3057_v53  ;;  %v2569_v53 = vld [vmem:[%s4842_s2 + $0x740] sm:$0xff]  ;;  %v3077_v56 = vpack.c.bf16 %v2696_v50, %v2694_v47 }
 0x181   : > { %v2959_v60 = vpack.c.bf16 %v2571_v54, %v2569_v53 }
 0x182   : > { %2940 = vmatpush1.bf16.msra.mxu1 %v2939_v58  ;;  %v2576_v58 = vld [vmem:[%s4842_s2 + $0x778] sm:$0xff] }
 0x183   : > { %3060 = vmatpush1.bf16.msra.mxu0 %v3059_v59  ;;  %2942 = vmatprep.subr.bf16.mxu1 %v2941_v2  ;;  %v2698_v59 = vld [vmem:[%s4842_s2 + $0xb28] sm:$0xff]  ;;  %v2700_v2 = vld [vmem:[%s4842_s2 + $0xb38] sm:$0xff]  ;;  %v2961_v63 = vpack.c.bf16 %v2576_v58, %v2574_v57 }
 0x184   : > { %3062 = vmatprep.subr.bf16.mxu0 %v3061_v0  ;;  %v2573_v0 = vld [vmem:[%s4842_s2 + $0x760] sm:$0xff]  ;;  %v3081_v5 = vpack.c.bf16 %v2700_v2, %v2698_v59 }
 0x185   : > { %v2963_v7 = vpack.c.bf16 %v2575_v1, %v2573_v0 }
 0x186   : > { %2944 = vmatpush1.bf16.msra.mxu1 %v2943_v10  ;;  %v3083_v10 = vpack.c.bf16 %v2699_v61, %v2697_v6 }
 0x187   : > { %3064 = vmatpush1.bf16.msra.mxu0 %v3063_v11  ;;  %2946 = vmatprep.subr.bf16.mxu1 %v2945_v12 }
 0x188   : > { %3066 = vmatprep.subr.bf16.mxu0 %v3065_v17 }
 0x18a   : > { %2948 = vmatpush1.bf16.msra.mxu1 %v2947_v8 }
 0x18b   : > { %3068 = vmatpush1.bf16.msra.mxu0 %v3067_v23  ;;  %2950 = vmatprep.subr.bf16.mxu1 %v2949_v24 }
 0x18c   : > { %3070 = vmatprep.subr.bf16.mxu0 %v3069_v27  ;;  %v3299_v27 = vmov 0.0  }
 0x18e   : > { %2952 = vmatpush1.bf16.msra.mxu1 %v2951_v30 }
 0x18f   : > { %3072 = vmatpush1.bf16.msra.mxu0 %v3071_v38  ;;  %2954 = vmatprep.subr.bf16.mxu1 %v2953_v39 }
 0x190   : > { %3074 = vmatprep.subr.bf16.mxu0 %v3073_v31 }
 0x192   : > { %2956 = vmatpush1.bf16.msra.mxu1 %v2955_v51 }
 0x193   : > { %3076 = vmatpush1.bf16.msra.mxu0 %v3075_v48  ;;  %2958 = vmatprep.subr.bf16.mxu1 %v2957_v52 }
 0x194   : > { %3078 = vmatprep.subr.bf16.mxu0 %v3077_v56 }
 0x196   : > { %2960 = vmatpush1.bf16.msra.mxu1 %v2959_v60 }
 0x197   : > { %3080 = vmatpush1.bf16.msra.mxu0 %v3079_v3  ;;  %2962 = vmatprep.subr.bf16.mxu1 %v2961_v63 }
 0x198   : > { %3082 = vmatprep.subr.bf16.mxu0 %v3081_v5 }
 0x19a   : > { %2964 = vmatpush1.bf16.msra.mxu1 %v2963_v7  ;;  %v2709_v7 = vld [vmem:[%s4843_s3 + $0x10] sm:$0xff] }
 0x19b   : > { %3084 = vmatpush1.bf16.msra.mxu0 %v3083_v10  ;;  %v1963_v10 = vld [vmem:[%s4843_s3] sm:$0xff] }
 0x19d   : > { %1624 = vmatmul.mubr.f32.vlgmr.msra.gmra.mrb[16].mxu1 %v4008_v33 }
 0x19e   : > { %1931 = vmatmul.mubr.f32.vlgmr.msra.gmra.mrb[16].mxu0 %v4008_v33  ;;  %2578 = vmatprep.mubr.msk.f32.mxu1 %vm417_vm1, %v4047_v49 }
 0x19f   : > { %2702 = vmatprep.mubr.msk.f32.mxu0 %vm417_vm1, %v4047_v49 }
 0x1a1   : > { %1630 = vmatmul.mubr.f32.gmra.mrb[18].mxu1 %v4031_v42 }
 0x1a2   : > { %1937 = vmatmul.mubr.f32.gmra.mrb[18].mxu0 %v4031_v42  ;;  %2579 = vmatprep.mubr.msk.f32.mxu1 %vm417_vm1, %v4089_v4 }
 0x1a3   : > { %2703 = vmatprep.mubr.msk.f32.mxu0 %vm417_vm1, %v4089_v4 }
 0x1a5   : > { %1636 = vmatmul.mubr.f32.gmra.mrb[20].mxu1 %v4082_v62 }
 0x1a6   : > { %1943 = vmatmul.mubr.f32.gmra.mrb[20].mxu0 %v4082_v62  ;;  %2580 = vmatprep.mubr.msk.f32.mxu1 %vm417_vm1, %v4112_v14 }
 0x1a7   : > { %2704 = vmatprep.mubr.msk.f32.mxu0 %vm417_vm1, %v4112_v14 }
 0x1a9   : > { %1642 = vmatmul.mubr.f32.gmra.mrb[22].mxu1 %v4102_v9 }
 0x1aa   : > { %1949 = vmatmul.mubr.f32.gmra.mrb[22].mxu0 %v4102_v9  ;;  %2129 = vmatprep.mubr.f32.mxu1 %v3299_v27 }
 0x1ab   : > { %2043 = vmatprep.mubr.f32.mxu0 %v3299_v27 }
 0x1f8   : > { %v1237_v33 = vpop.f32.mrb[8].mxu0  ;;  %v1326_v42 = vpop.f32.mrb[8].mxu1 }
 0x1f9   : > { %v1327_v49 = vadd.f32 %v1326_v42, %v1237_v33  ;;  %v1239_v11 = vpop.f32.mrb[9].mxu0  ;;  %v1328_v12 = vpop.f32.mrb[9].mxu1  ;;  %v2710_v33 = vld [vmem:[%s4843_s3 + $0x18] sm:$0x3f]  ;;  %v1964_v42 = vld [vmem:[%s4843_s3 + $0x8] sm:$0x3f] }
 0x1fa   : > { %v1329_v4 = vadd.f32 %v1328_v12, %v1239_v11  ;;  %v2716_v11 = vld [vmem:[%s4843_s3 + $0x28] sm:$0x3f]  ;;  %v2238_v12 = vlaneseq }
 0x1fc   : > { %v1243_v15 = vpop.f32.mrb[10].mxu0  ;;  %v1332_v13 = vpop.f32.mrb[10].mxu1 }
 0x1fd   : > { %v1333_v16 = vadd.f32 %v1332_v13, %v1243_v15  ;;  %v1245_v62 = vpop.f32.mrb[11].mxu0  ;;  %v1334_v17 = vpop.f32.mrb[11].mxu1 }
 0x1fe   : > { %v1335_v18 = vadd.f32 %v1334_v17, %v1245_v62 }
 0x200   : > { %v1249_v19 = vpop.f32.mrb[12].mxu0  ;;  %v1338_v20 = vpop.f32.mrb[12].mxu1 }
 0x201   : > { %v1339_v21 = vadd.f32 %v1338_v20, %v1249_v19  ;;  %v1251_v14 = vpop.f32.mrb[13].mxu0  ;;  %v1340_v22 = vpop.f32.mrb[13].mxu1 }
 0x202   : > { %v1341_v8 = vadd.f32 %v1340_v22, %v1251_v14  ;;  %v2236_v14 = vld [vmem:[%s4844_s4] sm:$0x3] }
 0x204   : > { %v1255_v23 = vpop.f32.mrb[14].mxu0  ;;  %v1344_v9 = vpop.f32.mrb[14].mxu1 }
 0x205   : > { %v1345_v24 = vadd.f32 %v1344_v9, %v1255_v23  ;;  %v1257_v25 = vpop.f32.mrb[15].mxu0  ;;  %v1346_v37 = vpop.f32.mrb[15].mxu1 }
 0x206   : > { %v1347_v26 = vadd.f32 %v1346_v37, %v1257_v25 }
 0x270   : > { %v1625_v28 = vpop.f32.mrb[16].mxu1 }
 0x271   : > { %v1648_v29 = vmax.f32 %v1327_v49, %v1625_v28  ;;  %v1932_v34 = vpop.f32.mrb[16].mxu0  ;;  %v1627_v35 = vpop.f32.mrb[17].mxu1  ;;  %v2715_v49 = vld [vmem:[%s4843_s3 + $0x20] sm:$0xff] }
 0x272   : > { %v1649_v36 = vmax.f32 %v1329_v4, %v1627_v35  ;;  %v1934_v30 = vpop.f32.mrb[17].mxu0  ;;  %v2239_v4 = vshrl.u32 %v2238_v12, 7 }
 0x273   : > { %v1955_v38 = vmax.f32 %v1648_v29, %v1932_v34 }
 0x274   : > { %v1956_v39 = vmax.f32 %v1649_v36, %v1934_v30  ;;  %v1631_v40 = vpop.f32.mrb[18].mxu1  ;;  %v2240_v19 = vsub.s32 0, %v2239_v4  ;;  %v2244_v22 = vsub.s32 1, %v2239_v4 }
 0x275   : > { %v1650_v43 = vmax.f32 %v1333_v16, %v1631_v40  ;;  %v1938_v44 = vpop.f32.mrb[18].mxu0  ;;  %v1633_v31 = vpop.f32.mrb[19].mxu1 }
 0x276   : > { %v1651_v32 = vmax.f32 %v1335_v18, %v1633_v31  ;;  %v1940_v45 = vpop.f32.mrb[19].mxu0  ;;  %v2241_v25 = vrot.slane %v2236_v14, %v2240_v19 }
 0x277   : > { %v1957_v46 = vmax.f32 %v1650_v43, %v1938_v44 }
 0x278   : > { %v1958_v47 = vmax.f32 %v1651_v32, %v1940_v45  ;;  %v1637_v50 = vpop.f32.mrb[20].mxu1 }
 0x279   : > { %v3087_v51 = vpack.c.bf16 %v1957_v46, %v1955_v38  ;;  %v1652_v48 = vmax.f32 %v1339_v21, %v1637_v50  ;;  %v1944_v52 = vpop.f32.mrb[20].mxu0  ;;  %v1639_v53 = vpop.f32.mrb[21].mxu1 }
 0x27a   : > { %v3085_v54 = vpack.c.bf16 %v1958_v47, %v1956_v39  ;;  %v1653_v55 = vmax.f32 %v1341_v8, %v1639_v53  ;;  %v1946_v56 = vpop.f32.mrb[21].mxu0 }
 0x27b   : > { %v1959_v41 = vmax.f32 %v1652_v48, %v1944_v52 }
 0x27c   : > { %v1960_v57 = vmax.f32 %v1653_v55, %v1946_v56  ;;  %v1643_v58 = vpop.f32.mrb[22].mxu1  ;;  %3086 = vmatprep.subr.bf16.mxu0 %v3085_v54  ;;  %3096 = vmatprep.subr.bf16.mxu1 %v3085_v54 }
 0x27d   : > { %v1654_v59 = vmax.f32 %v1345_v24, %v1643_v58  ;;  %v1950_v2 = vpop.f32.mrb[22].mxu0  ;;  %v1645_v60 = vpop.f32.mrb[23].mxu1  ;;  %3088 = vmatpush1.bf16.msra.mxu0 %v3087_v51  ;;  %3098 = vmatpush1.bf16.msra.mxu1 %v3087_v51 }
 0x27e   : > { %v1655_v3 = vmax.f32 %v1347_v26, %v1645_v60  ;;  %v1952_v63 = vpop.f32.mrb[23].mxu0  ;;  %v2245_v26 = vrot.slane %v2236_v14, %v2244_v22 }
 0x27f   : > { %v1961_v0 = vmax.f32 %v1654_v59, %v1950_v2 }
 0x280   : > { %v1962_v1 = vmax.f32 %v1655_v3, %v1952_v63 }
 0x281   : > { %v3092_v5 = vpack.c.bf16 %v1961_v0, %v1959_v41 }
 0x282   : > { %v3089_v61 = vpack.c.bf16 %v1962_v1, %v1960_v57 }
 0x284   : > { %3091 = vmatprep.subr.msk.bf16.mxu0 %vm4784_vm5, %v3089_v61  ;;  %3101 = vmatprep.subr.msk.bf16.mxu1 %vm4784_vm5, %v3089_v61 }
 0x285   : > { %3094 = vmatpush1.bf16.msk.msra.mxu0 %vm4784_vm5, %v3092_v5  ;;  %3104 = vmatpush1.bf16.msk.msra.mxu1 %vm4784_vm5, %v3092_v5 }
 0x286   : > { %3106 = vmatprep.subr.bf16.mxu1 %v3085_v54 }
 0x288   : > { %2713 = vmatmul.mubr.msk.f32.vlgmr.msra.gmra.mrb[24].mxu1 %vm1965_vm6, %v2709_v7  ;;  %2707 = vmatmul.mubr.msk.f32.vlgmr.msra.gmra.mrb[24].mxu0 %vm1965_vm6, %v1963_v10 }
 0x289   : > { %3108 = vmatpush1.bf16.msra.mxu1 %v3087_v51  ;;  %2135 = vmatprep.mubr.f32.mxu1 %v3299_v27 }
 0x28a   : > { %3111 = vmatprep.subr.msk.bf16.mxu1 %vm4784_vm5, %v3089_v61  ;;  %2049 = vmatprep.mubr.f32.mxu0 %v3299_v27 }
 0x28c   : > { %2714 = vmatmul.mubr.msk.f32.gmra.mrb[26].mxu1 %vm1965_vm6, %v2710_v33  ;;  %2708 = vmatmul.mubr.msk.f32.gmra.mrb[26].mxu0 %vm1965_vm6, %v1964_v42 }
 0x28d   : > { %3114 = vmatpush1.bf16.msk.msra.mxu1 %vm4784_vm5, %v3092_v5  ;;  %2219 = vmatprep.mubr.f32.mxu1 %v3299_v27 }
 0x290   : > { %2719 = vmatmul.mubr.msk.f32.vlgmr.msra.gmra.mrb[28].mxu1 %vm1965_vm6, %v2715_v49 }
 0x291   : > { %2225 = vmatprep.mubr.f32.mxu1 %v3299_v27 }
 0x294   : > { %2720 = vmatmul.mubr.msk.f32.gmra.mrb[30].mxu1 %vm1965_vm6, %v2716_v11 }
 0x35b   : > { %v2045_v15 = vpop.f32.mrb[24].mxu0  ;;  %v2131_v13 = vpop.f32.mrb[24].mxu1 }
 0x35c   : > { %v2142_v16 = vmax.f32 %v2045_v15, %v2131_v13  ;;  %v2047_v62 = vpop.f32.mrb[25].mxu0  ;;  %v2133_v17 = vpop.f32.mrb[25].mxu1 }
 0x35d   : > { %v2143_v18 = vmax.f32 %v2047_v62, %v2133_v17 }
 0x35f   : > { %v2137_v20 = vpop.f32.mrb[26].mxu1  ;;  %v2051_v21 = vpop.f32.mrb[26].mxu0 }
 0x360   : > { %v2139_v8 = vpop.f32.mrb[27].mxu1  ;;  %v2144_v23 = vmax.f32 %v2051_v21, %v2137_v20  ;;  %v2053_v9 = vpop.f32.mrb[27].mxu0 }
 0x361   : > { %v2145_v24 = vmax.f32 %v2053_v9, %v2139_v8 }
 0x363   : > { %v2221_v37 = vpop.f32.mrb[28].mxu1 }
 0x364   : > { %v2232_v27 = vmax.f32 %v2142_v16, %v2221_v37  ;;  %v2223_v28 = vpop.f32.mrb[29].mxu1 }
 0x365   : > { %v2233_v29 = vmax.f32 %v2143_v18, %v2223_v28 }
 0x366   : > { %v2248_v34 = vadd.f32 %v2241_v25, %v2232_v27 }
 0x367   : > { %v2249_v35 = vadd.f32 %v2245_v26, %v2233_v29  ;;  %v2227_v36 = vpop.f32.mrb[30].mxu1 }
 0x368   : > { %2252 = vst [vmem:[%s224_s22] sm:$0xff] %v2248_v34  ;;  %v2234_v30 = vmax.f32 %v2144_v23, %v2227_v36  ;;  %v2229_v38 = vpop.f32.mrb[31].mxu1 }
 0x369   : > { %2253 = vst.msk [vmem:[%s224_s22 + $0x8] sm:$0xff] %vm417_vm1, %v2249_v35  ;;  %v2235_v39 = vmax.f32 %v2145_v24, %v2229_v38 }
 0x36a   : > { %v2250_v40 = vadd.f32 %v2241_v25, %v2234_v30 }
 0x36b   : > { %v2251_v43 = vadd.f32 %v2245_v26, %v2235_v39 }
 0x36c   : > { %2254 = vst [vmem:[%s224_s22 + $0x10] sm:$0x3f] %v2250_v40 }
 0x36d   : > { %2256 = vst.msk [vmem:[%s224_s22 + $0x18] sm:$0x3f] %vm2255_vm7, %v2251_v43 }
 0x36e PF: > { %s15_s18 = sadd.s32 1, %s3296_s18  }
 0x36f   : > { %p12_p4 = scmp.ge.s32.totalorder %s15_s18, 4  }
 0x371   :  { %14 = sbr.rel (!%p12_p4) target bundleno = 1 (0x1), region = 76 }

// kernel: seperated_impala_forward.14
= control target key start
LH: loop header
LB: loop body
LE: loop exit
PB: predicated region body
PF: predicated region fallthrough
CT: control target
= control target key end

     0   :  { %s1832_s18 = smov 0   ;;  %s2256_s0 = inlined_call_operand.vmem [shape: f32[2,5,160], index: 0, kind: input, shape index: {}]   ;;  %s2257_s1 = inlined_call_operand.vmem [shape: bf16[3,160,160], index: 1, kind: input, shape index: {}]   ;;  %s2258_s2 = inlined_call_operand.vmem [shape: f32[1,160], index: 2, kind: input, shape index: {}]   ;;  %s2259_s3 = inlined_call_operand.vmem [shape: bf16[3,160,160], index: 3, kind: input, shape index: {}]   ;;  %s2260_s4 = inlined_call_operand.vmem [shape: f32[1,160], index: 4, kind: input, shape index: {}]   ;;  %s2261_s5 = inlined_call_operand.vmem [shape: f32[2,5,160], index: 5, kind: output, shape index: {}]  }
   0x1 LB: > { %s1385_s19 = sadd.s32 4294967295, %s1799_s18   ;;  %p1389_p0 = scmp.ge.s32.totalorder %s1799_s18, 1  ;;  %s1799_s18 = sphi %s1832_s18, %s15_s18  }
   0x2   : > { %p187_p1 = scmp.lt.s32.totalorder %s1799_s18, 3 }
   0x4   : > { %p188_p2 = pnand %p1389_p0, %p187_p1 }
   0x5   : > { %v1613_v0 = vld [vmem:[%s2257_s1 + $0xa4] ss:$8 sps:$4 sm:$0xff] (!%p188_p2)   ;;  %v226_v1 = vlaneseq (!%p188_p2)  ;;  %v1617_v3 = vld [vmem:[%s2257_s1 + $0xa0] ss:$8 sps:$4 sm:$0xff] (!%p188_p2)   ;;  %v1619_v5 = vld [vmem:[%s2257_s1 + $0xb4] ss:$8 sps:$4 sm:$0xff] (!%p188_p2)  }
   0x6   : > { %191 = sbr.rel (%p188_p2) target bundleno = 584 (0x248), region = 40  ;;  %v1615_v2 = vld [vmem:[%s2257_s1 + $0x4] ss:$8 sps:$4 sm:$0xff] (!%p188_p2)   ;;  %412 = vmatprep.subr.bf16.mxu0 (!%p188_p2), %v1613_v0  ;;  %v1618_v4 = vld [vmem:[%s2257_s1] ss:$8 sps:$4 sm:$0xff] (!%p188_p2)   ;;  %v1801_v8 = vmov (!%p188_p2), 0.0  }
   0x7   : > { %555 = vmatprep.subr.bf16.mxu1 (!%p188_p2), %v1615_v2  ;;  %vm228_vm0 = vcmp.lt.s32.totalorder (!%p188_p2), %v226_v1, 160  ;;  %413 = vmatpush1.bf16.msra.mxu0 (!%p188_p2), %v1617_v3  ;;  %v1621_v6 = vld [vmem:[%s2257_s1 + $0x14] ss:$8 sps:$4 sm:$0xff] (!%p188_p2)   ;;  %v1623_v7 = vld [vmem:[%s2257_s1 + $0xb0] ss:$8 sps:$4 sm:$0xff] (!%p188_p2)   ;;  %p215_p3 = scmp.lt.s32.totalorder (!%p188_p2), %s1385_s19, 1 }
   0x8   : > { %556 = vmatpush1.bf16.msra.mxu1 (!%p188_p2), %v1618_v4  ;;  %230 = vst.msk [vmem:[#allocation2] ss:$8 sm:$0x3] (!%p188_p2), %vm228_vm0, %v1801_v8  ;;  %233 = vst.msk [vmem:[#allocation2 + $0x6] ss:$8 sm:$0x3] (!%p188_p2), %vm228_vm0, %v1801_v8  ;;  %414 = vmatprep.subr.bf16.mxu0 (!%p188_p2), %v1619_v5 }
   0x9   : > { %v1624_v9 = vld [vmem:[%s2257_s1 + $0x10] ss:$8 sps:$4 sm:$0xff] (!%p188_p2)   ;;  %557 = vmatprep.subr.bf16.mxu1 (!%p188_p2), %v1621_v6  ;;  %v1625_v10 = vld [vmem:[%s2257_s1 + $0xc4] ss:$8 sps:$4 sm:$0xff] (!%p188_p2)   ;;  %v1629_v12 = vld [vmem:[%s2257_s1 + $0xc0] ss:$8 sps:$4 sm:$0xff] (!%p188_p2)  }
   0xa   : > { %v1627_v11 = vld [vmem:[%s2257_s1 + $0x24] ss:$8 sps:$4 sm:$0xff] (!%p188_p2)   ;;  %v1630_v13 = vld [vmem:[%s2257_s1 + $0x20] ss:$8 sps:$4 sm:$0xff] (!%p188_p2)   ;;  %v1631_v14 = vld [vmem:[%s2257_s1 + $0xd4] ss:$8 sps:$4 sm:$0xff] (!%p188_p2)  }
   0xb   : > { %415 = vmatpush1.bf16.msra.mxu0 (!%p188_p2), %v1623_v7  ;;  %v1633_v15 = vld [vmem:[%s2257_s1 + $0x34] ss:$8 sps:$4 sm:$0xff] (!%p188_p2)   ;;  %v1635_v16 = vld [vmem:[%s2257_s1 + $0xd0] ss:$8 sps:$4 sm:$0xff] (!%p188_p2)   ;;  %v1637_v18 = vld [vmem:[%s2257_s1 + $0xe4] ss:$8 sps:$4 sm:$0xff] (!%p188_p2)  }
   0xc   : > { %558 = vmatpush1.bf16.msra.mxu1 (!%p188_p2), %v1624_v9  ;;  %416 = vmatprep.subr.bf16.mxu0 (!%p188_p2), %v1625_v10  ;;  %v1636_v17 = vld [vmem:[%s2257_s1 + $0x30] ss:$8 sps:$4 sm:$0xff] (!%p188_p2)   ;;  %v1639_v19 = vld [vmem:[%s2257_s1 + $0x44] ss:$8 sps:$4 sm:$0xff] (!%p188_p2)   ;;  %v1641_v20 = vld [vmem:[%s2257_s1 + $0xe0] ss:$8 sps:$4 sm:$0xff] (!%p188_p2)  }
   0xd   : > { %559 = vmatprep.subr.bf16.mxu1 %v1627_v11  ;;  %v1642_v21 = vld [vmem:[%s2257_s1 + $0x40] ss:$8 sps:$4 sm:$0xff]   ;;  %v1643_v22 = vld [vmem:[%s2257_s1 + $0xf4] ss:$8 sps:$4 sm:$0xff]   ;;  %s2263_s19 = smov (!%p215_p3, %s1385_s19), 1  ;;  %vm246_vm1 = vcmask 259073  }
   0xe   : > { %v1645_v23 = vld [vmem:[%s2257_s1 + $0x54] ss:$8 sps:$4 sm:$0xff]   ;;  %v1647_v24 = vld [vmem:[%s2257_s1 + $0xf0] ss:$8 sps:$4 sm:$0xff]   ;;  %v1649_v26 = vld [vmem:[%s2257_s1 + $0x104] ss:$8 sps:$4 sm:$0xff]  }
   0xf   : > { %417 = vmatpush1.bf16.msra.mxu0 %v1629_v12  ;;  %v1648_v25 = vld [vmem:[%s2257_s1 + $0x50] ss:$8 sps:$4 sm:$0xff]   ;;  %s1602_s24 = sshll.u32 %s2263_s19, 4  ;;  %v1651_v27 = vld [vmem:[%s2257_s1 + $0x64] ss:$8 sps:$4 sm:$0xff]   ;;  %vm408_vm2 = vcmask 261120  }
  0x10   : > { %560 = vmatpush1.bf16.msra.mxu1 %v1630_v13  ;;  %418 = vmatprep.subr.bf16.mxu0 %v1631_v14  ;;  %v1653_v28 = vld [vmem:[%s2257_s1 + $0x100] ss:$8 sps:$4 sm:$0xff]   ;;  %s219_s8 = scalar_lea.vmem %s2256_s0, %s1602_s24  ;;  %v1655_v30 = vld [vmem:[%s2257_s1 + $0x114] ss:$8 sps:$4 sm:$0xff]   ;;  %v1659_v35 = vld [vmem:[%s2257_s1 + $0x110] ss:$8 sps:$4 sm:$0xff]   ;;  %s224_s26 = scalar_lea.vmem %s2261_s5, %s1602_s24 }
  0x11   : > { %561 = vmatprep.subr.bf16.mxu1 %v1633_v15  ;;  %v1654_v29 = vld [vmem:[%s2257_s1 + $0x60] ss:$8 sps:$4 sm:$0xff]   ;;  %v1657_v31 = vld [vmem:[%s2257_s1 + $0x74] ss:$8 sps:$4 sm:$0xff]   ;;  %v1660_v36 = vld [vmem:[%s2257_s1 + $0x70] ss:$8 sps:$4 sm:$0xff]  }
  0x12   : > { %v1943_v32 = vld [vmem:[%s219_s8 + $0x8] sm:$0x1f]  ;;  %v1946_v34 = vld [vmem:[%s219_s8] sm:$0x1f]  ;;  %v1667_v44 = vld [vmem:[%s2257_s1 + $0x134] ss:$8 sps:$4 sm:$0xff]  }
  0x13   : > { %419 = vmatpush1.bf16.msra.mxu0 %v1635_v16  ;;  %v238_v33 = vmax.f32 %v1943_v32, 0.0  ;;  %v237_v37 = vmax.f32 %v1946_v34, 0.0  ;;  %v1661_v38 = vld [vmem:[%s2257_s1 + $0x124] ss:$8 sps:$4 sm:$0xff]   ;;  %v1665_v42 = vld [vmem:[%s2257_s1 + $0x120] ss:$8 sps:$4 sm:$0xff]  }
  0x14   : > { %562 = vmatpush1.bf16.msra.mxu1 %v1636_v17  ;;  %420 = vmatprep.subr.bf16.mxu0 %v1637_v18  ;;  %v1663_v39 = vld [vmem:[%s2257_s1 + $0x84] ss:$8 sps:$4 sm:$0xff]   ;;  %v1666_v43 = vld [vmem:[%s2257_s1 + $0x80] ss:$8 sps:$4 sm:$0xff]   ;;  %v1669_v45 = vld [vmem:[%s2257_s1 + $0x94] ss:$8 sps:$4 sm:$0xff]  }
  0x15   : > { %563 = vmatprep.subr.bf16.mxu1 %v1639_v19  ;;  %v242_v40 = vrot.slane %v238_v33, 7  ;;  %v241_v41 = vrot.slane %v237_v37, 7  ;;  %v1671_v46 = vld [vmem:[%s2257_s1 + $0x130] ss:$8 sps:$4 sm:$0xff]   ;;  %v1675_v48 = vld [vmem:[%s2257_s1 + $0x144] ss:$8 sps:$4 sm:$0xff]  }
  0x16   : > { %v1672_v47 = vld [vmem:[%s2257_s1 + $0x90] ss:$8 sps:$4 sm:$0xff]   ;;  %v1673_v58 = vld [vmem:[%s2257_s1 + $0x140] ss:$8 sps:$4 sm:$0xff]   ;;  %v1678_v60 = vld [vmem:[%s2257_s1 + $0x154] ss:$8 sps:$4 sm:$0xff]  }
  0x17   : > { %421 = vmatpush1.bf16.msra.mxu0 %v1641_v20  ;;  %247 = vst.msk [vmem:[#allocation2 + $0x8] sm:$0x3e] %vm246_vm1, %v242_v40  ;;  %245 = vst [vmem:[#allocation2] sm:$0x3e] %v241_v41  ;;  %v1676_v0 = vld [vmem:[%s2257_s1 + $0x150] ss:$8 sps:$4 sm:$0xff]  }
  0x18   : > { %564 = vmatpush1.bf16.msra.mxu1 %v1642_v21  ;;  %422 = vmatprep.subr.bf16.mxu0 %v1643_v22  ;;  %v1681_v2 = vld [vmem:[%s2257_s1 + $0x164] ss:$8 sps:$4 sm:$0xff]   ;;  %v1679_v3 = vld [vmem:[%s2257_s1 + $0x160] ss:$8 sps:$4 sm:$0xff]   ;;  %v1684_v4 = vld [vmem:[%s2257_s1 + $0x174] ss:$8 sps:$4 sm:$0xff]  }
  0x19   : > { %565 = vmatprep.subr.bf16.mxu1 %v1645_v23  ;;  %v1682_v5 = vld [vmem:[%s2257_s1 + $0x170] ss:$8 sps:$4 sm:$0xff]   ;;  %v1687_v6 = vld [vmem:[%s2257_s1 + $0x184] ss:$8 sps:$4 sm:$0xff]   ;;  %v1685_v7 = vld [vmem:[%s2257_s1 + $0x180] ss:$8 sps:$4 sm:$0xff]  }
  0x1a   : > { %v1690_v8 = vld [vmem:[%s2257_s1 + $0x194] ss:$8 sps:$4 sm:$0xff]   ;;  %v1688_v9 = vld [vmem:[%s2257_s1 + $0x190] ss:$8 sps:$4 sm:$0xff]   ;;  %v1693_v10 = vld [vmem:[%s2257_s1 + $0x1a4] ss:$8 sps:$4 sm:$0xff]  }
  0x1b   : > { %423 = vmatpush1.bf16.msra.mxu0 %v1647_v24  ;;  %v1691_v11 = vld [vmem:[%s2257_s1 + $0x1a0] ss:$8 sps:$4 sm:$0xff]   ;;  %v1696_v12 = vld [vmem:[%s2257_s1 + $0x1b4] ss:$8 sps:$4 sm:$0xff]   ;;  %v1694_v13 = vld [vmem:[%s2257_s1 + $0x1b0] ss:$8 sps:$4 sm:$0xff]  }
  0x1c   : > { %566 = vmatpush1.bf16.msra.mxu1 %v1648_v25  ;;  %424 = vmatprep.subr.bf16.mxu0 %v1649_v26  ;;  %v1699_v14 = vld [vmem:[%s2257_s1 + $0x1c4] ss:$8 sps:$4 sm:$0xff]   ;;  %v1697_v15 = vld [vmem:[%s2257_s1 + $0x1c0] ss:$8 sps:$4 sm:$0xff]   ;;  %v1702_v16 = vld [vmem:[%s2257_s1 + $0x1d4] ss:$8 sps:$4 sm:$0xff]  }
  0x1d   : > { %567 = vmatprep.subr.bf16.mxu1 %v1651_v27  ;;  %v1700_v17 = vld [vmem:[%s2257_s1 + $0x1d0] ss:$8 sps:$4 sm:$0xff]   ;;  %v1703_v19 = vld [vmem:[%s2259_s3] ss:$8 sps:$4 sm:$0xff]   ;;  %v1705_v20 = vld [vmem:[%s2259_s3 + $0x4] ss:$8 sps:$4 sm:$0xff]  }
  0x1e   : > { %v249_v49 = vld [vmem:[#allocation2 + $0x8] sm:$0x7f]  ;;  %v248_v51 = vld [vmem:[#allocation2] sm:$0x7f]  ;;  %v1708_v21 = vld [vmem:[%s2259_s3 + $0x14] ss:$8 sps:$4 sm:$0xff]  }
  0x1f   : > { %425 = vmatpush1.bf16.msra.mxu0 %v1653_v28  ;;  %v251_v50 = vpack.c.bf16 %v249_v49, %v249_v49  ;;  %v250_v52 = vpack.c.bf16 %v248_v51, %v248_v51  ;;  %v1709_v22 = vld [vmem:[%s2259_s3 + $0xa0] ss:$8 sps:$4 sm:$0xff]   ;;  %v1711_v23 = vld [vmem:[%s2259_s3 + $0xa4] ss:$8 sps:$4 sm:$0xff]   ;;  %v1706_v24 = vld [vmem:[%s2259_s3 + $0x10] ss:$8 sps:$4 sm:$0xff]  }
  0x20   : > { %568 = vmatpush1.bf16.msra.mxu1 %v1654_v29  ;;  %426 = vmatprep.subr.bf16.mxu0 %v1655_v30  ;;  %v1717_v25 = vld [vmem:[%s2259_s3 + $0xb4] ss:$8 sps:$4 sm:$0xff]   ;;  %v1714_v26 = vld [vmem:[%s2259_s3 + $0x24] ss:$8 sps:$4 sm:$0xff]   ;;  %v1715_v27 = vld [vmem:[%s2259_s3 + $0xb0] ss:$8 sps:$4 sm:$0xff]  }
  0x21   : > { %569 = vmatprep.subr.bf16.mxu1 %v1657_v31  ;;  %v301_v53 = vshrl.u32 %v251_v50, 16  ;;  %v303_v54 = vshll.u32 %v251_v50, 16  ;;  %1455 = vmatprep.mubr.msk.bf16.mxu1 %vm408_vm2, %v251_v50  ;;  %v294_v55 = vshrl.u32 %v250_v52, 16  ;;  %v296_v56 = vshll.u32 %v250_v52, 16  ;;  %v1723_v28 = vld [vmem:[%s2259_s3 + $0xc4] ss:$8 sps:$4 sm:$0xff]  }
  0x22   : > { %v620_v62 = vrot.slane %v251_v50, 1  ;;  %v619_v18 = vrot.slane %v250_v52, 1  ;;  %v1712_v29 = vld [vmem:[%s2259_s3 + $0x20] ss:$8 sps:$4 sm:$0xff]   ;;  %v1720_v30 = vld [vmem:[%s2259_s3 + $0x34] ss:$8 sps:$4 sm:$0xff]  }
  0x23   : > { %427 = vmatpush1.bf16.msra.mxu0 %v1659_v35  ;;  %v305_v57 = vrot.slane %v303_v54, 1  ;;  %v298_v59 = vrot.slane %v296_v56, 1  ;;  %v1721_v31 = vld [vmem:[%s2259_s3 + $0xc0] ss:$8 sps:$4 sm:$0xff]   ;;  %v1729_v33 = vld [vmem:[%s2259_s3 + $0xd4] ss:$8 sps:$4 sm:$0xff]  }
  0x24   : > { %570 = vmatpush1.bf16.msra.mxu1 %v1660_v36  ;;  %428 = vmatprep.subr.bf16.mxu0 %v1661_v38  ;;  %v1718_v35 = vld [vmem:[%s2259_s3 + $0x30] ss:$8 sps:$4 sm:$0xff]   ;;  %v1726_v36 = vld [vmem:[%s2259_s3 + $0x44] ss:$8 sps:$4 sm:$0xff]   ;;  %v1724_v38 = vld [vmem:[%s2259_s3 + $0x40] ss:$8 sps:$4 sm:$0xff]  }
  0x25   : > { %571 = vmatprep.subr.bf16.mxu1 %v1663_v39  ;;  %v306_v61 = vor.u32 %v305_v57, %v301_v53  ;;  %v299_v63 = vor.u32 %v298_v59, %v294_v55  ;;  %v1727_v37 = vld [vmem:[%s2259_s3 + $0xd0] ss:$8 sps:$4 sm:$0xff]   ;;  %v1732_v39 = vld [vmem:[%s2259_s3 + $0x54] ss:$8 sps:$4 sm:$0xff]   ;;  %v1733_v41 = vld [vmem:[%s2259_s3 + $0xe0] ss:$8 sps:$4 sm:$0xff]  }
  0x26   : > { %v1730_v40 = vld [vmem:[%s2259_s3 + $0x50] ss:$8 sps:$4 sm:$0xff]   ;;  %v1747_v49 = vld [vmem:[%s2259_s3 + $0x104] ss:$8 sps:$4 sm:$0xff]   ;;  %v1745_v50 = vld [vmem:[%s2259_s3 + $0x100] ss:$8 sps:$4 sm:$0xff]  }
  0x27   : > { %429 = vmatpush1.bf16.msra.mxu0 %v1665_v42  ;;  %1434 = vmatprep.mubr.msk.bf16.mxu0 %vm408_vm2, %v306_v61  ;;  %v1735_v42 = vld [vmem:[%s2259_s3 + $0xe4] ss:$8 sps:$4 sm:$0xff]   ;;  %v1748_v51 = vld [vmem:[%s2259_s3 + $0x80] ss:$8 sps:$4 sm:$0xff]   ;;  %v1753_v53 = vld [vmem:[%s2259_s3 + $0x114] ss:$8 sps:$4 sm:$0xff]  }
  0x28   : > { %572 = vmatpush1.bf16.msra.mxu1 %v1666_v43  ;;  %430 = vmatprep.subr.bf16.mxu0 %v1667_v44  ;;  %v1738_v43 = vld [vmem:[%s2259_s3 + $0x64] ss:$8 sps:$4 sm:$0xff]   ;;  %v1736_v44 = vld [vmem:[%s2259_s3 + $0x60] ss:$8 sps:$4 sm:$0xff]   ;;  %v1756_v54 = vld [vmem:[%s2259_s3 + $0x94] ss:$8 sps:$4 sm:$0xff]  }
  0x29   : > { %573 = vmatprep.subr.bf16.mxu1 %v1669_v45  ;;  %v1741_v45 = vld [vmem:[%s2259_s3 + $0xf4] ss:$8 sps:$4 sm:$0xff]   ;;  %v1751_v55 = vld [vmem:[%s2259_s3 + $0x110] ss:$8 sps:$4 sm:$0xff]   ;;  %v1759_v56 = vld [vmem:[%s2259_s3 + $0x124] ss:$8 sps:$4 sm:$0xff]  }
  0x2a   : > { %v1754_v57 = vld [vmem:[%s2259_s3 + $0x90] ss:$8 sps:$4 sm:$0xff]   ;;  %v1762_v59 = vld [vmem:[%s2259_s3 + $0x134] ss:$8 sps:$4 sm:$0xff]   ;;  %v1765_v61 = vld [vmem:[%s2259_s3 + $0x144] ss:$8 sps:$4 sm:$0xff]  }
  0x2b   : > { %431 = vmatpush1.bf16.msra.mxu0 %v1671_v46  ;;  %v1739_v46 = vld [vmem:[%s2259_s3 + $0xf0] ss:$8 sps:$4 sm:$0xff]   ;;  %vm1328_vm3 = vcmask 258048  }
  0x2c   : > { %574 = vmatpush1.bf16.msra.mxu1 %v1672_v47  ;;  %725 = vmatprep.subr.bf16.mxu0 %v1675_v48  ;;  %v1744_v47 = vld [vmem:[%s2259_s3 + $0x74] ss:$8 sps:$4 sm:$0xff]   ;;  %v1742_v48 = vld [vmem:[%s2259_s3 + $0x70] ss:$8 sps:$4 sm:$0xff]  }
  0x2d   : > { %955 = vmatprep.subr.bf16.mxu1 %v1711_v23 }
  0x2e   : > { %445 = vmatmul.mubr.bf16.vlgmr.msra.gmra.mrb[0].mxu0 %v299_v63 }
  0x2f   : > { %588 = vmatmul.mubr.bf16.vlgmr.msra.gmra.mrb[0].mxu1 %v250_v52  ;;  %726 = vmatpush1.bf16.msra.mxu0 %v1673_v58  ;;  %v1750_v52 = vld [vmem:[%s2259_s3 + $0x84] ss:$8 sps:$4 sm:$0xff]   ;;  %v1757_v58 = vld [vmem:[%s2259_s3 + $0x120] ss:$8 sps:$4 sm:$0xff]  }
  0x30   : > { %1496 = vmatprep.mubr.msk.bf16.mxu0 %vm408_vm2, %v620_v62  ;;  %727 = vmatprep.subr.bf16.mxu0 %v1678_v60  ;;  %v1760_v60 = vld [vmem:[%s2259_s3 + $0x130] ss:$8 sps:$4 sm:$0xff]  }
  0x31   : > { %956 = vmatpush1.bf16.msra.mxu1 %v1709_v22 }
  0x32   : > { %957 = vmatprep.subr.bf16.mxu1 %v1717_v25 }
  0x33   : > { %728 = vmatpush1.bf16.msra.mxu0 %v1676_v0 }
  0x34   : > { %729 = vmatprep.subr.bf16.mxu0 %v1681_v2 }
  0x35   : > { %958 = vmatpush1.bf16.msra.mxu1 %v1715_v27 }
  0x36   : > { %959 = vmatprep.subr.bf16.mxu1 %v1723_v28 }
  0x37   : > { %730 = vmatpush1.bf16.msra.mxu0 %v1679_v3 }
  0x38   : > { %731 = vmatprep.subr.bf16.mxu0 %v1684_v4 }
  0x39   : > { %960 = vmatpush1.bf16.msra.mxu1 %v1721_v31 }
  0x3a   : > { %961 = vmatprep.subr.bf16.mxu1 %v1729_v33 }
  0x3b   : > { %732 = vmatpush1.bf16.msra.mxu0 %v1682_v5 }
  0x3c   : > { %733 = vmatprep.subr.bf16.mxu0 %v1687_v6 }
  0x3d   : > { %962 = vmatpush1.bf16.msra.mxu1 %v1727_v37 }
  0x3e   : > { %963 = vmatprep.subr.bf16.mxu1 %v1735_v42 }
  0x3f   : > { %734 = vmatpush1.bf16.msra.mxu0 %v1685_v7 }
  0x40   : > { %735 = vmatprep.subr.bf16.mxu0 %v1690_v8 }
  0x41   : > { %964 = vmatpush1.bf16.msra.mxu1 %v1733_v41  ;;  %v1768_v41 = vld [vmem:[%s2259_s3 + $0x154] ss:$8 sps:$4 sm:$0xff]  }
  0x42   : > { %965 = vmatprep.subr.bf16.mxu1 %v1741_v45  ;;  %v1769_v45 = vld [vmem:[%s2259_s3 + $0x160] ss:$8 sps:$4 sm:$0xff]  }
  0x43   : > { %736 = vmatpush1.bf16.msra.mxu0 %v1688_v9  ;;  %v2167_v9 = vshrl.u32 %v226_v1, 7 }
  0x44   : > { %737 = vmatprep.subr.bf16.mxu0 %v1693_v10 }
  0x45   : > { %966 = vmatpush1.bf16.msra.mxu1 %v1739_v46  ;;  %v772_v10 = vsub.s32 0, %v2167_v9  ;;  %v1774_v46 = vld [vmem:[%s2259_s3 + $0x174] ss:$8 sps:$4 sm:$0xff]  }
  0x46   : > { %967 = vmatprep.subr.bf16.mxu1 %v1747_v49  ;;  %v1775_v49 = vld [vmem:[%s2259_s3 + $0x180] ss:$8 sps:$4 sm:$0xff]  }
  0x47   : > { %738 = vmatpush1.bf16.msra.mxu0 %v1691_v11  ;;  %v768_v11 = vld [vmem:[%s2258_s2] sm:$0x3] }
  0x48   : > { %739 = vmatprep.subr.bf16.mxu0 %v1696_v12  ;;  %v776_v12 = vsub.s32 1, %v2167_v9 }
  0x49   : > { %968 = vmatpush1.bf16.msra.mxu1 %v1745_v50  ;;  %v1780_v50 = vld [vmem:[%s2259_s3 + $0x194] ss:$8 sps:$4 sm:$0xff]  }
  0x4a   : > { %969 = vmatprep.subr.bf16.mxu1 %v1753_v53  ;;  %v1781_v53 = vld [vmem:[%s2259_s3 + $0x1a0] ss:$8 sps:$4 sm:$0xff]  }
  0x4b   : > { %740 = vmatpush1.bf16.msra.mxu0 %v1694_v13  ;;  %v773_v13 = vrot.slane %v768_v11, %v772_v10 }
  0x4c   : > { %741 = vmatprep.subr.bf16.mxu0 %v1699_v14 }
  0x4d   : > { %970 = vmatpush1.bf16.msra.mxu1 %v1751_v55  ;;  %v1784_v55 = vld [vmem:[%s2259_s3 + $0x1b0] ss:$8 sps:$4 sm:$0xff]  }
  0x4e   : > { %971 = vmatprep.subr.bf16.mxu1 %v1759_v56  ;;  %v1789_v56 = vld [vmem:[%s2259_s3 + $0x1c4] ss:$8 sps:$4 sm:$0xff]  }
  0x4f   : > { %742 = vmatpush1.bf16.msra.mxu0 %v1697_v15  ;;  %v777_v15 = vrot.slane %v768_v11, %v776_v12 }
  0x50   : > { %743 = vmatprep.subr.bf16.mxu0 %v1702_v16 }
  0x51   : > { %972 = vmatpush1.bf16.msra.mxu1 %v1757_v58  ;;  %v1792_v58 = vld [vmem:[%s2259_s3 + $0x1d4] ss:$8 sps:$4 sm:$0xff]  }
  0x52   : > { %973 = vmatprep.subr.bf16.mxu1 %v1762_v59  ;;  %v1790_v59 = vld [vmem:[%s2259_s3 + $0x1d0] ss:$8 sps:$4 sm:$0xff]  }
  0x53   : > { %744 = vmatpush1.bf16.msra.mxu0 %v1700_v17 }
  0x54   : > { %1098 = vmatprep.subr.bf16.mxu0 %v1705_v20 }
  0x55   : > { %974 = vmatpush1.bf16.msra.mxu1 %v1760_v60 }
  0x56   : > { %758 = vmatmul.mubr.bf16.vlgmr.msra.gmra.mrb[4].mxu0 %v619_v18  ;;  %1268 = vmatprep.subr.bf16.mxu1 %v1765_v61 }
  0x57   : > { %1099 = vmatpush1.bf16.msra.mxu0 %v1703_v19 }
  0x58   : > { %1100 = vmatprep.subr.bf16.mxu0 %v1708_v21 }
  0x5b   : > { %1101 = vmatpush1.bf16.msra.mxu0 %v1706_v24 }
  0x5c   : > { %1102 = vmatprep.subr.bf16.mxu0 %v1714_v26 }
  0x5f   : > { %1103 = vmatpush1.bf16.msra.mxu0 %v1712_v29 }
  0x60   : > { %1104 = vmatprep.subr.bf16.mxu0 %v1720_v30 }
  0x63   : > { %1105 = vmatpush1.bf16.msra.mxu0 %v1718_v35 }
  0x64   : > { %1106 = vmatprep.subr.bf16.mxu0 %v1726_v36 }
  0x67   : > { %1107 = vmatpush1.bf16.msra.mxu0 %v1724_v38 }
  0x68   : > { %1108 = vmatprep.subr.bf16.mxu0 %v1732_v39  ;;  %v1763_v39 = vld [vmem:[%s2259_s3 + $0x140] ss:$8 sps:$4 sm:$0xff]  }
  0x6b   : > { %1109 = vmatpush1.bf16.msra.mxu0 %v1730_v40 }
  0x6c   : > { %1110 = vmatprep.subr.bf16.mxu0 %v1738_v43  ;;  %v1766_v43 = vld [vmem:[%s2259_s3 + $0x150] ss:$8 sps:$4 sm:$0xff]  }
  0x6f   : > { %1111 = vmatpush1.bf16.msra.mxu0 %v1736_v44  ;;  %v1771_v44 = vld [vmem:[%s2259_s3 + $0x164] ss:$8 sps:$4 sm:$0xff]  }
  0x70   : > { %1112 = vmatprep.subr.bf16.mxu0 %v1744_v47  ;;  %v1772_v47 = vld [vmem:[%s2259_s3 + $0x170] ss:$8 sps:$4 sm:$0xff]  }
  0x73   : > { %1113 = vmatpush1.bf16.msra.mxu0 %v1742_v48  ;;  %v1777_v48 = vld [vmem:[%s2259_s3 + $0x184] ss:$8 sps:$4 sm:$0xff]  }
  0x74   : > { %1114 = vmatprep.subr.bf16.mxu0 %v1750_v52  ;;  %v1783_v52 = vld [vmem:[%s2259_s3 + $0x1a4] ss:$8 sps:$4 sm:$0xff]  }
  0x77   : > { %1115 = vmatpush1.bf16.msra.mxu0 %v1748_v51  ;;  %v1778_v51 = vld [vmem:[%s2259_s3 + $0x190] ss:$8 sps:$4 sm:$0xff]  }
  0x78   : > { %1116 = vmatprep.subr.bf16.mxu0 %v1756_v54  ;;  %v1786_v54 = vld [vmem:[%s2259_s3 + $0x1b4] ss:$8 sps:$4 sm:$0xff]  }
  0x7b   : > { %1117 = vmatpush1.bf16.msra.mxu0 %v1754_v57  ;;  %v1787_v57 = vld [vmem:[%s2259_s3 + $0x1c0] ss:$8 sps:$4 sm:$0xff]  }
 0x101   : > { %v446_v3 = vpop.f32.mrb[0].mxu0 }
 0x102   : > { %v589_v62 = vpop.f32.mrb[0].mxu1  ;;  %v448_v5 = vpop.f32.mrb[1].mxu0 }
 0x103   : > { %v591_v63 = vpop.f32.mrb[1].mxu1  ;;  %v590_v4 = vadd.f32 %v589_v62, %v446_v3  ;;  %v450_v7 = vpop.f32.mrb[2].mxu0 }
 0x104   : > { %v593_v0 = vpop.f32.mrb[2].mxu1  ;;  %v592_v6 = vadd.f32 %v591_v63, %v448_v5  ;;  %v451_v8 = vpop.f32.mrb[3].mxu0 }
 0x105   : > { %v594_v2 = vpop.f32.mrb[3].mxu1  ;;  %v1311_v8 = vld [vmem:[%s2260_s4] sm:$0x3] }
 0x106   : > { %v1316_v11 = vrot.slane %v1311_v8, %v772_v10 }
 0x129   : > { %v759_v14 = vpop.f32.mrb[4].mxu0 }
 0x12a   : > { %v766_v16 = vadd.f32 %v759_v14, %v590_v4  ;;  %v761_v17 = vpop.f32.mrb[5].mxu0  ;;  %v1320_v14 = vrot.slane %v1311_v8, %v776_v12 }
 0x12b   : > { %v767_v18 = vadd.f32 %v761_v17, %v592_v6  ;;  %v763_v1 = vpop.f32.mrb[6].mxu0 }
 0x12c   : > { %v780_v19 = vadd.f32 %v773_v13, %v766_v16  ;;  %v764_v20 = vpop.f32.mrb[7].mxu0 }
 0x12d   : > { %v781_v21 = vadd.f32 %v777_v15, %v767_v18 }
 0x12e   : > { %v782_v22 = vmax.f32 %v780_v19, 0.0 }
 0x12f   : > { %v783_v23 = vmax.f32 %v781_v21, 0.0 }
 0x130   : > { %v786_v24 = vrot.slane %v782_v22, 7 }
 0x131   : > { %v787_v25 = vrot.slane %v783_v23, 7 }
 0x132   : > { %790 = vst [vmem:[#allocation2] sm:$0x3e] %v786_v24 }
 0x133   : > { %791 = vst.msk [vmem:[#allocation2 + $0x8] sm:$0x3e] %vm246_vm1, %v787_v25 }
 0x139   : > { %v792_v26 = vld [vmem:[#allocation2] sm:$0x7f] }
 0x13a   : > { %v793_v27 = vld [vmem:[#allocation2 + $0x8] sm:$0x7f]  ;;  %v794_v28 = vpack.c.bf16 %v792_v26, %v792_v26 }
 0x13b   : > { %v795_v29 = vpack.c.bf16 %v793_v27, %v793_v27 }
 0x13c   : > { %v840_v30 = vshll.u32 %v794_v28, 16  ;;  %v838_v37 = vshrl.u32 %v794_v28, 16  ;;  %v1162_v60 = vrot.slane %v794_v28, 1 }
 0x13d   : > { %1558 = vmatprep.mubr.msk.bf16.mxu0 %vm408_vm2, %v795_v29  ;;  %v847_v31 = vshll.u32 %v795_v29, 16  ;;  %v845_v35 = vshrl.u32 %v795_v29, 16  ;;  %v1163_v42 = vrot.slane %v795_v29, 1 }
 0x13e   : > { %1131 = vmatmul.mubr.bf16.vlgmr.msra.gmra.mrb[8].mxu0 %v794_v28  ;;  %v842_v33 = vrot.slane %v840_v30, 1 }
 0x13f   : > { %v849_v36 = vrot.slane %v847_v31, 1 }
 0x140   : > { %v843_v40 = vor.u32 %v842_v33, %v838_v37 }
 0x141   : > { %v850_v38 = vor.u32 %v849_v36, %v845_v35 }
 0x143   : > { %1537 = vmatprep.mubr.msk.bf16.mxu1 %vm408_vm2, %v850_v38 }
 0x144   : > { %988 = vmatmul.mubr.bf16.vlgmr.msra.gmra.mrb[4].mxu1 %v843_v40 }
 0x145   : > { %1269 = vmatpush1.bf16.msra.mxu1 %v1763_v39  ;;  %1599 = vmatprep.mubr.msk.bf16.mxu1 %vm408_vm2, %v1163_v42 }
 0x146   : > { %1270 = vmatprep.subr.bf16.mxu1 %v1768_v41 }
 0x149   : > { %1271 = vmatpush1.bf16.msra.mxu1 %v1766_v43 }
 0x14a   : > { %1272 = vmatprep.subr.bf16.mxu1 %v1771_v44 }
 0x14d   : > { %1273 = vmatpush1.bf16.msra.mxu1 %v1769_v45 }
 0x14e   : > { %1274 = vmatprep.subr.bf16.mxu1 %v1774_v46 }
 0x151   : > { %1275 = vmatpush1.bf16.msra.mxu1 %v1772_v47 }
 0x152   : > { %1276 = vmatprep.subr.bf16.mxu1 %v1777_v48 }
 0x155   : > { %1277 = vmatpush1.bf16.msra.mxu1 %v1775_v49 }
 0x156   : > { %1278 = vmatprep.subr.bf16.mxu1 %v1780_v50 }
 0x159   : > { %1279 = vmatpush1.bf16.msra.mxu1 %v1778_v51 }
 0x15a   : > { %1280 = vmatprep.subr.bf16.mxu1 %v1783_v52 }
 0x15d   : > { %1281 = vmatpush1.bf16.msra.mxu1 %v1781_v53 }
 0x15e   : > { %1282 = vmatprep.subr.bf16.mxu1 %v1786_v54 }
 0x161   : > { %1283 = vmatpush1.bf16.msra.mxu1 %v1784_v55 }
 0x162   : > { %1284 = vmatprep.subr.bf16.mxu1 %v1789_v56 }
 0x165   : > { %1285 = vmatpush1.bf16.msra.mxu1 %v1787_v57 }
 0x166   : > { %1286 = vmatprep.subr.bf16.mxu1 %v1792_v58 }
 0x169   : > { %1287 = vmatpush1.bf16.msra.mxu1 %v1790_v59 }
 0x16c   : > { %1301 = vmatmul.mubr.bf16.vlgmr.msra.gmra.mrb[8].mxu1 %v1162_v60 }
 0x211   : > { %v1132_v61 = vpop.f32.mrb[8].mxu0 }
 0x212   : > { %v1134_v62 = vpop.f32.mrb[9].mxu0 }
 0x213   : > { %v1136_v63 = vpop.f32.mrb[10].mxu0 }
 0x214   : > { %v1137_v0 = vpop.f32.mrb[11].mxu0 }
 0x217   : > { %v989_v2 = vpop.f32.mrb[4].mxu1 }
 0x218   : > { %v1133_v3 = vadd.f32 %v1132_v61, %v989_v2  ;;  %v991_v4 = vpop.f32.mrb[5].mxu1 }
 0x219   : > { %v1135_v5 = vadd.f32 %v1134_v62, %v991_v4  ;;  %v993_v6 = vpop.f32.mrb[6].mxu1 }
 0x21a   : > { %v994_v7 = vpop.f32.mrb[7].mxu1 }
 0x23f   : > { %v1302_v13 = vpop.f32.mrb[8].mxu1 }
 0x240   : > { %v1309_v15 = vadd.f32 %v1302_v13, %v1133_v3  ;;  %v1304_v16 = vpop.f32.mrb[9].mxu1 }
 0x241   : > { %v1310_v17 = vadd.f32 %v1304_v16, %v1135_v5  ;;  %v1306_v18 = vpop.f32.mrb[10].mxu1 }
 0x242   : > { %v1323_v1 = vadd.f32 %v1316_v11, %v1309_v15  ;;  %v1307_v19 = vpop.f32.mrb[11].mxu1 }
 0x243   : > { %v1324_v20 = vadd.f32 %v1320_v14, %v1310_v17 }
 0x244   : > { %v1325_v21 = vadd.f32 %v1323_v1, %v1946_v34 }
 0x245   : > { %v1326_v10 = vadd.f32 %v1324_v20, %v1943_v32 }
 0x246   : > { %1327 = vst [vmem:[%s224_s26] sm:$0x1f] %v1325_v21 }
 0x247   : > { %1329 = vst.msk [vmem:[%s224_s26 + $0x8] sm:$0x1f] %vm1328_vm3, %v1326_v10 }
 0x248 PF: > { %s15_s18 = sadd.s32 1, %s1799_s18  }
 0x249   : > { %p12_p4 = scmp.ge.s32.totalorder %s15_s18, 4  }
 0x24b   :  { %14 = sbr.rel (!%p12_p4) target bundleno = 1 (0x1), region = 75 }

// kernel: seperated_impala_forward.13
= control target key start
LH: loop header
LB: loop body
LE: loop exit
PB: predicated region body
PF: predicated region fallthrough
CT: control target
= control target key end

     0   :  { %s3446_s18 = smov 0   ;;  %s4821_s0 = inlined_call_operand.vmem [shape: f32[2,14,224], index: 0, kind: input, shape index: {}]   ;;  %s4822_s1 = inlined_call_operand.vmem [shape: bf16[3,224,384], index: 1, kind: input, shape index: {}]   ;;  %s4823_s2 = inlined_call_operand.vmem [shape: f32[3,384,160], index: 2, kind: input, shape index: {}]   ;;  %s4824_s3 = inlined_call_operand.vmem [shape: f32[3,5,12], index: 3, kind: input, shape index: {}]   ;;  %s4825_s4 = inlined_call_operand.vmem [shape: f32[1,160], index: 4, kind: input, shape index: {}]   ;;  %s4826_s5 = inlined_call_operand.vmem [shape: f32[2,5,160], index: 5, kind: output, shape index: {}]  }
   0x1 LB: > { %s2432_s19 = sadd.s32 4294967295, %s3411_s18   ;;  %p2436_p0 = scmp.ge.s32.totalorder %s3411_s18, 1  ;;  %s3411_s18 = sphi %s3446_s18, %s15_s18  }
   0x2   : > { %p187_p1 = scmp.lt.s32.totalorder %s3411_s18, 3 }
   0x4   : > { %p188_p2 = pnand %p2436_p0, %p187_p1 }
   0x5   : > { %v3237_v0 = vld [vmem:[%s4822_s1 + $0x154] ss:$12 sps:$4 sm:$0xff] (!%p188_p2)   ;;  %v3413_v1 = vmov (!%p188_p2), 0   ;;  %v3239_v2 = vld [vmem:[%s4822_s1 + $0x158] ss:$12 sps:$4 sm:$0xff] (!%p188_p2)   ;;  %p215_p3 = scmp.lt.s32.totalorder (!%p188_p2), %s2432_s19, 1 }
   0x6   : > { %191 = sbr.rel (%p188_p2) target bundleno = 936 (0x3a8), region = 40  ;;  %631 = vmatprep.subr.bf16.mxu1 (!%p188_p2), %v3413_v1  ;;  %588 = vmatprep.subr.bf16.mxu0 (!%p188_p2), %v3237_v0  ;;  %v3240_v3 = vld [vmem:[%s4822_s1 + $0x150] ss:$12 sps:$4 sm:$0xff] (!%p188_p2)   ;;  %v3241_v4 = vld [vmem:[%s4822_s1 + $0x16c] ss:$12 sps:$4 sm:$0xff] (!%p188_p2)   ;;  %vm584_vm0 = vcmask (!%p188_p2), 785408  }
   0x7   : > { %632 = vmatpush1.bf16.msra.mxu1 (!%p188_p2), %v3239_v2  ;;  %589 = vmatpush1.bf16.msra.mxu0 (!%p188_p2), %v3240_v3  ;;  %v3243_v5 = vld [vmem:[%s4822_s1 + $0x170] ss:$12 sps:$4 sm:$0xff] (!%p188_p2)   ;;  %v3244_v6 = vld [vmem:[%s4822_s1 + $0x168] ss:$12 sps:$4 sm:$0xff] (!%p188_p2)   ;;  %v3248_v9 = vld [vmem:[%s4822_s1 + $0x180] ss:$12 sps:$4 sm:$0xff] (!%p188_p2)  }
   0x8   : > { %633 = vmatprep.subr.bf16.mxu1 (!%p188_p2), %v3413_v1  ;;  %590 = vmatprep.subr.bf16.mxu0 (!%p188_p2), %v3241_v4  ;;  %v3245_v7 = vld [vmem:[%s4822_s1 + $0x184] ss:$12 sps:$4 sm:$0xff] (!%p188_p2)   ;;  %v3247_v8 = vld [vmem:[%s4822_s1 + $0x188] ss:$12 sps:$4 sm:$0xff] (!%p188_p2)   ;;  %v3251_v11 = vld [vmem:[%s4822_s1 + $0x1a0] ss:$12 sps:$4 sm:$0xff] (!%p188_p2)  }
   0x9   : > { %v3249_v10 = vld [vmem:[%s4822_s1 + $0x19c] ss:$12 sps:$4 sm:$0xff] (!%p188_p2)   ;;  %v3252_v12 = vld [vmem:[%s4822_s1 + $0x198] ss:$12 sps:$4 sm:$0xff] (!%p188_p2)   ;;  %v3253_v13 = vld [vmem:[%s4822_s1 + $0x1b4] ss:$12 sps:$4 sm:$0xff] (!%p188_p2)  }
   0xa   : > { %v3255_v14 = vld [vmem:[%s4822_s1 + $0x1b8] ss:$12 sps:$4 sm:$0xff] (!%p188_p2)   ;;  %v3256_v15 = vld [vmem:[%s4822_s1 + $0x1b0] ss:$12 sps:$4 sm:$0xff] (!%p188_p2)   ;;  %v3260_v18 = vld [vmem:[%s4822_s1 + $0x1c8] ss:$12 sps:$4 sm:$0xff] (!%p188_p2)  }
   0xb   : > { %634 = vmatpush1.bf16.msra.mxu1 (!%p188_p2), %v3243_v5  ;;  %591 = vmatpush1.bf16.msra.mxu0 (!%p188_p2), %v3244_v6  ;;  %v3257_v16 = vld [vmem:[%s4822_s1 + $0x1cc] ss:$12 sps:$4 sm:$0xff] (!%p188_p2)   ;;  %v3259_v17 = vld [vmem:[%s4822_s1 + $0x1d0] ss:$12 sps:$4 sm:$0xff] (!%p188_p2)   ;;  %v3263_v20 = vld [vmem:[%s4822_s1 + $0x1e8] ss:$12 sps:$4 sm:$0xff] (!%p188_p2)  }
   0xc   : > { %635 = vmatprep.subr.bf16.mxu1 (!%p188_p2), %v3413_v1  ;;  %592 = vmatprep.subr.bf16.mxu0 (!%p188_p2), %v3245_v7  ;;  %v3261_v19 = vld [vmem:[%s4822_s1 + $0x1e4] ss:$12 sps:$4 sm:$0xff] (!%p188_p2)   ;;  %v3264_v21 = vld [vmem:[%s4822_s1 + $0x1e0] ss:$12 sps:$4 sm:$0xff] (!%p188_p2)   ;;  %v3265_v22 = vld [vmem:[%s4822_s1 + $0x1fc] ss:$12 sps:$4 sm:$0xff] (!%p188_p2)  }
   0xd   : > { %s4828_s19 = smov (!%p215_p3, %s2432_s19), 1  ;;  %v3267_v23 = vld [vmem:[%s4822_s1 + $0x200] ss:$12 sps:$4 sm:$0xff]   ;;  %v3268_v24 = vld [vmem:[%s4822_s1 + $0x1f8] ss:$12 sps:$4 sm:$0xff]   ;;  %vm2126_vm1 = vcmask 1043456  }
   0xe   : > { %s2890_s16 = sshll.u32 %s4828_s19, 5  ;;  %v3269_v25 = vld [vmem:[%s4822_s1 + $0x214] ss:$12 sps:$4 sm:$0xff]   ;;  %v3271_v26 = vld [vmem:[%s4822_s1 + $0x218] ss:$12 sps:$4 sm:$0xff]   ;;  %vm3415_vm2 = vmmov 1  }
   0xf   : > { %636 = vmatpush1.bf16.msra.mxu1 %v3247_v8  ;;  %593 = vmatpush1.bf16.msra.mxu0 %v3248_v9  ;;  %s219_s27 = scalar_lea.vmem %s4821_s0, %s2890_s16  ;;  %v3272_v27 = vld [vmem:[%s4822_s1 + $0x210] ss:$12 sps:$4 sm:$0xff]   ;;  %v3273_v29 = vld [vmem:[%s4822_s1 + $0x22c] ss:$12 sps:$4 sm:$0xff]   ;;  %v3276_v33 = vld [vmem:[%s4822_s1 + $0x228] ss:$12 sps:$4 sm:$0xff]  }
  0x10   : > { %637 = vmatprep.subr.bf16.mxu1 %v3413_v1  ;;  %594 = vmatprep.subr.bf16.mxu0 %v3249_v10  ;;  %v227_v28 = vld [vmem:[%s219_s27 + $0x8] sm:$0xff]  ;;  %v229_v30 = vld [vmem:[%s219_s27 + $0x18] sm:$0x3f]  ;;  %v3277_v36 = vld [vmem:[%s4822_s1 + $0x244] ss:$12 sps:$4 sm:$0xff]   ;;  %vm2122_vm4 = vcmask 97280  }
  0x11   : > { %v3557_v31 = vpack.c.bf16 %v229_v30, %v227_v28  ;;  %v3275_v32 = vld [vmem:[%s4822_s1 + $0x230] ss:$12 sps:$4 sm:$0xff]   ;;  %v3279_v37 = vld [vmem:[%s4822_s1 + $0x248] ss:$12 sps:$4 sm:$0xff]   ;;  %v226_v39 = vld [vmem:[%s219_s27] sm:$0xff]  ;;  %s2891_s7 = sshll.u32 %s4828_s19, 4 }
  0x12   : > { %v228_v40 = vld [vmem:[%s219_s27 + $0x10] sm:$0x3f]  ;;  %v3280_v41 = vld [vmem:[%s4822_s1 + $0x240] ss:$12 sps:$4 sm:$0xff]   ;;  %v3281_v43 = vld [vmem:[%s4822_s1 + $0x25c] ss:$12 sps:$4 sm:$0xff]   ;;  %s224_s10 = scalar_lea.vmem %s4826_s5, %s2891_s7 }
  0x13   : > { %638 = vmatpush1.bf16.msra.mxu1 %v3251_v11  ;;  %595 = vmatpush1.bf16.msra.mxu0 %v3252_v12  ;;  %v353_v34 = vshrl.u32 %v3557_v31, 16  ;;  %v355_v35 = vshll.u32 %v3557_v31, 16  ;;  %v3583_v44 = vpack.c.bf16 %v228_v40, %v226_v39  ;;  %v3283_v45 = vld [vmem:[%s4822_s1 + $0x260] ss:$12 sps:$4 sm:$0xff]   ;;  %v3284_v46 = vld [vmem:[%s4822_s1 + $0x258] ss:$12 sps:$4 sm:$0xff]   ;;  %vm3181_vm3 = vmpackc.low %vm2126_vm1, %vm3415_vm2 }
  0x14   : > { %639 = vmatprep.subr.bf16.mxu1 %v3413_v1  ;;  %596 = vmatprep.subr.bf16.mxu0 %v3253_v13  ;;  %v3285_v47 = vld [vmem:[%s4822_s1 + $0x274] ss:$12 sps:$4 sm:$0xff]   ;;  %v3287_v49 = vld [vmem:[%s4822_s1 + $0x278] ss:$12 sps:$4 sm:$0xff]   ;;  %v3288_v50 = vld [vmem:[%s4822_s1 + $0x270] ss:$12 sps:$4 sm:$0xff]  }
  0x15   : > { %v357_v38 = vrot.slane %v355_v35, 1  ;;  %v348_v48 = vshll.u32 %v3583_v44, 16  ;;  %v3289_v51 = vld [vmem:[%s4822_s1 + $0x28c] ss:$12 sps:$4 sm:$0xff]   ;;  %v346_v52 = vshrl.u32 %v3583_v44, 16  ;;  %vm2375_vm5 = vcmask 258048  }
  0x16   : > { %v3291_v54 = vld [vmem:[%s4822_s1 + $0x290] ss:$12 sps:$4 sm:$0xff]   ;;  %v3292_v55 = vld [vmem:[%s4822_s1 + $0x288] ss:$12 sps:$4 sm:$0xff]   ;;  %v3293_v59 = vld [vmem:[%s4822_s1] ss:$12 sps:$4 sm:$0xff]  }
  0x17   : > { %640 = vmatpush1.bf16.msra.mxu1 %v3255_v14  ;;  %597 = vmatpush1.bf16.msra.mxu0 %v3256_v15  ;;  %v358_v42 = vor.u32 %v357_v38, %v353_v34  ;;  %v350_v53 = vrot.slane %v348_v48, 1  ;;  %v3295_v56 = vld [vmem:[%s4822_s1 + $0x4] ss:$12 sps:$4 sm:$0xff]   ;;  %v3296_v58 = vld [vmem:[%s4822_s1 + $0x8] ss:$12 sps:$4 sm:$0xff]  }
  0x18   : > { %641 = vmatprep.subr.bf16.mxu1 %v3413_v1  ;;  %598 = vmatprep.subr.bf16.mxu0 %v3257_v16  ;;  %v3299_v60 = vld [vmem:[%s4822_s1 + $0x1c] ss:$12 sps:$4 sm:$0xff]   ;;  %v3300_v61 = vld [vmem:[%s4822_s1 + $0x20] ss:$12 sps:$4 sm:$0xff]   ;;  %v3297_v62 = vld [vmem:[%s4822_s1 + $0x18] ss:$12 sps:$4 sm:$0xff]  }
  0x19   : > { %2540 = vmatprep.mubr.msk.bf16.mxu1 %vm584_vm0, %v358_v42  ;;  %2539 = vmatprep.mubr.msk.bf16.mxu0 %vm584_vm0, %v358_v42  ;;  %v351_v57 = vor.u32 %v350_v53, %v346_v52  ;;  %v3303_v63 = vld [vmem:[%s4822_s1 + $0x34] ss:$12 sps:$4 sm:$0xff]   ;;  %v3304_v0 = vld [vmem:[%s4822_s1 + $0x38] ss:$12 sps:$4 sm:$0xff]   ;;  %v3301_v2 = vld [vmem:[%s4822_s1 + $0x30] ss:$12 sps:$4 sm:$0xff]  }
  0x1a   : > { %v3307_v3 = vld [vmem:[%s4822_s1 + $0x4c] ss:$12 sps:$4 sm:$0xff]   ;;  %v3308_v4 = vld [vmem:[%s4822_s1 + $0x50] ss:$12 sps:$4 sm:$0xff]   ;;  %v3305_v5 = vld [vmem:[%s4822_s1 + $0x48] ss:$12 sps:$4 sm:$0xff]  }
  0x1b   : > { %642 = vmatpush1.bf16.msra.mxu1 %v3259_v17  ;;  %599 = vmatpush1.bf16.msra.mxu0 %v3260_v18  ;;  %v3311_v6 = vld [vmem:[%s4822_s1 + $0x64] ss:$12 sps:$4 sm:$0xff]   ;;  %v3312_v7 = vld [vmem:[%s4822_s1 + $0x68] ss:$12 sps:$4 sm:$0xff]   ;;  %v3309_v8 = vld [vmem:[%s4822_s1 + $0x60] ss:$12 sps:$4 sm:$0xff]  }
  0x1c   : > { %643 = vmatprep.subr.bf16.mxu1 %v3413_v1  ;;  %600 = vmatprep.subr.bf16.mxu0 %v3261_v19  ;;  %v3315_v9 = vld [vmem:[%s4822_s1 + $0x7c] ss:$12 sps:$4 sm:$0xff]   ;;  %v3316_v10 = vld [vmem:[%s4822_s1 + $0x80] ss:$12 sps:$4 sm:$0xff]   ;;  %v3313_v11 = vld [vmem:[%s4822_s1 + $0x78] ss:$12 sps:$4 sm:$0xff]  }
  0x1d   : > { %v3319_v12 = vld [vmem:[%s4822_s1 + $0x94] ss:$12 sps:$4 sm:$0xff]   ;;  %v3320_v13 = vld [vmem:[%s4822_s1 + $0x98] ss:$12 sps:$4 sm:$0xff]   ;;  %v3317_v14 = vld [vmem:[%s4822_s1 + $0x90] ss:$12 sps:$4 sm:$0xff]  }
  0x1e   : > { %v3323_v15 = vld [vmem:[%s4822_s1 + $0xac] ss:$12 sps:$4 sm:$0xff]   ;;  %v3324_v16 = vld [vmem:[%s4822_s1 + $0xb0] ss:$12 sps:$4 sm:$0xff]   ;;  %v3321_v17 = vld [vmem:[%s4822_s1 + $0xa8] ss:$12 sps:$4 sm:$0xff]  }
  0x1f   : > { %644 = vmatpush1.bf16.msra.mxu1 %v3263_v20  ;;  %601 = vmatpush1.bf16.msra.mxu0 %v3264_v21  ;;  %v3327_v18 = vld [vmem:[%s4822_s1 + $0xc4] ss:$12 sps:$4 sm:$0xff]   ;;  %v3328_v19 = vld [vmem:[%s4822_s1 + $0xc8] ss:$12 sps:$4 sm:$0xff]   ;;  %v3325_v20 = vld [vmem:[%s4822_s1 + $0xc0] ss:$12 sps:$4 sm:$0xff]  }
  0x20   : > { %645 = vmatprep.subr.bf16.mxu1 %v3413_v1  ;;  %602 = vmatprep.subr.bf16.mxu0 %v3265_v22  ;;  %v3331_v21 = vld [vmem:[%s4822_s1 + $0xdc] ss:$12 sps:$4 sm:$0xff]   ;;  %v3332_v22 = vld [vmem:[%s4822_s1 + $0xe0] ss:$12 sps:$4 sm:$0xff]   ;;  %v3343_v30 = vld [vmem:[%s4822_s1 + $0x124] ss:$12 sps:$4 sm:$0xff]  }
  0x21   : > { %v3340_v28 = vld [vmem:[%s4822_s1 + $0x110] ss:$12 sps:$4 sm:$0xff]   ;;  %v3348_v35 = vld [vmem:[%s4822_s1 + $0x140] ss:$12 sps:$4 sm:$0xff]   ;;  %v3352_v38 = vld [vmem:[%s4822_s1 + $0x2a8] ss:$12 sps:$4 sm:$0xff]  }
  0x22   : > { %v3347_v34 = vld [vmem:[%s4822_s1 + $0x13c] ss:$12 sps:$4 sm:$0xff]   ;;  %v3349_v39 = vld [vmem:[%s4822_s1 + $0x2a0] ss:$12 sps:$4 sm:$0xff]  }
  0x23   : > { %646 = vmatpush1.bf16.msra.mxu1 %v3267_v23  ;;  %603 = vmatpush1.bf16.msra.mxu0 %v3268_v24  ;;  %v3329_v23 = vld [vmem:[%s4822_s1 + $0xd8] ss:$12 sps:$4 sm:$0xff]   ;;  %v3335_v24 = vld [vmem:[%s4822_s1 + $0xf4] ss:$12 sps:$4 sm:$0xff]   ;;  %v3355_v40 = vld [vmem:[%s4822_s1 + $0x2bc] ss:$12 sps:$4 sm:$0xff]  }
  0x24   : > { %647 = vmatprep.subr.bf16.mxu1 %v3413_v1  ;;  %604 = vmatprep.subr.bf16.mxu0 %v3269_v25  ;;  %v3336_v25 = vld [vmem:[%s4822_s1 + $0xf8] ss:$12 sps:$4 sm:$0xff]   ;;  %v3356_v42 = vld [vmem:[%s4822_s1 + $0x2c0] ss:$12 sps:$4 sm:$0xff]   ;;  %v3364_v48 = vld [vmem:[%s4822_s1 + $0x2f0] ss:$12 sps:$4 sm:$0xff]  }
  0x25   : > { %v3365_v52 = vld [vmem:[%s4822_s1 + $0x300] ss:$12 sps:$4 sm:$0xff]   ;;  %v3371_v53 = vld [vmem:[%s4822_s1 + $0x31c] ss:$12 sps:$4 sm:$0xff]  }
  0x27   : > { %648 = vmatpush1.bf16.msra.mxu1 %v3271_v26  ;;  %605 = vmatpush1.bf16.msra.mxu0 %v3272_v27  ;;  %v3333_v26 = vld [vmem:[%s4822_s1 + $0xf0] ss:$12 sps:$4 sm:$0xff]   ;;  %v3339_v27 = vld [vmem:[%s4822_s1 + $0x10c] ss:$12 sps:$4 sm:$0xff]  }
  0x28   : > { %649 = vmatprep.subr.bf16.mxu1 %v3413_v1  ;;  %606 = vmatprep.subr.bf16.mxu0 %v3273_v29  ;;  %v3337_v29 = vld [vmem:[%s4822_s1 + $0x108] ss:$12 sps:$4 sm:$0xff]  }
  0x2b   : > { %650 = vmatpush1.bf16.msra.mxu1 %v3275_v32  ;;  %607 = vmatpush1.bf16.msra.mxu0 %v3276_v33  ;;  %v3344_v32 = vld [vmem:[%s4822_s1 + $0x128] ss:$12 sps:$4 sm:$0xff]   ;;  %v3341_v33 = vld [vmem:[%s4822_s1 + $0x120] ss:$12 sps:$4 sm:$0xff]  }
  0x2c   : > { %651 = vmatprep.subr.bf16.mxu1 %v3413_v1  ;;  %608 = vmatprep.subr.bf16.mxu0 %v3277_v36  ;;  %v3345_v36 = vld [vmem:[%s4822_s1 + $0x138] ss:$12 sps:$4 sm:$0xff]  }
  0x2f   : > { %652 = vmatpush1.bf16.msra.mxu1 %v3279_v37  ;;  %609 = vmatpush1.bf16.msra.mxu0 %v3280_v41  ;;  %v3351_v37 = vld [vmem:[%s4822_s1 + $0x2a4] ss:$12 sps:$4 sm:$0xff]   ;;  %v1042_v41 = vrot.slane %v3557_v31, 1 }
  0x30   : > { %653 = vmatprep.subr.bf16.mxu1 %v3413_v1  ;;  %610 = vmatprep.subr.bf16.mxu0 %v3281_v43  ;;  %v3353_v43 = vld [vmem:[%s4822_s1 + $0x2b8] ss:$12 sps:$4 sm:$0xff]  }
  0x33   : > { %654 = vmatpush1.bf16.msra.mxu1 %v3283_v45  ;;  %611 = vmatpush1.bf16.msra.mxu0 %v3284_v46  ;;  %v3360_v45 = vld [vmem:[%s4822_s1 + $0x2d8] ss:$12 sps:$4 sm:$0xff]   ;;  %v3357_v46 = vld [vmem:[%s4822_s1 + $0x2d0] ss:$12 sps:$4 sm:$0xff]  }
  0x34   : > { %655 = vmatprep.subr.bf16.mxu1 %v3413_v1  ;;  %612 = vmatprep.subr.bf16.mxu0 %v3285_v47  ;;  %v3363_v47 = vld [vmem:[%s4822_s1 + $0x2ec] ss:$12 sps:$4 sm:$0xff]  }
  0x37   : > { %656 = vmatpush1.bf16.msra.mxu1 %v3287_v49  ;;  %613 = vmatpush1.bf16.msra.mxu0 %v3288_v50  ;;  %v3361_v49 = vld [vmem:[%s4822_s1 + $0x2e8] ss:$12 sps:$4 sm:$0xff]   ;;  %v3367_v50 = vld [vmem:[%s4822_s1 + $0x304] ss:$12 sps:$4 sm:$0xff]  }
  0x38   : > { %657 = vmatprep.subr.bf16.mxu1 %v3413_v1  ;;  %614 = vmatprep.subr.bf16.mxu0 %v3289_v51  ;;  %v3368_v51 = vld [vmem:[%s4822_s1 + $0x308] ss:$12 sps:$4 sm:$0xff]  }
  0x3b   : > { %658 = vmatpush1.bf16.msra.mxu1 %v3291_v54  ;;  %615 = vmatpush1.bf16.msra.mxu0 %v3292_v55  ;;  %v3372_v54 = vld [vmem:[%s4822_s1 + $0x320] ss:$12 sps:$4 sm:$0xff]   ;;  %v3369_v55 = vld [vmem:[%s4822_s1 + $0x318] ss:$12 sps:$4 sm:$0xff]  }
  0x3c   : > { %941 = vmatprep.subr.bf16.mxu1 %v3413_v1  ;;  %898 = vmatprep.subr.bf16.mxu0 %v3295_v56  ;;  %v3375_v56 = vld [vmem:[%s4822_s1 + $0x334] ss:$12 sps:$4 sm:$0xff]  }
  0x3e   : > { %664 = vmatmul.mubr.bf16.vlgmr.msra.gmra.mrb[0].mxu1 %v351_v57  ;;  %621 = vmatmul.mubr.bf16.vlgmr.msra.gmra.mrb[0].mxu0 %v351_v57  ;;  %v3376_v57 = vld [vmem:[%s4822_s1 + $0x338] ss:$12 sps:$4 sm:$0xff]  }
  0x3f   : > { %942 = vmatpush1.bf16.msra.mxu1 %v3296_v58  ;;  %899 = vmatpush1.bf16.msra.mxu0 %v3293_v59  ;;  %v3373_v58 = vld [vmem:[%s4822_s1 + $0x330] ss:$12 sps:$4 sm:$0xff]   ;;  %v3379_v59 = vld [vmem:[%s4822_s1 + $0x34c] ss:$12 sps:$4 sm:$0xff]  }
  0x40   : > { %943 = vmatprep.subr.bf16.mxu1 %v3413_v1  ;;  %900 = vmatprep.subr.bf16.mxu0 %v3299_v60  ;;  %v3380_v60 = vld [vmem:[%s4822_s1 + $0x350] ss:$12 sps:$4 sm:$0xff]  }
  0x41   : > { %2584 = vmatprep.mubr.msk.bf16.mxu1 %vm584_vm0, %v3557_v31  ;;  %2583 = vmatprep.mubr.msk.bf16.mxu0 %vm584_vm0, %v3557_v31  ;;  %v3359_v31 = vld [vmem:[%s4822_s1 + $0x2d4] ss:$12 sps:$4 sm:$0xff]  }
  0x43   : > { %944 = vmatpush1.bf16.msra.mxu1 %v3300_v61  ;;  %901 = vmatpush1.bf16.msra.mxu0 %v3297_v62  ;;  %v3377_v61 = vld [vmem:[%s4822_s1 + $0x348] ss:$12 sps:$4 sm:$0xff]   ;;  %v3383_v62 = vld [vmem:[%s4822_s1 + $0x364] ss:$12 sps:$4 sm:$0xff]  }
  0x44   : > { %945 = vmatprep.subr.bf16.mxu1 %v3413_v1  ;;  %902 = vmatprep.subr.bf16.mxu0 %v3303_v63  ;;  %v3384_v63 = vld [vmem:[%s4822_s1 + $0x368] ss:$12 sps:$4 sm:$0xff]  }
  0x47   : > { %946 = vmatpush1.bf16.msra.mxu1 %v3304_v0  ;;  %903 = vmatpush1.bf16.msra.mxu0 %v3301_v2  ;;  %v3381_v0 = vld [vmem:[%s4822_s1 + $0x360] ss:$12 sps:$4 sm:$0xff]   ;;  %v3387_v2 = vld [vmem:[%s4822_s1 + $0x37c] ss:$12 sps:$4 sm:$0xff]  }
  0x48   : > { %947 = vmatprep.subr.bf16.mxu1 %v3413_v1  ;;  %904 = vmatprep.subr.bf16.mxu0 %v3307_v3  ;;  %v3388_v3 = vld [vmem:[%s4822_s1 + $0x380] ss:$12 sps:$4 sm:$0xff]  }
  0x4b   : > { %948 = vmatpush1.bf16.msra.mxu1 %v3308_v4  ;;  %905 = vmatpush1.bf16.msra.mxu0 %v3305_v5  ;;  %v3385_v4 = vld [vmem:[%s4822_s1 + $0x378] ss:$12 sps:$4 sm:$0xff]   ;;  %v3391_v5 = vld [vmem:[%s4822_s1 + $0x394] ss:$12 sps:$4 sm:$0xff]  }
  0x4c   : > { %949 = vmatprep.subr.bf16.mxu1 %v3413_v1  ;;  %906 = vmatprep.subr.bf16.mxu0 %v3311_v6  ;;  %v3392_v6 = vld [vmem:[%s4822_s1 + $0x398] ss:$12 sps:$4 sm:$0xff]  }
  0x4f   : > { %950 = vmatpush1.bf16.msra.mxu1 %v3312_v7  ;;  %907 = vmatpush1.bf16.msra.mxu0 %v3309_v8  ;;  %v3389_v7 = vld [vmem:[%s4822_s1 + $0x390] ss:$12 sps:$4 sm:$0xff]   ;;  %v3395_v8 = vld [vmem:[%s4822_s1 + $0x3ac] ss:$12 sps:$4 sm:$0xff]  }
  0x50   : > { %951 = vmatprep.subr.bf16.mxu1 %v3413_v1  ;;  %908 = vmatprep.subr.bf16.mxu0 %v3315_v9  ;;  %v3396_v9 = vld [vmem:[%s4822_s1 + $0x3b0] ss:$12 sps:$4 sm:$0xff]  }
  0x53   : > { %952 = vmatpush1.bf16.msra.mxu1 %v3316_v10  ;;  %909 = vmatpush1.bf16.msra.mxu0 %v3313_v11  ;;  %v3393_v10 = vld [vmem:[%s4822_s1 + $0x3a8] ss:$12 sps:$4 sm:$0xff]   ;;  %v3399_v11 = vld [vmem:[%s4822_s1 + $0x3c4] ss:$12 sps:$4 sm:$0xff]  }
  0x54   : > { %953 = vmatprep.subr.bf16.mxu1 %v3413_v1  ;;  %910 = vmatprep.subr.bf16.mxu0 %v3319_v12  ;;  %v3400_v12 = vld [vmem:[%s4822_s1 + $0x3c8] ss:$12 sps:$4 sm:$0xff]  }
  0x57   : > { %954 = vmatpush1.bf16.msra.mxu1 %v3320_v13  ;;  %911 = vmatpush1.bf16.msra.mxu0 %v3317_v14  ;;  %v3397_v13 = vld [vmem:[%s4822_s1 + $0x3c0] ss:$12 sps:$4 sm:$0xff]   ;;  %v3403_v14 = vld [vmem:[%s4822_s1 + $0x3dc] ss:$12 sps:$4 sm:$0xff]  }
  0x58   : > { %955 = vmatprep.subr.bf16.mxu1 %v3413_v1  ;;  %912 = vmatprep.subr.bf16.mxu0 %v3323_v15  ;;  %v1426_v15 = vld [vmem:[%s4823_s2 + $0x208] sm:$0xff] }
  0x5b   : > { %956 = vmatpush1.bf16.msra.mxu1 %v3324_v16  ;;  %913 = vmatpush1.bf16.msra.mxu0 %v3321_v17  ;;  %v1428_v16 = vld [vmem:[%s4823_s2 + $0x218] sm:$0xff]  ;;  %v1362_v17 = vld [vmem:[%s4823_s2 + $0x8] sm:$0xff] }
  0x5c   : > { %957 = vmatprep.subr.bf16.mxu1 %v3413_v1  ;;  %914 = vmatprep.subr.bf16.mxu0 %v3327_v18  ;;  %v1364_v18 = vld [vmem:[%s4823_s2 + $0x18] sm:$0xff] }
  0x5f   : > { %958 = vmatpush1.bf16.msra.mxu1 %v3328_v19  ;;  %915 = vmatpush1.bf16.msra.mxu0 %v3325_v20  ;;  %v3401_v19 = vld [vmem:[%s4822_s1 + $0x3d8] ss:$12 sps:$4 sm:$0xff]   ;;  %v3404_v20 = vld [vmem:[%s4822_s1 + $0x3e0] ss:$12 sps:$4 sm:$0xff]  }
  0x60   : > { %959 = vmatprep.subr.bf16.mxu1 %v3413_v1  ;;  %916 = vmatprep.subr.bf16.mxu0 %v3331_v21  ;;  %v1361_v21 = vld [vmem:[%s4823_s2] sm:$0xff] }
  0x63   : > { %960 = vmatpush1.bf16.msra.mxu1 %v3332_v22  ;;  %917 = vmatpush1.bf16.msra.mxu0 %v3329_v23  ;;  %v2956_v22 = vpack.c.bf16 %v1428_v16, %v1426_v15  ;;  %v1425_v23 = vld [vmem:[%s4823_s2 + $0x200] sm:$0xff]  ;;  %v1384_v15 = vld [vmem:[%s4823_s2 + $0xb8] sm:$0xff] }
  0x64   : > { %961 = vmatprep.subr.bf16.mxu1 %v3413_v1  ;;  %918 = vmatprep.subr.bf16.mxu0 %v3335_v24  ;;  %v1427_v24 = vld [vmem:[%s4823_s2 + $0x210] sm:$0xff] }
  0x67   : > { %962 = vmatpush1.bf16.msra.mxu1 %v3336_v25  ;;  %919 = vmatpush1.bf16.msra.mxu0 %v3333_v26  ;;  %v2892_v25 = vpack.c.bf16 %v1364_v18, %v1362_v17  ;;  %v1363_v26 = vld [vmem:[%s4823_s2 + $0x10] sm:$0xff]  ;;  %v1381_v18 = vld [vmem:[%s4823_s2 + $0xa0] sm:$0xff] }
  0x68   : > { %963 = vmatprep.subr.bf16.mxu1 %v3413_v1  ;;  %920 = vmatprep.subr.bf16.mxu0 %v3339_v27  ;;  %v1432_v27 = vld [vmem:[%s4823_s2 + $0x238] sm:$0xff] }
  0x6b   : > { %964 = vmatpush1.bf16.msra.mxu1 %v3340_v28  ;;  %921 = vmatpush1.bf16.msra.mxu0 %v3337_v29  ;;  %v1041_v28 = vrot.slane %v3583_v44, 1  ;;  %v1366_v29 = vld [vmem:[%s4823_s2 + $0x28] sm:$0xff] }
  0x6c   : > { %965 = vmatprep.subr.bf16.mxu1 %v3413_v1  ;;  %922 = vmatprep.subr.bf16.mxu0 %v3343_v30  ;;  %v1368_v30 = vld [vmem:[%s4823_s2 + $0x38] sm:$0xff] }
  0x6f   : > { %966 = vmatpush1.bf16.msra.mxu1 %v3344_v32  ;;  %923 = vmatpush1.bf16.msra.mxu0 %v3341_v33  ;;  %v2958_v32 = vpack.c.bf16 %v1427_v24, %v1425_v23  ;;  %v2894_v33 = vpack.c.bf16 %v1363_v26, %v1361_v21  ;;  %v1447_v21 = vld [vmem:[%s4823_s2 + $0x2b0] sm:$0xff]  ;;  %v1450_v24 = vld [vmem:[%s4823_s2 + $0x2c8] sm:$0xff] }
  0x70   : > { %967 = vmatprep.subr.bf16.mxu1 %v3413_v1  ;;  %924 = vmatprep.subr.bf16.mxu0 %v3347_v34  ;;  %v1365_v34 = vld [vmem:[%s4823_s2 + $0x20] sm:$0xff]  ;;  %v1383_v23 = vld [vmem:[%s4823_s2 + $0xb0] sm:$0xff]  ;;  %v1386_v26 = vld [vmem:[%s4823_s2 + $0xc8] sm:$0xff] }
  0x73   : > { %968 = vmatpush1.bf16.msra.mxu1 %v3348_v35  ;;  %925 = vmatpush1.bf16.msra.mxu0 %v3345_v36  ;;  %v1431_v36 = vld [vmem:[%s4823_s2 + $0x230] sm:$0xff] }
  0x74   : > { %1314 = vmatprep.subr.bf16.mxu1 %v3413_v1  ;;  %1271 = vmatprep.subr.bf16.mxu0 %v3351_v37  ;;  %v2896_v37 = vpack.c.bf16 %v1368_v30, %v1366_v29  ;;  %v1385_v29 = vld [vmem:[%s4823_s2 + $0xc0] sm:$0xff] }
  0x76   : > { %974 = vmatmul.mubr.bf16.vlgmr.msra.gmra.mrb[0].mxu1 %v3583_v44  ;;  %931 = vmatmul.mubr.bf16.vlgmr.msra.gmra.mrb[0].mxu0 %v3583_v44  ;;  %v1429_v44 = vld [vmem:[%s4823_s2 + $0x220] sm:$0xff] }
  0x77   : > { %1315 = vmatpush1.bf16.msra.mxu1 %v3352_v38  ;;  %1272 = vmatpush1.bf16.msra.mxu0 %v3349_v39  ;;  %v1367_v38 = vld [vmem:[%s4823_s2 + $0x30] sm:$0xff]  ;;  %v1434_v39 = vld [vmem:[%s4823_s2 + $0x248] sm:$0xff] }
  0x78   : > { %1316 = vmatprep.subr.bf16.mxu1 %v3413_v1  ;;  %1273 = vmatprep.subr.bf16.mxu0 %v3355_v40  ;;  %v1436_v40 = vld [vmem:[%s4823_s2 + $0x258] sm:$0xff] }
  0x79   : > { %2684 = vmatprep.mubr.msk.bf16.mxu1 %vm584_vm0, %v1042_v41  ;;  %2683 = vmatprep.mubr.msk.bf16.mxu0 %vm584_vm0, %v1042_v41  ;;  %v1370_v41 = vld [vmem:[%s4823_s2 + $0x48] sm:$0xff] }
  0x7b   : > { %1317 = vmatpush1.bf16.msra.mxu1 %v3356_v42  ;;  %1274 = vmatpush1.bf16.msra.mxu0 %v3353_v43  ;;  %v1372_v42 = vld [vmem:[%s4823_s2 + $0x58] sm:$0xff]  ;;  %v2962_v43 = vpack.c.bf16 %v1431_v36, %v1429_v44  ;;  %v1454_v44 = vld [vmem:[%s4823_s2 + $0x2e8] sm:$0xff] }
  0x7c   : > { %1318 = vmatprep.subr.bf16.mxu1 %v3413_v1  ;;  %1275 = vmatprep.subr.bf16.mxu0 %v3359_v31  ;;  %v2898_v31 = vpack.c.bf16 %v1367_v38, %v1365_v34  ;;  %v1456_v36 = vld [vmem:[%s4823_s2 + $0x2f8] sm:$0xff] }
  0x7d   : > { %v1392_v38 = vld [vmem:[%s4823_s2 + $0xf8] sm:$0xff] }
  0x7f   : > { %1319 = vmatpush1.bf16.msra.mxu1 %v3360_v45  ;;  %1276 = vmatpush1.bf16.msra.mxu0 %v3357_v46  ;;  %v1369_v45 = vld [vmem:[%s4823_s2 + $0x40] sm:$0xff]  ;;  %v2964_v46 = vpack.c.bf16 %v1436_v40, %v1434_v39 }
  0x80   : > { %1320 = vmatprep.subr.bf16.mxu1 %v3413_v1  ;;  %1277 = vmatprep.subr.bf16.mxu0 %v3363_v47  ;;  %v1433_v47 = vld [vmem:[%s4823_s2 + $0x240] sm:$0xff] }
  0x83   : > { %1321 = vmatpush1.bf16.msra.mxu1 %v3364_v48  ;;  %1278 = vmatpush1.bf16.msra.mxu0 %v3361_v49  ;;  %v1435_v48 = vld [vmem:[%s4823_s2 + $0x250] sm:$0xff]  ;;  %v2900_v49 = vpack.c.bf16 %v1372_v42, %v1370_v41  ;;  %v2984_v41 = vpack.c.bf16 %v1456_v36, %v1454_v44  ;;  %v1453_v42 = vld [vmem:[%s4823_s2 + $0x2e0] sm:$0xff]  ;;  %v3414_v36 = vmov 0.0  }
  0x84   : > { %1322 = vmatprep.subr.bf16.mxu1 %v3413_v1  ;;  %1279 = vmatprep.subr.bf16.mxu0 %v3367_v50  ;;  %v1371_v50 = vld [vmem:[%s4823_s2 + $0x50] sm:$0xff] }
  0x87   : > { %1323 = vmatpush1.bf16.msra.mxu1 %v3368_v51  ;;  %1280 = vmatpush1.bf16.msra.mxu0 %v3365_v52  ;;  %v1438_v51 = vld [vmem:[%s4823_s2 + $0x268] sm:$0xff]  ;;  %v1440_v52 = vld [vmem:[%s4823_s2 + $0x278] sm:$0xff] }
  0x88   : > { %1324 = vmatprep.subr.bf16.mxu1 %v3413_v1  ;;  %1281 = vmatprep.subr.bf16.mxu0 %v3371_v53  ;;  %v1374_v53 = vld [vmem:[%s4823_s2 + $0x68] sm:$0xff] }
  0x8b   : > { %1325 = vmatpush1.bf16.msra.mxu1 %v3372_v54  ;;  %1282 = vmatpush1.bf16.msra.mxu0 %v3369_v55  ;;  %v1376_v54 = vld [vmem:[%s4823_s2 + $0x78] sm:$0xff]  ;;  %v2966_v55 = vpack.c.bf16 %v1435_v48, %v1433_v47  ;;  %v1394_v47 = vld [vmem:[%s4823_s2 + $0x108] sm:$0xff] }
  0x8c   : > { %1326 = vmatprep.subr.bf16.mxu1 %v3413_v1  ;;  %1283 = vmatprep.subr.bf16.mxu0 %v3375_v56  ;;  %v2902_v56 = vpack.c.bf16 %v1371_v50, %v1369_v45  ;;  %v1389_v45 = vld [vmem:[%s4823_s2 + $0xe0] sm:$0xff]  ;;  %v1396_v48 = vld [vmem:[%s4823_s2 + $0x118] sm:$0xff] }
  0x8f   : > { %1327 = vmatpush1.bf16.msra.mxu1 %v3376_v57  ;;  %1284 = vmatpush1.bf16.msra.mxu0 %v3373_v58  ;;  %v1373_v57 = vld [vmem:[%s4823_s2 + $0x60] sm:$0xff]  ;;  %v2968_v58 = vpack.c.bf16 %v1440_v52, %v1438_v51  ;;  %v2924_v51 = vpack.c.bf16 %v1396_v48, %v1394_v47  ;;  %v2786_v48 = vld [vmem:[%s4823_s2 + $0x628] sm:$0xff] }
  0x90   : > { %1328 = vmatprep.subr.bf16.mxu1 %v3413_v1  ;;  %1285 = vmatprep.subr.bf16.mxu0 %v3379_v59  ;;  %v1437_v59 = vld [vmem:[%s4823_s2 + $0x260] sm:$0xff] }
  0x91   : > { %v1393_v52 = vld [vmem:[%s4823_s2 + $0x100] sm:$0xff] }
  0x93   : > { %1329 = vmatpush1.bf16.msra.mxu1 %v3380_v60  ;;  %1286 = vmatpush1.bf16.msra.mxu0 %v3377_v61  ;;  %v1439_v60 = vld [vmem:[%s4823_s2 + $0x270] sm:$0xff]  ;;  %v2904_v61 = vpack.c.bf16 %v1376_v54, %v1374_v53  ;;  %v1398_v54 = vld [vmem:[%s4823_s2 + $0x128] sm:$0xff] }
  0x94   : > { %1330 = vmatprep.subr.bf16.mxu1 %v3413_v1  ;;  %1287 = vmatprep.subr.bf16.mxu0 %v3383_v62  ;;  %v1375_v62 = vld [vmem:[%s4823_s2 + $0x70] sm:$0xff] }
  0x95   : > { %v1395_v53 = vld [vmem:[%s4823_s2 + $0x110] sm:$0xff] }
  0x97   : > { %1331 = vmatpush1.bf16.msra.mxu1 %v3384_v63  ;;  %1288 = vmatpush1.bf16.msra.mxu0 %v3381_v0  ;;  %v1442_v63 = vld [vmem:[%s4823_s2 + $0x288] sm:$0xff]  ;;  %v1444_v0 = vld [vmem:[%s4823_s2 + $0x298] sm:$0xff] }
  0x98   : > { %1332 = vmatprep.subr.bf16.mxu1 %v3413_v1  ;;  %1289 = vmatprep.subr.bf16.mxu0 %v3387_v2  ;;  %v1378_v2 = vld [vmem:[%s4823_s2 + $0x88] sm:$0xff] }
  0x9b   : > { %1333 = vmatpush1.bf16.msra.mxu1 %v3388_v3  ;;  %1290 = vmatpush1.bf16.msra.mxu0 %v3385_v4  ;;  %v1380_v3 = vld [vmem:[%s4823_s2 + $0x98] sm:$0xff]  ;;  %v2970_v4 = vpack.c.bf16 %v1439_v60, %v1437_v59  ;;  %v1399_v59 = vld [vmem:[%s4823_s2 + $0x130] sm:$0xff]  ;;  %v1402_v60 = vld [vmem:[%s4823_s2 + $0x148] sm:$0xff] }
  0x9c   : > { %1334 = vmatprep.subr.bf16.mxu1 %v3413_v1  ;;  %1291 = vmatprep.subr.bf16.mxu0 %v3391_v5  ;;  %v2906_v5 = vpack.c.bf16 %v1375_v62, %v1373_v57 }
  0x9f   : > { %1335 = vmatpush1.bf16.msra.mxu1 %v3392_v6  ;;  %1292 = vmatpush1.bf16.msra.mxu0 %v3389_v7  ;;  %v1377_v6 = vld [vmem:[%s4823_s2 + $0x80] sm:$0xff]  ;;  %v2972_v7 = vpack.c.bf16 %v1444_v0, %v1442_v63 }
  0xa0   : > { %1336 = vmatprep.subr.bf16.mxu1 %v3413_v1  ;;  %1293 = vmatprep.subr.bf16.mxu0 %v3395_v8  ;;  %v1441_v8 = vld [vmem:[%s4823_s2 + $0x280] sm:$0xff] }
  0xa1   : > { %v1401_v0 = vld [vmem:[%s4823_s2 + $0x140] sm:$0xff] }
  0xa3   : > { %1337 = vmatpush1.bf16.msra.mxu1 %v3396_v9  ;;  %1294 = vmatpush1.bf16.msra.mxu0 %v3393_v10  ;;  %v1443_v9 = vld [vmem:[%s4823_s2 + $0x290] sm:$0xff]  ;;  %v2908_v10 = vpack.c.bf16 %v1380_v3, %v1378_v2  ;;  %v1406_v3 = vld [vmem:[%s4823_s2 + $0x168] sm:$0xff] }
  0xa4   : > { %1338 = vmatprep.subr.bf16.mxu1 %v3413_v1  ;;  %1295 = vmatprep.subr.bf16.mxu0 %v3399_v11  ;;  %v1379_v11 = vld [vmem:[%s4823_s2 + $0x90] sm:$0xff]  ;;  %v2974_v16 = vpack.c.bf16 %v1443_v9, %v1441_v8  ;;  %v1410_v9 = vld [vmem:[%s4823_s2 + $0x188] sm:$0xff] }
  0xa5   : > { %v2910_v17 = vpack.c.bf16 %v1379_v11, %v1377_v6  ;;  %v1403_v2 = vld [vmem:[%s4823_s2 + $0x150] sm:$0xff] }
  0xa6   : > { %v1407_v8 = vld [vmem:[%s4823_s2 + $0x170] sm:$0xff] }
  0xa7   : > { %1339 = vmatpush1.bf16.msra.mxu1 %v3400_v12  ;;  %1296 = vmatpush1.bf16.msra.mxu0 %v3397_v13  ;;  %v1446_v12 = vld [vmem:[%s4823_s2 + $0x2a8] sm:$0xff]  ;;  %v1448_v13 = vld [vmem:[%s4823_s2 + $0x2b8] sm:$0xff] }
  0xa8   : > { %1340 = vmatprep.subr.bf16.mxu1 %v3413_v1  ;;  %1297 = vmatprep.subr.bf16.mxu0 %v3403_v14  ;;  %v1430_v1 = vld [vmem:[%s4823_s2 + $0x228] sm:$0xff] }
  0xa9   : > { %v2960_v35 = vpack.c.bf16 %v1432_v27, %v1430_v1  ;;  %v1382_v14 = vld [vmem:[%s4823_s2 + $0xa8] sm:$0xff]  ;;  %v1388_v1 = vld [vmem:[%s4823_s2 + $0xd8] sm:$0xff] }
  0xaa   : > { %v2916_v34 = vpack.c.bf16 %v1388_v1, %v1386_v26  ;;  %v1419_v26 = vld [vmem:[%s4823_s2 + $0x1d0] sm:$0xff]  ;;  %v1422_v1 = vld [vmem:[%s4823_s2 + $0x1e8] sm:$0xff] }
  0xab   : > { %1341 = vmatpush1.bf16.msra.mxu1 %v3404_v20  ;;  %1298 = vmatpush1.bf16.msra.mxu0 %v3401_v19  ;;  %v2976_v19 = vpack.c.bf16 %v1448_v13, %v1446_v12  ;;  %v1445_v20 = vld [vmem:[%s4823_s2 + $0x2a0] sm:$0xff] }
  0xac   : > { %2957 = vmatprep.subr.bf16.mxu1 %v2956_v22  ;;  %2893 = vmatprep.subr.bf16.mxu0 %v2892_v25  ;;  %v2912_v22 = vpack.c.bf16 %v1384_v15, %v1382_v14  ;;  %v1452_v25 = vld [vmem:[%s4823_s2 + $0x2d8] sm:$0xff]  ;;  %v2978_v27 = vpack.c.bf16 %v1447_v21, %v1445_v20  ;;  %v1409_v13 = vld [vmem:[%s4823_s2 + $0x180] sm:$0xff]  ;;  %v1411_v14 = vld [vmem:[%s4823_s2 + $0x190] sm:$0xff] }
  0xad   : > { %v2980_v30 = vpack.c.bf16 %v1452_v25, %v1450_v24  ;;  %v1414_v15 = vld [vmem:[%s4823_s2 + $0x1a8] sm:$0xff]  ;;  %v1415_v20 = vld [vmem:[%s4823_s2 + $0x1b0] sm:$0xff]  ;;  %v1417_v25 = vld [vmem:[%s4823_s2 + $0x1c0] sm:$0xff] }
  0xae   : > { %1347 = vmatmul.mubr.bf16.vlgmr.msra.gmra.mrb[0].mxu1 %v1041_v28  ;;  %1304 = vmatmul.mubr.bf16.vlgmr.msra.gmra.mrb[0].mxu0 %v1041_v28  ;;  %v2914_v28 = vpack.c.bf16 %v1383_v23, %v1381_v18  ;;  %v1418_v21 = vld [vmem:[%s4823_s2 + $0x1c8] sm:$0xff] }
  0xaf   : > { %2959 = vmatpush1.bf16.msra.mxu1 %v2958_v32  ;;  %2895 = vmatpush1.bf16.msra.mxu0 %v2894_v33  ;;  %v1449_v32 = vld [vmem:[%s4823_s2 + $0x2c0] sm:$0xff]  ;;  %v1451_v33 = vld [vmem:[%s4823_s2 + $0x2d0] sm:$0xff] }
  0xb0   : > { %2961 = vmatprep.subr.bf16.mxu1 %v2960_v35  ;;  %2897 = vmatprep.subr.bf16.mxu0 %v2896_v37  ;;  %v1387_v35 = vld [vmem:[%s4823_s2 + $0xd0] sm:$0xff]  ;;  %v1390_v37 = vld [vmem:[%s4823_s2 + $0xe8] sm:$0xff]  ;;  %v2982_v39 = vpack.c.bf16 %v1451_v33, %v1449_v32 }
  0xb1   : > { %v2918_v40 = vpack.c.bf16 %v1387_v35, %v1385_v29  ;;  %v1423_v32 = vld [vmem:[%s4823_s2 + $0x1f0] sm:$0xff]  ;;  %v2686_v33 = vld [vmem:[%s4823_s2 + $0x308] sm:$0xff]  ;;  %v2688_v35 = vld [vmem:[%s4823_s2 + $0x318] sm:$0xff]  ;;  %1598 = vmatprep.mubr.f32.mxu1 %v3414_v36 }
  0xb2   : > { %v2988_v44 = vpack.c.bf16 %v2688_v35, %v2686_v33  ;;  %v2708_v35 = vld [vmem:[%s4823_s2 + $0x3b8] sm:$0xff] }
  0xb3   : > { %2963 = vmatpush1.bf16.msra.mxu1 %v2962_v43  ;;  %2899 = vmatpush1.bf16.msra.mxu0 %v2898_v31  ;;  %v1455_v43 = vld [vmem:[%s4823_s2 + $0x2f0] sm:$0xff]  ;;  %v2920_v31 = vpack.c.bf16 %v1392_v38, %v1390_v37  ;;  %v2782_v37 = vld [vmem:[%s4823_s2 + $0x608] sm:$0xff]  ;;  %v2784_v38 = vld [vmem:[%s4823_s2 + $0x618] sm:$0xff] }
  0xb4   : > { %2965 = vmatprep.subr.bf16.mxu1 %v2964_v46  ;;  %2901 = vmatprep.subr.bf16.mxu0 %v2900_v49  ;;  %v1391_v46 = vld [vmem:[%s4823_s2 + $0xf0] sm:$0xff]  ;;  %v2986_v49 = vpack.c.bf16 %v1455_v43, %v1453_v42  ;;  %v2690_v42 = vld [vmem:[%s4823_s2 + $0x328] sm:$0xff]  ;;  %v2692_v43 = vld [vmem:[%s4823_s2 + $0x338] sm:$0xff] }
  0xb5   : > { %v2922_v50 = vpack.c.bf16 %v1391_v46, %v1389_v45  ;;  %v2781_v45 = vld [vmem:[%s4823_s2 + $0x600] sm:$0xff]  ;;  %v2783_v46 = vld [vmem:[%s4823_s2 + $0x610] sm:$0xff]  ;;  %v2992_v47 = vpack.c.bf16 %v2692_v43, %v2690_v42 }
  0xb6   : > { %v2705_v43 = vld [vmem:[%s4823_s2 + $0x3a0] sm:$0xff] }
  0xb7   : > { %2967 = vmatpush1.bf16.msra.mxu1 %v2966_v55  ;;  %2903 = vmatpush1.bf16.msra.mxu0 %v2902_v56  ;;  %v1400_v55 = vld [vmem:[%s4823_s2 + $0x138] sm:$0xff]  ;;  %v2926_v56 = vpack.c.bf16 %v1395_v53, %v1393_v52  ;;  %v2691_v52 = vld [vmem:[%s4823_s2 + $0x330] sm:$0xff] }
  0xb8   : > { %2969 = vmatprep.subr.bf16.mxu1 %v2968_v58  ;;  %2905 = vmatprep.subr.bf16.mxu0 %v2904_v61  ;;  %v2928_v57 = vpack.c.bf16 %v1400_v55, %v1398_v54  ;;  %v1397_v58 = vld [vmem:[%s4823_s2 + $0x120] sm:$0xff]  ;;  %v1404_v61 = vld [vmem:[%s4823_s2 + $0x158] sm:$0xff]  ;;  %v3086_v55 = vpack.c.bf16 %v2783_v46, %v2781_v45  ;;  %v2710_v46 = vld [vmem:[%s4823_s2 + $0x3c8] sm:$0xff] }
  0xb9   : > { %v2930_v62 = vpack.c.bf16 %v1399_v59, %v1397_v58  ;;  %v2932_v63 = vpack.c.bf16 %v1404_v61, %v1402_v60  ;;  %v2785_v61 = vld [vmem:[%s4823_s2 + $0x620] sm:$0xff] }
  0xbb   : > { %2971 = vmatpush1.bf16.msra.mxu1 %v2970_v4  ;;  %2907 = vmatpush1.bf16.msra.mxu0 %v2906_v5  ;;  %v1408_v4 = vld [vmem:[%s4823_s2 + $0x178] sm:$0xff]  ;;  %v2934_v5 = vpack.c.bf16 %v1403_v2, %v1401_v0 }
  0xbc   : > { %2973 = vmatprep.subr.bf16.mxu1 %v2972_v7  ;;  %2909 = vmatprep.subr.bf16.mxu0 %v2908_v10  ;;  %v2936_v6 = vpack.c.bf16 %v1408_v4, %v1406_v3  ;;  %v1405_v7 = vld [vmem:[%s4823_s2 + $0x160] sm:$0xff]  ;;  %v1412_v10 = vld [vmem:[%s4823_s2 + $0x198] sm:$0xff]  ;;  %v2790_v3 = vld [vmem:[%s4823_s2 + $0x648] sm:$0xff] }
  0xbd   : > { %v2938_v11 = vpack.c.bf16 %v1407_v8, %v1405_v7  ;;  %v2940_v12 = vpack.c.bf16 %v1412_v10, %v1410_v9  ;;  %v2792_v4 = vld [vmem:[%s4823_s2 + $0x658] sm:$0xff]  ;;  %v2693_v7 = vld [vmem:[%s4823_s2 + $0x340] sm:$0xff]  ;;  %v2695_v8 = vld [vmem:[%s4823_s2 + $0x350] sm:$0xff] }
  0xbe   : > { %v2698_v10 = vld [vmem:[%s4823_s2 + $0x368] sm:$0xff] }
  0xbf   : > { %2975 = vmatpush1.bf16.msra.mxu1 %v2974_v16  ;;  %2911 = vmatpush1.bf16.msra.mxu0 %v2910_v17  ;;  %v1416_v16 = vld [vmem:[%s4823_s2 + $0x1b8] sm:$0xff]  ;;  %v2942_v17 = vpack.c.bf16 %v1411_v14, %v1409_v13  ;;  %v2789_v13 = vld [vmem:[%s4823_s2 + $0x640] sm:$0xff]  ;;  %v2791_v14 = vld [vmem:[%s4823_s2 + $0x650] sm:$0xff] }
  0xc0   : > { %2977 = vmatprep.subr.bf16.mxu1 %v2976_v19  ;;  %2913 = vmatprep.subr.bf16.mxu0 %v2912_v22  ;;  %v2944_v18 = vpack.c.bf16 %v1416_v16, %v1414_v15  ;;  %v1413_v19 = vld [vmem:[%s4823_s2 + $0x1a0] sm:$0xff]  ;;  %v1420_v22 = vld [vmem:[%s4823_s2 + $0x1d8] sm:$0xff]  ;;  %v2998_v15 = vpack.c.bf16 %v2695_v8, %v2693_v7  ;;  %v2794_v16 = vld [vmem:[%s4823_s2 + $0x668] sm:$0xff] }
  0xc1   : > { %v2946_v23 = vpack.c.bf16 %v1415_v20, %v1413_v19  ;;  %v2948_v24 = vpack.c.bf16 %v1420_v22, %v1418_v21  ;;  %v2697_v19 = vld [vmem:[%s4823_s2 + $0x360] sm:$0xff]  ;;  %v2699_v20 = vld [vmem:[%s4823_s2 + $0x370] sm:$0xff]  ;;  %v3094_v21 = vpack.c.bf16 %v2791_v14, %v2789_v13  ;;  %v2702_v22 = vld [vmem:[%s4823_s2 + $0x388] sm:$0xff] }
  0xc2   : > { %v2812_v7 = vld [vmem:[%s4823_s2 + $0x6f8] sm:$0xff] }
  0xc3   : > { %2979 = vmatpush1.bf16.msra.mxu1 %v2978_v27  ;;  %2915 = vmatpush1.bf16.msra.mxu0 %v2914_v28  ;;  %v1424_v27 = vld [vmem:[%s4823_s2 + $0x1f8] sm:$0xff]  ;;  %v2950_v28 = vpack.c.bf16 %v1419_v26, %v1417_v25  ;;  %v2793_v25 = vld [vmem:[%s4823_s2 + $0x660] sm:$0xff]  ;;  %v2795_v26 = vld [vmem:[%s4823_s2 + $0x670] sm:$0xff] }
  0xc4   : > { %2981 = vmatprep.subr.bf16.mxu1 %v2980_v30  ;;  %2917 = vmatprep.subr.bf16.mxu0 %v2916_v34  ;;  %v2952_v29 = vpack.c.bf16 %v1424_v27, %v1422_v1  ;;  %v1421_v30 = vld [vmem:[%s4823_s2 + $0x1e0] sm:$0xff]  ;;  %v3002_v1 = vpack.c.bf16 %v2699_v20, %v2697_v19  ;;  %v2798_v27 = vld [vmem:[%s4823_s2 + $0x688] sm:$0xff]  ;;  %v3098_v33 = vpack.c.bf16 %v2795_v26, %v2793_v25  ;;  %v2720_v13 = vld [vmem:[%s4823_s2 + $0x418] sm:$0xff] }
  0xc5   : > { %v2954_v34 = vpack.c.bf16 %v1423_v32, %v1421_v30  ;;  %v2701_v30 = vld [vmem:[%s4823_s2 + $0x380] sm:$0xff]  ;;  %v2703_v32 = vld [vmem:[%s4823_s2 + $0x390] sm:$0xff]  ;;  %v2816_v19 = vld [vmem:[%s4823_s2 + $0x718] sm:$0xff] }
  0xc6   : > { %v2724_v25 = vld [vmem:[%s4823_s2 + $0x438] sm:$0xff] }
  0xc7   : > { %2983 = vmatpush1.bf16.msra.mxu1 %v2982_v39  ;;  %2919 = vmatpush1.bf16.msra.mxu0 %v2918_v40  ;;  %v3084_v39 = vpack.c.bf16 %v2784_v38, %v2782_v37  ;;  %v2685_v40 = vld [vmem:[%s4823_s2 + $0x300] sm:$0xff]  ;;  %v2799_v38 = vld [vmem:[%s4823_s2 + $0x690] sm:$0xff] }
  0xc8   : > { %2985 = vmatprep.subr.bf16.mxu1 %v2984_v41  ;;  %2921 = vmatprep.subr.bf16.mxu0 %v2920_v31  ;;  %v2687_v41 = vld [vmem:[%s4823_s2 + $0x310] sm:$0xff]  ;;  %v2797_v37 = vld [vmem:[%s4823_s2 + $0x680] sm:$0xff] }
  0xc9   : > { %v2990_v31 = vpack.c.bf16 %v2687_v41, %v2685_v40  ;;  %v2802_v40 = vld [vmem:[%s4823_s2 + $0x6a8] sm:$0xff]  ;;  %v2804_v41 = vld [vmem:[%s4823_s2 + $0x6b8] sm:$0xff]  ;;  %v3102_v45 = vpack.c.bf16 %v2799_v38, %v2797_v37 }
  0xca   : > { %v2728_v37 = vld [vmem:[%s4823_s2 + $0x458] sm:$0xff] }
  0xcb   : > { %2987 = vmatpush1.bf16.msra.mxu1 %v2986_v49  ;;  %2923 = vmatpush1.bf16.msra.mxu0 %v2922_v50  ;;  %v2788_v49 = vld [vmem:[%s4823_s2 + $0x638] sm:$0xff] }
  0xcc   : > { %2925 = vmatprep.subr.bf16.mxu0 %v2924_v51  ;;  %2989 = vmatprep.subr.bf16.mxu1 %v2988_v44  ;;  %v2689_v51 = vld [vmem:[%s4823_s2 + $0x320] sm:$0xff]  ;;  %v3088_v60 = vpack.c.bf16 %v2788_v49, %v2786_v48  ;;  %v3104_v48 = vpack.c.bf16 %v2804_v41, %v2802_v40  ;;  %v2819_v40 = vld [vmem:[%s4823_s2 + $0x730] sm:$0xff] }
  0xcd   : > { %v2994_v2 = vpack.c.bf16 %v2691_v52, %v2689_v51  ;;  %v2801_v49 = vld [vmem:[%s4823_s2 + $0x6a0] sm:$0xff]  ;;  %v2803_v51 = vld [vmem:[%s4823_s2 + $0x6b0] sm:$0xff] }
  0xcf   : > { %2927 = vmatpush1.bf16.msra.mxu0 %v2926_v56  ;;  %v2694_v56 = vld [vmem:[%s4823_s2 + $0x348] sm:$0xff] }
  0xd0   : > { %2929 = vmatprep.subr.bf16.mxu0 %v2928_v57  ;;  %v2696_v57 = vld [vmem:[%s4823_s2 + $0x358] sm:$0xff] }
  0xd3   : > { %2931 = vmatpush1.bf16.msra.mxu0 %v2930_v62  ;;  %v2787_v62 = vld [vmem:[%s4823_s2 + $0x630] sm:$0xff] }
  0xd4   : > { %2933 = vmatprep.subr.bf16.mxu0 %v2932_v63  ;;  %v3090_v9 = vpack.c.bf16 %v2787_v62, %v2785_v61  ;;  %v2714_v61 = vld [vmem:[%s4823_s2 + $0x3e8] sm:$0xff]  ;;  %v2716_v62 = vld [vmem:[%s4823_s2 + $0x3f8] sm:$0xff] }
  0xd5   : > { %v3016_v8 = vpack.c.bf16 %v2716_v62, %v2714_v61  ;;  %v2731_v61 = vld [vmem:[%s4823_s2 + $0x470] sm:$0xff] }
  0xd7   : > { %2935 = vmatpush1.bf16.msra.mxu0 %v2934_v5 }
  0xd8   : > { %2937 = vmatprep.subr.bf16.mxu0 %v2936_v6  ;;  %v2996_v6 = vpack.c.bf16 %v2696_v57, %v2694_v56  ;;  %v2709_v57 = vld [vmem:[%s4823_s2 + $0x3c0] sm:$0xff] }
  0xdb   : > { %2939 = vmatpush1.bf16.msra.mxu0 %v2938_v11  ;;  %v2700_v11 = vld [vmem:[%s4823_s2 + $0x378] sm:$0xff] }
  0xdc   : > { %2941 = vmatprep.subr.bf16.mxu0 %v2940_v12  ;;  %v3092_v12 = vpack.c.bf16 %v2792_v4, %v2790_v3  ;;  %v2807_v3 = vld [vmem:[%s4823_s2 + $0x6d0] sm:$0xff] }
  0xdf   : > { %2943 = vmatpush1.bf16.msra.mxu0 %v2942_v17  ;;  %v2796_v17 = vld [vmem:[%s4823_s2 + $0x678] sm:$0xff] }
  0xe0   : > { %2945 = vmatprep.subr.bf16.mxu0 %v2944_v18  ;;  %v3000_v18 = vpack.c.bf16 %v2700_v11, %v2698_v10  ;;  %v2715_v10 = vld [vmem:[%s4823_s2 + $0x3f0] sm:$0xff] }
  0xe3   : > { %2947 = vmatpush1.bf16.msra.mxu0 %v2946_v23  ;;  %v2704_v23 = vld [vmem:[%s4823_s2 + $0x398] sm:$0xff] }
  0xe4   : > { %2949 = vmatprep.subr.bf16.mxu0 %v2948_v24  ;;  %v3096_v24 = vpack.c.bf16 %v2796_v17, %v2794_v16  ;;  %v2811_v16 = vld [vmem:[%s4823_s2 + $0x6f0] sm:$0xff] }
  0xe7   : > { %2951 = vmatpush1.bf16.msra.mxu0 %v2950_v28  ;;  %v2800_v28 = vld [vmem:[%s4823_s2 + $0x698] sm:$0xff] }
  0xe8   : > { %2953 = vmatprep.subr.bf16.mxu0 %v2952_v29  ;;  %v3004_v29 = vpack.c.bf16 %v2704_v23, %v2702_v22  ;;  %v3100_v44 = vpack.c.bf16 %v2800_v28, %v2798_v27  ;;  %v2719_v22 = vld [vmem:[%s4823_s2 + $0x410] sm:$0xff] }
  0xe9   : > { %v2815_v27 = vld [vmem:[%s4823_s2 + $0x710] sm:$0xff] }
  0xeb   : > { %2955 = vmatpush1.bf16.msra.mxu0 %v2954_v34  ;;  %v2706_v34 = vld [vmem:[%s4823_s2 + $0x3a8] sm:$0xff] }
  0xec   : > { %3085 = vmatprep.subr.bf16.mxu0 %v3084_v39  ;;  %v3006_v39 = vpack.c.bf16 %v2703_v32, %v2701_v30  ;;  %v3008_v42 = vpack.c.bf16 %v2708_v35, %v2706_v34  ;;  %v2820_v30 = vld [vmem:[%s4823_s2 + $0x738] sm:$0xff]  ;;  %v2723_v34 = vld [vmem:[%s4823_s2 + $0x430] sm:$0xff] }
 0x181   : > { %v4229_v50 = vpop.f32.mrb[0].mxu1  ;;  %v4237_v53 = vpop.f32.mrb[0].mxu0 }
 0x182   : > { %v1350_v54 = vpop.f32.mrb[1].mxu1  ;;  %1599 = vmatmul.mubr.f32.vlgmr.msra.gmra.mrb[4].mxu1 %v4229_v50  ;;  %v1307_v58 = vpop.f32.mrb[1].mxu0 }
 0x183   : > { %2991 = vmatpush1.bf16.msra.mxu1 %v2990_v31  ;;  %v4246_v59 = vpop.f32.mrb[2].mxu1  ;;  %1604 = vmatprep.mubr.f32.mxu1 %v3414_v36  ;;  %v4255_v63 = vpop.f32.mrb[2].mxu0  ;;  %v2707_v31 = vld [vmem:[%s4823_s2 + $0x3b0] sm:$0xff]  ;;  %v2806_v54 = vld [vmem:[%s4823_s2 + $0x6c8] sm:$0xff] }
 0x184   : > { %v1353_v0 = vpop.f32.mrb[3].mxu1  ;;  %1521 = vmatprep.mubr.f32.mxu0 %v1307_v58  ;;  %2993 = vmatprep.subr.bf16.mxu1 %v2992_v47  ;;  %v4263_v5 = vpop.f32.mrb[3].mxu0  ;;  %v2712_v47 = vld [vmem:[%s4823_s2 + $0x3d8] sm:$0xff]  ;;  %v3010_v52 = vpack.c.bf16 %v2707_v31, %v2705_v43 }
 0x185   : > { %1522 = vmatmul.mubr.f32.vlgmr.msra.gmra.mrb[4].mxu0 %v4237_v53  ;;  %v3012_v56 = vpack.c.bf16 %v2712_v47, %v2710_v46  ;;  %v2824_v43 = vld [vmem:[%s4823_s2 + $0x758] sm:$0xff]  ;;  %v2727_v46 = vld [vmem:[%s4823_s2 + $0x450] sm:$0xff] }
 0x186   : > { %3087 = vmatpush1.bf16.msra.mxu0 %v3086_v55  ;;  %1527 = vmatprep.mubr.f32.mxu0 %v4263_v5  ;;  %v2808_v55 = vld [vmem:[%s4823_s2 + $0x6d8] sm:$0xff] }
 0x187   : > { %1605 = vmatmul.mubr.f32.gmra.mrb[6].mxu1 %v4246_v59  ;;  %3089 = vmatprep.subr.bf16.mxu0 %v3088_v60  ;;  %v3106_v60 = vpack.c.bf16 %v2803_v51, %v2801_v49  ;;  %v3108_v0 = vpack.c.bf16 %v2808_v55, %v2806_v54  ;;  %v2732_v49 = vld [vmem:[%s4823_s2 + $0x478] sm:$0xff]  ;;  %v2823_v54 = vld [vmem:[%s4823_s2 + $0x750] sm:$0xff] }
 0x188   : > { %2995 = vmatpush1.bf16.msra.mxu1 %v2994_v2  ;;  %1772 = vmatprep.mubr.f32.mxu1 %v1307_v58  ;;  %v2805_v2 = vld [vmem:[%s4823_s2 + $0x6c0] sm:$0xff] }
 0x189   : > { %1528 = vmatmul.mubr.f32.gmra.mrb[6].mxu0 %v4255_v63  ;;  %2997 = vmatprep.subr.bf16.mxu1 %v2996_v6  ;;  %v2810_v6 = vld [vmem:[%s4823_s2 + $0x6e8] sm:$0xff]  ;;  %v3110_v11 = vpack.c.bf16 %v2807_v3, %v2805_v2  ;;  %v2736_v2 = vld [vmem:[%s4823_s2 + $0x498] sm:$0xff] }
 0x18a   : > { %3091 = vmatpush1.bf16.msra.mxu0 %v3090_v9  ;;  %2027 = vmatprep.mubr.f32.mxu0 %v1307_v58  ;;  %v2711_v58 = vld [vmem:[%s4823_s2 + $0x3d0] sm:$0xff]  ;;  %v2713_v9 = vld [vmem:[%s4823_s2 + $0x3e0] sm:$0xff]  ;;  %v3112_v14 = vpack.c.bf16 %v2812_v7, %v2810_v6 }
 0x18b   : > { %3093 = vmatprep.subr.bf16.mxu0 %v3092_v12  ;;  %v3014_v4 = vpack.c.bf16 %v2711_v58, %v2709_v57  ;;  %v2718_v12 = vld [vmem:[%s4823_s2 + $0x408] sm:$0xff]  ;;  %v3018_v17 = vpack.c.bf16 %v2715_v10, %v2713_v9  ;;  %v2828_v57 = vld [vmem:[%s4823_s2 + $0x778] sm:$0xff]  ;;  %v2827_v6 = vld [vmem:[%s4823_s2 + $0x770] sm:$0xff] }
 0x18c   : > { %2999 = vmatpush1.bf16.msra.mxu1 %v2998_v15  ;;  %v2809_v15 = vld [vmem:[%s4823_s2 + $0x6e0] sm:$0xff]  ;;  %v3020_v20 = vpack.c.bf16 %v2720_v13, %v2718_v12  ;;  %v2832_v9 = vld [vmem:[%s4823_s2 + $0x798] sm:$0xff]  ;;  %v2735_v12 = vld [vmem:[%s4823_s2 + $0x490] sm:$0xff] }
 0x18d   : > { %3001 = vmatprep.subr.bf16.mxu1 %v3000_v18  ;;  %v2814_v18 = vld [vmem:[%s4823_s2 + $0x708] sm:$0xff]  ;;  %v3114_v23 = vpack.c.bf16 %v2811_v16, %v2809_v15  ;;  %v2740_v15 = vld [vmem:[%s4823_s2 + $0x4b8] sm:$0xff] }
 0x18e   : > { %3095 = vmatpush1.bf16.msra.mxu0 %v3094_v21  ;;  %v2717_v21 = vld [vmem:[%s4823_s2 + $0x400] sm:$0xff]  ;;  %v3116_v26 = vpack.c.bf16 %v2816_v19, %v2814_v18  ;;  %v2831_v18 = vld [vmem:[%s4823_s2 + $0x790] sm:$0xff] }
 0x18f   : > { %3097 = vmatprep.subr.bf16.mxu0 %v3096_v24  ;;  %v2722_v24 = vld [vmem:[%s4823_s2 + $0x428] sm:$0xff]  ;;  %v3022_v28 = vpack.c.bf16 %v2719_v22, %v2717_v21  ;;  %v2836_v21 = vld [vmem:[%s4823_s2 + $0x7b8] sm:$0xff] }
 0x190   : > { %3003 = vmatpush1.bf16.msra.mxu1 %v3002_v1  ;;  %v2813_v1 = vld [vmem:[%s4823_s2 + $0x700] sm:$0xff]  ;;  %v3024_v32 = vpack.c.bf16 %v2724_v25, %v2722_v24  ;;  %v2739_v24 = vld [vmem:[%s4823_s2 + $0x4b0] sm:$0xff] }
 0x191   : > { %3005 = vmatprep.subr.bf16.mxu1 %v3004_v29  ;;  %v2818_v29 = vld [vmem:[%s4823_s2 + $0x728] sm:$0xff]  ;;  %v3118_v35 = vpack.c.bf16 %v2815_v27, %v2813_v1  ;;  %v2744_v1 = vld [vmem:[%s4823_s2 + $0x4d8] sm:$0xff] }
 0x192   : > { %3099 = vmatpush1.bf16.msra.mxu0 %v3098_v33  ;;  %v2721_v33 = vld [vmem:[%s4823_s2 + $0x420] sm:$0xff]  ;;  %v3120_v38 = vpack.c.bf16 %v2820_v30, %v2818_v29  ;;  %v2835_v29 = vld [vmem:[%s4823_s2 + $0x7b0] sm:$0xff] }
 0x193   : > { %3101 = vmatprep.subr.bf16.mxu0 %v3100_v44  ;;  %v2726_v44 = vld [vmem:[%s4823_s2 + $0x448] sm:$0xff]  ;;  %v3026_v41 = vpack.c.bf16 %v2723_v34, %v2721_v33  ;;  %v2840_v33 = vld [vmem:[%s4823_s2 + $0x7d8] sm:$0xff] }
 0x194   : > { %3007 = vmatpush1.bf16.msra.mxu1 %v3006_v39  ;;  %v2817_v39 = vld [vmem:[%s4823_s2 + $0x720] sm:$0xff]  ;;  %v3028_v31 = vpack.c.bf16 %v2728_v37, %v2726_v44  ;;  %v2743_v44 = vld [vmem:[%s4823_s2 + $0x4d0] sm:$0xff] }
 0x195   : > { %3009 = vmatprep.subr.bf16.mxu1 %v3008_v42  ;;  %v2822_v42 = vld [vmem:[%s4823_s2 + $0x748] sm:$0xff]  ;;  %v3122_v47 = vpack.c.bf16 %v2819_v40, %v2817_v39  ;;  %v2748_v39 = vld [vmem:[%s4823_s2 + $0x4f8] sm:$0xff] }
 0x196   : > { %3103 = vmatpush1.bf16.msra.mxu0 %v3102_v45  ;;  %v2725_v45 = vld [vmem:[%s4823_s2 + $0x440] sm:$0xff]  ;;  %v3124_v51 = vpack.c.bf16 %v2824_v43, %v2822_v42  ;;  %v2839_v42 = vld [vmem:[%s4823_s2 + $0x7d0] sm:$0xff] }
 0x197   : > { %3105 = vmatprep.subr.bf16.mxu0 %v3104_v48  ;;  %v2730_v48 = vld [vmem:[%s4823_s2 + $0x468] sm:$0xff]  ;;  %v3030_v55 = vpack.c.bf16 %v2727_v46, %v2725_v45  ;;  %v2844_v45 = vld [vmem:[%s4823_s2 + $0x7f8] sm:$0xff] }
 0x198   : > { %3011 = vmatpush1.bf16.msra.mxu1 %v3010_v52  ;;  %v2821_v52 = vld [vmem:[%s4823_s2 + $0x740] sm:$0xff]  ;;  %v3032_v58 = vpack.c.bf16 %v2732_v49, %v2730_v48  ;;  %v2747_v48 = vld [vmem:[%s4823_s2 + $0x4f0] sm:$0xff] }
 0x199   : > { %3013 = vmatprep.subr.bf16.mxu1 %v3012_v56  ;;  %v2826_v56 = vld [vmem:[%s4823_s2 + $0x768] sm:$0xff]  ;;  %v3126_v62 = vpack.c.bf16 %v2823_v54, %v2821_v52  ;;  %v2752_v52 = vld [vmem:[%s4823_s2 + $0x518] sm:$0xff] }
 0x19a   : > { %3107 = vmatpush1.bf16.msra.mxu0 %v3106_v60  ;;  %v2729_v60 = vld [vmem:[%s4823_s2 + $0x460] sm:$0xff]  ;;  %v3128_v3 = vpack.c.bf16 %v2828_v57, %v2826_v56  ;;  %v2843_v56 = vld [vmem:[%s4823_s2 + $0x7f0] sm:$0xff] }
 0x19b   : > { %3109 = vmatprep.subr.bf16.mxu0 %v3108_v0  ;;  %v2734_v0 = vld [vmem:[%s4823_s2 + $0x488] sm:$0xff]  ;;  %v3034_v7 = vpack.c.bf16 %v2731_v61, %v2729_v60  ;;  %v2848_v60 = vld [vmem:[%s4823_s2 + $0x818] sm:$0xff] }
 0x19c   : > { %3015 = vmatpush1.bf16.msra.mxu1 %v3014_v4  ;;  %v2825_v4 = vld [vmem:[%s4823_s2 + $0x760] sm:$0xff]  ;;  %v3036_v10 = vpack.c.bf16 %v2736_v2, %v2734_v0  ;;  %v2751_v0 = vld [vmem:[%s4823_s2 + $0x510] sm:$0xff] }
 0x19d   : > { %3017 = vmatprep.subr.bf16.mxu1 %v3016_v8  ;;  %v2830_v8 = vld [vmem:[%s4823_s2 + $0x788] sm:$0xff]  ;;  %v3130_v13 = vpack.c.bf16 %v2827_v6, %v2825_v4  ;;  %v2756_v4 = vld [vmem:[%s4823_s2 + $0x538] sm:$0xff] }
 0x19e   : > { %3111 = vmatpush1.bf16.msra.mxu0 %v3110_v11  ;;  %v2733_v11 = vld [vmem:[%s4823_s2 + $0x480] sm:$0xff]  ;;  %v3132_v16 = vpack.c.bf16 %v2832_v9, %v2830_v8  ;;  %v2847_v8 = vld [vmem:[%s4823_s2 + $0x810] sm:$0xff] }
 0x19f   : > { %3113 = vmatprep.subr.bf16.mxu0 %v3112_v14  ;;  %v2738_v14 = vld [vmem:[%s4823_s2 + $0x4a8] sm:$0xff]  ;;  %v3038_v19 = vpack.c.bf16 %v2735_v12, %v2733_v11  ;;  %v2852_v11 = vld [vmem:[%s4823_s2 + $0x838] sm:$0xff] }
 0x1a0   : > { %3019 = vmatpush1.bf16.msra.mxu1 %v3018_v17  ;;  %v2829_v17 = vld [vmem:[%s4823_s2 + $0x780] sm:$0xff]  ;;  %v3040_v22 = vpack.c.bf16 %v2740_v15, %v2738_v14  ;;  %v2755_v14 = vld [vmem:[%s4823_s2 + $0x530] sm:$0xff] }
 0x1a1   : > { %3021 = vmatprep.subr.bf16.mxu1 %v3020_v20  ;;  %v2834_v20 = vld [vmem:[%s4823_s2 + $0x7a8] sm:$0xff]  ;;  %v3134_v25 = vpack.c.bf16 %v2831_v18, %v2829_v17  ;;  %v2760_v17 = vld [vmem:[%s4823_s2 + $0x558] sm:$0xff] }
 0x1a2   : > { %3115 = vmatpush1.bf16.msra.mxu0 %v3114_v23  ;;  %v2737_v23 = vld [vmem:[%s4823_s2 + $0x4a0] sm:$0xff]  ;;  %v3136_v27 = vpack.c.bf16 %v2836_v21, %v2834_v20  ;;  %v2851_v20 = vld [vmem:[%s4823_s2 + $0x830] sm:$0xff] }
 0x1a3   : > { %3117 = vmatprep.subr.bf16.mxu0 %v3116_v26  ;;  %v2742_v26 = vld [vmem:[%s4823_s2 + $0x4c8] sm:$0xff]  ;;  %v3042_v30 = vpack.c.bf16 %v2739_v24, %v2737_v23  ;;  %v2856_v23 = vld [vmem:[%s4823_s2 + $0x858] sm:$0xff] }
 0x1a4   : > { %3023 = vmatpush1.bf16.msra.mxu1 %v3022_v28  ;;  %v2833_v28 = vld [vmem:[%s4823_s2 + $0x7a0] sm:$0xff]  ;;  %v3044_v34 = vpack.c.bf16 %v2744_v1, %v2742_v26  ;;  %v2759_v26 = vld [vmem:[%s4823_s2 + $0x550] sm:$0xff] }
 0x1a5   : > { %3025 = vmatprep.subr.bf16.mxu1 %v3024_v32  ;;  %v2838_v32 = vld [vmem:[%s4823_s2 + $0x7c8] sm:$0xff]  ;;  %v3138_v37 = vpack.c.bf16 %v2835_v29, %v2833_v28  ;;  %v2853_v29 = vld [vmem:[%s4823_s2 + $0x840] sm:$0xff] }
 0x1a6   : > { %3119 = vmatpush1.bf16.msra.mxu0 %v3118_v35  ;;  %v2741_v35 = vld [vmem:[%s4823_s2 + $0x4c0] sm:$0xff]  ;;  %v3140_v40 = vpack.c.bf16 %v2840_v33, %v2838_v32  ;;  %v2858_v32 = vld [vmem:[%s4823_s2 + $0x868] sm:$0xff]  ;;  %v2860_v33 = vld [vmem:[%s4823_s2 + $0x878] sm:$0xff] }
 0x1a7   : > { %3121 = vmatprep.subr.bf16.mxu0 %v3120_v38  ;;  %v2746_v38 = vld [vmem:[%s4823_s2 + $0x4e8] sm:$0xff]  ;;  %v3046_v43 = vpack.c.bf16 %v2743_v44, %v2741_v35  ;;  %v2761_v35 = vld [vmem:[%s4823_s2 + $0x560] sm:$0xff]  ;;  %v2763_v44 = vld [vmem:[%s4823_s2 + $0x570] sm:$0xff] }
 0x1a8   : > { %3027 = vmatpush1.bf16.msra.mxu1 %v3026_v41  ;;  %v2837_v41 = vld [vmem:[%s4823_s2 + $0x7c0] sm:$0xff]  ;;  %v3048_v46 = vpack.c.bf16 %v2748_v39, %v2746_v38  ;;  %v2766_v38 = vld [vmem:[%s4823_s2 + $0x588] sm:$0xff]  ;;  %v3160_v39 = vpack.c.bf16 %v2860_v33, %v2858_v32 }
 0x1a9   : > { %3029 = vmatprep.subr.bf16.mxu1 %v3028_v31  ;;  %v2842_v31 = vld [vmem:[%s4823_s2 + $0x7e8] sm:$0xff]  ;;  %v3142_v49 = vpack.c.bf16 %v2839_v42, %v2837_v41  ;;  %v2859_v41 = vld [vmem:[%s4823_s2 + $0x870] sm:$0xff]  ;;  %v3066_v42 = vpack.c.bf16 %v2763_v44, %v2761_v35 }
 0x1aa   : > { %3123 = vmatpush1.bf16.msra.mxu0 %v3122_v47  ;;  %v2745_v47 = vld [vmem:[%s4823_s2 + $0x4e0] sm:$0xff]  ;;  %v3144_v54 = vpack.c.bf16 %v2844_v45, %v2842_v31  ;;  %v2864_v31 = vld [vmem:[%s4823_s2 + $0x898] sm:$0xff] }
 0x1ab   : > { %3125 = vmatprep.subr.bf16.mxu0 %v3124_v51  ;;  %v2750_v51 = vld [vmem:[%s4823_s2 + $0x508] sm:$0xff]  ;;  %v3050_v57 = vpack.c.bf16 %v2747_v48, %v2745_v47  ;;  %v2767_v47 = vld [vmem:[%s4823_s2 + $0x590] sm:$0xff] }
 0x1ac   : > { %3031 = vmatpush1.bf16.msra.mxu1 %v3030_v55  ;;  %v2841_v55 = vld [vmem:[%s4823_s2 + $0x7e0] sm:$0xff]  ;;  %v3052_v61 = vpack.c.bf16 %v2752_v52, %v2750_v51  ;;  %v2772_v51 = vld [vmem:[%s4823_s2 + $0x5b8] sm:$0xff] }
 0x1ad   : > { %3033 = vmatprep.subr.bf16.mxu1 %v3032_v58  ;;  %v2846_v58 = vld [vmem:[%s4823_s2 + $0x808] sm:$0xff]  ;;  %v3146_v2 = vpack.c.bf16 %v2843_v56, %v2841_v55  ;;  %v2863_v55 = vld [vmem:[%s4823_s2 + $0x890] sm:$0xff] }
 0x1ae   : > { %3127 = vmatpush1.bf16.msra.mxu0 %v3126_v62  ;;  %v2749_v62 = vld [vmem:[%s4823_s2 + $0x500] sm:$0xff]  ;;  %v3148_v6 = vpack.c.bf16 %v2848_v60, %v2846_v58  ;;  %v2868_v58 = vld [vmem:[%s4823_s2 + $0x8b8] sm:$0xff] }
 0x1af   : > { %3129 = vmatprep.subr.bf16.mxu0 %v3128_v3  ;;  %v2754_v3 = vld [vmem:[%s4823_s2 + $0x528] sm:$0xff]  ;;  %v3054_v9 = vpack.c.bf16 %v2751_v0, %v2749_v62  ;;  %v2771_v62 = vld [vmem:[%s4823_s2 + $0x5b0] sm:$0xff] }
 0x1b0   : > { %3035 = vmatpush1.bf16.msra.mxu1 %v3034_v7  ;;  %v2845_v7 = vld [vmem:[%s4823_s2 + $0x800] sm:$0xff]  ;;  %v3056_v12 = vpack.c.bf16 %v2756_v4, %v2754_v3  ;;  %v2776_v3 = vld [vmem:[%s4823_s2 + $0x5d8] sm:$0xff] }
 0x1b1   : > { %3037 = vmatprep.subr.bf16.mxu1 %v3036_v10  ;;  %v2850_v10 = vld [vmem:[%s4823_s2 + $0x828] sm:$0xff]  ;;  %v3150_v15 = vpack.c.bf16 %v2847_v8, %v2845_v7  ;;  %v2867_v7 = vld [vmem:[%s4823_s2 + $0x8b0] sm:$0xff] }
 0x1b2   : > { %3131 = vmatpush1.bf16.msra.mxu0 %v3130_v13  ;;  %v2753_v13 = vld [vmem:[%s4823_s2 + $0x520] sm:$0xff]  ;;  %v3152_v18 = vpack.c.bf16 %v2852_v11, %v2850_v10  ;;  %v2872_v10 = vld [vmem:[%s4823_s2 + $0x8d8] sm:$0xff] }
 0x1b3   : > { %3133 = vmatprep.subr.bf16.mxu0 %v3132_v16  ;;  %v2758_v16 = vld [vmem:[%s4823_s2 + $0x548] sm:$0xff]  ;;  %v3058_v21 = vpack.c.bf16 %v2755_v14, %v2753_v13  ;;  %v2775_v13 = vld [vmem:[%s4823_s2 + $0x5d0] sm:$0xff] }
 0x1b4   : > { %3039 = vmatpush1.bf16.msra.mxu1 %v3038_v19  ;;  %v2849_v19 = vld [vmem:[%s4823_s2 + $0x820] sm:$0xff]  ;;  %v3060_v24 = vpack.c.bf16 %v2760_v17, %v2758_v16  ;;  %v2780_v16 = vld [vmem:[%s4823_s2 + $0x5f8] sm:$0xff] }
 0x1b5   : > { %3041 = vmatprep.subr.bf16.mxu1 %v3040_v22  ;;  %v2854_v22 = vld [vmem:[%s4823_s2 + $0x848] sm:$0xff]  ;;  %v3154_v1 = vpack.c.bf16 %v2851_v20, %v2849_v19  ;;  %v2871_v19 = vld [vmem:[%s4823_s2 + $0x8d0] sm:$0xff] }
 0x1b6   : > { %3135 = vmatpush1.bf16.msra.mxu0 %v3134_v25  ;;  %v2757_v25 = vld [vmem:[%s4823_s2 + $0x540] sm:$0xff]  ;;  %v3156_v28 = vpack.c.bf16 %v2856_v23, %v2854_v22  ;;  %v2876_v22 = vld [vmem:[%s4823_s2 + $0x8f8] sm:$0xff] }
 0x1b7   : > { %3137 = vmatprep.subr.bf16.mxu0 %v3136_v27  ;;  %v2762_v27 = vld [vmem:[%s4823_s2 + $0x568] sm:$0xff] }
 0x1b8   : > { %3043 = vmatpush1.bf16.msra.mxu1 %v3042_v30  ;;  %v3062_v30 = vpack.c.bf16 %v2759_v26, %v2757_v25  ;;  %v2779_v25 = vld [vmem:[%s4823_s2 + $0x5f0] sm:$0xff] }
 0x1b9   : > { %3045 = vmatprep.subr.bf16.mxu1 %v3044_v34 }
 0x1ba   : > { %3139 = vmatpush1.bf16.msra.mxu0 %v3138_v37 }
 0x1bb   : > { %3141 = vmatprep.subr.bf16.mxu0 %v3140_v40  ;;  %v2857_v40 = vld [vmem:[%s4823_s2 + $0x860] sm:$0xff] }
 0x1bc   : > { %3047 = vmatpush1.bf16.msra.mxu1 %v3046_v43  ;;  %v2862_v43 = vld [vmem:[%s4823_s2 + $0x888] sm:$0xff]  ;;  %v3162_v48 = vpack.c.bf16 %v2859_v41, %v2857_v40 }
 0x1bd   : > { %3049 = vmatprep.subr.bf16.mxu1 %v3048_v46  ;;  %v2765_v46 = vld [vmem:[%s4823_s2 + $0x580] sm:$0xff]  ;;  %v3164_v52 = vpack.c.bf16 %v2864_v31, %v2862_v43 }
 0x1be   : > { %3143 = vmatpush1.bf16.msra.mxu0 %v3142_v49  ;;  %v2770_v49 = vld [vmem:[%s4823_s2 + $0x5a8] sm:$0xff]  ;;  %v3070_v56 = vpack.c.bf16 %v2767_v47, %v2765_v46 }
 0x1bf   : > { %3145 = vmatprep.subr.bf16.mxu0 %v3144_v54  ;;  %v2861_v54 = vld [vmem:[%s4823_s2 + $0x880] sm:$0xff]  ;;  %v3072_v60 = vpack.c.bf16 %v2772_v51, %v2770_v49 }
 0x1c0   : > { %3051 = vmatpush1.bf16.msra.mxu1 %v3050_v57  ;;  %v2866_v57 = vld [vmem:[%s4823_s2 + $0x8a8] sm:$0xff]  ;;  %v3166_v0 = vpack.c.bf16 %v2863_v55, %v2861_v54 }
 0x1c1   : > { %3053 = vmatprep.subr.bf16.mxu1 %v3052_v61  ;;  %v2769_v61 = vld [vmem:[%s4823_s2 + $0x5a0] sm:$0xff]  ;;  %v3168_v4 = vpack.c.bf16 %v2868_v58, %v2866_v57 }
 0x1c2   : > { %3147 = vmatpush1.bf16.msra.mxu0 %v3146_v2  ;;  %v2774_v2 = vld [vmem:[%s4823_s2 + $0x5c8] sm:$0xff]  ;;  %v3074_v8 = vpack.c.bf16 %v2771_v62, %v2769_v61  ;;  %v2884_v62 = vld [vmem:[%s4824_s3 + $0x10] sm:$0x1f] }
 0x1c3   : > { %1773 = vmatmul.mubr.f32.vlgmr.msra.gmra.mrb[8].mxu1 %v4237_v53  ;;  %3149 = vmatprep.subr.bf16.mxu0 %v3148_v6  ;;  %v2865_v6 = vld [vmem:[%s4823_s2 + $0x8a0] sm:$0xff]  ;;  %v3076_v11 = vpack.c.bf16 %v2776_v3, %v2774_v2  ;;  %v2880_v61 = vld [vmem:[%s4824_s3 + $0x8] sm:$0x1f] }
 0x1c4   : > { %1778 = vmatprep.mubr.f32.mxu1 %v4263_v5  ;;  %3055 = vmatpush1.bf16.msra.mxu1 %v3054_v9  ;;  %v2870_v9 = vld [vmem:[%s4823_s2 + $0x8c8] sm:$0xff]  ;;  %v3170_v14 = vpack.c.bf16 %v2867_v7, %v2865_v6 }
 0x1c5   : > { %2028 = vmatmul.mubr.f32.vlgmr.msra.gmra.mrb[8].mxu0 %v4237_v53  ;;  %3057 = vmatprep.subr.bf16.mxu1 %v3056_v12  ;;  %v2764_v53 = vld [vmem:[%s4823_s2 + $0x578] sm:$0xff]  ;;  %v2773_v12 = vld [vmem:[%s4823_s2 + $0x5c0] sm:$0xff]  ;;  %v3172_v17 = vpack.c.bf16 %v2872_v10, %v2870_v9 }
 0x1c6   : > { %2033 = vmatprep.mubr.f32.mxu0 %v4263_v5  ;;  %3151 = vmatpush1.bf16.msra.mxu0 %v3150_v15  ;;  %v2855_v5 = vld [vmem:[%s4823_s2 + $0x850] sm:$0xff]  ;;  %v3064_v34 = vpack.c.bf16 %v2764_v53, %v2762_v27  ;;  %v2778_v15 = vld [vmem:[%s4823_s2 + $0x5e8] sm:$0xff]  ;;  %v3078_v20 = vpack.c.bf16 %v2775_v13, %v2773_v12  ;;  %v2873_v27 = vld [vmem:[%s4823_s2 + $0x8e0] sm:$0xff] }
 0x1c7   : > { %1779 = vmatmul.mubr.f32.gmra.mrb[10].mxu1 %v4255_v63  ;;  %3153 = vmatprep.subr.bf16.mxu0 %v3152_v18  ;;  %v3158_v37 = vpack.c.bf16 %v2855_v5, %v2853_v29  ;;  %v2869_v18 = vld [vmem:[%s4823_s2 + $0x8c0] sm:$0xff]  ;;  %v3080_v23 = vpack.c.bf16 %v2780_v16, %v2778_v15  ;;  %v2875_v53 = vld [vmem:[%s4823_s2 + $0x8f0] sm:$0xff] }
 0x1c8   : > { %3059 = vmatpush1.bf16.msra.mxu1 %v3058_v21  ;;  %1849 = vmatprep.mubr.f32.mxu1 %v3414_v36  ;;  %v2874_v21 = vld [vmem:[%s4823_s2 + $0x8e8] sm:$0xff]  ;;  %v3174_v26 = vpack.c.bf16 %v2871_v19, %v2869_v18  ;;  %v3178_v29 = vpack.c.bf16 %v2875_v53, %v2873_v27 }
 0x1c9   : > { %2034 = vmatmul.mubr.f32.gmra.mrb[10].mxu0 %v4255_v63  ;;  %3061 = vmatprep.subr.bf16.mxu1 %v3060_v24  ;;  %v2768_v63 = vld [vmem:[%s4823_s2 + $0x598] sm:$0xff]  ;;  %v2777_v24 = vld [vmem:[%s4823_s2 + $0x5e0] sm:$0xff] }
 0x1ca   : > { %3155 = vmatpush1.bf16.msra.mxu0 %v3154_v1  ;;  %2104 = vmatprep.mubr.f32.mxu0 %v3414_v36  ;;  %v3068_v45 = vpack.c.bf16 %v2768_v63, %v2766_v38  ;;  %v3176_v1 = vpack.c.bf16 %v2876_v22, %v2874_v21 }
 0x1cb   : > { %3157 = vmatprep.subr.bf16.mxu0 %v3156_v28  ;;  %v3082_v28 = vpack.c.bf16 %v2779_v25, %v2777_v24 }
 0x1cc   : > { %3063 = vmatpush1.bf16.msra.mxu1 %v3062_v30 }
 0x1cd   : > { %3065 = vmatprep.subr.bf16.mxu1 %v3064_v34 }
 0x1ce   : > { %3159 = vmatpush1.bf16.msra.mxu0 %v3158_v37 }
 0x1cf   : > { %3161 = vmatprep.subr.bf16.mxu0 %v3160_v39 }
 0x1d0   : > { %3067 = vmatpush1.bf16.msra.mxu1 %v3066_v42 }
 0x1d1   : > { %3069 = vmatprep.subr.bf16.mxu1 %v3068_v45 }
 0x1d2   : > { %3163 = vmatpush1.bf16.msra.mxu0 %v3162_v48 }
 0x1d3   : > { %3165 = vmatprep.subr.bf16.mxu0 %v3164_v52 }
 0x1d4   : > { %3071 = vmatpush1.bf16.msra.mxu1 %v3070_v56 }
 0x1d5   : > { %3073 = vmatprep.subr.bf16.mxu1 %v3072_v60  ;;  %v2121_v60 = vld [vmem:[%s4824_s3] sm:$0x1f] }
 0x1d6   : > { %3167 = vmatpush1.bf16.msra.mxu0 %v3166_v0  ;;  %v2362_v0 = vlaneseq }
 0x1d7   : > { %3169 = vmatprep.subr.bf16.mxu0 %v3168_v4 }
 0x1d8   : > { %3075 = vmatpush1.bf16.msra.mxu1 %v3074_v8  ;;  %v2363_v2 = vshrl.u32 %v2362_v0, 7  ;;  %v2360_v8 = vld [vmem:[%s4825_s4] sm:$0x3] }
 0x1d9   : > { %3077 = vmatprep.subr.bf16.mxu1 %v3076_v11 }
 0x1da   : > { %3171 = vmatpush1.bf16.msra.mxu0 %v3170_v14  ;;  %v2364_v6 = vsub.s32 0, %v2363_v2  ;;  %v2368_v9 = vsub.s32 1, %v2363_v2 }
 0x1db   : > { %3173 = vmatprep.subr.bf16.mxu0 %v3172_v17 }
 0x1dc   : > { %3079 = vmatpush1.bf16.msra.mxu1 %v3078_v20  ;;  %v2369_v14 = vrot.slane %v2360_v8, %v2368_v9 }
 0x1dd   : > { %3081 = vmatprep.subr.bf16.mxu1 %v3080_v23 }
 0x1de   : > { %3175 = vmatpush1.bf16.msra.mxu0 %v3174_v26 }
 0x1df   : > { %3177 = vmatprep.subr.bf16.mxu0 %v3176_v1 }
 0x1e0   : > { %3083 = vmatpush1.bf16.msra.mxu1 %v3082_v28 }
 0x1e2   : > { %3179 = vmatpush1.bf16.msra.mxu0 %v3178_v29 }
 0x1e3   : > { %1850 = vmatmul.mubr.f32.vlgmr.msra.gmra.mrb[8].mxu1 %v4229_v50 }
 0x1e4   : > { %1855 = vmatprep.mubr.f32.mxu1 %v3414_v36 }
 0x1e5   : > { %2105 = vmatmul.mubr.f32.vlgmr.msra.gmra.mrb[8].mxu0 %v4229_v50 }
 0x1e6   : > { %2110 = vmatprep.mubr.f32.mxu0 %v3414_v36 }
 0x1e7   : > { %1856 = vmatmul.mubr.f32.gmra.mrb[10].mxu1 %v4246_v59 }
 0x1e8   : > { %2197 = vmatprep.mubr.f32.mxu1 %v3414_v36 }
 0x1e9   : > { %2111 = vmatmul.mubr.f32.gmra.mrb[10].mxu0 %v4246_v59 }
 0x255   : > { %v1600_v5 = vpop.f32.mrb[4].mxu1 }
 0x256   : > { %v1602_v30 = vpop.f32.mrb[5].mxu1 }
 0x258   : > { %v1523_v32 = vpop.f32.mrb[4].mxu0 }
 0x259   : > { %v1601_v33 = vadd.f32 %v1600_v5, %v1523_v32  ;;  %v1525_v34 = vpop.f32.mrb[5].mxu0 }
 0x25a   : > { %v1603_v35 = vadd.f32 %v1602_v30, %v1525_v34  ;;  %v1606_v44 = vpop.f32.mrb[6].mxu1 }
 0x25b   : > { %v1608_v37 = vpop.f32.mrb[7].mxu1 }
 0x25c   : > { %v1529_v38 = vpop.f32.mrb[6].mxu0 }
 0x25d   : > { %v1607_v63 = vadd.f32 %v1606_v44, %v1529_v38  ;;  %v1531_v39 = vpop.f32.mrb[7].mxu0 }
 0x25e   : > { %v1609_v50 = vadd.f32 %v1608_v37, %v1531_v39 }
 0x2b6   : > { %v1851_v40 = vpop.f32.mrb[8].mxu1 }
 0x2b7   : > { %v1862_v41 = vmax.f32 %v1601_v33, %v1851_v40  ;;  %v1853_v42 = vpop.f32.mrb[9].mxu1 }
 0x2b8   : > { %v1863_v43 = vmax.f32 %v1603_v35, %v1853_v42  ;;  %v2106_v31 = vpop.f32.mrb[8].mxu0 }
 0x2b9   : > { %v2117_v45 = vmax.f32 %v1862_v41, %v2106_v31  ;;  %v2108_v46 = vpop.f32.mrb[9].mxu0 }
 0x2ba   : > { %v1857_v59 = vpop.f32.mrb[10].mxu1  ;;  %v2118_v47 = vmax.f32 %v1863_v43, %v2108_v46 }
 0x2bb   : > { %v1864_v48 = vmax.f32 %v1607_v63, %v1857_v59  ;;  %v1859_v49 = vpop.f32.mrb[11].mxu1 }
 0x2bc   : > { %v1865_v51 = vmax.f32 %v1609_v50, %v1859_v49  ;;  %v2112_v52 = vpop.f32.mrb[10].mxu0 }
 0x2bd   : > { %v2119_v54 = vmax.f32 %v1864_v48, %v2112_v52  ;;  %v2114_v55 = vpop.f32.mrb[11].mxu0 }
 0x2be   : > { %v2120_v56 = vmax.f32 %v1865_v51, %v2114_v55 }
 0x2bf   : > { %v3183_v57 = vpack.c.bf16 %v2119_v54, %v2117_v45 }
 0x2c0   : > { %v3180_v58 = vpack.c.bf16 %v2120_v56, %v2118_v47 }
 0x2c2   : > { %3182 = vmatprep.subr.msk.bf16.mxu1 %vm3181_vm3, %v3180_v58 }
 0x2c3   : > { %3185 = vmatpush1.bf16.msk.msra.mxu1 %vm3181_vm3, %v3183_v57 }
 0x2c4   : > { %3188 = vmatprep.subr.msk.bf16.mxu1 %vm3181_vm3, %v3180_v58 }
 0x2c6   : > { %2879 = vmatmul.mubr.msk.f32.vlgmr.msra.gmra.mrb[12].mxu1 %vm2122_vm4, %v2121_v60 }
 0x2c7   : > { %3191 = vmatpush1.bf16.msk.msra.mxu1 %vm3181_vm3, %v3183_v57  ;;  %2273 = vmatprep.mubr.f32.mxu1 %v3414_v36 }
 0x2c8   : > { %3194 = vmatprep.subr.msk.bf16.mxu1 %vm3181_vm3, %v3180_v58 }
 0x2ca   : > { %2883 = vmatmul.mubr.msk.f32.vlgmr.msra.gmra.mrb[14].mxu1 %vm2122_vm4, %v2880_v61 }
 0x2cb   : > { %3197 = vmatpush1.bf16.msk.msra.mxu1 %vm3181_vm3, %v3183_v57  ;;  %2351 = vmatprep.mubr.f32.mxu1 %v3414_v36  ;;  %v2365_v36 = vrot.slane %v2360_v8, %v2364_v6 }
 0x2ce   : > { %2887 = vmatmul.mubr.msk.f32.vlgmr.msra.gmra.mrb[16].mxu1 %vm2122_vm4, %v2884_v62 }
 0x399   : > { %v2199_v3 = vpop.f32.mrb[12].mxu1 }
 0x39a   : > { %v2201_v4 = vpop.f32.mrb[13].mxu1 }
 0x39d   : > { %v2275_v7 = vpop.f32.mrb[14].mxu1 }
 0x39e   : > { %v2280_v10 = vmax.f32 %v2199_v3, %v2275_v7  ;;  %v2277_v11 = vpop.f32.mrb[15].mxu1 }
 0x39f   : > { %v2281_v12 = vmax.f32 %v2201_v4, %v2277_v11 }
 0x3a1   : > { %v2353_v13 = vpop.f32.mrb[16].mxu1 }
 0x3a2   : > { %v2358_v15 = vmax.f32 %v2280_v10, %v2353_v13  ;;  %v2355_v16 = vpop.f32.mrb[17].mxu1 }
 0x3a3   : > { %v2359_v17 = vmax.f32 %v2281_v12, %v2355_v16 }
 0x3a4   : > { %v2372_v18 = vadd.f32 %v2365_v36, %v2358_v15 }
 0x3a5   : > { %v2373_v19 = vadd.f32 %v2369_v14, %v2359_v17 }
 0x3a6   : > { %2374 = vst [vmem:[%s224_s10] sm:$0x1f] %v2372_v18 }
 0x3a7   : > { %2376 = vst.msk [vmem:[%s224_s10 + $0x8] sm:$0x1f] %vm2375_vm5, %v2373_v19 }
 0x3a8 PF: > { %s15_s18 = sadd.s32 1, %s3411_s18  }
 0x3a9   : > { %p12_p4 = scmp.ge.s32.totalorder %s15_s18, 4  }
 0x3ab   :  { %14 = sbr.rel (!%p12_p4) target bundleno = 1 (0x1), region = 76 }

// kernel: seperated_impala_forward.16
= control target key start
LH: loop header
LB: loop body
LE: loop exit
PB: predicated region body
PF: predicated region fallthrough
CT: control target
= control target key end

     0   :  { %s1765_s18 = smov 0   ;;  %s2261_s0 = inlined_call_operand.vmem [shape: f32[2,5,160], index: 0, kind: input, shape index: {}]   ;;  %s2262_s1 = inlined_call_operand.vmem [shape: bf16[3,160,192], index: 1, kind: input, shape index: {}]   ;;  %s2263_s2 = inlined_call_operand.vmem [shape: f32[3,192,64], index: 2, kind: input, shape index: {}]   ;;  %s2264_s3 = inlined_call_operand.vmem [shape: f32[3,1,3], index: 3, kind: input, shape index: {}]   ;;  %s2265_s4 = inlined_call_operand.vmem [shape: f32[1,64], index: 4, kind: input, shape index: {}]   ;;  %s2266_s5 = inlined_call_operand.vmem [shape: f32[2,1,64], index: 5, kind: output, shape index: {}]  }
   0x1 LB: > { %s1314_s19 = sadd.s32 4294967295, %s1730_s18   ;;  %p1318_p0 = scmp.ge.s32.totalorder %s1730_s18, 1  ;;  %s1730_s18 = sphi %s1765_s18, %s15_s18  }
   0x2   : > { %p187_p1 = scmp.lt.s32.totalorder %s1730_s18, 3 }
   0x4   : > { %p188_p2 = pnand %p1318_p0, %p187_p1 }
   0x5   : > { %v1634_v0 = vld [vmem:[%s2262_s1 + $0xa4] ss:$8 sps:$4 sm:$0xff] (!%p188_p2)   ;;  %p213_p3 = scmp.lt.s32.totalorder (!%p188_p2), %s1314_s19, 1  ;;  %v1636_v1 = vld [vmem:[%s2262_s1 + $0xa0] ss:$8 sps:$4 sm:$0xff] (!%p188_p2)   ;;  %v1732_v3 = vmov (!%p188_p2), 0.0|0.0  }
   0x6   : > { %191 = sbr.rel (%p188_p2) target bundleno = 876 (0x36c), region = 40  ;;  %386 = vmatprep.subr.bf16.mxu0 (!%p188_p2), %v1634_v0  ;;  %v1637_v2 = vld [vmem:[%s2262_s1 + $0xb4] ss:$8 sps:$4 sm:$0xff] (!%p188_p2)   ;;  %1507 = vmatprep.subr.bf16.mxu1 (!%p188_p2), %v1732_v3  ;;  %v1639_v4 = vld [vmem:[%s2262_s1 + $0xb0] ss:$8 sps:$4 sm:$0xff] (!%p188_p2)   ;;  %vm382_vm0 = vcmask (!%p188_p2), 261120  }
   0x7   : > { %387 = vmatpush1.bf16.msra.mxu0 (!%p188_p2), %v1636_v1  ;;  %v1640_v5 = vld [vmem:[%s2262_s1 + $0xc4] ss:$8 sps:$4 sm:$0xff] (!%p188_p2)   ;;  %v1642_v6 = vld [vmem:[%s2262_s1 + $0xc0] ss:$8 sps:$4 sm:$0xff] (!%p188_p2)   ;;  %v1643_v7 = vld [vmem:[%s2262_s1 + $0xd4] ss:$8 sps:$4 sm:$0xff] (!%p188_p2)  }
   0x8   : > { %388 = vmatprep.subr.bf16.mxu0 (!%p188_p2), %v1637_v2  ;;  %v1645_v8 = vld [vmem:[%s2262_s1 + $0xd0] ss:$8 sps:$4 sm:$0xff] (!%p188_p2)   ;;  %v1646_v9 = vld [vmem:[%s2262_s1 + $0xe4] ss:$8 sps:$4 sm:$0xff] (!%p188_p2)   ;;  %v1648_v12 = vld [vmem:[%s2262_s1 + $0xe0] ss:$8 sps:$4 sm:$0xff] (!%p188_p2)  }
   0x9   : > { %v1649_v13 = vld [vmem:[%s2262_s1 + $0xf4] ss:$8 sps:$4 sm:$0xff] (!%p188_p2)   ;;  %v1651_v17 = vld [vmem:[%s2262_s1 + $0xf0] ss:$8 sps:$4 sm:$0xff] (!%p188_p2)   ;;  %v1652_v18 = vld [vmem:[%s2262_s1 + $0x104] ss:$8 sps:$4 sm:$0xff] (!%p188_p2)  }
   0xa   : > { %v1654_v20 = vld [vmem:[%s2262_s1 + $0x100] ss:$8 sps:$4 sm:$0xff] (!%p188_p2)   ;;  %v1655_v22 = vld [vmem:[%s2262_s1 + $0x114] ss:$8 sps:$4 sm:$0xff] (!%p188_p2)   ;;  %v1657_v24 = vld [vmem:[%s2262_s1 + $0x110] ss:$8 sps:$4 sm:$0xff] (!%p188_p2)  }
   0xb   : > { %389 = vmatpush1.bf16.msra.mxu0 (!%p188_p2), %v1639_v4  ;;  %v1658_v25 = vld [vmem:[%s2262_s1 + $0x124] ss:$8 sps:$4 sm:$0xff] (!%p188_p2)   ;;  %v1660_v27 = vld [vmem:[%s2262_s1 + $0x120] ss:$8 sps:$4 sm:$0xff] (!%p188_p2)   ;;  %v1661_v28 = vld [vmem:[%s2262_s1 + $0x134] ss:$8 sps:$4 sm:$0xff] (!%p188_p2)  }
   0xc   : > { %390 = vmatprep.subr.bf16.mxu0 (!%p188_p2), %v1640_v5  ;;  %v1663_v31 = vld [vmem:[%s2262_s1 + $0x130] ss:$8 sps:$4 sm:$0xff] (!%p188_p2)   ;;  %v1666_v32 = vld [vmem:[%s2262_s1 + $0x4] ss:$8 sps:$4 sm:$0xff] (!%p188_p2)   ;;  %v1664_v34 = vld [vmem:[%s2262_s1] ss:$8 sps:$4 sm:$0xff] (!%p188_p2)  }
   0xd   : > { %s2268_s19 = smov (!%p213_p3, %s1314_s19), 1  ;;  %v1669_v35 = vld [vmem:[%s2262_s1 + $0x14] ss:$8 sps:$4 sm:$0xff]   ;;  %v742_v36 = vld [vmem:[%s2263_s2] sm:$0xff]  ;;  %v743_v37 = vld [vmem:[%s2263_s2 + $0x8] sm:$0xff]  ;;  %vm766_vm1 = vcmask 523264  }
   0xe   : > { %s1485_s7 = sshll.u32 %s2268_s19, 4  ;;  %v744_v38 = vld [vmem:[%s2263_s2 + $0x10] sm:$0xff]  ;;  %v745_v39 = vld [vmem:[%s2263_s2 + $0x18] sm:$0xff]  ;;  %v1508_v41 = vpack.c.bf16 %v743_v37, %v742_v36  ;;  %v1672_v42 = vld [vmem:[%s2262_s1 + $0x24] ss:$8 sps:$4 sm:$0xff]   ;;  %vm1734_vm2 = vmmov 0   ;;  %s220_s22 = scalar_lea.vmem %s2266_s5, %s2268_s19 }
   0xf   : > { %s217_s12 = scalar_lea.vmem %s2261_s0, %s1485_s7  ;;  %391 = vmatpush1.bf16.msra.mxu0 %v1642_v6  ;;  %v1667_v40 = vld [vmem:[%s2262_s1 + $0x10] ss:$8 sps:$4 sm:$0xff]   ;;  %v1511_v43 = vpack.c.bf16 %v745_v39, %v744_v38  ;;  %v746_v44 = vld [vmem:[%s2263_s2 + $0x20] sm:$0xff]  ;;  %v747_v45 = vld [vmem:[%s2263_s2 + $0x28] sm:$0xff]  ;;  %vm1037_vm3 = vcmask 1042432   ;;  %vm1033_vm4 = vcmask 23552  }
  0x10   : > { %392 = vmatprep.subr.bf16.mxu0 %v1643_v7  ;;  %v223_v10 = vld [vmem:[%s217_s12 + $0x8] sm:$0x1f]  ;;  %v222_v21 = vld [vmem:[%s217_s12] sm:$0x1f]  ;;  %1509 = vmatpush1.bf16.msra.mxu1 %v1508_v41  ;;  %v1675_v47 = vld [vmem:[%s2262_s1 + $0x34] ss:$8 sps:$4 sm:$0xff]   ;;  %v1514_v48 = vpack.c.bf16 %v747_v45, %v746_v44 }
  0x11   : > { %v1807_v11 = vpack.c.bf16 %v223_v10, %v223_v10  ;;  %v1830_v23 = vpack.c.bf16 %v222_v21, %v222_v21  ;;  %1510 = vmatprep.subr.bf16.mxu1 %v1732_v3  ;;  %v1670_v46 = vld [vmem:[%s2262_s1 + $0x20] ss:$8 sps:$4 sm:$0xff]   ;;  %v748_v49 = vld [vmem:[%s2263_s2 + $0x30] sm:$0xff]  ;;  %v749_v50 = vld [vmem:[%s2263_s2 + $0x38] sm:$0xff]  ;;  %vm1265_vm5 = vcmask 516096  }
  0x12   : > { %v1673_v51 = vld [vmem:[%s2262_s1 + $0x30] ss:$8 sps:$4 sm:$0xff]   ;;  %v1678_v52 = vld [vmem:[%s2262_s1 + $0x44] ss:$8 sps:$4 sm:$0xff]   ;;  %v1517_v53 = vpack.c.bf16 %v749_v50, %v748_v49  ;;  %v1676_v56 = vld [vmem:[%s2262_s1 + $0x40] ss:$8 sps:$4 sm:$0xff]  }
  0x13   : > { %393 = vmatpush1.bf16.msra.mxu0 %v1645_v8  ;;  %v275_v14 = vshrl.u32 %v1807_v11, 16  ;;  %v277_v15 = vshll.u32 %v1807_v11, 16  ;;  %v270_v26 = vshll.u32 %v1830_v23, 16  ;;  %v268_v29 = vshrl.u32 %v1830_v23, 16  ;;  %v750_v54 = vld [vmem:[%s2263_s2 + $0x40] sm:$0xff]  ;;  %v751_v55 = vld [vmem:[%s2263_s2 + $0x48] sm:$0xff] }
  0x14   : > { %394 = vmatprep.subr.bf16.mxu0 %v1646_v9  ;;  %1512 = vmatpush1.bf16.msra.mxu1 %v1511_v43  ;;  %v1681_v57 = vld [vmem:[%s2262_s1 + $0x54] ss:$8 sps:$4 sm:$0xff]   ;;  %v1520_v58 = vpack.c.bf16 %v751_v55, %v750_v54  ;;  %v1679_v61 = vld [vmem:[%s2262_s1 + $0x50] ss:$8 sps:$4 sm:$0xff]   ;;  %v1684_v62 = vld [vmem:[%s2262_s1 + $0x64] ss:$8 sps:$4 sm:$0xff]  }
  0x15   : > { %v279_v16 = vrot.slane %v277_v15, 1  ;;  %v272_v30 = vrot.slane %v270_v26, 1  ;;  %1513 = vmatprep.subr.bf16.mxu1 %v1732_v3  ;;  %v752_v59 = vld [vmem:[%s2263_s2 + $0x50] sm:$0xff]  ;;  %v753_v60 = vld [vmem:[%s2263_s2 + $0x58] sm:$0xff]  ;;  %v754_v0 = vld [vmem:[%s2263_s2 + $0x60] sm:$0xff]  ;;  %v594_v26 = vrot.slane %v1807_v11, 1 }
  0x16   : > { %v1523_v63 = vpack.c.bf16 %v753_v60, %v752_v59  ;;  %v755_v1 = vld [vmem:[%s2263_s2 + $0x68] sm:$0xff]  ;;  %v1687_v4 = vld [vmem:[%s2262_s1 + $0x74] ss:$8 sps:$4 sm:$0xff]   ;;  %v1685_v8 = vld [vmem:[%s2262_s1 + $0x70] ss:$8 sps:$4 sm:$0xff]  }
  0x17   : > { %395 = vmatpush1.bf16.msra.mxu0 %v1648_v12  ;;  %v280_v19 = vor.u32 %v279_v16, %v275_v14  ;;  %v273_v33 = vor.u32 %v272_v30, %v268_v29  ;;  %v1682_v2 = vld [vmem:[%s2262_s1 + $0x60] ss:$8 sps:$4 sm:$0xff]   ;;  %v1526_v5 = vpack.c.bf16 %v755_v1, %v754_v0  ;;  %v756_v6 = vld [vmem:[%s2263_s2 + $0x70] sm:$0xff]  ;;  %v757_v7 = vld [vmem:[%s2263_s2 + $0x78] sm:$0xff] }
  0x18   : > { %396 = vmatprep.subr.bf16.mxu0 %v1649_v13  ;;  %1515 = vmatpush1.bf16.msra.mxu1 %v1514_v48  ;;  %v1690_v9 = vld [vmem:[%s2262_s1 + $0x84] ss:$8 sps:$4 sm:$0xff]   ;;  %v1529_v10 = vpack.c.bf16 %v757_v7, %v756_v6  ;;  %v1688_v14 = vld [vmem:[%s2262_s1 + $0x80] ss:$8 sps:$4 sm:$0xff]   ;;  %v1693_v15 = vld [vmem:[%s2262_s1 + $0x94] ss:$8 sps:$4 sm:$0xff]  }
  0x19   : > { %1361 = vmatprep.mubr.msk.bf16.mxu0 %vm382_vm0, %v280_v19  ;;  %1516 = vmatprep.subr.bf16.mxu1 %v1732_v3  ;;  %v758_v12 = vld [vmem:[%s2263_s2 + $0x80] sm:$0xff]  ;;  %v759_v13 = vld [vmem:[%s2263_s2 + $0x88] sm:$0xff]  ;;  %v1691_v19 = vld [vmem:[%s2262_s1 + $0x90] ss:$8 sps:$4 sm:$0xff]   ;;  %v593_v48 = vrot.slane %v1830_v23, 1 }
  0x1a   : > { %v1532_v16 = vpack.c.bf16 %v759_v13, %v758_v12  ;;  %v764_v29 = vld [vmem:[%s2263_s2 + $0xb0] sm:$0xff]  ;;  %v765_v30 = vld [vmem:[%s2263_s2 + $0xb8] sm:$0xff]  ;;  %v1708_v36 = vld [vmem:[%s2262_s1 + $0x184] ss:$8 sps:$4 sm:$0xff]  }
  0x1b   : > { %397 = vmatpush1.bf16.msra.mxu0 %v1651_v17  ;;  %v760_v17 = vld [vmem:[%s2263_s2 + $0x90] sm:$0xff]  ;;  %v1706_v37 = vld [vmem:[%s2262_s1 + $0x180] ss:$8 sps:$4 sm:$0xff]   ;;  %v1720_v44 = vld [vmem:[%s2262_s1 + $0x1c4] ss:$8 sps:$4 sm:$0xff]  }
  0x1c   : > { %398 = vmatprep.subr.bf16.mxu0 %v1652_v18  ;;  %1518 = vmatpush1.bf16.msra.mxu1 %v1517_v53  ;;  %v761_v18 = vld [vmem:[%s2263_s2 + $0x98] sm:$0xff]  ;;  %v1712_v41 = vld [vmem:[%s2262_s1 + $0x1a0] ss:$8 sps:$4 sm:$0xff]  }
  0x1d   : > { %1519 = vmatprep.subr.bf16.mxu1 %v1732_v3  ;;  %v1535_v21 = vpack.c.bf16 %v761_v18, %v760_v17  ;;  %v1711_v38 = vld [vmem:[%s2262_s1 + $0x194] ss:$8 sps:$4 sm:$0xff]   ;;  %v1709_v39 = vld [vmem:[%s2262_s1 + $0x190] ss:$8 sps:$4 sm:$0xff]   ;;  %v1718_v45 = vld [vmem:[%s2262_s1 + $0x1c0] ss:$8 sps:$4 sm:$0xff]  }
  0x1e   : > { %v1715_v43 = vld [vmem:[%s2262_s1 + $0x1b0] ss:$8 sps:$4 sm:$0xff]   ;;  %v1425_v49 = vld [vmem:[%s2263_s2 + $0xc0] sm:$0xff]  ;;  %v1426_v50 = vld [vmem:[%s2263_s2 + $0xc8] sm:$0xff] }
  0x1f   : > { %399 = vmatpush1.bf16.msra.mxu0 %v1654_v20  ;;  %v1696_v20 = vld [vmem:[%s2262_s1 + $0x144] ss:$8 sps:$4 sm:$0xff]   ;;  %v1428_v54 = vld [vmem:[%s2263_s2 + $0xd8] sm:$0xff]  ;;  %v1443_v17 = vld [vmem:[%s2263_s2 + $0x150] sm:$0xff] }
  0x20   : > { %400 = vmatprep.subr.bf16.mxu0 %v1655_v22  ;;  %1521 = vmatpush1.bf16.msra.mxu1 %v1520_v58  ;;  %v762_v22 = vld [vmem:[%s2263_s2 + $0xa0] sm:$0xff]  ;;  %v1430_v59 = vld [vmem:[%s2263_s2 + $0xe8] sm:$0xff]  ;;  %v1440_v12 = vld [vmem:[%s2263_s2 + $0x138] sm:$0xff] }
  0x21   : > { %1522 = vmatprep.subr.bf16.mxu1 %v1732_v3  ;;  %v1429_v58 = vld [vmem:[%s2263_s2 + $0xe0] sm:$0xff]  ;;  %v1434_v1 = vld [vmem:[%s2263_s2 + $0x108] sm:$0xff]  ;;  %v1444_v18 = vld [vmem:[%s2263_s2 + $0x158] sm:$0xff] }
  0x22   : > { %v1550_v60 = vpack.c.bf16 %v1430_v59, %v1429_v58  ;;  %v1433_v0 = vld [vmem:[%s2263_s2 + $0x100] sm:$0xff]  ;;  %v1472_v59 = vld [vmem:[%s2263_s2 + $0x230] sm:$0xff] }
  0x23   : > { %401 = vmatpush1.bf16.msra.mxu0 %v1657_v24  ;;  %v763_v24 = vld [vmem:[%s2263_s2 + $0xa8] sm:$0xff]  ;;  %v1437_v7 = vld [vmem:[%s2263_s2 + $0x120] sm:$0xff] }
  0x24   : > { %402 = vmatprep.subr.bf16.mxu0 %v1658_v25  ;;  %1524 = vmatpush1.bf16.msra.mxu1 %v1523_v63  ;;  %v1694_v25 = vld [vmem:[%s2262_s1 + $0x140] ss:$8 sps:$4 sm:$0xff]  }
  0x25   : > { %1525 = vmatprep.subr.bf16.mxu1 %v1732_v3 }
  0x27   : > { %403 = vmatpush1.bf16.msra.mxu0 %v1660_v27  ;;  %v1699_v27 = vld [vmem:[%s2262_s1 + $0x154] ss:$8 sps:$4 sm:$0xff]  }
  0x28   : > { %404 = vmatprep.subr.bf16.mxu0 %v1661_v28  ;;  %1527 = vmatpush1.bf16.msra.mxu1 %v1526_v5  ;;  %v1538_v28 = vpack.c.bf16 %v763_v24, %v762_v22  ;;  %v1436_v5 = vld [vmem:[%s2263_s2 + $0x118] sm:$0xff]  ;;  %v1447_v24 = vld [vmem:[%s2263_s2 + $0x170] sm:$0xff] }
  0x29   : > { %1528 = vmatprep.subr.bf16.mxu1 %v1732_v3 }
  0x2b   : > { %405 = vmatpush1.bf16.msra.mxu0 %v1663_v31  ;;  %v1702_v31 = vld [vmem:[%s2262_s1 + $0x164] ss:$8 sps:$4 sm:$0xff]  }
  0x2c   : > { %529 = vmatprep.subr.bf16.mxu0 %v1666_v32  ;;  %1530 = vmatpush1.bf16.msra.mxu1 %v1529_v10  ;;  %v1541_v32 = vpack.c.bf16 %v765_v30, %v764_v29  ;;  %v1439_v10 = vld [vmem:[%s2263_s2 + $0x130] sm:$0xff] }
  0x2d   : > { %1531 = vmatprep.subr.bf16.mxu1 %v1732_v3  ;;  %v1565_v13 = vpack.c.bf16 %v1440_v12, %v1439_v10  ;;  %v1452_v30 = vld [vmem:[%s2263_s2 + $0x190] sm:$0xff] }
  0x2e   : > { %419 = vmatmul.mubr.bf16.vlgmr.msra.gmra.mrb[0].mxu0 %v273_v33  ;;  %v1700_v33 = vld [vmem:[%s2262_s1 + $0x160] ss:$8 sps:$4 sm:$0xff]  }
  0x2f   : > { %530 = vmatpush1.bf16.msra.mxu0 %v1664_v34  ;;  %1382 = vmatprep.mubr.msk.bf16.mxu0 %vm382_vm0, %v1807_v11  ;;  %v1697_v11 = vld [vmem:[%s2262_s1 + $0x150] ss:$8 sps:$4 sm:$0xff]   ;;  %v1705_v34 = vld [vmem:[%s2262_s1 + $0x174] ss:$8 sps:$4 sm:$0xff]  }
  0x30   : > { %531 = vmatprep.subr.bf16.mxu0 %v1669_v35  ;;  %1533 = vmatpush1.bf16.msra.mxu1 %v1532_v16  ;;  %v1703_v35 = vld [vmem:[%s2262_s1 + $0x170] ss:$8 sps:$4 sm:$0xff]  }
  0x31   : > { %1534 = vmatprep.subr.bf16.mxu1 %v1732_v3 }
  0x33   : > { %532 = vmatpush1.bf16.msra.mxu0 %v1667_v40  ;;  %v1714_v40 = vld [vmem:[%s2262_s1 + $0x1a4] ss:$8 sps:$4 sm:$0xff]  }
  0x34   : > { %533 = vmatprep.subr.bf16.mxu0 %v1672_v42  ;;  %1536 = vmatpush1.bf16.msra.mxu1 %v1535_v21  ;;  %v1717_v42 = vld [vmem:[%s2262_s1 + $0x1b4] ss:$8 sps:$4 sm:$0xff]   ;;  %v1446_v21 = vld [vmem:[%s2263_s2 + $0x168] sm:$0xff] }
  0x35   : > { %1537 = vmatprep.subr.bf16.mxu1 %v1732_v3 }
  0x37   : > { %534 = vmatpush1.bf16.msra.mxu0 %v1670_v46  ;;  %v1723_v46 = vld [vmem:[%s2262_s1 + $0x1d4] ss:$8 sps:$4 sm:$0xff]  }
  0x38   : > { %535 = vmatprep.subr.bf16.mxu0 %v1675_v47  ;;  %1539 = vmatpush1.bf16.msra.mxu1 %v1538_v28  ;;  %v1721_v47 = vld [vmem:[%s2262_s1 + $0x1d0] ss:$8 sps:$4 sm:$0xff]   ;;  %v1451_v28 = vld [vmem:[%s2263_s2 + $0x188] sm:$0xff] }
  0x39   : > { %1540 = vmatprep.subr.bf16.mxu1 %v1732_v3 }
  0x3b   : > { %536 = vmatpush1.bf16.msra.mxu0 %v1673_v51 }
  0x3c   : > { %537 = vmatprep.subr.bf16.mxu0 %v1678_v52  ;;  %1542 = vmatpush1.bf16.msra.mxu1 %v1541_v32  ;;  %v1544_v52 = vpack.c.bf16 %v1426_v50, %v1425_v49  ;;  %v1454_v32 = vld [vmem:[%s2263_s2 + $0x1a0] sm:$0xff] }
  0x3d   : > { %1543 = vmatprep.subr.bf16.mxu1 %v1732_v3  ;;  %v1466_v50 = vld [vmem:[%s2263_s2 + $0x200] sm:$0xff] }
  0x3f   : > { %538 = vmatpush1.bf16.msra.mxu0 %v1676_v56 }
  0x40   : > { %539 = vmatprep.subr.bf16.mxu0 %v1681_v57 }
  0x43   : > { %540 = vmatpush1.bf16.msra.mxu0 %v1679_v61  ;;  %v1431_v61 = vld [vmem:[%s2263_s2 + $0xf0] sm:$0xff] }
  0x44   : > { %541 = vmatprep.subr.bf16.mxu0 %v1684_v62  ;;  %v1432_v62 = vld [vmem:[%s2263_s2 + $0xf8] sm:$0xff] }
  0x45   : > { %v1553_v63 = vpack.c.bf16 %v1432_v62, %v1431_v61  ;;  %v1733_v62 = vmov 0.0  }
  0x47   : > { %542 = vmatpush1.bf16.msra.mxu0 %v1682_v2  ;;  %v1556_v2 = vpack.c.bf16 %v1434_v1, %v1433_v0 }
  0x48   : > { %543 = vmatprep.subr.bf16.mxu0 %v1687_v4  ;;  %v1435_v4 = vld [vmem:[%s2263_s2 + $0x110] sm:$0xff] }
  0x49   : > { %v1559_v6 = vpack.c.bf16 %v1436_v5, %v1435_v4 }
  0x4b   : > { %544 = vmatpush1.bf16.msra.mxu0 %v1685_v8  ;;  %v1438_v8 = vld [vmem:[%s2263_s2 + $0x128] sm:$0xff] }
  0x4c   : > { %545 = vmatprep.subr.bf16.mxu0 %v1690_v9  ;;  %v1562_v9 = vpack.c.bf16 %v1438_v8, %v1437_v7  ;;  %v1480_v8 = vld [vmem:[%s2264_s3 + $0x2] sm:$0x1] }
  0x4f   : > { %546 = vmatpush1.bf16.msra.mxu0 %v1688_v14  ;;  %v1441_v14 = vld [vmem:[%s2263_s2 + $0x140] sm:$0xff] }
  0x50   : > { %547 = vmatprep.subr.bf16.mxu0 %v1693_v15  ;;  %v1442_v15 = vld [vmem:[%s2263_s2 + $0x148] sm:$0xff] }
  0x51   : > { %v1568_v16 = vpack.c.bf16 %v1442_v15, %v1441_v14 }
  0x53   : > { %548 = vmatpush1.bf16.msra.mxu0 %v1691_v19  ;;  %v1571_v19 = vpack.c.bf16 %v1444_v18, %v1443_v17 }
  0x54   : > { %699 = vmatprep.subr.bf16.mxu0 %v1696_v20  ;;  %v1445_v20 = vld [vmem:[%s2263_s2 + $0x160] sm:$0xff] }
  0x55   : > { %v1574_v22 = vpack.c.bf16 %v1446_v21, %v1445_v20 }
  0x56   : > { %562 = vmatmul.mubr.bf16.vlgmr.msra.gmra.mrb[0].mxu0 %v1830_v23  ;;  %v1427_v23 = vld [vmem:[%s2263_s2 + $0xd0] sm:$0xff] }
  0x57   : > { %700 = vmatpush1.bf16.msra.mxu0 %v1694_v25  ;;  %1423 = vmatprep.mubr.msk.bf16.mxu0 %vm382_vm0, %v594_v26  ;;  %v1547_v57 = vpack.c.bf16 %v1428_v54, %v1427_v23  ;;  %v1448_v25 = vld [vmem:[%s2263_s2 + $0x178] sm:$0xff]  ;;  %v1468_v23 = vld [vmem:[%s2263_s2 + $0x210] sm:$0xff] }
  0x58   : > { %701 = vmatprep.subr.bf16.mxu0 %v1699_v27  ;;  %v1577_v26 = vpack.c.bf16 %v1448_v25, %v1447_v24  ;;  %v1450_v27 = vld [vmem:[%s2263_s2 + $0x180] sm:$0xff]  ;;  %v1469_v54 = vld [vmem:[%s2263_s2 + $0x218] sm:$0xff] }
  0x59   : > { %v1580_v29 = vpack.c.bf16 %v1451_v28, %v1450_v27 }
  0x5b   : > { %702 = vmatpush1.bf16.msra.mxu0 %v1697_v11  ;;  %v1453_v11 = vld [vmem:[%s2263_s2 + $0x198] sm:$0xff] }
  0x5c   : > { %703 = vmatprep.subr.bf16.mxu0 %v1702_v31  ;;  %v1583_v31 = vpack.c.bf16 %v1453_v11, %v1452_v30 }
  0x5f   : > { %704 = vmatpush1.bf16.msra.mxu0 %v1700_v33  ;;  %v1455_v33 = vld [vmem:[%s2263_s2 + $0x1a8] sm:$0xff] }
  0x60   : > { %705 = vmatprep.subr.bf16.mxu0 %v1705_v34  ;;  %v1586_v34 = vpack.c.bf16 %v1455_v33, %v1454_v32 }
  0x63   : > { %706 = vmatpush1.bf16.msra.mxu0 %v1703_v35  ;;  %v1456_v35 = vld [vmem:[%s2263_s2 + $0x1b0] sm:$0xff] }
  0x64   : > { %707 = vmatprep.subr.bf16.mxu0 %v1708_v36  ;;  %v1457_v36 = vld [vmem:[%s2263_s2 + $0x1b8] sm:$0xff] }
  0x67   : > { %708 = vmatpush1.bf16.msra.mxu0 %v1706_v37  ;;  %v1589_v37 = vpack.c.bf16 %v1457_v36, %v1456_v35 }
  0x68   : > { %709 = vmatprep.subr.bf16.mxu0 %v1711_v38  ;;  %v1458_v38 = vld [vmem:[%s2263_s2 + $0x1c0] sm:$0xff] }
  0x6b   : > { %710 = vmatpush1.bf16.msra.mxu0 %v1709_v39  ;;  %v1459_v39 = vld [vmem:[%s2263_s2 + $0x1c8] sm:$0xff] }
  0x6c   : > { %711 = vmatprep.subr.bf16.mxu0 %v1714_v40  ;;  %v1592_v40 = vpack.c.bf16 %v1459_v39, %v1458_v38 }
  0x6f   : > { %712 = vmatpush1.bf16.msra.mxu0 %v1712_v41  ;;  %v1460_v41 = vld [vmem:[%s2263_s2 + $0x1d0] sm:$0xff] }
  0x70   : > { %713 = vmatprep.subr.bf16.mxu0 %v1717_v42  ;;  %v1461_v42 = vld [vmem:[%s2263_s2 + $0x1d8] sm:$0xff] }
  0x73   : > { %714 = vmatpush1.bf16.msra.mxu0 %v1715_v43  ;;  %v1595_v43 = vpack.c.bf16 %v1461_v42, %v1460_v41 }
  0x74   : > { %715 = vmatprep.subr.bf16.mxu0 %v1720_v44  ;;  %v1462_v44 = vld [vmem:[%s2263_s2 + $0x1e0] sm:$0xff] }
  0x77   : > { %716 = vmatpush1.bf16.msra.mxu0 %v1718_v45  ;;  %v1463_v45 = vld [vmem:[%s2263_s2 + $0x1e8] sm:$0xff] }
  0x78   : > { %717 = vmatprep.subr.bf16.mxu0 %v1723_v46  ;;  %v1598_v46 = vpack.c.bf16 %v1463_v45, %v1462_v44 }
  0x7b   : > { %718 = vmatpush1.bf16.msra.mxu0 %v1721_v47  ;;  %v1464_v47 = vld [vmem:[%s2263_s2 + $0x1f0] sm:$0xff] }
  0x7c   : > { %1492 = vmatprep.subr.mxu0 %v1733_v62 }
  0x7e   : > { %732 = vmatmul.mubr.bf16.vlgmr.msra.gmra.mrb[0].mxu0 %v593_v48  ;;  %v1465_v48 = vld [vmem:[%s2263_s2 + $0x1f8] sm:$0xff] }
  0x7f   : > { %v1601_v49 = vpack.c.bf16 %v1465_v48, %v1464_v47  ;;  %1494 = vmatprep.mubr.msk.f32.mxu0 %vm1734_vm2, %v1733_v62 }
 0x151   : > { %v2065_v51 = vpop.f32.mrb[0].mxu0 }
 0x152   : > { %v2067_v53 = vpop.f32.mrb[1].mxu0 }
 0x153   : > { %v737_v55 = vpop.f32.mrb[2].mxu0  ;;  %1424 = vmatprep.mubr.msk.f32.mxu1 %vm766_vm1, %v2067_v53 }
 0x154   : > { %v738_v56 = vpop.f32.mrb[3].mxu0  ;;  %835 = vmatmul.mubr.f32.vlgmr.msra.gmra.mrb[0].mxu1 %v2065_v51  ;;  %v1607_v55 = vpack.c.bf16 %v1469_v54, %v1468_v23 }
 0x155   : > { %1545 = vmatpush1.bf16.msra.mxu1 %v1544_v52  ;;  %1449 = vmatprep.mubr.msk.f32.mxu1 %vm766_vm1, %v2067_v53  ;;  %v1467_v52 = vld [vmem:[%s2263_s2 + $0x208] sm:$0xff]  ;;  %v1470_v56 = vld [vmem:[%s2263_s2 + $0x220] sm:$0xff] }
 0x156   : > { %1546 = vmatprep.subr.bf16.mxu1 %v1732_v3 }
 0x159   : > { %1548 = vmatpush1.bf16.msra.mxu1 %v1547_v57  ;;  %v1471_v57 = vld [vmem:[%s2263_s2 + $0x228] sm:$0xff] }
 0x15a   : > { %1549 = vmatprep.subr.bf16.mxu1 %v1732_v3  ;;  %v1610_v58 = vpack.c.bf16 %v1471_v57, %v1470_v56 }
 0x15d   : > { %1551 = vmatpush1.bf16.msra.mxu1 %v1550_v60  ;;  %v1473_v60 = vld [vmem:[%s2263_s2 + $0x238] sm:$0xff] }
 0x15e   : > { %1552 = vmatprep.subr.bf16.mxu1 %v1732_v3  ;;  %v1613_v61 = vpack.c.bf16 %v1473_v60, %v1472_v59 }
 0x161   : > { %1554 = vmatpush1.bf16.msra.mxu1 %v1553_v63 }
 0x162   : > { %1555 = vmatprep.subr.bf16.mxu1 %v1732_v3 }
 0x165   : > { %1557 = vmatpush1.bf16.msra.mxu1 %v1556_v2 }
 0x166   : > { %1558 = vmatprep.subr.bf16.mxu1 %v1732_v3 }
 0x169   : > { %1560 = vmatpush1.bf16.msra.mxu1 %v1559_v6 }
 0x16a   : > { %1561 = vmatprep.subr.bf16.mxu1 %v1732_v3 }
 0x16d   : > { %1563 = vmatpush1.bf16.msra.mxu1 %v1562_v9 }
 0x16e   : > { %1564 = vmatprep.subr.bf16.mxu1 %v1732_v3 }
 0x171   : > { %1566 = vmatpush1.bf16.msra.mxu1 %v1565_v13 }
 0x172   : > { %1567 = vmatprep.subr.bf16.mxu1 %v1732_v3 }
 0x175   : > { %1569 = vmatpush1.bf16.msra.mxu1 %v1568_v16  ;;  %v1263_v16 = vld [vmem:[%s2265_s4] sm:$0x1] }
 0x176   : > { %1570 = vmatprep.subr.bf16.mxu1 %v1732_v3 }
 0x179   : > { %1572 = vmatpush1.bf16.msra.mxu1 %v1571_v19 }
 0x17a   : > { %1573 = vmatprep.subr.bf16.mxu1 %v1732_v3 }
 0x17d   : > { %1575 = vmatpush1.bf16.msra.mxu1 %v1574_v22 }
 0x17e   : > { %1576 = vmatprep.subr.bf16.mxu1 %v1732_v3 }
 0x181   : > { %1578 = vmatpush1.bf16.msra.mxu1 %v1577_v26 }
 0x182   : > { %1579 = vmatprep.subr.bf16.mxu1 %v1732_v3 }
 0x184   : > { %930 = vmatmul.mubr.f32.vlgmr.msra.gmra.mrb[2].mxu1 %v2065_v51 }
 0x185   : > { %1581 = vmatpush1.bf16.msra.mxu1 %v1580_v29  ;;  %1474 = vmatprep.mubr.msk.f32.mxu1 %vm766_vm1, %v2067_v53  ;;  %v1604_v53 = vpack.c.bf16 %v1467_v52, %v1466_v50 }
 0x186   : > { %1582 = vmatprep.subr.bf16.mxu1 %v1732_v3 }
 0x189   : > { %1584 = vmatpush1.bf16.msra.mxu1 %v1583_v31 }
 0x18a   : > { %1585 = vmatprep.subr.bf16.mxu1 %v1732_v3 }
 0x18d   : > { %1587 = vmatpush1.bf16.msra.mxu1 %v1586_v34 }
 0x18e   : > { %1588 = vmatprep.subr.bf16.mxu1 %v1732_v3 }
 0x191   : > { %1590 = vmatpush1.bf16.msra.mxu1 %v1589_v37 }
 0x192   : > { %1591 = vmatprep.subr.bf16.mxu1 %v1732_v3 }
 0x195   : > { %1593 = vmatpush1.bf16.msra.mxu1 %v1592_v40 }
 0x196   : > { %1594 = vmatprep.subr.bf16.mxu1 %v1732_v3 }
 0x199   : > { %1596 = vmatpush1.bf16.msra.mxu1 %v1595_v43 }
 0x19a   : > { %1597 = vmatprep.subr.bf16.mxu1 %v1732_v3 }
 0x19d   : > { %1599 = vmatpush1.bf16.msra.mxu1 %v1598_v46 }
 0x19e   : > { %1600 = vmatprep.subr.bf16.mxu1 %v1732_v3 }
 0x1a1   : > { %1602 = vmatpush1.bf16.msra.mxu1 %v1601_v49 }
 0x1a2   : > { %1603 = vmatprep.subr.bf16.mxu1 %v1732_v3 }
 0x1a5   : > { %1605 = vmatpush1.bf16.msra.mxu1 %v1604_v53 }
 0x1a6   : > { %1606 = vmatprep.subr.bf16.mxu1 %v1732_v3 }
 0x1a9   : > { %1608 = vmatpush1.bf16.msra.mxu1 %v1607_v55 }
 0x1aa   : > { %1609 = vmatprep.subr.bf16.mxu1 %v1732_v3 }
 0x1ad   : > { %1611 = vmatpush1.bf16.msra.mxu1 %v1610_v58 }
 0x1ae   : > { %1612 = vmatprep.subr.bf16.mxu1 %v1732_v3  ;;  %v1032_v3 = vld [vmem:[%s2264_s3] sm:$0x1] }
 0x1b1   : > { %1614 = vmatpush1.bf16.msra.mxu1 %v1613_v61 }
 0x1b4   : > { %1026 = vmatmul.mubr.f32.vlgmr.msra.gmra.mrb[4].mxu1 %v2065_v51  ;;  %v1477_v51 = vld [vmem:[%s2264_s3 + $0x1] sm:$0x1] }
 0x227   : > { %v836_v63 = vpop.f32.mrb[0].mxu1 }
 0x228   : > { %v838_v0 = vpop.f32.mrb[1].mxu1 }
 0x257   : > { %v931_v1 = vpop.f32.mrb[2].mxu1 }
 0x258   : > { %v935_v2 = vmax.f32 %v836_v63, %v931_v1  ;;  %v933_v4 = vpop.f32.mrb[3].mxu1 }
 0x287   : > { %v1027_v5 = vpop.f32.mrb[4].mxu1 }
 0x288   : > { %v1031_v6 = vmax.f32 %v935_v2, %v1027_v5  ;;  %v1029_v7 = vpop.f32.mrb[5].mxu1 }
 0x28a   : > { %1493 = vmatpush3.msk.msra.mxu0 %vm1037_vm3, %v1031_v6 }
 0x28b   : > { %1495 = vmatmul.mubr.msk.f32.vlgmr.msra.gmra.mrb[4].mxu0 %vm1033_vm4, %v1032_v3  ;;  %1497 = vmatprep.subr.mxu0 %v1733_v62 }
 0x28c   : > { %1498 = vmatpush3.msk.msra.mxu0 %vm1037_vm3, %v1031_v6  ;;  %1499 = vmatprep.mubr.msk.f32.mxu0 %vm1734_vm2, %v1733_v62 }
 0x28d   : > { %1502 = vmatprep.subr.mxu0 %v1733_v62 }
 0x28f   : > { %1500 = vmatmul.mubr.msk.f32.vlgmr.msra.gmra.mrb[6].mxu0 %vm1033_vm4, %v1477_v51 }
 0x290   : > { %1503 = vmatpush3.msk.msra.mxu0 %vm1037_vm3, %v1031_v6  ;;  %1504 = vmatprep.mubr.msk.f32.mxu0 %vm1734_vm2, %v1733_v62 }
 0x293   : > { %1505 = vmatmul.mubr.msk.f32.vlgmr.msra.gmra.mrb[8].mxu0 %vm1033_vm4, %v1480_v8 }
 0x35e   : > { %v1107_v9 = vpop.f32.mrb[4].mxu0 }
 0x35f   : > { %v1496_v10 = vpop.f32.mrb[5].mxu0 }
 0x362   : > { %v1182_v12 = vpop.f32.mrb[6].mxu0 }
 0x363   : > { %v1186_v13 = vmax.f32 %v1107_v9, %v1182_v12  ;;  %v1501_v14 = vpop.f32.mrb[7].mxu0 }
 0x366   : > { %v1258_v15 = vpop.f32.mrb[8].mxu0 }
 0x367   : > { %v1262_v17 = vmax.f32 %v1186_v13, %v1258_v15  ;;  %v1506_v18 = vpop.f32.mrb[9].mxu0 }
 0x369   : > { %v1264_v19 = vadd.f32 %v1263_v16, %v1262_v17 }
 0x36b   : > { %1266 = vst.msk [vmem:[%s220_s22] sm:$0x1] %vm1265_vm5, %v1264_v19 }
 0x36c PF: > { %s15_s18 = sadd.s32 1, %s1730_s18  }
 0x36d   : > { %p12_p4 = scmp.ge.s32.totalorder %s15_s18, 4  }
 0x36f   :  { %14 = sbr.rel (!%p12_p4) target bundleno = 1 (0x1), region = 76 }

// kernel: seperated_impala_forward.17
= control target key start
LH: loop header
LB: loop body
LE: loop exit
PB: predicated region body
PF: predicated region fallthrough
CT: control target
= control target key end

     0   :  { %s988_s18 = smov 0   ;;  %s1140_s0 = inlined_call_operand.vmem [shape: f32[2,1,64], index: 0, kind: input, shape index: {}]   ;;  %s1141_s1 = inlined_call_operand.vmem [shape: bf16[3,64,64], index: 1, kind: input, shape index: {}]   ;;  %s1142_s2 = inlined_call_operand.vmem [shape: f32[1,64], index: 2, kind: input, shape index: {}]   ;;  %s1143_s3 = inlined_call_operand.vmem [shape: bf16[3,64,64], index: 3, kind: input, shape index: {}]   ;;  %s1144_s4 = inlined_call_operand.vmem [shape: f32[1,64], index: 4, kind: input, shape index: {}]   ;;  %s1145_s5 = inlined_call_operand.vmem [shape: f32[2,1,64], index: 5, kind: output, shape index: {}]  }
   0x1 LB: > { %s743_s19 = sadd.s32 4294967295, %s954_s18   ;;  %p747_p0 = scmp.ge.s32.totalorder %s954_s18, 1  ;;  %s954_s18 = sphi %s988_s18, %s15_s18  }
   0x2   : > { %p185_p1 = scmp.lt.s32.totalorder %s954_s18, 3 }
   0x4   : > { %p186_p2 = pnand %p747_p0, %p185_p1 }
   0x5   : > { %v924_v0 = vld [vmem:[%s1141_s1 + $0x20] sm:$0xff] (!%p186_p2)   ;;  %v956_v1 = vmov (!%p186_p2), 0.0   ;;  %v926_v3 = vld [vmem:[%s1141_s1 + $0x28] sm:$0xff] (!%p186_p2)   ;;  %vm957_vm0 = vmmov (!%p186_p2), 0   ;;  %p209_p3 = scmp.lt.s32.totalorder (!%p186_p2), %s743_s19, 1  ;;  %vm216_vm1 = vcmask (!%p186_p2), 516096  }
   0x6   : > { %189 = sbr.rel (%p186_p2) target bundleno = 511 (0x1ff), region = 40  ;;  %842 = vmatprep.subr.bf16.mxu0 (!%p186_p2), %v956_v1  ;;  %854 = vmatprep.subr.bf16.mxu1 (!%p186_p2), %v956_v1  ;;  %v925_v2 = vld [vmem:[%s1141_s1] sm:$0xff] (!%p186_p2)   ;;  %v927_v4 = vld [vmem:[%s1141_s1 + $0x8] sm:$0xff] (!%p186_p2)   ;;  %217 = vst.msk [vmem:[#allocation2] sm:$0x1] (!%p186_p2), %vm216_vm1, %v956_v1  ;;  %v928_v5 = vld [vmem:[%s1141_s1 + $0x30] sm:$0xff] (!%p186_p2)  }
   0x7   : > { %843 = vmatpush3.bf16.msra.mxu0 (!%p186_p2), %v924_v0  ;;  %850 = vmatprep.mubr.msk.bf16.mxu0 (!%p186_p2), %vm957_vm0, %v956_v1  ;;  %218 = vst.msk [vmem:[#allocation2 + $0x2] sm:$0x1] (!%p186_p2), %vm216_vm1, %v956_v1  ;;  %v929_v6 = vld [vmem:[%s1141_s1 + $0x10] sm:$0xff] (!%p186_p2)   ;;  %v930_v9 = vld [vmem:[%s1141_s1 + $0x38] sm:$0xff] (!%p186_p2)   ;;  %vm268_vm2 = vcmask (!%p186_p2), 523264   ;;  %v932_v13 = vld [vmem:[%s1141_s1 + $0x40] sm:$0xff] (!%p186_p2)  }
   0x8   : > { %855 = vmatpush3.bf16.msra.mxu1 (!%p186_p2), %v925_v2  ;;  %844 = vmatprep.subr.bf16.mxu0 (!%p186_p2), %v956_v1  ;;  %v931_v10 = vld [vmem:[%s1141_s1 + $0x18] sm:$0xff] (!%p186_p2)   ;;  %v933_v15 = vld [vmem:[%s1141_s1 + $0x48] sm:$0xff] (!%p186_p2)   ;;  %v934_v16 = vld [vmem:[%s1141_s1 + $0x50] sm:$0xff] (!%p186_p2)  }
   0x9   : > { %856 = vmatprep.subr.bf16.mxu1 (!%p186_p2), %v956_v1  ;;  %862 = vmatprep.mubr.msk.bf16.mxu1 (!%p186_p2), %vm957_vm0, %v956_v1  ;;  %v935_v17 = vld [vmem:[%s1141_s1 + $0x58] sm:$0xff] (!%p186_p2)   ;;  %v936_v19 = vld [vmem:[%s1143_s3] sm:$0xff] (!%p186_p2)   ;;  %v938_v21 = vld [vmem:[%s1143_s3 + $0x8] sm:$0xff] (!%p186_p2)  }
   0xa   : > { %v937_v20 = vld [vmem:[%s1143_s3 + $0x20] sm:$0xff] (!%p186_p2)   ;;  %v939_v22 = vld [vmem:[%s1143_s3 + $0x28] sm:$0xff] (!%p186_p2)   ;;  %v940_v23 = vld [vmem:[%s1143_s3 + $0x10] sm:$0xff] (!%p186_p2)  }
   0xb   : > { %845 = vmatpush3.bf16.msra.mxu0 (!%p186_p2), %v926_v3  ;;  %v941_v24 = vld [vmem:[%s1143_s3 + $0x30] sm:$0xff] (!%p186_p2)   ;;  %v942_v25 = vld [vmem:[%s1143_s3 + $0x18] sm:$0xff] (!%p186_p2)   ;;  %v457_v37 = vld [vmem:[%s1142_s2] sm:$0x1] (!%p186_p2) }
   0xc   : > { %857 = vmatpush3.bf16.msra.mxu1 (!%p186_p2), %v927_v4  ;;  %846 = vmatprep.subr.bf16.mxu0 (!%p186_p2), %v956_v1  ;;  %v943_v26 = vld [vmem:[%s1143_s3 + $0x38] sm:$0xff] (!%p186_p2)   ;;  %v944_v46 = vld [vmem:[%s1143_s3 + $0x40] sm:$0xff] (!%p186_p2)   ;;  %v945_v48 = vld [vmem:[%s1143_s3 + $0x48] sm:$0xff] (!%p186_p2)  }
   0xd   : > { %s1147_s19 = smov (!%p209_p3, %s743_s19), 1  ;;  %858 = vmatprep.subr.bf16.mxu1 %v956_v1  ;;  %v946_v49 = vld [vmem:[%s1143_s3 + $0x50] sm:$0xff]   ;;  %v947_v50 = vld [vmem:[%s1143_s3 + $0x58] sm:$0xff]   ;;  %v695_v62 = vld [vmem:[%s1144_s4] sm:$0x1] }
   0xe   : > { %s211_s7 = scalar_lea.vmem %s1140_s0, %s1147_s19  ;;  %s214_s6 = scalar_lea.vmem %s1145_s5, %s1147_s19 }
   0xf   : > { %v1034_v7 = vld [vmem:[%s211_s7] sm:$0x1]  ;;  %847 = vmatpush3.bf16.msra.mxu0 %v928_v5 }
  0x10   : > { %v220_v8 = vmax.f32 %v1034_v7, 0.0  ;;  %859 = vmatpush3.bf16.msra.mxu1 %v929_v6  ;;  %848 = vmatprep.subr.bf16.mxu0 %v956_v1 }
  0x11   : > { %860 = vmatprep.subr.bf16.mxu1 %v956_v1 }
  0x12   : > { %221 = vst.msk [vmem:[#allocation2 + $0x1] sm:$0x1] %vm216_vm1, %v220_v8 }
  0x13   : > { %849 = vmatpush3.bf16.msra.mxu0 %v930_v9 }
  0x14   : > { %861 = vmatpush3.bf16.msra.mxu1 %v931_v10  ;;  %866 = vmatprep.subr.bf16.mxu0 %v956_v1 }
  0x15   : > { %878 = vmatprep.subr.bf16.mxu1 %v956_v1 }
  0x19   : > { %v222_v11 = vld [vmem:[#allocation2] sm:$0x7] }
  0x1a   : > { %v223_v12 = vpack.c.bf16 %v222_v11, %v222_v11 }
  0x1c   : > { %v242_v14 = vshrl.u32 %v223_v12, 16  ;;  %863 = vmatmul.mubr.msk.bf16.vlgmr.msra.gmra.mrb[0].mxu1 %vm268_vm2, %v223_v12  ;;  %v388_v18 = vrot.slane %v223_v12, 1 }
  0x1d   : > { %886 = vmatprep.mubr.msk.bf16.mxu1 %vm957_vm0, %v956_v1  ;;  %879 = vmatpush3.bf16.msra.mxu1 %v937_v20 }
  0x1e   : > { %851 = vmatmul.mubr.msk.bf16.vlgmr.msra.gmra.mrb[0].mxu0 %vm268_vm2, %v242_v14  ;;  %880 = vmatprep.subr.bf16.mxu1 %v956_v1 }
  0x1f   : > { %867 = vmatpush3.bf16.msra.mxu0 %v932_v13  ;;  %874 = vmatprep.mubr.msk.bf16.mxu0 %vm957_vm0, %v956_v1 }
  0x20   : > { %868 = vmatprep.subr.bf16.mxu0 %v956_v1 }
  0x21   : > { %881 = vmatpush3.bf16.msra.mxu1 %v939_v22 }
  0x22   : > { %882 = vmatprep.subr.bf16.mxu1 %v956_v1 }
  0x23   : > { %869 = vmatpush3.bf16.msra.mxu0 %v933_v15 }
  0x24   : > { %870 = vmatprep.subr.bf16.mxu0 %v956_v1 }
  0x25   : > { %883 = vmatpush3.bf16.msra.mxu1 %v941_v24 }
  0x26   : > { %884 = vmatprep.subr.bf16.mxu1 %v956_v1 }
  0x27   : > { %871 = vmatpush3.bf16.msra.mxu0 %v934_v16 }
  0x28   : > { %872 = vmatprep.subr.bf16.mxu0 %v956_v1 }
  0x29   : > { %885 = vmatpush3.bf16.msra.mxu1 %v943_v26 }
  0x2a   : > { %902 = vmatprep.subr.bf16.mxu1 %v956_v1 }
  0x2b   : > { %873 = vmatpush3.bf16.msra.mxu0 %v935_v17 }
  0x2c   : > { %890 = vmatprep.subr.bf16.mxu0 %v956_v1 }
  0x2e   : > { %875 = vmatmul.mubr.msk.bf16.vlgmr.msra.gmra.mrb[4].mxu0 %vm268_vm2, %v388_v18 }
  0x2f   : > { %898 = vmatprep.mubr.msk.bf16.mxu0 %vm957_vm0, %v956_v1  ;;  %891 = vmatpush3.bf16.msra.mxu0 %v936_v19 }
  0x30   : > { %892 = vmatprep.subr.bf16.mxu0 %v956_v1 }
  0x33   : > { %893 = vmatpush3.bf16.msra.mxu0 %v938_v21 }
  0x34   : > { %894 = vmatprep.subr.bf16.mxu0 %v956_v1 }
  0x37   : > { %895 = vmatpush3.bf16.msra.mxu0 %v940_v23 }
  0x38   : > { %896 = vmatprep.subr.bf16.mxu0 %v956_v1 }
  0x3b   : > { %897 = vmatpush3.bf16.msra.mxu0 %v942_v25 }
  0xef   : > { %v372_v27 = vpop.f32.mrb[0].mxu1 }
  0xf0   : > { %v864_v28 = vpop.f32.mrb[1].mxu1 }
  0xf1   : > { %v306_v29 = vpop.f32.mrb[0].mxu0  ;;  %v375_v30 = vpop.f32.mrb[2].mxu1 }
  0xf2   : > { %v373_v31 = vadd.f32 %v372_v27, %v306_v29  ;;  %v852_v32 = vpop.f32.mrb[1].mxu0  ;;  %v865_v33 = vpop.f32.mrb[3].mxu1 }
  0xf3   : > { %v309_v34 = vpop.f32.mrb[2].mxu0 }
  0xf4   : > { %v853_v35 = vpop.f32.mrb[3].mxu0 }
 0x101   : > { %v450_v36 = vpop.f32.mrb[4].mxu0 }
 0x102   : > { %v456_v38 = vadd.f32 %v450_v36, %v373_v31  ;;  %v876_v39 = vpop.f32.mrb[5].mxu0 }
 0x103   : > { %v453_v40 = vpop.f32.mrb[6].mxu0 }
 0x104   : > { %v458_v41 = vadd.f32 %v457_v37, %v456_v38  ;;  %v877_v42 = vpop.f32.mrb[7].mxu0 }
 0x106   : > { %v459_v43 = vmax.f32 %v458_v41, 0.0 }
 0x108   : > { %460 = vst.msk [vmem:[#allocation2 + $0x1] sm:$0x1] %vm216_vm1, %v459_v43 }
 0x10f   : > { %v461_v44 = vld [vmem:[#allocation2] sm:$0x7] }
 0x110   : > { %v462_v45 = vpack.c.bf16 %v461_v44, %v461_v44 }
 0x112   : > { %899 = vmatmul.mubr.msk.bf16.vlgmr.msra.gmra.mrb[8].mxu0 %vm268_vm2, %v462_v45  ;;  %v481_v47 = vshrl.u32 %v462_v45, 16  ;;  %v626_v51 = vrot.slane %v462_v45, 1 }
 0x114   : > { %887 = vmatmul.mubr.msk.bf16.vlgmr.msra.gmra.mrb[4].mxu1 %vm268_vm2, %v481_v47 }
 0x115   : > { %903 = vmatpush3.bf16.msra.mxu1 %v944_v46  ;;  %910 = vmatprep.mubr.msk.bf16.mxu1 %vm957_vm0, %v956_v1 }
 0x116   : > { %904 = vmatprep.subr.bf16.mxu1 %v956_v1 }
 0x119   : > { %905 = vmatpush3.bf16.msra.mxu1 %v945_v48 }
 0x11a   : > { %906 = vmatprep.subr.bf16.mxu1 %v956_v1 }
 0x11d   : > { %907 = vmatpush3.bf16.msra.mxu1 %v946_v49 }
 0x11e   : > { %908 = vmatprep.subr.bf16.mxu1 %v956_v1 }
 0x121   : > { %909 = vmatpush3.bf16.msra.mxu1 %v947_v50 }
 0x124   : > { %911 = vmatmul.mubr.msk.bf16.vlgmr.msra.gmra.mrb[8].mxu1 %vm268_vm2, %v626_v51 }
 0x1e5   : > { %v610_v52 = vpop.f32.mrb[8].mxu0 }
 0x1e6   : > { %v900_v53 = vpop.f32.mrb[9].mxu0 }
 0x1e7   : > { %v544_v54 = vpop.f32.mrb[4].mxu1  ;;  %v613_v55 = vpop.f32.mrb[10].mxu0 }
 0x1e8   : > { %v611_v56 = vadd.f32 %v610_v52, %v544_v54  ;;  %v888_v57 = vpop.f32.mrb[5].mxu1  ;;  %v901_v58 = vpop.f32.mrb[11].mxu0 }
 0x1e9   : > { %v547_v59 = vpop.f32.mrb[6].mxu1 }
 0x1ea   : > { %v889_v60 = vpop.f32.mrb[7].mxu1 }
 0x1f7   : > { %v688_v61 = vpop.f32.mrb[8].mxu1 }
 0x1f8   : > { %v694_v63 = vadd.f32 %v688_v61, %v611_v56  ;;  %v912_v0 = vpop.f32.mrb[9].mxu1 }
 0x1f9   : > { %v691_v1 = vpop.f32.mrb[10].mxu1 }
 0x1fa   : > { %v696_v2 = vadd.f32 %v695_v62, %v694_v63  ;;  %v913_v3 = vpop.f32.mrb[11].mxu1 }
 0x1fc   : > { %v697_v4 = vadd.f32 %v696_v2, %v1034_v7 }
 0x1fe   : > { %698 = vst.msk [vmem:[%s214_s6] sm:$0x1] %vm216_vm1, %v697_v4 }
 0x1ff PF: > { %s15_s18 = sadd.s32 1, %s954_s18  }
 0x200   : > { %p12_p4 = scmp.ge.s32.totalorder %s15_s18, 4  }
 0x202   :  { %14 = sbr.rel (!%p12_p4) target bundleno = 1 (0x1), region = 74 }

// kernel: seperated_impala_forward.19
= control target key start
LH: loop header
LB: loop body
LE: loop exit
PB: predicated region body
PF: predicated region fallthrough
CT: control target
= control target key end

     0   :  { %v612_v2 = vmov 0   ;;  %vm100_vm0 = vcmask 1040384   ;;  %vm96_vm1 = vcmask 531456   ;;  %s779_s0 = inlined_call_operand.vmem [shape: f32[2,65], index: 0, kind: input, shape index: {}]   ;;  %s780_s1 = inlined_call_operand.vmem [shape: bf16[65,256], index: 1, kind: input, shape index: {}]   ;;  %s781_s2 = inlined_call_operand.vmem [shape: f32[1,256], index: 2, kind: input, shape index: {}]   ;;  %s782_s3 = inlined_call_operand.vmem [shape: bf16[256,128], index: 3, kind: input, shape index: {}]   ;;  %s783_s4 = inlined_call_operand.vmem [shape: f32[1,128], index: 4, kind: input, shape index: {}]   ;;  %s784_s5 = inlined_call_operand.vmem [shape: bf16[128,2], index: 5, kind: input, shape index: {}]   ;;  %s785_s6 = inlined_call_operand.vmem [shape: f32[1,2], index: 6, kind: input, shape index: {}]   ;;  %s786_s7 = inlined_call_operand.hbm [shape: f32[2,2], index: 7, kind: output, shape index: {}]  }
   0x1   :  { %v550_v0 = vld [vmem:[%s780_s1 + $0x4] ss:$8 sps:$4 sm:$0xff]   ;;  %v552_v1 = vld [vmem:[%s780_s1] ss:$8 sps:$4 sm:$0xff]   ;;  %141 = vmatprep.mubr.bf16.mxu0 %v612_v2  ;;  %v553_v3 = vld [vmem:[%s780_s1 + $0x14] ss:$8 sps:$4 sm:$0xff]  }
   0x2   :  { %109 = vmatprep.subr.bf16.mxu0 %v550_v0  ;;  %v555_v4 = vld [vmem:[%s780_s1 + $0x10] ss:$8 sps:$4 sm:$0xff]   ;;  %v556_v5 = vld [vmem:[%s780_s1 + $0x24] ss:$8 sps:$4 sm:$0xff]   ;;  %v558_v6 = vld [vmem:[%s780_s1 + $0x20] ss:$8 sps:$4 sm:$0xff]  }
   0x3   :  { %110 = vmatpush1.bf16.msra.mxu0 %v552_v1  ;;  %v38_v7 = vld [vmem:[%s780_s1 + $0x40] sm:$0x11]  ;;  %v559_v8 = vld [vmem:[%s780_s1 + $0x34] ss:$8 sps:$4 sm:$0xff]   ;;  %v566_v12 = vld [vmem:[%s782_s3 + $0x48] sm:$0xff]   ;;  %v102_v13 = vsel %vm100_vm0, 65535, %v612_v2 }
   0x4   :  { %111 = vmatprep.subr.bf16.mxu0 %v553_v3  ;;  %v564_v9 = vld [vmem:[%s782_s3 + $0x40] sm:$0xff]   ;;  %v467_v11 = vcombine.high %v38_v7, %v38_v7  ;;  %v567_v14 = vld [vmem:[%s782_s3 + $0x8] sm:$0xff]   ;;  %v568_v15 = vld [vmem:[%s782_s3 + $0x50] sm:$0xff]   ;;  %v466_v17 = vcombine.low %v38_v7, %v38_v7 }
   0x5   :  { %v565_v10 = vld [vmem:[%s782_s3] sm:$0xff]   ;;  %495 = vmatprep.subr.bf16.mxu1 %v564_v9  ;;  %v561_v16 = vld [vmem:[%s780_s1 + $0x30] ss:$8 sps:$4 sm:$0xff]   ;;  %v574_v27 = vld [vmem:[%s782_s3 + $0x68] sm:$0xff]  }
   0x6   :  { %496 = vmatpush3.bf16.msra.mxu1 %v565_v10  ;;  %v107_v18 = vand.u32 %v467_v11, %v102_v13  ;;  %v569_v19 = vld [vmem:[%s782_s3 + $0x10] sm:$0xff]   ;;  %v570_v20 = vld [vmem:[%s782_s3 + $0x58] sm:$0xff]   ;;  %v104_v21 = vand.u32 %v466_v17, %v102_v13  ;;  %v28_v22 = vld [vmem:[%s779_s0] sm:$0x3] }
   0x7   :  { %112 = vmatpush1.bf16.msra.mxu0 %v555_v4  ;;  %497 = vmatprep.subr.bf16.mxu1 %v566_v12  ;;  %v571_v23 = vld [vmem:[%s782_s3 + $0x18] sm:$0xff]   ;;  %v29_v24 = vpack.c.bf16 %v28_v22, %v28_v22  ;;  %v572_v25 = vld [vmem:[%s782_s3 + $0x60] sm:$0xff]   ;;  %v575_v28 = vld [vmem:[%s782_s3 + $0x28] sm:$0xff]  }
   0x8   :  { %113 = vmatprep.subr.bf16.mxu0 %v556_v5  ;;  %v573_v26 = vld [vmem:[%s782_s3 + $0x20] sm:$0xff]  }
   0xa   :  { %498 = vmatpush3.bf16.msra.mxu1 %v567_v14 }
   0xb   :  { %114 = vmatpush1.bf16.msra.mxu0 %v558_v6  ;;  %499 = vmatprep.subr.bf16.mxu1 %v568_v15 }
   0xc   :  { %115 = vmatprep.subr.bf16.mxu0 %v559_v8 }
   0xe   :  { %500 = vmatpush3.bf16.msra.mxu1 %v569_v19 }
   0xf   :  { %116 = vmatpush1.bf16.msra.mxu0 %v561_v16  ;;  %501 = vmatprep.subr.bf16.mxu1 %v570_v20 }
  0x10   :  { %117 = vmatprep.subr.bf16.mxu0 %v107_v18 }
  0x12   :  { %502 = vmatpush3.bf16.msra.mxu1 %v571_v23 }
  0x13   :  { %118 = vmatpush1.bf16.msra.mxu0 %v104_v21  ;;  %503 = vmatprep.subr.bf16.mxu1 %v572_v25 }
  0x16   :  { %468 = vmatmul.mubr.msk.bf16.vlgmr.msra.gmra.mrb[0].mxu0 %vm96_vm1, %v29_v24  ;;  %504 = vmatpush3.bf16.msra.mxu1 %v573_v26 }
  0x17   :  { %505 = vmatprep.subr.bf16.mxu1 %v574_v27 }
  0x18   :  { %12 = vsyncpa [#allocation3], 0  ;;  %v576_v29 = vld [vmem:[%s782_s3 + $0x70] sm:$0xff]   ;;  %v578_v31 = vld [vmem:[%s782_s3 + $0x78] sm:$0xff]   ;;  %v613_v34 = vmov 0.0   ;;  %v41_v40 = vlaneseq  ;;  %vm614_vm2 = vmmov 0  }
  0x19   :  { %v577_v30 = vld [vmem:[%s782_s3 + $0x30] sm:$0xff]   ;;  %v579_v32 = vld [vmem:[%s782_s3 + $0x38] sm:$0xff]   ;;  %v580_v33 = vld [vmem:[%s784_s5] sm:$0xff]   ;;  %526 = vmatprep.subr.bf16.mxu0 %v613_v34  ;;  %542 = vmatprep.mubr.msk.bf16.mxu0 %vm614_vm2, %v613_v34  ;;  %vm442_vm3 = vcmask 9216  }
  0x1a   :  { %506 = vmatpush3.bf16.msra.mxu1 %v575_v28  ;;  %527 = vmatpush3.bf16.msra.mxu0 %v580_v33  ;;  %v581_v35 = vld [vmem:[%s784_s5 + $0x8] sm:$0xff]   ;;  %v582_v36 = vld [vmem:[%s784_s5 + $0x10] sm:$0xff]   ;;  %v583_v37 = vld [vmem:[%s784_s5 + $0x18] sm:$0xff]   ;;  %v42_v41 = vshrl.u32 %v41_v40, 7 }
  0x1b   :  { %507 = vmatprep.subr.bf16.mxu1 %v576_v29  ;;  %528 = vmatprep.subr.bf16.mxu0 %v613_v34  ;;  %v584_v38 = vld [vmem:[%s784_s5 + $0x20] sm:$0xff]   ;;  %v585_v39 = vld [vmem:[%s784_s5 + $0x28] sm:$0xff]   ;;  %v586_v57 = vld [vmem:[%s784_s5 + $0x30] sm:$0xff]  }
  0x1c   :  { %v43_v42 = vsub.s32 0, %v42_v41  ;;  %v39_v43 = vld [vmem:[%s781_s2] sm:$0x3]  ;;  %v47_v44 = vsub.s32 1, %v42_v41  ;;  %v587_v58 = vld [vmem:[%s784_s5 + $0x38] sm:$0xff]   ;;  %s615_s5 = smov [#allocation2]  }
  0x1d   :  { %v469_v60 = vld [vmem:[%s783_s4] ss:$0 sm:$0xff]  ;;  %s450_s23 = sshll.u32 %s615_s5, 4  ;;  %s451_s23 = int_to_ptr.vmem [resolvable:$true] %s450_s23 }
  0x1e   :  { %508 = vmatpush3.bf16.msra.mxu1 %v577_v30  ;;  %529 = vmatpush3.bf16.msra.mxu0 %v581_v35  ;;  %v44_v45 = vrot.slane %v39_v43, %v43_v42  ;;  %v48_v46 = vrot.slane %v39_v43, %v47_v44  ;;  %v486_v4 = vld [vmem:[%s785_s6] ss:$0 sm:$0xff]  ;;  %s588_s4 = scalar_lea.vmem %s451_s23, 32  ;;  %p593_p1 = scmp.lt.s32.totalorder %s451_s23, %s451_s23 }
  0x1f   :  { %509 = vmatprep.subr.bf16.mxu1 %v578_v31  ;;  %530 = vmatprep.subr.bf16.mxu0 %v613_v34  ;;  %p589_p0 = scmp.ne.s32.totalorder %s451_s23, %s588_s4  ;;  %p594_p2 = scmp.lt.s32.totalorder %s588_s4, %s588_s4 }
  0x21   :  { %p595_p3 = por %p594_p2, %p593_p1 }
  0x22   :  { %510 = vmatpush3.bf16.msra.mxu1 %v579_v32  ;;  %531 = vmatpush3.bf16.msra.mxu0 %v582_v36 }
  0x23   :  { %532 = vmatprep.subr.bf16.mxu0 %v613_v34  ;;  %p596_p4 = pnand %p595_p3, %p589_p0 }
  0x26   :  { %533 = vmatpush3.bf16.msra.mxu0 %v583_v37 }
  0x27   :  { %534 = vmatprep.subr.bf16.mxu0 %v613_v34 }
  0x2a   :  { %535 = vmatpush3.bf16.msra.mxu0 %v584_v38 }
  0x2b   :  { %536 = vmatprep.subr.bf16.mxu0 %v613_v34 }
  0x2e   :  { %537 = vmatpush3.bf16.msra.mxu0 %v585_v39 }
  0x2f   :  { %538 = vmatprep.subr.bf16.mxu0 %v613_v34 }
  0x32   :  { %539 = vmatpush3.bf16.msra.mxu0 %v586_v57 }
  0x33   :  { %540 = vmatprep.subr.bf16.mxu0 %v613_v34 }
  0x36   :  { %541 = vmatpush3.bf16.msra.mxu0 %v587_v58 }
  0xe9   :  { %v143_v47 = vpop.f32.mrb[0].mxu0 }
  0xea   :  { %v144_v48 = vadd.f32 %v143_v47, %v44_v45  ;;  %v145_v49 = vpop.f32.mrb[1].mxu0 }
  0xeb   :  { %v146_v50 = vadd.f32 %v145_v49, %v48_v46  ;;  %v147_v51 = vpop.f32.mrb[2].mxu0 }
  0xec   :  { %v150_v52 = vmax.f32 %v144_v48, 0.0  ;;  %v148_v53 = vpop.f32.mrb[3].mxu0 }
  0xed   :  { %v151_v54 = vmax.f32 %v146_v50, 0.0 }
  0xee   :  { %v152_v56 = vpack.c.bf16 %v150_v52, %v150_v52 }
  0xef   :  { %v153_v55 = vpack.c.bf16 %v151_v54, %v151_v54 }
  0xf1   :  { %321 = vmatprep.mubr.bf16.mxu1 %v153_v55 }
  0xf2   :  { %322 = vmatmul.mubr.bf16.vlgmr.msra.gmra.mrb[0].mxu1 %v152_v56 }
 0x1c5   :  { %v511_v59 = vpop.f32.mrb[0].mxu1 }
 0x1c6   :  { %v512_v61 = vpop.f32.mrb[1].mxu1 }
 0x1c7   :  { %v513_v62 = vadd.f32 %v512_v61, %v511_v59  ;;  %v514_v63 = vpop.f32.mrb[2].mxu1 }
 0x1c8   :  { %v515_v0 = vpop.f32.mrb[3].mxu1 }
 0x1c9   :  { %v324_v1 = vadd.f32 %v513_v62, %v469_v60 }
 0x1cb   :  { %v329_v2 = vmax.f32 %v324_v1, 0.0 }
 0x1cd   :  { %v330_v3 = vpack.c.bf16 %v329_v2, %v329_v2 }
 0x1cf   :  { %543 = vmatmul.mubr.bf16.vlgmr.msra.gmra.mrb[4].mxu0 %v330_v3 }
 0x2a2   :  { %v436_v5 = vpop.f32.mrb[4].mxu0 }
 0x2a3   :  { %v437_v6 = vadd.f32 %v486_v4, %v436_v5  ;;  %v544_v7 = vpop.f32.mrb[5].mxu0 }
 0x2a4   :  { %v439_v8 = vpop.f32.mrb[6].mxu0 }
 0x2a5   :  { %v545_v9 = vpop.f32.mrb[7].mxu0  ;;  %443 = vst.msk [vmem:[#allocation2] sm:$0x3] %vm442_vm3, %v437_v6 }
 0x2a6   :  { %599 = shalt.err (!%p596_p4)
}
 0x2a7   :  { %s600_s6 = scalar_lea.hbm %s786_s7, 32 }
 0x2a8   :  { %p601_p5 = scmp.ne.s32.totalorder %s786_s7, %s600_s6  ;;  %p604_p6 = scmp.lt.u32.totalorder %s600_s6, %s786_s7 }
 0x2aa   :  { %p606_p7 = pnand %p604_p6, %p601_p5 }
 0x2ac   :  { %609 = shalt.err (!%p606_p7)
}
 0x2ad   :  { %453 = dma.vmem_to_hbm [thread:$0]  %s451_s23, 32, %s786_s7, [#allocation3]  }
 0x2ae   :  { %610 = dma.done.wait [#allocation3], 32  }
 0x2af   :  { %611 = vsyncadd [#allocation3], 4294967264 }
 0x2b0   :  { %457 = vsyncpa [#allocation3], 1 }

</bundles_post_ra>
